<compile_context>
chip_gen: v5e
topology: v5e:2x2
jax: 0.10.0
libtpu: 0.0.40
codegen_flags: <defaults>
</compile_context>

<pallas_src>
import functools

import numpy as np
import jax
import jax.numpy as jnp
from jax.experimental import pallas as pl
from jax.experimental.pallas import tpu as pltpu

GATE = 128  # per-gate lane block: GRU hidden state padded to one 128-lane vreg row


# ----------------------------------------------------------------------------- fused kernel
def dqrn_kernel(x_ref,
                wih_lo_ref, whh_lo_ref, bih_lo_ref, bhh_lo_ref,
                wih_hi_ref, whh_hi_ref, bih_hi_ref, bhh_hi_ref,
                sel_ref, bc_ref, bs_ref, b1_ref, w2_ref, b2_ref,
                wc_hbm, ws_hbm, w1a_hbm, w1b_hbm,
                q_ref,
                wc_vm, ws_vm, w1a_vm, w1b_vm, dma_sem,
                *, seq_len, n_cluster, hidden_low, hidden_high):
    f32 = jnp.float32
    bf16 = jnp.bfloat16

    # -------- kick off the head-weight HBM->VMEM DMAs; they overlap the whole GRU chain --------
    cp_wc = pltpu.make_async_copy(wc_hbm, wc_vm, dma_sem.at[0])
    cp_ws = pltpu.make_async_copy(ws_hbm, ws_vm, dma_sem.at[1])
    cp_w1a = pltpu.make_async_copy(w1a_hbm, w1a_vm, dma_sem.at[2])
    cp_w1b = pltpu.make_async_copy(w1b_hbm, w1b_vm, dma_sem.at[3])
    cp_wc.start()           # small weights first (needed first by the head)
    cp_ws.start()
    cp_w1a.start()
    cp_w1b.start()

    # -------- GRU-low over time (batch = clusters); gates fused into one 3*128-lane MXU pass --------
    wih_lo = wih_lo_ref[...]        # (IN,    3*GATE)  gate g at lanes [g*128, g*128+H_low)
    bih_lo = bih_lo_ref[...]        # (1,     3*GATE)
    whh_lo = whh_lo_ref[...]        # (H_low, 3*GATE)
    bhh_lo = bhh_lo_ref[...]        # (1,     3*GATE)

    h = jnp.zeros((n_cluster, GATE), f32)             # hidden padded to 128 lanes; pad lanes stay 0
    for t in range(seq_len):                          # statically unrolled recurrence
        x_t = x_ref[t]                                # (NC, IN): leading-axis ref index, no slicing
        gi = jnp.dot(x_t, wih_lo, preferred_element_type=f32) + bih_lo          # (NC, 3*GATE)
        gh = jnp.dot(h[:, :hidden_low], whh_lo, preferred_element_type=f32) + bhh_lo
        r = jax.nn.sigmoid(gi[:, 0:GATE] + gh[:, 0:GATE])
        z = jax.nn.sigmoid(gi[:, GATE:2 * GATE] + gh[:, GATE:2 * GATE])
        n = jnp.tanh(gi[:, 2 * GATE:3 * GATE] + r * gh[:, 2 * GATE:3 * GATE])
        h = (1.0 - z) * n + z * h
    cluster_rep = h                                   # (NC, GATE), cols >= H_low are 0

    # -------- GRU-high over the cluster sequence (batch = 1); same gate fusion, input hoisted ------
    hi = jnp.dot(cluster_rep[:, :hidden_low], wih_hi_ref[...],
                 preferred_element_type=f32) + bih_hi_ref[...]                   # (NC, 3*GATE)
    whh_hi = whh_hi_ref[...]                          # (H_high, 3*GATE)
    bhh_hi = bhh_hi_ref[...]                          # (1,      3*GATE)

    hh = jnp.zeros((1, GATE), f32)
    for c in range(n_cluster):                        # statically unrolled recurrence
        hic = hi[c:c + 1]                             # (1, 3*GATE): tiny static sublane select
        gh = jnp.dot(hh[:, :hidden_high], whh_hi, preferred_element_type=f32) + bhh_hi
        r = jax.nn.sigmoid(hic[:, 0:GATE] + gh[:, 0:GATE])
        z = jax.nn.sigmoid(hic[:, GATE:2 * GATE] + gh[:, GATE:2 * GATE])
        n = jnp.tanh(hic[:, 2 * GATE:3 * GATE] + r * gh[:, 2 * GATE:3 * GATE])
        hh = (1.0 - z) * n + z * hh
    state_rep = hh                                    # (1, GATE)

    # -------- FC head: bf16 MXU operands, f32 accumulation & elementwise --------
    # Wait on each overlapped weight DMA only where that weight is first needed.
    cp_wc.wait()
    cp_ws.wait()
    cr = cluster_rep[:, :hidden_low].astype(bf16)     # (NC, H_low)
    sr = state_rep[:, :hidden_high].astype(bf16)      # (1,  H_high)
    cluster_feat = jnp.maximum(
        jnp.dot(cr, wc_vm[...], preferred_element_type=f32) + bc_ref[...], 0.0)        # (NC, 1024)
    state_feat = jnp.maximum(
        jnp.dot(sr, ws_vm[...], preferred_element_type=f32) + bs_ref[...], 0.0)        # (1, 1024)
    # pair gather+add as a one-hot selection matmul: (NA, NC) @ (NC, 1024)
    merge_cluster = jnp.dot(sel_ref[...], cluster_feat, preferred_element_type=f32)    # (NA, 1024)

    cp_w1a.wait()
    cp_w1b.wait()
    # agent_fc1 via split weights (state half computed once, broadcast over actions)
    s_part = jnp.dot(state_feat.astype(bf16), w1a_vm[...], preferred_element_type=f32)     # (1, 1024)
    c_part = jnp.dot(merge_cluster.astype(bf16), w1b_vm[...], preferred_element_type=f32)  # (NA, 1024)
    h1 = jnp.maximum(s_part + c_part + b1_ref[...], 0.0)                                   # (NA, 1024)
    # agent_fc2 as broadcast-multiply + lane reduction (avoids an N=1 MXU pass)
    q = jnp.sum(h1 * w2_ref[...], axis=-1, keepdims=True) + b2_ref[...]                    # (NA, 1)
    # softmax over actions (dim 0); exact divide (6 elements, off the critical path)
    q = q - jnp.max(q, axis=0, keepdims=True)
    e = jnp.exp(q)
    q_ref[...] = e / jnp.sum(e, axis=0, keepdims=True)


# ----------------------------------------------------------------------------- wrapper
def dqrn_forward(x3d, gru_params, head_small, head_big, *,
                 seq_len, n_cluster, hidden_low, hidden_high, n_action):
    assert hidden_low <= GATE and hidden_high <= GATE

    kernel = functools.partial(dqrn_kernel, seq_len=seq_len, n_cluster=n_cluster,
                               hidden_low=hidden_low, hidden_high=hidden_high)

    vmem_args = (x3d,) + tuple(gru_params) + tuple(head_small)
    hbm_args = tuple(head_big)            # (wc_t, ws_t, w1a_t, w1b_t): DMA'd inside the kernel
    args = vmem_args + hbm_args

    vmem_spec = pl.BlockSpec(memory_space=pltpu.MemorySpace.VMEM)
    hbm_spec = pl.BlockSpec(memory_space=pl.ANY)

    scratch_shapes = [
        pltpu.VMEM(head_big[0].shape, head_big[0].dtype),   # cluster_fc weight
        pltpu.VMEM(head_big[1].shape, head_big[1].dtype),   # state_fc weight
        pltpu.VMEM(head_big[2].shape, head_big[2].dtype),   # agent_fc1, state half
        pltpu.VMEM(head_big[3].shape, head_big[3].dtype),   # agent_fc1, cluster half
        pltpu.SemaphoreType.DMA((4,)),
    ]

    def nbytes(a):
        return int(np.prod(a.shape)) * jnp.dtype(a.dtype).itemsize

    # VMEM limit from the real footprint (scratch weight buffers + small inputs + headroom),
    # capped at 32 MiB so it is valid on v5e/v6e (128 MiB) and v7x (64 MiB physical).
    scratch_bytes = sum(nbytes(a) for a in hbm_args)
    small_bytes = sum(nbytes(a) for a in vmem_args) + n_action * 4
    vmem_limit = int(min(32 * 1024 * 1024, scratch_bytes + 2 * small_bytes + 8 * 1024 * 1024))

    return pl.pallas_call(
        kernel,
        out_shape=jax.ShapeDtypeStruct((n_action, 1), jnp.float32),
        in_specs=[vmem_spec] * len(vmem_args) + [hbm_spec] * len(hbm_args),
        out_specs=vmem_spec,
        scratch_shapes=scratch_shapes,
        compiler_params=pltpu.CompilerParams(vmem_limit_bytes=vmem_limit),
    )(*args)


# ----------------------------------------------------------------------------- gate-fusion helpers
def fuse_gate_weight(w3, h_out):
    """(3, in, H) f32 -> (in, 3*GATE) with gate g occupying lanes [g*GATE, g*GATE+H)."""
    w_np = np.asarray(w3, np.float32)
    out = np.zeros((w_np.shape[1], 3 * GATE), np.float32)
    for g in range(3):
        out[:, g * GATE:g * GATE + h_out] = w_np[g]
    return jnp.asarray(out)


def fuse_gate_bias(b3, h_out):
    """(3, 1, H) f32 -> (1, 3*GATE)."""
    b_np = np.asarray(b3, np.float32)
    out = np.zeros((1, 3 * GATE), np.float32)
    for g in range(3):
        out[:, g * GATE:g * GATE + h_out] = b_np[g]
    return jnp.asarray(out)


# ----------------------------------------------------------------------------- driver
if __name__ == "__main__":
    # Small, DQRN-consistent sizes.
    n_sample = 8            # total images
    n_cluster = 4           # clusters in the (single) partition, equal sizes
    seq_len = n_sample // n_cluster
    input_size = 16
    hidden_low = 32
    hidden_high = 32
    n_action = n_cluster * (n_cluster - 1) // 2   # 6

    key = jax.random.PRNGKey(0)
    ks = jax.random.split(key, 20)

    def init(k, shape, fan_in):
        bound = 1.0 / np.sqrt(fan_in)
        return jax.random.uniform(k, shape, jnp.float32, -bound, bound)

    # GRU params in the natural layout (leading gate axis, gate order r/z/n) for the reference.
    wih_low = init(ks[0], (3, input_size, hidden_low), input_size)
    whh_low = init(ks[1], (3, hidden_low, hidden_low), hidden_low)
    bih_low = init(ks[2], (3, 1, hidden_low), hidden_low)
    bhh_low = init(ks[3], (3, 1, hidden_low), hidden_low)
    wih_high = init(ks[4], (3, hidden_low, hidden_high), hidden_low)
    whh_high = init(ks[5], (3, hidden_high, hidden_high), hidden_high)
    bih_high = init(ks[6], (3, 1, hidden_high), hidden_high)
    bhh_high = init(ks[7], (3, 1, hidden_high), hidden_high)

    # Fused / 128-lane-padded versions consumed by the kernel (one MXU pass per gate group).
    gru_fused = (
        fuse_gate_weight(wih_low, hidden_low),    # (IN,     3*GATE)
        fuse_gate_weight(whh_low, hidden_low),    # (H_low,  3*GATE)
        fuse_gate_bias(bih_low, hidden_low),      # (1,      3*GATE)
        fuse_gate_bias(bhh_low, hidden_low),
        fuse_gate_weight(wih_high, hidden_high),  # (H_low,  3*GATE)
        fuse_gate_weight(whh_high, hidden_high),  # (H_high, 3*GATE)
        fuse_gate_bias(bih_high, hidden_high),
        fuse_gate_bias(bhh_high, hidden_high),
    )

    # FC params stored transposed (in, out); large matrices in bf16 (the head is memory-bound).
    ws_t = init(ks[8], (hidden_high, 1024), hidden_high).astype(jnp.bfloat16)   # state_fc
    bs = init(ks[9], (1, 1024), hidden_high)
    wc_t = init(ks[10], (hidden_low, 1024), hidden_low).astype(jnp.bfloat16)    # cluster_fc
    bc = init(ks[11], (1, 1024), hidden_low)
    w1a_t = init(ks[12], (1024, 1024), 2048).astype(jnp.bfloat16)               # agent_fc1, state half
    w1b_t = init(ks[13], (1024, 1024), 2048).astype(jnp.bfloat16)               # agent_fc1, cluster half
    b1 = init(ks[14], (1, 1024), 2048)
    w2_row = init(ks[15], (1, 1024), 1024)                                      # agent_fc2 weight row
    b2 = jnp.zeros((1, 1), jnp.float32)

    # Inputs: n_sample image features; partition = n_cluster clusters of seq_len consecutive images.
    images = jax.random.normal(ks[16], (n_sample, input_size), jnp.float32)
    x_low = jnp.transpose(images.reshape(n_cluster, seq_len, input_size), (1, 0, 2))  # (T, NC, IN)

    # Static pair indices (same construction as DQRN.__init__) as a one-hot selection matrix.
    row_idx, col_idx = [], []
    for i in range(n_cluster):
        for j in range(i):
            row_idx.append(i)
            col_idx.append(j)
    sel_np = np.zeros((n_action, n_cluster), np.float32)
    sel_np[np.arange(n_action), np.array(row_idx)] += 1.0
    sel_np[np.arange(n_action), np.array(col_idx)] += 1.0
    sel = jnp.asarray(sel_np)

    head_small = (sel, bc, bs, b1, w2_row, b2)
    head_big = (wc_t, ws_t, w1a_t, w1b_t)     # streamed from HBM inside the kernel (overlapped)

    # ---- Pallas forward (single fused kernel) -------------------------------
    q_table = dqrn_forward(x_low, gru_fused, head_small, head_big,
                           seq_len=seq_len, n_cluster=n_cluster,
                           hidden_low=hidden_low, hidden_high=hidden_high, n_action=n_action)
    q_table = jax.block_until_ready(q_table)

    # ---- pure-JAX reference --------------------------------------------------
    def gru_ref(x_seq, wih, whh, bih, bhh):
        T, B, _ = x_seq.shape
        H = whh.shape[1]
        h = jnp.zeros((B, H), jnp.float32)
        for t in range(T):
            gr = x_seq[t] @ wih[0] + bih[0]
            gz = x_seq[t] @ wih[1] + bih[1]
            gn = x_seq[t] @ wih[2] + bih[2]
            hr = h @ whh[0] + bhh[0]
            hz = h @ whh[1] + bhh[1]
            hn = h @ whh[2] + bhh[2]
            r = jax.nn.sigmoid(gr + hr)
            z = jax.nn.sigmoid(gz + hz)
            n = jnp.tanh(gn + r * hn)
            h = (1.0 - z) * n + z * h
        return h

    def mm_bf16(a, w_bf16):   # mimic the kernel's bf16 MXU path (f32 accumulation)
        return jnp.dot(a.astype(jnp.bfloat16).astype(jnp.float32), w_bf16.astype(jnp.float32))

    cluster_rep_r = gru_ref(x_low, wih_low, whh_low, bih_low, bhh_low)          # (NC, H_low)
    state_rep_r = gru_ref(cluster_rep_r.reshape(n_cluster, 1, hidden_low),
                          wih_high, whh_high, bih_high, bhh_high)               # (1, H_high)
    cf = jnp.maximum(mm_bf16(cluster_rep_r, wc_t) + bc, 0.0)
    sf = jnp.maximum(mm_bf16(state_rep_r, ws_t) + bs, 0.0)
    mc = sel @ cf
    h1 = jnp.maximum(mm_bf16(sf, w1a_t) + mm_bf16(mc, w1b_t) + b1, 0.0)
    q_r = jnp.sum(h1 * w2_row, axis=-1, keepdims=True) + b2
    q_r = q_r - jnp.max(q_r, axis=0, keepdims=True)
    e_r = jnp.exp(q_r)
    q_r = e_r / jnp.sum(e_r, axis=0, keepdims=True)

    np.testing.assert_allclose(np.asarray(q_table), np.asarray(q_r), rtol=1e-2, atol=1e-3)
    assert q_table.shape == (n_action, 1)
    np.testing.assert_allclose(float(jnp.sum(q_table)), 1.0, rtol=1e-3)

    print("KERNEL_OK")
</pallas_src>

<mosaic_0001>
module attributes {stable_mosaic.version = 11 : i64} {
  func.func @dqrn_kernel(%arg0: memref<2x4x16xf32, #tpu.memory_space<vmem>>, %arg1: memref<16x384xf32, #tpu.memory_space<vmem>>, %arg2: memref<32x384xf32, #tpu.memory_space<vmem>>, %arg3: memref<1x384xf32, #tpu.memory_space<vmem>>, %arg4: memref<1x384xf32, #tpu.memory_space<vmem>>, %arg5: memref<32x384xf32, #tpu.memory_space<vmem>>, %arg6: memref<32x384xf32, #tpu.memory_space<vmem>>, %arg7: memref<1x384xf32, #tpu.memory_space<vmem>>, %arg8: memref<1x384xf32, #tpu.memory_space<vmem>>, %arg9: memref<6x4xf32, #tpu.memory_space<vmem>>, %arg10: memref<1x1024xf32, #tpu.memory_space<vmem>>, %arg11: memref<1x1024xf32, #tpu.memory_space<vmem>>, %arg12: memref<1x1024xf32, #tpu.memory_space<vmem>>, %arg13: memref<1x1024xf32, #tpu.memory_space<vmem>>, %arg14: memref<1x1xf32, #tpu.memory_space<vmem>>, %arg15: memref<32x1024xbf16, #tpu.memory_space<any>>, %arg16: memref<32x1024xbf16, #tpu.memory_space<any>>, %arg17: memref<1024x1024xbf16, #tpu.memory_space<any>>, %arg18: memref<1024x1024xbf16, #tpu.memory_space<any>>, %arg19: memref<6x1xf32, #tpu.memory_space<vmem>>, %arg20: memref<32x1024xbf16, #tpu.memory_space<vmem>>, %arg21: memref<32x1024xbf16, #tpu.memory_space<vmem>>, %arg22: memref<1024x1024xbf16, #tpu.memory_space<vmem>>, %arg23: memref<1024x1024xbf16, #tpu.memory_space<vmem>>, %arg24: memref<4x!tpu.dma_semaphore, #tpu.memory_space<semaphore_mem>>) attributes {dimension_semantics = [], scalar_prefetch = 0 : i64, scratch_operands = 5 : i64, tpu.core_type = #tpu.core_type<tc>} {
    %c0_i32 = arith.constant 0 : i32
    %0 = tpu.memref_slice %arg24[%c0_i32] : memref<4x!tpu.dma_semaphore, #tpu.memory_space<semaphore_mem>> -> memref<1x!tpu.dma_semaphore, #tpu.memory_space<semaphore_mem>>
    %1 = tpu.memref_squeeze %0 : memref<1x!tpu.dma_semaphore, #tpu.memory_space<semaphore_mem>> -> memref<!tpu.dma_semaphore, #tpu.memory_space<semaphore_mem>>
    tpu.enqueue_dma source(%arg15 : memref<32x1024xbf16, #tpu.memory_space<any>>) target(%arg20 : memref<32x1024xbf16, #tpu.memory_space<vmem>>) target_semaphore(%1 : memref<!tpu.dma_semaphore, #tpu.memory_space<semaphore_mem>>)
    %c1_i32 = arith.constant 1 : i32
    %2 = tpu.memref_slice %arg24[%c1_i32] : memref<4x!tpu.dma_semaphore, #tpu.memory_space<semaphore_mem>> -> memref<1x!tpu.dma_semaphore, #tpu.memory_space<semaphore_mem>>
    %3 = tpu.memref_squeeze %2 : memref<1x!tpu.dma_semaphore, #tpu.memory_space<semaphore_mem>> -> memref<!tpu.dma_semaphore, #tpu.memory_space<semaphore_mem>>
    tpu.enqueue_dma source(%arg16 : memref<32x1024xbf16, #tpu.memory_space<any>>) target(%arg21 : memref<32x1024xbf16, #tpu.memory_space<vmem>>) target_semaphore(%3 : memref<!tpu.dma_semaphore, #tpu.memory_space<semaphore_mem>>)
    %c2_i32 = arith.constant 2 : i32
    %4 = tpu.memref_slice %arg24[%c2_i32] : memref<4x!tpu.dma_semaphore, #tpu.memory_space<semaphore_mem>> -> memref<1x!tpu.dma_semaphore, #tpu.memory_space<semaphore_mem>>
    %5 = tpu.memref_squeeze %4 : memref<1x!tpu.dma_semaphore, #tpu.memory_space<semaphore_mem>> -> memref<!tpu.dma_semaphore, #tpu.memory_space<semaphore_mem>>
    tpu.enqueue_dma source(%arg17 : memref<1024x1024xbf16, #tpu.memory_space<any>>) target(%arg22 : memref<1024x1024xbf16, #tpu.memory_space<vmem>>) target_semaphore(%5 : memref<!tpu.dma_semaphore, #tpu.memory_space<semaphore_mem>>)
    %c3_i32 = arith.constant 3 : i32
    %6 = tpu.memref_slice %arg24[%c3_i32] : memref<4x!tpu.dma_semaphore, #tpu.memory_space<semaphore_mem>> -> memref<1x!tpu.dma_semaphore, #tpu.memory_space<semaphore_mem>>
    %7 = tpu.memref_squeeze %6 : memref<1x!tpu.dma_semaphore, #tpu.memory_space<semaphore_mem>> -> memref<!tpu.dma_semaphore, #tpu.memory_space<semaphore_mem>>
    tpu.enqueue_dma source(%arg18 : memref<1024x1024xbf16, #tpu.memory_space<any>>) target(%arg23 : memref<1024x1024xbf16, #tpu.memory_space<vmem>>) target_semaphore(%7 : memref<!tpu.dma_semaphore, #tpu.memory_space<semaphore_mem>>)
    %c0 = arith.constant 0 : index
    %c0_0 = arith.constant 0 : index
    %8 = vector.load %arg1[%c0, %c0_0] : memref<16x384xf32, #tpu.memory_space<vmem>>, vector<16x384xf32>
    %c0_1 = arith.constant 0 : index
    %c0_2 = arith.constant 0 : index
    %9 = vector.load %arg3[%c0_1, %c0_2] : memref<1x384xf32, #tpu.memory_space<vmem>>, vector<1x384xf32>
    %c0_3 = arith.constant 0 : index
    %c0_4 = arith.constant 0 : index
    %10 = vector.load %arg2[%c0_3, %c0_4] : memref<32x384xf32, #tpu.memory_space<vmem>>, vector<32x384xf32>
    %c0_5 = arith.constant 0 : index
    %c0_6 = arith.constant 0 : index
    %11 = vector.load %arg4[%c0_5, %c0_6] : memref<1x384xf32, #tpu.memory_space<vmem>>, vector<1x384xf32>
    %cst = arith.constant 0.000000e+00 : f32
    %12 = vector.broadcast %cst : f32 to vector<4x128xf32>
    %c0_7 = arith.constant 0 : index
    %c0_8 = arith.constant 0 : index
    %c0_9 = arith.constant 0 : index
    %13 = vector.load %arg0[%c0_7, %c0_8, %c0_9] : memref<2x4x16xf32, #tpu.memory_space<vmem>>, vector<1x4x16xf32>
    %14 = vector.shape_cast %13 : vector<1x4x16xf32> to vector<4x16xf32>
    %cst_10 = arith.constant dense<0.000000e+00> : vector<4x384xf32>
    %15 = tpu.matmul %14, %8, %cst_10 {dimension_numbers = #tpu.dot_dimension_numbers<[1], [0], [0], [1], [0, 0, 1, 1], [], []>} : vector<4x16xf32>, vector<16x384xf32>, vector<4x384xf32> -> vector<4x384xf32>
    %16 = vector.broadcast %9 : vector<1x384xf32> to vector<4x384xf32>
    %17 = arith.addf %15, %16 : vector<4x384xf32>
    %18 = vector.extract_strided_slice %12 {offsets = [0, 0], sizes = [4, 32], strides = [1, 1]} : vector<4x128xf32> to vector<4x32xf32>
    %cst_11 = arith.constant dense<0.000000e+00> : vector<4x384xf32>
    %19 = tpu.matmul %18, %10, %cst_11 {dimension_numbers = #tpu.dot_dimension_numbers<[1], [0], [0], [1], [0, 0, 1, 1], [], []>} : vector<4x32xf32>, vector<32x384xf32>, vector<4x384xf32> -> vector<4x384xf32>
    %20 = vector.broadcast %11 : vector<1x384xf32> to vector<4x384xf32>
    %21 = arith.addf %19, %20 : vector<4x384xf32>
    %22 = vector.extract_strided_slice %17 {offsets = [0, 0], sizes = [4, 128], strides = [1, 1]} : vector<4x384xf32> to vector<4x128xf32>
    %23 = vector.extract_strided_slice %21 {offsets = [0, 0], sizes = [4, 128], strides = [1, 1]} : vector<4x384xf32> to vector<4x128xf32>
    %24 = arith.addf %22, %23 : vector<4x128xf32>
    %25 = arith.negf %24 : vector<4x128xf32>
    %26 = math.exp %25 : vector<4x128xf32>
    %cst_12 = arith.constant 1.000000e+00 : f32
    %27 = vector.broadcast %cst_12 : f32 to vector<4x128xf32>
    %28 = arith.addf %27, %26 : vector<4x128xf32>
    %29 = arith.divf %27, %28 : vector<4x128xf32>
    %30 = vector.extract_strided_slice %17 {offsets = [0, 128], sizes = [4, 128], strides = [1, 1]} : vector<4x384xf32> to vector<4x128xf32>
    %31 = vector.extract_strided_slice %21 {offsets = [0, 128], sizes = [4, 128], strides = [1, 1]} : vector<4x384xf32> to vector<4x128xf32>
    %32 = arith.addf %30, %31 : vector<4x128xf32>
    %33 = arith.negf %32 : vector<4x128xf32>
    %34 = math.exp %33 : vector<4x128xf32>
    %cst_13 = arith.constant 1.000000e+00 : f32
    %35 = vector.broadcast %cst_13 : f32 to vector<4x128xf32>
    %36 = arith.addf %35, %34 : vector<4x128xf32>
    %37 = arith.divf %35, %36 : vector<4x128xf32>
    %38 = vector.extract_strided_slice %17 {offsets = [0, 256], sizes = [4, 128], strides = [1, 1]} : vector<4x384xf32> to vector<4x128xf32>
    %39 = vector.extract_strided_slice %21 {offsets = [0, 256], sizes = [4, 128], strides = [1, 1]} : vector<4x384xf32> to vector<4x128xf32>
    %40 = arith.mulf %29, %39 : vector<4x128xf32>
    %41 = arith.addf %38, %40 : vector<4x128xf32>
    %42 = math.tanh %41 : vector<4x128xf32>
    %cst_14 = arith.constant 1.000000e+00 : f32
    %43 = vector.broadcast %cst_14 : f32 to vector<4x128xf32>
    %44 = arith.subf %43, %37 : vector<4x128xf32>
    %45 = arith.mulf %44, %42 : vector<4x128xf32>
    %46 = arith.mulf %37, %12 : vector<4x128xf32>
    %47 = arith.addf %45, %46 : vector<4x128xf32>
    %c1 = arith.constant 1 : index
    %c0_15 = arith.constant 0 : index
    %c0_16 = arith.constant 0 : index
    %48 = vector.load %arg0[%c1, %c0_15, %c0_16] : memref<2x4x16xf32, #tpu.memory_space<vmem>>, vector<1x4x16xf32>
    %49 = vector.shape_cast %48 : vector<1x4x16xf32> to vector<4x16xf32>
    %cst_17 = arith.constant dense<0.000000e+00> : vector<4x384xf32>
    %50 = tpu.matmul %49, %8, %cst_17 {dimension_numbers = #tpu.dot_dimension_numbers<[1], [0], [0], [1], [0, 0, 1, 1], [], []>} : vector<4x16xf32>, vector<16x384xf32>, vector<4x384xf32> -> vector<4x384xf32>
    %51 = vector.broadcast %9 : vector<1x384xf32> to vector<4x384xf32>
    %52 = arith.addf %50, %51 : vector<4x384xf32>
    %53 = vector.extract_strided_slice %47 {offsets = [0, 0], sizes = [4, 32], strides = [1, 1]} : vector<4x128xf32> to vector<4x32xf32>
    %cst_18 = arith.constant dense<0.000000e+00> : vector<4x384xf32>
    %54 = tpu.matmul %53, %10, %cst_18 {dimension_numbers = #tpu.dot_dimension_numbers<[1], [0], [0], [1], [0, 0, 1, 1], [], []>} : vector<4x32xf32>, vector<32x384xf32>, vector<4x384xf32> -> vector<4x384xf32>
    %55 = vector.broadcast %11 : vector<1x384xf32> to vector<4x384xf32>
    %56 = arith.addf %54, %55 : vector<4x384xf32>
    %57 = vector.extract_strided_slice %52 {offsets = [0, 0], sizes = [4, 128], strides = [1, 1]} : vector<4x384xf32> to vector<4x128xf32>
    %58 = vector.extract_strided_slice %56 {offsets = [0, 0], sizes = [4, 128], strides = [1, 1]} : vector<4x384xf32> to vector<4x128xf32>
    %59 = arith.addf %57, %58 : vector<4x128xf32>
    %60 = arith.negf %59 : vector<4x128xf32>
    %61 = math.exp %60 : vector<4x128xf32>
    %cst_19 = arith.constant 1.000000e+00 : f32
    %62 = vector.broadcast %cst_19 : f32 to vector<4x128xf32>
    %63 = arith.addf %62, %61 : vector<4x128xf32>
    %64 = arith.divf %62, %63 : vector<4x128xf32>
    %65 = vector.extract_strided_slice %52 {offsets = [0, 128], sizes = [4, 128], strides = [1, 1]} : vector<4x384xf32> to vector<4x128xf32>
    %66 = vector.extract_strided_slice %56 {offsets = [0, 128], sizes = [4, 128], strides = [1, 1]} : vector<4x384xf32> to vector<4x128xf32>
    %67 = arith.addf %65, %66 : vector<4x128xf32>
    %68 = arith.negf %67 : vector<4x128xf32>
    %69 = math.exp %68 : vector<4x128xf32>
    %cst_20 = arith.constant 1.000000e+00 : f32
    %70 = vector.broadcast %cst_20 : f32 to vector<4x128xf32>
    %71 = arith.addf %70, %69 : vector<4x128xf32>
    %72 = arith.divf %70, %71 : vector<4x128xf32>
    %73 = vector.extract_strided_slice %52 {offsets = [0, 256], sizes = [4, 128], strides = [1, 1]} : vector<4x384xf32> to vector<4x128xf32>
    %74 = vector.extract_strided_slice %56 {offsets = [0, 256], sizes = [4, 128], strides = [1, 1]} : vector<4x384xf32> to vector<4x128xf32>
    %75 = arith.mulf %64, %74 : vector<4x128xf32>
    %76 = arith.addf %73, %75 : vector<4x128xf32>
    %77 = math.tanh %76 : vector<4x128xf32>
    %cst_21 = arith.constant 1.000000e+00 : f32
    %78 = vector.broadcast %cst_21 : f32 to vector<4x128xf32>
    %79 = arith.subf %78, %72 : vector<4x128xf32>
    %80 = arith.mulf %79, %77 : vector<4x128xf32>
    %81 = arith.mulf %72, %47 : vector<4x128xf32>
    %82 = arith.addf %80, %81 : vector<4x128xf32>
    %83 = vector.extract_strided_slice %82 {offsets = [0, 0], sizes = [4, 32], strides = [1, 1]} : vector<4x128xf32> to vector<4x32xf32>
    %c0_22 = arith.constant 0 : index
    %c0_23 = arith.constant 0 : index
    %84 = vector.load %arg5[%c0_22, %c0_23] : memref<32x384xf32, #tpu.memory_space<vmem>>, vector<32x384xf32>
    %cst_24 = arith.constant dense<0.000000e+00> : vector<4x384xf32>
    %85 = tpu.matmul %83, %84, %cst_24 {dimension_numbers = #tpu.dot_dimension_numbers<[1], [0], [0], [1], [0, 0, 1, 1], [], []>} : vector<4x32xf32>, vector<32x384xf32>, vector<4x384xf32> -> vector<4x384xf32>
    %c0_25 = arith.constant 0 : index
    %c0_26 = arith.constant 0 : index
    %86 = vector.load %arg7[%c0_25, %c0_26] : memref<1x384xf32, #tpu.memory_space<vmem>>, vector<1x384xf32>
    %87 = vector.broadcast %86 : vector<1x384xf32> to vector<4x384xf32>
    %88 = arith.addf %85, %87 : vector<4x384xf32>
    %c0_27 = arith.constant 0 : index
    %c0_28 = arith.constant 0 : index
    %89 = vector.load %arg6[%c0_27, %c0_28] : memref<32x384xf32, #tpu.memory_space<vmem>>, vector<32x384xf32>
    %c0_29 = arith.constant 0 : index
    %c0_30 = arith.constant 0 : index
    %90 = vector.load %arg8[%c0_29, %c0_30] : memref<1x384xf32, #tpu.memory_space<vmem>>, vector<1x384xf32>
    %cst_31 = arith.constant 0.000000e+00 : f32
    %91 = vector.broadcast %cst_31 : f32 to vector<1x128xf32>
    %92 = vector.extract_strided_slice %88 {offsets = [0, 0], sizes = [1, 384], strides = [1, 1]} : vector<4x384xf32> to vector<1x384xf32>
    %93 = vector.extract_strided_slice %91 {offsets = [0, 0], sizes = [1, 32], strides = [1, 1]} : vector<1x128xf32> to vector<1x32xf32>
    %cst_32 = arith.constant dense<0.000000e+00> : vector<1x384xf32>
    %94 = tpu.matmul %93, %89, %cst_32 {dimension_numbers = #tpu.dot_dimension_numbers<[1], [0], [0], [1], [0, 0, 1, 1], [], []>} : vector<1x32xf32>, vector<32x384xf32>, vector<1x384xf32> -> vector<1x384xf32>
    %95 = arith.addf %94, %90 : vector<1x384xf32>
    %96 = vector.extract_strided_slice %92 {offsets = [0, 0], sizes = [1, 128], strides = [1, 1]} : vector<1x384xf32> to vector<1x128xf32>
    %97 = vector.extract_strided_slice %95 {offsets = [0, 0], sizes = [1, 128], strides = [1, 1]} : vector<1x384xf32> to vector<1x128xf32>
    %98 = arith.addf %96, %97 : vector<1x128xf32>
    %99 = arith.negf %98 : vector<1x128xf32>
    %100 = math.exp %99 : vector<1x128xf32>
    %cst_33 = arith.constant 1.000000e+00 : f32
    %101 = vector.broadcast %cst_33 : f32 to vector<1x128xf32>
    %102 = arith.addf %101, %100 : vector<1x128xf32>
    %103 = arith.divf %101, %102 : vector<1x128xf32>
    %104 = vector.extract_strided_slice %92 {offsets = [0, 128], sizes = [1, 128], strides = [1, 1]} : vector<1x384xf32> to vector<1x128xf32>
    %105 = vector.extract_strided_slice %95 {offsets = [0, 128], sizes = [1, 128], strides = [1, 1]} : vector<1x384xf32> to vector<1x128xf32>
    %106 = arith.addf %104, %105 : vector<1x128xf32>
    %107 = arith.negf %106 : vector<1x128xf32>
    %108 = math.exp %107 : vector<1x128xf32>
    %cst_34 = arith.constant 1.000000e+00 : f32
    %109 = vector.broadcast %cst_34 : f32 to vector<1x128xf32>
    %110 = arith.addf %109, %108 : vector<1x128xf32>
    %111 = arith.divf %109, %110 : vector<1x128xf32>
    %112 = vector.extract_strided_slice %92 {offsets = [0, 256], sizes = [1, 128], strides = [1, 1]} : vector<1x384xf32> to vector<1x128xf32>
    %113 = vector.extract_strided_slice %95 {offsets = [0, 256], sizes = [1, 128], strides = [1, 1]} : vector<1x384xf32> to vector<1x128xf32>
    %114 = arith.mulf %103, %113 : vector<1x128xf32>
    %115 = arith.addf %112, %114 : vector<1x128xf32>
    %116 = math.tanh %115 : vector<1x128xf32>
    %cst_35 = arith.constant 1.000000e+00 : f32
    %117 = vector.broadcast %cst_35 : f32 to vector<1x128xf32>
    %118 = arith.subf %117, %111 : vector<1x128xf32>
    %119 = arith.mulf %118, %116 : vector<1x128xf32>
    %120 = arith.mulf %111, %91 : vector<1x128xf32>
    %121 = arith.addf %119, %120 : vector<1x128xf32>
    %122 = vector.extract_strided_slice %88 {offsets = [1, 0], sizes = [1, 384], strides = [1, 1]} : vector<4x384xf32> to vector<1x384xf32>
    %123 = vector.extract_strided_slice %121 {offsets = [0, 0], sizes = [1, 32], strides = [1, 1]} : vector<1x128xf32> to vector<1x32xf32>
    %cst_36 = arith.constant dense<0.000000e+00> : vector<1x384xf32>
    %124 = tpu.matmul %123, %89, %cst_36 {dimension_numbers = #tpu.dot_dimension_numbers<[1], [0], [0], [1], [0, 0, 1, 1], [], []>} : vector<1x32xf32>, vector<32x384xf32>, vector<1x384xf32> -> vector<1x384xf32>
    %125 = arith.addf %124, %90 : vector<1x384xf32>
    %126 = vector.extract_strided_slice %122 {offsets = [0, 0], sizes = [1, 128], strides = [1, 1]} : vector<1x384xf32> to vector<1x128xf32>
    %127 = vector.extract_strided_slice %125 {offsets = [0, 0], sizes = [1, 128], strides = [1, 1]} : vector<1x384xf32> to vector<1x128xf32>
    %128 = arith.addf %126, %127 : vector<1x128xf32>
    %129 = arith.negf %128 : vector<1x128xf32>
    %130 = math.exp %129 : vector<1x128xf32>
    %cst_37 = arith.constant 1.000000e+00 : f32
    %131 = vector.broadcast %cst_37 : f32 to vector<1x128xf32>
    %132 = arith.addf %131, %130 : vector<1x128xf32>
    %133 = arith.divf %131, %132 : vector<1x128xf32>
    %134 = vector.extract_strided_slice %122 {offsets = [0, 128], sizes = [1, 128], strides = [1, 1]} : vector<1x384xf32> to vector<1x128xf32>
    %135 = vector.extract_strided_slice %125 {offsets = [0, 128], sizes = [1, 128], strides = [1, 1]} : vector<1x384xf32> to vector<1x128xf32>
    %136 = arith.addf %134, %135 : vector<1x128xf32>
    %137 = arith.negf %136 : vector<1x128xf32>
    %138 = math.exp %137 : vector<1x128xf32>
    %cst_38 = arith.constant 1.000000e+00 : f32
    %139 = vector.broadcast %cst_38 : f32 to vector<1x128xf32>
    %140 = arith.addf %139, %138 : vector<1x128xf32>
    %141 = arith.divf %139, %140 : vector<1x128xf32>
    %142 = vector.extract_strided_slice %122 {offsets = [0, 256], sizes = [1, 128], strides = [1, 1]} : vector<1x384xf32> to vector<1x128xf32>
    %143 = vector.extract_strided_slice %125 {offsets = [0, 256], sizes = [1, 128], strides = [1, 1]} : vector<1x384xf32> to vector<1x128xf32>
    %144 = arith.mulf %133, %143 : vector<1x128xf32>
    %145 = arith.addf %142, %144 : vector<1x128xf32>
    %146 = math.tanh %145 : vector<1x128xf32>
    %cst_39 = arith.constant 1.000000e+00 : f32
    %147 = vector.broadcast %cst_39 : f32 to vector<1x128xf32>
    %148 = arith.subf %147, %141 : vector<1x128xf32>
    %149 = arith.mulf %148, %146 : vector<1x128xf32>
    %150 = arith.mulf %141, %121 : vector<1x128xf32>
    %151 = arith.addf %149, %150 : vector<1x128xf32>
    %152 = vector.extract_strided_slice %88 {offsets = [2, 0], sizes = [1, 384], strides = [1, 1]} : vector<4x384xf32> to vector<1x384xf32>
    %153 = vector.extract_strided_slice %151 {offsets = [0, 0], sizes = [1, 32], strides = [1, 1]} : vector<1x128xf32> to vector<1x32xf32>
    %cst_40 = arith.constant dense<0.000000e+00> : vector<1x384xf32>
    %154 = tpu.matmul %153, %89, %cst_40 {dimension_numbers = #tpu.dot_dimension_numbers<[1], [0], [0], [1], [0, 0, 1, 1], [], []>} : vector<1x32xf32>, vector<32x384xf32>, vector<1x384xf32> -> vector<1x384xf32>
    %155 = arith.addf %154, %90 : vector<1x384xf32>
    %156 = vector.extract_strided_slice %152 {offsets = [0, 0], sizes = [1, 128], strides = [1, 1]} : vector<1x384xf32> to vector<1x128xf32>
    %157 = vector.extract_strided_slice %155 {offsets = [0, 0], sizes = [1, 128], strides = [1, 1]} : vector<1x384xf32> to vector<1x128xf32>
    %158 = arith.addf %156, %157 : vector<1x128xf32>
    %159 = arith.negf %158 : vector<1x128xf32>
    %160 = math.exp %159 : vector<1x128xf32>
    %cst_41 = arith.constant 1.000000e+00 : f32
    %161 = vector.broadcast %cst_41 : f32 to vector<1x128xf32>
    %162 = arith.addf %161, %160 : vector<1x128xf32>
    %163 = arith.divf %161, %162 : vector<1x128xf32>
    %164 = vector.extract_strided_slice %152 {offsets = [0, 128], sizes = [1, 128], strides = [1, 1]} : vector<1x384xf32> to vector<1x128xf32>
    %165 = vector.extract_strided_slice %155 {offsets = [0, 128], sizes = [1, 128], strides = [1, 1]} : vector<1x384xf32> to vector<1x128xf32>
    %166 = arith.addf %164, %165 : vector<1x128xf32>
    %167 = arith.negf %166 : vector<1x128xf32>
    %168 = math.exp %167 : vector<1x128xf32>
    %cst_42 = arith.constant 1.000000e+00 : f32
    %169 = vector.broadcast %cst_42 : f32 to vector<1x128xf32>
    %170 = arith.addf %169, %168 : vector<1x128xf32>
    %171 = arith.divf %169, %170 : vector<1x128xf32>
    %172 = vector.extract_strided_slice %152 {offsets = [0, 256], sizes = [1, 128], strides = [1, 1]} : vector<1x384xf32> to vector<1x128xf32>
    %173 = vector.extract_strided_slice %155 {offsets = [0, 256], sizes = [1, 128], strides = [1, 1]} : vector<1x384xf32> to vector<1x128xf32>
    %174 = arith.mulf %163, %173 : vector<1x128xf32>
    %175 = arith.addf %172, %174 : vector<1x128xf32>
    %176 = math.tanh %175 : vector<1x128xf32>
    %cst_43 = arith.constant 1.000000e+00 : f32
    %177 = vector.broadcast %cst_43 : f32 to vector<1x128xf32>
    %178 = arith.subf %177, %171 : vector<1x128xf32>
    %179 = arith.mulf %178, %176 : vector<1x128xf32>
    %180 = arith.mulf %171, %151 : vector<1x128xf32>
    %181 = arith.addf %179, %180 : vector<1x128xf32>
    %182 = vector.extract_strided_slice %88 {offsets = [3, 0], sizes = [1, 384], strides = [1, 1]} : vector<4x384xf32> to vector<1x384xf32>
    %183 = vector.extract_strided_slice %181 {offsets = [0, 0], sizes = [1, 32], strides = [1, 1]} : vector<1x128xf32> to vector<1x32xf32>
    %cst_44 = arith.constant dense<0.000000e+00> : vector<1x384xf32>
    %184 = tpu.matmul %183, %89, %cst_44 {dimension_numbers = #tpu.dot_dimension_numbers<[1], [0], [0], [1], [0, 0, 1, 1], [], []>} : vector<1x32xf32>, vector<32x384xf32>, vector<1x384xf32> -> vector<1x384xf32>
    %185 = arith.addf %184, %90 : vector<1x384xf32>
    %186 = vector.extract_strided_slice %182 {offsets = [0, 0], sizes = [1, 128], strides = [1, 1]} : vector<1x384xf32> to vector<1x128xf32>
    %187 = vector.extract_strided_slice %185 {offsets = [0, 0], sizes = [1, 128], strides = [1, 1]} : vector<1x384xf32> to vector<1x128xf32>
    %188 = arith.addf %186, %187 : vector<1x128xf32>
    %189 = arith.negf %188 : vector<1x128xf32>
    %190 = math.exp %189 : vector<1x128xf32>
    %cst_45 = arith.constant 1.000000e+00 : f32
    %191 = vector.broadcast %cst_45 : f32 to vector<1x128xf32>
    %192 = arith.addf %191, %190 : vector<1x128xf32>
    %193 = arith.divf %191, %192 : vector<1x128xf32>
    %194 = vector.extract_strided_slice %182 {offsets = [0, 128], sizes = [1, 128], strides = [1, 1]} : vector<1x384xf32> to vector<1x128xf32>
    %195 = vector.extract_strided_slice %185 {offsets = [0, 128], sizes = [1, 128], strides = [1, 1]} : vector<1x384xf32> to vector<1x128xf32>
    %196 = arith.addf %194, %195 : vector<1x128xf32>
    %197 = arith.negf %196 : vector<1x128xf32>
    %198 = math.exp %197 : vector<1x128xf32>
    %cst_46 = arith.constant 1.000000e+00 : f32
    %199 = vector.broadcast %cst_46 : f32 to vector<1x128xf32>
    %200 = arith.addf %199, %198 : vector<1x128xf32>
    %201 = arith.divf %199, %200 : vector<1x128xf32>
    %202 = vector.extract_strided_slice %182 {offsets = [0, 256], sizes = [1, 128], strides = [1, 1]} : vector<1x384xf32> to vector<1x128xf32>
    %203 = vector.extract_strided_slice %185 {offsets = [0, 256], sizes = [1, 128], strides = [1, 1]} : vector<1x384xf32> to vector<1x128xf32>
    %204 = arith.mulf %193, %203 : vector<1x128xf32>
    %205 = arith.addf %202, %204 : vector<1x128xf32>
    %206 = math.tanh %205 : vector<1x128xf32>
    %cst_47 = arith.constant 1.000000e+00 : f32
    %207 = vector.broadcast %cst_47 : f32 to vector<1x128xf32>
    %208 = arith.subf %207, %201 : vector<1x128xf32>
    %209 = arith.mulf %208, %206 : vector<1x128xf32>
    %210 = arith.mulf %201, %181 : vector<1x128xf32>
    %211 = arith.addf %209, %210 : vector<1x128xf32>
    %c0_i32_48 = arith.constant 0 : i32
    %212 = tpu.memref_slice %arg24[%c0_i32_48] : memref<4x!tpu.dma_semaphore, #tpu.memory_space<semaphore_mem>> -> memref<1x!tpu.dma_semaphore, #tpu.memory_space<semaphore_mem>>
    %213 = tpu.memref_squeeze %212 : memref<1x!tpu.dma_semaphore, #tpu.memory_space<semaphore_mem>> -> memref<!tpu.dma_semaphore, #tpu.memory_space<semaphore_mem>>
    tpu.wait_dma2 semaphore(%213 : memref<!tpu.dma_semaphore, #tpu.memory_space<semaphore_mem>>) src(%arg15 : memref<32x1024xbf16, #tpu.memory_space<any>>) dst(%arg20 : memref<32x1024xbf16, #tpu.memory_space<vmem>>)
    %c1_i32_49 = arith.constant 1 : i32
    %214 = tpu.memref_slice %arg24[%c1_i32_49] : memref<4x!tpu.dma_semaphore, #tpu.memory_space<semaphore_mem>> -> memref<1x!tpu.dma_semaphore, #tpu.memory_space<semaphore_mem>>
    %215 = tpu.memref_squeeze %214 : memref<1x!tpu.dma_semaphore, #tpu.memory_space<semaphore_mem>> -> memref<!tpu.dma_semaphore, #tpu.memory_space<semaphore_mem>>
    tpu.wait_dma2 semaphore(%215 : memref<!tpu.dma_semaphore, #tpu.memory_space<semaphore_mem>>) src(%arg16 : memref<32x1024xbf16, #tpu.memory_space<any>>) dst(%arg21 : memref<32x1024xbf16, #tpu.memory_space<vmem>>)
    %216 = vector.extract_strided_slice %82 {offsets = [0, 0], sizes = [4, 32], strides = [1, 1]} : vector<4x128xf32> to vector<4x32xf32>
    %217 = arith.truncf %216 : vector<4x32xf32> to vector<4x32xbf16>
    %218 = vector.extract_strided_slice %211 {offsets = [0, 0], sizes = [1, 32], strides = [1, 1]} : vector<1x128xf32> to vector<1x32xf32>
    %219 = arith.truncf %218 : vector<1x32xf32> to vector<1x32xbf16>
    %c0_50 = arith.constant 0 : index
    %c0_51 = arith.constant 0 : index
    %220 = vector.load %arg20[%c0_50, %c0_51] : memref<32x1024xbf16, #tpu.memory_space<vmem>>, vector<32x1024xbf16>
    %cst_52 = arith.constant dense<0.000000e+00> : vector<4x1024xf32>
    %221 = tpu.matmul %217, %220, %cst_52 {dimension_numbers = #tpu.dot_dimension_numbers<[1], [0], [0], [1], [0, 0, 1, 1], [], []>} : vector<4x32xbf16>, vector<32x1024xbf16>, vector<4x1024xf32> -> vector<4x1024xf32>
    %c0_53 = arith.constant 0 : index
    %c0_54 = arith.constant 0 : index
    %222 = vector.load %arg10[%c0_53, %c0_54] : memref<1x1024xf32, #tpu.memory_space<vmem>>, vector<1x1024xf32>
    %223 = vector.broadcast %222 : vector<1x1024xf32> to vector<4x1024xf32>
    %224 = arith.addf %221, %223 : vector<4x1024xf32>
    %cst_55 = arith.constant 0.000000e+00 : f32
    %225 = vector.broadcast %cst_55 : f32 to vector<4x1024xf32>
    %226 = arith.maximumf %224, %225 : vector<4x1024xf32>
    %c0_56 = arith.constant 0 : index
    %c0_57 = arith.constant 0 : index
    %227 = vector.load %arg21[%c0_56, %c0_57] : memref<32x1024xbf16, #tpu.memory_space<vmem>>, vector<32x1024xbf16>
    %cst_58 = arith.constant dense<0.000000e+00> : vector<1x1024xf32>
    %228 = tpu.matmul %219, %227, %cst_58 {dimension_numbers = #tpu.dot_dimension_numbers<[1], [0], [0], [1], [0, 0, 1, 1], [], []>} : vector<1x32xbf16>, vector<32x1024xbf16>, vector<1x1024xf32> -> vector<1x1024xf32>
    %c0_59 = arith.constant 0 : index
    %c0_60 = arith.constant 0 : index
    %229 = vector.load %arg11[%c0_59, %c0_60] : memref<1x1024xf32, #tpu.memory_space<vmem>>, vector<1x1024xf32>
    %230 = arith.addf %228, %229 : vector<1x1024xf32>
    %cst_61 = arith.constant 0.000000e+00 : f32
    %231 = vector.broadcast %cst_61 : f32 to vector<1x1024xf32>
    %232 = arith.maximumf %230, %231 : vector<1x1024xf32>
    %c0_62 = arith.constant 0 : index
    %c0_63 = arith.constant 0 : index
    %233 = vector.load %arg9[%c0_62, %c0_63] : memref<6x4xf32, #tpu.memory_space<vmem>>, vector<6x4xf32>
    %cst_64 = arith.constant dense<0.000000e+00> : vector<6x1024xf32>
    %234 = tpu.matmul %233, %226, %cst_64 {dimension_numbers = #tpu.dot_dimension_numbers<[1], [0], [0], [1], [0, 0, 1, 1], [], []>} : vector<6x4xf32>, vector<4x1024xf32>, vector<6x1024xf32> -> vector<6x1024xf32>
    %c2_i32_65 = arith.constant 2 : i32
    %235 = tpu.memref_slice %arg24[%c2_i32_65] : memref<4x!tpu.dma_semaphore, #tpu.memory_space<semaphore_mem>> -> memref<1x!tpu.dma_semaphore, #tpu.memory_space<semaphore_mem>>
    %236 = tpu.memref_squeeze %235 : memref<1x!tpu.dma_semaphore, #tpu.memory_space<semaphore_mem>> -> memref<!tpu.dma_semaphore, #tpu.memory_space<semaphore_mem>>
    tpu.wait_dma2 semaphore(%236 : memref<!tpu.dma_semaphore, #tpu.memory_space<semaphore_mem>>) src(%arg17 : memref<1024x1024xbf16, #tpu.memory_space<any>>) dst(%arg22 : memref<1024x1024xbf16, #tpu.memory_space<vmem>>)
    %c3_i32_66 = arith.constant 3 : i32
    %237 = tpu.memref_slice %arg24[%c3_i32_66] : memref<4x!tpu.dma_semaphore, #tpu.memory_space<semaphore_mem>> -> memref<1x!tpu.dma_semaphore, #tpu.memory_space<semaphore_mem>>
    %238 = tpu.memref_squeeze %237 : memref<1x!tpu.dma_semaphore, #tpu.memory_space<semaphore_mem>> -> memref<!tpu.dma_semaphore, #tpu.memory_space<semaphore_mem>>
    tpu.wait_dma2 semaphore(%238 : memref<!tpu.dma_semaphore, #tpu.memory_space<semaphore_mem>>) src(%arg18 : memref<1024x1024xbf16, #tpu.memory_space<any>>) dst(%arg23 : memref<1024x1024xbf16, #tpu.memory_space<vmem>>)
    %239 = arith.truncf %232 : vector<1x1024xf32> to vector<1x1024xbf16>
    %c0_67 = arith.constant 0 : index
    %c0_68 = arith.constant 0 : index
    %240 = vector.load %arg22[%c0_67, %c0_68] : memref<1024x1024xbf16, #tpu.memory_space<vmem>>, vector<1024x1024xbf16>
    %cst_69 = arith.constant dense<0.000000e+00> : vector<1x1024xf32>
    %241 = tpu.matmul %239, %240, %cst_69 {dimension_numbers = #tpu.dot_dimension_numbers<[1], [0], [0], [1], [0, 0, 1, 1], [], []>} : vector<1x1024xbf16>, vector<1024x1024xbf16>, vector<1x1024xf32> -> vector<1x1024xf32>
    %242 = arith.truncf %234 : vector<6x1024xf32> to vector<6x1024xbf16>
    %c0_70 = arith.constant 0 : index
    %c0_71 = arith.constant 0 : index
    %243 = vector.load %arg23[%c0_70, %c0_71] : memref<1024x1024xbf16, #tpu.memory_space<vmem>>, vector<1024x1024xbf16>
    %cst_72 = arith.constant dense<0.000000e+00> : vector<6x1024xf32>
    %244 = tpu.matmul %242, %243, %cst_72 {dimension_numbers = #tpu.dot_dimension_numbers<[1], [0], [0], [1], [0, 0, 1, 1], [], []>} : vector<6x1024xbf16>, vector<1024x1024xbf16>, vector<6x1024xf32> -> vector<6x1024xf32>
    %245 = vector.broadcast %241 : vector<1x1024xf32> to vector<6x1024xf32>
    %246 = arith.addf %245, %244 : vector<6x1024xf32>
    %c0_73 = arith.constant 0 : index
    %c0_74 = arith.constant 0 : index
    %247 = vector.load %arg12[%c0_73, %c0_74] : memref<1x1024xf32, #tpu.memory_space<vmem>>, vector<1x1024xf32>
    %248 = vector.broadcast %247 : vector<1x1024xf32> to vector<6x1024xf32>
    %249 = arith.addf %246, %248 : vector<6x1024xf32>
    %cst_75 = arith.constant 0.000000e+00 : f32
    %250 = vector.broadcast %cst_75 : f32 to vector<6x1024xf32>
    %251 = arith.maximumf %249, %250 : vector<6x1024xf32>
    %c0_76 = arith.constant 0 : index
    %c0_77 = arith.constant 0 : index
    %252 = vector.load %arg13[%c0_76, %c0_77] : memref<1x1024xf32, #tpu.memory_space<vmem>>, vector<1x1024xf32>
    %253 = vector.broadcast %252 : vector<1x1024xf32> to vector<6x1024xf32>
    %254 = arith.mulf %251, %253 : vector<6x1024xf32>
    %cst_78 = arith.constant dense<0.000000e+00> : vector<6xf32>
    %255 = vector.multi_reduction <add>, %254, %cst_78 [1] : vector<6x1024xf32> to vector<6xf32>
    %256 = vector.shape_cast %255 : vector<6xf32> to vector<6x1xf32>
    %c0_79 = arith.constant 0 : index
    %c0_80 = arith.constant 0 : index
    %257 = vector.load %arg14[%c0_79, %c0_80] : memref<1x1xf32, #tpu.memory_space<vmem>>, vector<1x1xf32>
    %258 = vector.broadcast %257 : vector<1x1xf32> to vector<6x1xf32>
    %259 = arith.addf %256, %258 : vector<6x1xf32>
    %cst_81 = arith.constant dense<0xFF800000> : vector<1xf32>
    %260 = vector.multi_reduction <maximumf>, %259, %cst_81 [0] : vector<6x1xf32> to vector<1xf32>
    %261 = vector.shape_cast %260 : vector<1xf32> to vector<1x1xf32>
    %262 = vector.broadcast %261 : vector<1x1xf32> to vector<6x1xf32>
    %263 = arith.subf %259, %262 : vector<6x1xf32>
    %264 = math.exp %263 : vector<6x1xf32>
    %cst_82 = arith.constant dense<0.000000e+00> : vector<1xf32>
    %265 = vector.multi_reduction <add>, %264, %cst_82 [0] : vector<6x1xf32> to vector<1xf32>
    %266 = vector.shape_cast %265 : vector<1xf32> to vector<1x1xf32>
    %267 = vector.broadcast %266 : vector<1x1xf32> to vector<6x1xf32>
    %268 = arith.divf %264, %267 : vector<6x1xf32>
    %c0_83 = arith.constant 0 : index
    %c0_84 = arith.constant 0 : index
    %269 = vector.load %arg19[%c0_83, %c0_84] : memref<6x1xf32, #tpu.memory_space<vmem>>, vector<6x1xf32>
    tpu.vector_store %arg19[%c0_83, %c0_84], %268 {strides = array<i32>} : memref<6x1xf32, #tpu.memory_space<vmem>>, vector<6x1xf32>,
    return
  }
}

</mosaic_0001>

<bundles_post_ra>
// kernel: tpu_custom_call.1
= control target key start
LH: loop header
LB: loop body
LE: loop exit
PB: predicated region body
PF: predicated region fallthrough
CT: control target
= control target key end

     0   :  { %s16574_s0 = inlined_call_operand.hbm [shape: f32[2,4,16], index: 0, kind: input, shape index: {}]   ;;  %s16575_s1 = inlined_call_operand.hbm [shape: f32[16,384], index: 1, kind: input, shape index: {}]   ;;  %s16576_s2 = inlined_call_operand.hbm [shape: f32[32,384], index: 2, kind: input, shape index: {}]   ;;  %s16577_s3 = inlined_call_operand.hbm [shape: f32[1,384], index: 3, kind: input, shape index: {}]   ;;  %s16578_s4 = inlined_call_operand.hbm [shape: f32[1,384], index: 4, kind: input, shape index: {}]   ;;  %s16579_s5 = inlined_call_operand.hbm [shape: f32[32,384], index: 5, kind: input, shape index: {}]   ;;  %s16580_s6 = inlined_call_operand.hbm [shape: f32[32,384], index: 6, kind: input, shape index: {}]   ;;  %s16581_s7 = inlined_call_operand.hbm [shape: f32[1,384], index: 7, kind: input, shape index: {}]   ;;  %s16582_s8 = inlined_call_operand.hbm [shape: f32[1,384], index: 8, kind: input, shape index: {}]   ;;  %s16583_s9 = inlined_call_operand.vmem [shape: f32[6,4], index: 9, kind: input, shape index: {}]   ;;  %s16584_s10 = inlined_call_operand.hbm [shape: f32[1,1024], index: 10, kind: input, shape index: {}]   ;;  %s16585_s11 = inlined_call_operand.hbm [shape: f32[1,1024], index: 11, kind: input, shape index: {}]   ;;  %s16586_s12 = inlined_call_operand.hbm [shape: f32[1,1024], index: 12, kind: input, shape index: {}]   ;;  %s16587_s13 = inlined_call_operand.hbm [shape: f32[1,1024], index: 13, kind: input, shape index: {}]   ;;  %s16588_s14 = inlined_call_operand.<no memory space> [shape: f32[1,1], index: 14, kind: input, shape index: {}]   ;;  %s16589_s15 = inlined_call_operand.hbm [shape: bf16[32,1024], index: 15, kind: input, shape index: {}]   ;;  %s16590_s16 = inlined_call_operand.hbm [shape: bf16[32,1024], index: 16, kind: input, shape index: {}]   ;;  %s16591_s17 = inlined_call_operand.hbm [shape: bf16[1024,1024], index: 17, kind: input, shape index: {}]   ;;  %s16592_s18 = inlined_call_operand.hbm [shape: bf16[1024,1024], index: 18, kind: input, shape index: {}]   ;;  %s16593_s19 = inlined_call_operand.vmem [shape: f32[6,1], index: 19, kind: output, shape index: {}]  }
   0x1   :  { %16594 = sst [smem:[#allocation49_spill]] %s16574_s0  ;;  %v24_v0 = vstv %s16588_s14 }
   0x2   :  { %16595 = sst [smem:[#allocation50_spill]] %s16575_s1  ;;  %25 = vst [vmem:[#allocation7] sm:$0x1] %v24_v0 }
   0x3   :  { %16596 = sst [smem:[#allocation51_spill]] %s16576_s2 }
   0x4   :  { %16597 = sst [smem:[#allocation52_spill]] %s16577_s3 }
   0x5   :  { %26 = vsyncpa [#allocation9], 0 }
   0x6   :  { %27 = vsyncpa [#allocation11], 0 }
   0x7   :  { %28 = vsyncpa [#allocation14], 0 }
   0x8   :  { %29 = vsyncpa [#allocation17], 0 }
   0x9   :  { %30 = vsyncpa [#allocation20], 0 }
   0xa   :  { %31 = vsyncpa [#allocation23], 0  ;;  %s16598_s1 = sld [smem:[#allocation50_spill]] }
  0x10   :  { %s50_s22 = sshll.u32 %s16598_s1, 4  ;;  %s51_s22 = int_to_ptr.hbm [resolvable:$true] %s50_s22 }
  0x11   :  { %32 = vsyncpa [#allocation26], 0  ;;  %s15789_s2 = smov [#allocation10]   ;;  %s16599_s3 = sld [smem:[#allocation52_spill]] }
  0x12   :  { %s52_s23 = sshll.u32 %s15789_s2, 4  ;;  %s15790_s26 = smov 384   ;;  %s53_s23 = int_to_ptr.vmem [resolvable:$true] %s52_s23 }
  0x13   :  { %s15791_s27 = smov 24   ;;  %s15792_s28 = smov [#allocation13]  }
  0x14   :  { %58 = dma.hbm_to_vmem [thread:$0]  %s51_s22, 768, %s53_s23, [#allocation11], %s15790_s26, %s15790_s26, %s15791_s27  }
  0x15   :  { %s79_s29 = sshll.u32 %s15792_s28, 4  ;;  %s98_s20 = sshll.u32 %s16579_s5, 4  ;;  %s80_s29 = int_to_ptr.vmem [resolvable:$true] %s79_s29  ;;  %s99_s20 = int_to_ptr.hbm [resolvable:$true] %s98_s20 }
  0x16   :  { %s125_s2 = sshll.u32 %s16581_s7, 4  ;;  %s15793_s24 = smov [#allocation16]   ;;  %s126_s2 = int_to_ptr.hbm [resolvable:$true] %s125_s2 }
  0x17   :  { %s77_s14 = sshll.u32 %s16599_s3, 4  ;;  %s100_s25 = sshll.u32 %s15793_s24, 4  ;;  %s78_s14 = int_to_ptr.hbm [resolvable:$true] %s77_s14  ;;  %s101_s25 = int_to_ptr.vmem [resolvable:$true] %s100_s25 }
  0x18   :  { %82 = dma.hbm_to_vmem [thread:$0]  %s78_s14, 48, %s80_s29, [#allocation14]  }
  0x19   :  { %106 = dma.hbm_to_vmem [thread:$0]  %s99_s20, 1536, %s101_s25, [#allocation17], %s15790_s26, %s15790_s26, %s15791_s27  }
  0x1a   :  { %s15794_s22 = smov [#allocation19]   ;;  %s149_s5 = sshll.u32 %s16584_s10, 4  ;;  %s150_s5 = int_to_ptr.hbm [resolvable:$true] %s149_s5 }
  0x1b   :  { %s127_s23 = sshll.u32 %s15794_s22, 4  ;;  %s171_s7 = sshll.u32 %s16586_s12, 4  ;;  %s128_s23 = int_to_ptr.vmem [resolvable:$true] %s127_s23  ;;  %s172_s7 = int_to_ptr.hbm [resolvable:$true] %s171_s7 }
  0x1c   :  { %130 = dma.hbm_to_vmem [thread:$0]  %s126_s2, 48, %s128_s23, [#allocation20]  }
  0x1d   :  { %s15795_s0 = smov [#allocation22]   ;;  %s15796_s21 = smov [#allocation25]  }
  0x1e   :  { %s151_s30 = sshll.u32 %s15795_s0, 4  ;;  %s173_s20 = sshll.u32 %s15796_s21, 4  ;;  %s152_s30 = int_to_ptr.vmem [resolvable:$true] %s151_s30  ;;  %s174_s20 = int_to_ptr.vmem [resolvable:$true] %s173_s20 }
  0x1f   :  { %154 = dma.hbm_to_vmem [thread:$0]  %s150_s5, 128, %s152_s30, [#allocation23]  }
  0x20   :  { %s16600_s25 = sld [smem:[#allocation49_spill]]  ;;  %s15797_s10 = smov [#allocation8]  }
  0x21   :  { %176 = dma.hbm_to_vmem [thread:$0]  %s172_s7, 128, %s174_s20, [#allocation26]  }
  0x22   :  { %s39_s2 = sshll.u32 %s15797_s10, 4  ;;  %s16601_s12 = sld [smem:[#allocation51_spill]]  ;;  %s40_s2 = int_to_ptr.vmem [resolvable:$true] %s39_s2 }
  0x23   :  { %s15798_s14 = smov 64   ;;  %s15799_s29 = smov 4  }
  0x24   :  { %s15800_s5 = smov [#allocation12]   ;;  %s88_s1 = sshll.u32 %s16578_s4, 4  ;;  %s89_s1 = int_to_ptr.hbm [resolvable:$true] %s88_s1 }
  0x25   :  { %s65_s0 = sshll.u32 %s15800_s5, 4  ;;  %s111_s24 = sshll.u32 %s16580_s6, 4  ;;  %s66_s0 = int_to_ptr.vmem [resolvable:$true] %s65_s0  ;;  %s112_s24 = int_to_ptr.hbm [resolvable:$true] %s111_s24 }
  0x26   :  { %s37_s22 = sshll.u32 %s16600_s25, 4  ;;  %s15801_s25 = smov [#allocation15]   ;;  %s38_s22 = int_to_ptr.hbm [resolvable:$true] %s37_s22 }
  0x27   :  { %45 = dma.hbm_to_vmem [thread:$0]  %s38_s22, 128, %s40_s2, [#allocation9], %s15798_s14, %s15798_s14, %s15799_s29  }
  0x28   :  { %s63_s28 = sshll.u32 %s16601_s12, 4  ;;  %s90_s10 = sshll.u32 %s15801_s25, 4  ;;  %s64_s28 = int_to_ptr.hbm [resolvable:$true] %s63_s28  ;;  %s91_s10 = int_to_ptr.vmem [resolvable:$true] %s90_s10 }
  0x29   :  { %71 = dma.hbm_to_vmem [thread:$0]  %s64_s28, 1536, %s66_s0, [#allocation11], %s15790_s26, %s15790_s26, %s15791_s27  }
  0x2a   :  { %93 = dma.hbm_to_vmem [thread:$0]  %s89_s1, 48, %s91_s10, [#allocation14]  }
  0x2b   :  { %s15802_s22 = smov [#allocation18]   ;;  %s136_s4 = sshll.u32 %s16582_s8, 4  ;;  %s137_s4 = int_to_ptr.hbm [resolvable:$true] %s136_s4 }
  0x2c   :  { %s113_s2 = sshll.u32 %s15802_s22, 4  ;;  %s160_s6 = sshll.u32 %s16585_s11, 4  ;;  %s114_s2 = int_to_ptr.vmem [resolvable:$true] %s113_s2  ;;  %s161_s6 = int_to_ptr.hbm [resolvable:$true] %s160_s6 }
  0x2d   :  { %119 = dma.hbm_to_vmem [thread:$0]  %s112_s24, 1536, %s114_s2, [#allocation17], %s15790_s26, %s15790_s26, %s15791_s27  }
  0x2e   :  { %s15803_s14 = smov [#allocation21]   ;;  %s15804_s5 = smov [#allocation24]  }
  0x2f   :  { %s138_s29 = sshll.u32 %s15803_s14, 4  ;;  %s162_s0 = sshll.u32 %s15804_s5, 4  ;;  %s139_s29 = int_to_ptr.vmem [resolvable:$true] %s138_s29  ;;  %s163_s0 = int_to_ptr.vmem [resolvable:$true] %s162_s0 }
  0x30   :  { %141 = dma.hbm_to_vmem [thread:$0]  %s137_s4, 48, %s139_s29, [#allocation20]  }
  0x31   :  { %s182_s8 = sshll.u32 %s16587_s13, 4  ;;  %s15805_s1 = smov [#allocation27]   ;;  %s183_s8 = int_to_ptr.hbm [resolvable:$true] %s182_s8 }
  0x32   :  { %165 = dma.hbm_to_vmem [thread:$0]  %s161_s6, 128, %s163_s0, [#allocation23]  }
  0x33   :  { %s184_s26 = sshll.u32 %s15805_s1, 4  ;;  %s185_s26 = int_to_ptr.vmem [resolvable:$true] %s184_s26 }
  0x34   :  { %187 = dma.hbm_to_vmem [thread:$0]  %s183_s8, 128, %s185_s26, [#allocation26]  }
  0x35   :  { %15767 = dma.done.wait [#allocation9], 128  }
  0x36   :  { %15768 = vsyncadd [#allocation9], 4294967168 }
  0x37   :  { %15769 = dma.done.wait [#allocation11], 2304  }
  0x38   :  { %15770 = vsyncadd [#allocation11], 4294964992 }
  0x39   :  { %15771 = dma.done.wait [#allocation14], 96  }
  0x3a   :  { %15772 = vsyncadd [#allocation14], 4294967200 }
  0x3b   :  { %15773 = dma.done.wait [#allocation17], 3072  }
  0x3c   :  { %15774 = vsyncadd [#allocation17], 4294964224 }
  0x3d   :  { %15775 = dma.done.wait [#allocation20], 96  }
  0x3e   :  { %15776 = vsyncadd [#allocation20], 4294967200 }
  0x3f   :  { %15777 = dma.done.wait [#allocation23], 256  }
  0x40   :  { %15778 = vsyncadd [#allocation23], 4294967040 }
  0x41   :  { %15779 = dma.done.wait [#allocation26], 256  }
  0x42   :  { %15780 = vsyncadd [#allocation26], 4294967040  ;;  %v301_v1 = vld [vmem:[#allocation10 + $0x18] sm:$0xff]  ;;  %v298_v3 = vld [vmem:[#allocation10] sm:$0xff]  ;;  %vm326_vm0 = vcmask 130048   ;;  %v15806_v16 = vmov 0.0  }
  0x43   :  { %v314_v2 = vld [vmem:[#allocation12 + $0x48] sm:$0xff]  ;;  %344 = vmatpush.msra.mxu0 %v301_v1  ;;  %v311_v4 = vld [vmem:[#allocation12 + $0x30] sm:$0xff]  ;;  %v308_v6 = vld [vmem:[#allocation12 + $0x18] sm:$0xff]  ;;  %vm397_vm9 = vcmask 261120   ;;  %s250_s27 = sshll.u32 %s16589_s15, 4  ;;  %s15807_s7 = smov [#allocation2]   ;;  %s251_s27 = int_to_ptr.hbm [resolvable:$true] %s250_s27 }
  0x44   :  { %413 = vmatpush.msra.mxu3 %v314_v2  ;;  %v318_v5 = vld [vmem:[#allocation8] sm:$0xf]  ;;  %v315_v7 = vld [vmem:[#allocation12 + $0x50] sm:$0xff]  ;;  %v299_v9 = vld [vmem:[#allocation10 + $0x8] sm:$0xff]  ;;  %s252_s20 = sshll.u32 %s15807_s7, 4  ;;  %s264_s10 = sshll.u32 %s16590_s16, 4  ;;  %s253_s20 = int_to_ptr.vmem [resolvable:$true] %s252_s20  ;;  %s265_s10 = int_to_ptr.hbm [resolvable:$true] %s264_s10 }
  0x45   :  { %345 = vmatpush.msra.mxu0 %v298_v3  ;;  %v302_v8 = vld [vmem:[#allocation10 + $0x20] sm:$0xff]  ;;  %v305_v10 = vld [vmem:[#allocation12] sm:$0xff]  ;;  %v312_v11 = vld [vmem:[#allocation12 + $0x38] sm:$0xff]  ;;  %255 = dma.hbm_to_vmem [thread:$0]  %s251_s27, 2048, %s253_s20, [#allocation6] }
  0x46   :  { %414 = vmatpush.msra.mxu3 %v311_v4  ;;  %9919 = vmatmul.msk.f32.vlgmr.msra.gmra.mxu0 %vm326_vm0, %v318_v5  ;;  %v303_v12 = vld [vmem:[#allocation10 + $0x28] sm:$0xff]  ;;  %v309_v13 = vld [vmem:[#allocation12 + $0x20] sm:$0xff]  ;;  %v306_v17 = vld [vmem:[#allocation12 + $0x8] sm:$0xff]  ;;  %s15808_s22 = smov [#allocation3]   ;;  %s278_s4 = sshll.u32 %s16591_s17, 4  ;;  %s279_s4 = int_to_ptr.hbm [resolvable:$true] %s278_s4 }
  0x47   :  { %364 = vmatpush.msra.mxu1 %v302_v8  ;;  %433 = vmatpush.msrb.mxu0 %v315_v7  ;;  %v316_v14 = vld [vmem:[#allocation12 + $0x58] sm:$0xff]  ;;  %v300_v15 = vld [vmem:[#allocation10 + $0x10] sm:$0xff]  ;;  %v310_v19 = vld [vmem:[#allocation12 + $0x28] sm:$0xff]  ;;  %s266_s2 = sshll.u32 %s15808_s22, 4  ;;  %s15809_s15 = smov [#allocation4]   ;;  %s267_s2 = int_to_ptr.vmem [resolvable:$true] %s266_s2 }
  0x48   :  { %415 = vmatpush.msra.mxu3 %v308_v6  ;;  %384 = vmatpush.msra.mxu2 %v303_v12  ;;  %v313_v18 = vld [vmem:[#allocation12 + $0x40] sm:$0xff]  ;;  %v307_v20 = vld [vmem:[#allocation12 + $0x10] sm:$0xff]  ;;  %v509_v39 = vld [vmem:[#allocation8 + $0x4] sm:$0xf]  ;;  %269 = dma.hbm_to_vmem [thread:$0]  %s265_s10, 2048, %s267_s2, [#allocation6 + $0x1] }
  0x49   :  { %365 = vmatpush.msra.mxu1 %v299_v9  ;;  %434 = vmatpush.msrb.mxu0 %v312_v11  ;;  %v15971_v21 = vld [vmem:[#allocation13] sm:$0x7]  ;;  %v15973_v23 = vld [vmem:[#allocation15] sm:$0x7]  ;;  %s280_s12 = sshll.u32 %s15809_s15, 4  ;;  %s292_s14 = sshll.u32 %s16592_s18, 4  ;;  %s281_s12 = int_to_ptr.vmem [resolvable:$true] %s280_s12  ;;  %s293_s14 = int_to_ptr.hbm [resolvable:$true] %s292_s14 }
  0x4a   :  { %416 = vmatpush.msra.mxu3 %v305_v10  ;;  %9920 = vmatmul.msk.f32.vlgmr.msra.gmra.mxu1 %vm326_vm0, %v318_v5  ;;  %v321_v24 = vperm.slane %v15971_v21, 1  ;;  %v320_v26 = vperm.slane %v15971_v21, 0  ;;  %v392_v27 = vperm.slane %v15973_v23, 1  ;;  %v391_v29 = vperm.slane %v15973_v23, 0  ;;  %283 = dma.hbm_to_vmem [thread:$0]  %s279_s4, 65536, %s281_s12, [#allocation6 + $0x2] }
  0x4b   :  { %417 = vmatmul.f32.vlgmr.msra.gmra.mxu3 %v15806_v16  ;;  %435 = vmatpush.msrb.mxu0 %v309_v13  ;;  %v393_v49 = vperm.slane %v15973_v23, 2  ;;  %v322_v55 = vperm.slane %v15971_v21, 2  ;;  %s15810_s16 = smov [#allocation5]  }
  0x4c   :  { %453 = vmatpush.msrb.mxu1 %v316_v14  ;;  %385 = vmatpush.msra.mxu2 %v300_v15  ;;  %s294_s29 = sshll.u32 %s15810_s16, 4  ;;  %s295_s29 = int_to_ptr.vmem [resolvable:$true] %s294_s29 }
  0x4d   :  { %547 = vmatpush.msrb.mxu3 %v302_v8  ;;  %436 = vmatpush.msrb.mxu0 %v306_v17  ;;  %297 = dma.hbm_to_vmem [thread:$0]  %s293_s14, 65536, %s295_s29, [#allocation6 + $0x3] }
  0x4e   :  { %454 = vmatpush.msrb.mxu1 %v313_v18  ;;  %437 = vmatmul.f32.vlgmr.msrb.gmra.mxu0 %v15806_v16 }
  0x4f   :  { %9921 = vmatmul.msk.f32.vlgmr.msra.gmra.mxu2 %vm326_vm0, %v318_v5  ;;  %548 = vmatpush.msrb.mxu3 %v299_v9 }
  0x50   :  { %455 = vmatpush.msrb.mxu1 %v310_v19  ;;  %527 = vmatpush.msrb.mxu2 %v301_v1 }
  0x51   :  { %567 = vmatpush.msra.mxu0 %v303_v12  ;;  %628 = vmatpush.msra.mxu3 %v316_v14 }
  0x52   :  { %456 = vmatpush.msrb.mxu1 %v307_v20  ;;  %528 = vmatpush.msrb.mxu2 %v298_v3 }
  0x53   :  { %457 = vmatmul.f32.vlgmr.msrb.gmra.mxu1 %v15806_v16  ;;  %568 = vmatpush.msra.mxu0 %v300_v15 }
  0x54   :  { %608 = vmatpush.msra.mxu2 %v315_v7  ;;  %588 = vmatpush.msra.mxu1 %v314_v2 }
  0x55   :  { %629 = vmatpush.msra.mxu3 %v313_v18 }
  0x56   :  { %609 = vmatpush.msra.mxu2 %v312_v11  ;;  %589 = vmatpush.msra.mxu1 %v311_v4 }
  0x57   :  { %630 = vmatpush.msra.mxu3 %v310_v19  ;;  %9924 = vmatmul.msk.f32.vlgmr.msrb.gmra.mxu2 %vm326_vm0, %v509_v39  ;;  %v16008_v19 = vld [vmem:[#allocation18 + $0x48] sm:$0xff] }
  0x58   :  { %610 = vmatpush.msra.mxu2 %v309_v13  ;;  %590 = vmatpush.msra.mxu1 %v308_v6 }
  0x59   :  { %631 = vmatpush.msra.mxu3 %v307_v20  ;;  %9926 = vmatmul.msk.f32.vlgmr.msra.gmra.mxu0 %vm326_vm0, %v509_v39 }
  0x5a   :  { %611 = vmatpush.msra.mxu2 %v306_v17  ;;  %591 = vmatpush.msra.mxu1 %v305_v10 }
  0x5b   :  { %9925 = vmatmul.msk.f32.vlgmr.msrb.gmra.mxu3 %vm326_vm0, %v509_v39  ;;  %v687_v39 = vld [vmem:[#allocation16 + $0x20] sm:$0xff] }
  0x5c   :  { %798 = vmatpush.msrb.mxu3 %v16008_v19 }
  0xc3   :  { %v347_v22 = vpop.f32.mrf.mxu0 }
  0xc4   :  { %v348_v31 = vadd.f32 %v347_v22, %v320_v26 }
  0xc7   :  { %v367_v25 = vpop.f32.mrf.mxu1 }
  0xc8   :  { %v368_v28 = vadd.f32 %v367_v25, %v321_v24 }
  0xcb   :  { %v438_v30 = vpop.f32.mrf.mxu0 }
  0xcc   :  { %v439_v32 = vadd.f32 %v438_v30, %v392_v27 }
  0xce   :  { %v418_v33 = vpop.f32.mrf.mxu3  ;;  %v481_v34 = vadd.f32 %v439_v32, %v368_v28  ;;  %v16013_v28 = vld [vmem:[#allocation18 + $0x30] sm:$0xff]  ;;  %v692_v32 = vld [vmem:[#allocation16 + $0x48] sm:$0xff] }
  0xcf   :  { %v419_v35 = vadd.f32 %v418_v33, %v391_v29  ;;  %799 = vmatpush.msrb.mxu3 %v16013_v28  ;;  %v16021_v33 = vld [vmem:[#allocation18] sm:$0xff]  ;;  %718 = vmatpush.msrb.mxu0 %v692_v32 }
  0xd0   :  { %v9923_v36 = vmul.f32 -1.442695, %v481_v34  ;;  %v458_v51 = vpop.f32.mrf.mxu1  ;;  %v693_v34 = vld [vmem:[#allocation16 + $0x50] sm:$0xff] }
  0xd1   :  { %v461_v37 = vadd.f32 %v419_v35, %v348_v31  ;;  %v459_v58 = vadd.f32 %v458_v51, %v393_v49  ;;  %738 = vmatpush.msrb.mxu1 %v693_v34 }
  0xd2   :  { %15290 = vpow2.f32 %v9923_v36  ;;  %v387_v57 = vpop.f32.mrf.mxu2  ;;  %v689_v36 = vld [vmem:[#allocation16 + $0x30] sm:$0xff] }
  0xd3   :  { %v9922_v38 = vmul.f32 -1.442695, %v461_v37  ;;  %v388_v63 = vadd.f32 %v387_v57, %v322_v55  ;;  %v690_v37 = vld [vmem:[#allocation16 + $0x38] sm:$0xff]  ;;  %719 = vmatpush.msrb.mxu0 %v689_v36  ;;  %v16045_v57 = vld [vmem:[#allocation18 + $0x40] sm:$0xff] }
  0xd4   :  { %739 = vmatpush.msrb.mxu1 %v690_v37 }
  0xd5   :  { %15292 = vpow2.f32 %v9922_v38  ;;  %v691_v38 = vld [vmem:[#allocation16 + $0x40] sm:$0xff] }
  0xd6   :  { %740 = vmatpush.msrb.mxu1 %v687_v39 }
  0xd8   :  { %v15291_v40 = vpop.eup %15290 }
  0xd9   :  { %v485_v41 = vadd.f32 1.0, %v15291_v40  ;;  %v688_v40 = vld [vmem:[#allocation16 + $0x28] sm:$0xff] }
  0xda   :  { %v530_v13 = vpop.f32.mrf.mxu2 }
  0xdb   :  { %v15293_v42 = vpop.eup %15292  ;;  %15294 = vrcp.f32 %v485_v41  ;;  %v497_v61 = vand.u32 2147483648, %v485_v41  ;;  %vm491_vm5 = vweird.f32 %v485_v41  ;;  %v495_v3 = vand.u32 2147483647, %v485_v41 }
  0xdc   :  { %v465_v43 = vadd.f32 1.0, %v15293_v42  ;;  %v531_v14 = vadd.f32 %v530_v13, %v320_v26  ;;  %v683_v42 = vld [vmem:[#allocation16] sm:$0xff] }
  0xdd   :  { %v498_v4 = vor.u32 1.1754944e-38, %v497_v61  ;;  %vm496_vm8 = vcmp.eq.f32.partialorder %v495_v3, 8.507059e+37 }
  0xde   :  { %15296 = vrcp.f32 %v465_v43  ;;  %v477_v52 = vand.u32 2147483648, %v465_v43  ;;  %v475_v54 = vand.u32 2147483647, %v465_v43  ;;  %vm471_vm2 = vweird.f32 %v465_v43  ;;  %v550_v20 = vpop.f32.mrf.mxu3 }
  0xdf   :  { %v551_v22 = vadd.f32 %v550_v20, %v321_v24  ;;  %v694_v24 = vld [vmem:[#allocation16 + $0x58] sm:$0xff] }
  0xe0   :  { %v478_v60 = vor.u32 1.1754944e-38, %v477_v52  ;;  %vm476_vm4 = vcmp.eq.f32.partialorder %v475_v54, 8.507059e+37  ;;  %758 = vmatpush.msrb.mxu2 %v694_v24  ;;  %v16036_v52 = vld [vmem:[#allocation18 + $0x8] sm:$0xff] }
  0xe1   :  { %v15295_v44 = vpop.eup %15294 }
  0xe2   :  { %v487_v45 = vmul.f32 %v15295_v44, %v485_v41  ;;  %vm492_vm6 = vweird.f32 %v15295_v44  ;;  %759 = vmatpush.msrb.mxu2 %v691_v38 }
  0xe3   :  { %vm493_vm7 = vmor %vm491_vm5, %vm492_vm6 }
  0xe4   :  { %v15297_v46 = vpop.eup %15296  ;;  %v488_v48 = vsub.f32 1.0, %v487_v45  ;;  %v685_v45 = vld [vmem:[#allocation16 + $0x10] sm:$0xff]  ;;  %760 = vmatpush.msrb.mxu2 %v688_v40 }
  0xe5   :  { %v467_v47 = vmul.f32 %v15297_v46, %v465_v43  ;;  %vm472_vm1 = vweird.f32 %v15297_v46 }
  0xe6   :  { %v489_v56 = vmul.f32 %v15295_v44, %v488_v48  ;;  %vm473_vm3 = vmor %vm471_vm2, %vm472_vm1  ;;  %761 = vmatpush.msrb.mxu2 %v685_v45 }
  0xe7   :  { %v468_v50 = vsub.f32 1.0, %v467_v47  ;;  %v16027_v47 = vld [vmem:[#allocation18 + $0x38] sm:$0xff] }
  0xe8   :  { %v490_v1 = vadd.f32 %v15295_v44, %v489_v56  ;;  %v16043_v56 = vld [vmem:[#allocation18 + $0x58] sm:$0xff] }
  0xe9   :  { %v469_v53 = vmul.f32 %v15297_v46, %v468_v50  ;;  %v16031_v50 = vld [vmem:[#allocation18 + $0x20] sm:$0xff] }
  0xea   :  { %v494_v6 = vsel %vm493_vm7, %v15295_v44, %v490_v1  ;;  %v684_v44 = vld [vmem:[#allocation16 + $0x8] sm:$0xff] }
  0xeb   :  { %v470_v59 = vadd.f32 %v15297_v46, %v469_v53  ;;  %v499_v7 = vsel %vm496_vm8, %v498_v4, %v494_v6  ;;  %741 = vmatpush.msrb.mxu1 %v684_v44 }
  0xec   :  { %v504_v8 = vsub.f32 1.0, %v499_v7  ;;  %v506_v11 = vmul.f32 0.0, %v499_v7 }
  0xed   :  { %v474_v62 = vsel %vm473_vm3, %v15297_v46, %v470_v59  ;;  %v16025_v46 = vld [vmem:[#allocation18 + $0x50] sm:$0xff] }
  0xee   :  { %v479_v0 = vsel %vm476_vm4, %v478_v60, %v474_v62  ;;  %v16050_v60 = vld [vmem:[#allocation18 + $0x28] sm:$0xff] }
  0xef   :  { %v501_v2 = vmul.f32 %v479_v0, %v459_v58 }
  0xf1   :  { %v502_v5 = vadd.f32 %v501_v2, %v388_v63  ;;  %v570_v63 = vpop.f32.mrf.mxu0  ;;  %v16054_v2 = vld [vmem:[#allocation18 + $0x10] sm:$0xff] }
  0xf2   :  { %v571_v6 = vadd.f32 %v570_v63, %v322_v55 }
  0xf3   :  { %15298 = vtanh.f32 %v502_v5 }
  0xf9   :  { %v15299_v9 = vpop.eup %15298 }
  0xfa   :  { %v505_v10 = vmul.f32 %v15299_v9, %v504_v8 }
  0xfc   :  { %v15996_v12 = vadd.f32 %v506_v11, %v505_v10 }
  0xfe   :  { %9927 = vmatmul.msk.f32.vlgmr.msra.gmra.mxu1 %vm397_vm9, %v15996_v12  ;;  %9928 = vmatmul.msk.f32.vlgmr.msra.gmra.mxu2 %vm397_vm9, %v15996_v12 }
  0xff   :  { %9929 = vmatmul.msk.f32.vlgmr.msra.gmra.mxu3 %vm397_vm9, %v15996_v12  ;;  %908 = vmatpush.msra.mxu2 %v16008_v19 }
 0x100   :  { %838 = vmatpush.msra.mxu1 %v16043_v56 }
 0x101   :  { %909 = vmatpush.msra.mxu2 %v16013_v28 }
 0x102   :  { %839 = vmatpush.msra.mxu1 %v16045_v57 }
 0x104   :  { %840 = vmatpush.msra.mxu1 %v16050_v60 }
 0x106   :  { %841 = vmatpush.msra.mxu1 %v16054_v2 }
 0x17b   :  { %v593_v15 = vpop.f32.mrf.mxu1 }
 0x17c   :  { %v594_v17 = vadd.f32 %v593_v15, %v391_v29  ;;  %v16018_v29 = vld [vmem:[#allocation18 + $0x18] sm:$0xff] }
 0x17d   :  { %800 = vmatpush.msrb.mxu3 %v16018_v29  ;;  %910 = vmatpush.msra.mxu2 %v16018_v29 }
 0x17e   :  { %v636_v18 = vadd.f32 %v594_v17, %v531_v14 }
 0x17f   :  { %801 = vmatpush.msrb.mxu3 %v16021_v33  ;;  %911 = vmatpush.msra.mxu2 %v16021_v33 }
 0x180   :  { %v9930_v25 = vmul.f32 -1.442695, %v636_v18  ;;  %802 = vmatmul.f32.vlgmr.msrb.gmra.mxu3 %v15806_v16 }
 0x181   :  { %v613_v30 = vpop.f32.mrf.mxu2  ;;  %928 = vmatpush.msra.mxu3 %v16025_v46 }
 0x182   :  { %15300 = vpow2.f32 %v9930_v25  ;;  %v614_v26 = vadd.f32 %v613_v30, %v392_v27  ;;  %v686_v27 = vld [vmem:[#allocation16 + $0x18] sm:$0xff]  ;;  %v633_v1 = vpop.f32.mrf.mxu3 }
 0x183   :  { %720 = vmatpush.msrb.mxu0 %v686_v27  ;;  %929 = vmatpush.msra.mxu3 %v16027_v47  ;;  %v634_v8 = vadd.f32 %v633_v1, %v393_v49 }
 0x184   :  { %v656_v31 = vadd.f32 %v614_v26, %v551_v22 }
 0x185   :  { %721 = vmatpush.msrb.mxu0 %v683_v42  ;;  %930 = vmatpush.msra.mxu3 %v16031_v50 }
 0x186   :  { %v9931_v35 = vmul.f32 -1.442695, %v656_v31 }
 0x187   :  { %818 = vmatpush.msra.mxu0 %v16025_v46  ;;  %931 = vmatpush.msra.mxu3 %v16036_v52 }
 0x188   :  { %v15301_v41 = vpop.eup %15300  ;;  %15302 = vpow2.f32 %v9931_v35 }
 0x189   :  { %v640_v43 = vadd.f32 1.0, %v15301_v41  ;;  %819 = vmatpush.msra.mxu0 %v16027_v47  ;;  %1070 = vmatpush.msrb.mxu3 %v16043_v56 }
 0x18b   :  { %15304 = vrcp.f32 %v640_v43  ;;  %820 = vmatpush.msra.mxu0 %v16031_v50  ;;  %v652_v59 = vand.u32 2147483648, %v640_v43  ;;  %v650_v62 = vand.u32 2147483647, %v640_v43  ;;  %1071 = vmatpush.msrb.mxu3 %v16045_v57  ;;  %vm646_vm11 = vweird.f32 %v640_v43 }
 0x18d   :  { %821 = vmatpush.msra.mxu0 %v16036_v52  ;;  %v653_v5 = vor.u32 1.1754944e-38, %v652_v59  ;;  %1072 = vmatpush.msrb.mxu3 %v16050_v60  ;;  %vm651_vm13 = vcmp.eq.f32.partialorder %v650_v62, 8.507059e+37 }
 0x18e   :  { %v15303_v48 = vpop.eup %15302 }
 0x18f   :  { %v660_v51 = vadd.f32 1.0, %v15303_v48  ;;  %1073 = vmatpush.msrb.mxu3 %v16054_v2 }
 0x191   :  { %v15305_v53 = vpop.eup %15304  ;;  %15306 = vrcp.f32 %v660_v51  ;;  %v672_v13 = vand.u32 2147483648, %v660_v51  ;;  %v670_v15 = vand.u32 2147483647, %v660_v51  ;;  %vm666_vm15 = vweird.f32 %v660_v51 }
 0x192   :  { %v642_v54 = vmul.f32 %v15305_v53, %v640_v43  ;;  %vm647_vm10 = vweird.f32 %v15305_v53 }
 0x193   :  { %vm648_vm12 = vmor %vm646_vm11, %vm647_vm10  ;;  %v673_v18 = vor.u32 1.1754944e-38, %v672_v13  ;;  %vm671_vm1 = vcmp.eq.f32.partialorder %v670_v15, 8.507059e+37 }
 0x194   :  { %v643_v58 = vsub.f32 1.0, %v642_v54 }
 0x196   :  { %v644_v61 = vmul.f32 %v15305_v53, %v643_v58 }
 0x197   :  { %v15307_v0 = vpop.eup %15306 }
 0x198   :  { %v662_v3 = vmul.f32 %v15307_v0, %v660_v51  ;;  %v645_v4 = vadd.f32 %v15305_v53, %v644_v61  ;;  %vm667_vm14 = vweird.f32 %v15307_v0 }
 0x199   :  { %vm668_vm0 = vmor %vm666_vm15, %vm667_vm14 }
 0x19a   :  { %v663_v7 = vsub.f32 1.0, %v662_v3  ;;  %v649_v9 = vsel %vm648_vm12, %v15305_v53, %v645_v4 }
 0x19b   :  { %v654_v10 = vsel %vm651_vm13, %v653_v5, %v649_v9 }
 0x19c   :  { %v664_v11 = vmul.f32 %v15307_v0, %v663_v7  ;;  %v676_v14 = vmul.f32 %v654_v10, %v634_v8 }
 0x19e   :  { %v665_v21 = vadd.f32 %v15307_v0, %v664_v11  ;;  %v677_v55 = vadd.f32 %v676_v14, %v571_v6 }
 0x1a0   :  { %v669_v17 = vsel %vm668_vm0, %v15307_v0, %v665_v21  ;;  %15308 = vtanh.f32 %v677_v55 }
 0x1a1   :  { %v674_v23 = vsel %vm671_vm1, %v673_v18, %v669_v17 }
 0x1a2   :  { %v679_v49 = vsub.f32 1.0, %v674_v23  ;;  %v681_v25 = vmul.f32 %v674_v23, %v15996_v12  ;;  %v695_v12 = vld [vmem:[#allocation19] sm:$0x7] }
 0x1a3   :  { %v699_v54 = vperm.slane %v695_v12, 2 }
 0x1a6   :  { %v15309_v20 = vpop.eup %15308 }
 0x1a7   :  { %v680_v22 = vmul.f32 %v15309_v20, %v679_v49 }
 0x1a9   :  { %v16066_v30 = vadd.f32 %v681_v25, %v680_v22 }
 0x1ab   :  { %9932 = vmatmul.msk.f32.vlgmr.msrb.gmra.mxu0 %vm397_vm9, %v16066_v30  ;;  %9933 = vmatmul.msk.f32.vlgmr.msrb.gmra.mxu1 %vm397_vm9, %v16066_v30 }
 0x1ac   :  { %9934 = vmatmul.msk.f32.vlgmr.msrb.gmra.mxu2 %vm397_vm9, %v16066_v30  ;;  %948 = vmatpush.msrb.mxu0 %v16043_v56 }
 0x1ad   :  { %1030 = vmatpush.msrb.mxu1 %v16008_v19  ;;  %1050 = vmatpush.msrb.mxu2 %v16025_v46 }
 0x1ae   :  { %949 = vmatpush.msrb.mxu0 %v16045_v57 }
 0x1af   :  { %1031 = vmatpush.msrb.mxu1 %v16013_v28  ;;  %1051 = vmatpush.msrb.mxu2 %v16027_v47 }
 0x1b0   :  { %950 = vmatpush.msrb.mxu0 %v16050_v60 }
 0x1b1   :  { %1032 = vmatpush.msrb.mxu1 %v16018_v29  ;;  %1052 = vmatpush.msrb.mxu2 %v16031_v50 }
 0x1b2   :  { %951 = vmatpush.msrb.mxu0 %v16054_v2 }
 0x1b3   :  { %822 = vmatmul.f32.vlgmr.msra.gmra.mxu0 %v15806_v16  ;;  %842 = vmatmul.f32.vlgmr.msra.gmra.mxu1 %v15806_v16  ;;  %v778_v16 = vld [vmem:[#allocation21] sm:$0x7] }
 0x1b4   :  { %1033 = vmatpush.msrb.mxu1 %v16021_v33  ;;  %1053 = vmatpush.msrb.mxu2 %v16036_v52  ;;  %v16096_v26 = vperm.slane %v778_v16, 0  ;;  %v16102_v36 = vperm.slane %v778_v16, 1 }
 0x1b5   :  { %1152 = vmatpush.msra.mxu0 %v16008_v19  ;;  %v697_v19 = vperm.slane %v695_v12, 0 }
 0x1b6   :  { %1172 = vmatpush.msra.mxu1 %v16025_v46 }
 0x1b7   :  { %1153 = vmatpush.msra.mxu0 %v16013_v28 }
 0x1b8   :  { %1173 = vmatpush.msra.mxu1 %v16027_v47  ;;  %v16108_v47 = vperm.slane %v778_v16, 2 }
 0x1b9   :  { %1154 = vmatpush.msra.mxu0 %v16018_v29  ;;  %v698_v29 = vperm.slane %v695_v12, 1 }
 0x1ba   :  { %1174 = vmatpush.msra.mxu1 %v16031_v50 }
 0x1bb   :  { %1155 = vmatpush.msra.mxu0 %v16021_v33 }
 0x1bc   :  { %1175 = vmatpush.msra.mxu1 %v16036_v52 }
 0x203   :  { %v803_v31 = vpop.f32.mrf.mxu3 }
 0x204   :  { %v804_v32 = vadd.f32 %v803_v31, %v16096_v26 }
 0x228   :  { %v723_v34 = vpop.f32.mrf.mxu0  ;;  %v743_v33 = vpop.f32.mrf.mxu1 }
 0x229   :  { %v16099_v28 = vadd.f32 %v723_v34, %v697_v19  ;;  %v16104_v38 = vadd.f32 %v743_v33, %v698_v29 }
 0x22b   :  { %v846_v24 = vadd.f32 %v804_v32, %v16099_v28 }
 0x22d   :  { %v9935_v35 = vmul.f32 -1.442695, %v846_v24 }
 0x22f   :  { %15310 = vpow2.f32 %v9935_v35  ;;  %v763_v62 = vpop.f32.mrf.mxu2 }
 0x230   :  { %v823_v37 = vpop.f32.mrf.mxu0  ;;  %v843_v50 = vpop.f32.mrf.mxu1  ;;  %v16111_v4 = vadd.f32 %v763_v62, %v699_v54 }
 0x231   :  { %v824_v27 = vadd.f32 %v823_v37, %v16102_v36  ;;  %v844_v58 = vadd.f32 %v843_v50, %v16108_v47 }
 0x233   :  { %v866_v39 = vadd.f32 %v824_v27, %v16104_v38 }
 0x235   :  { %v15311_v40 = vpop.eup %15310  ;;  %v9936_v41 = vmul.f32 -1.442695, %v866_v39 }
 0x236   :  { %v850_v42 = vadd.f32 1.0, %v15311_v40 }
 0x237   :  { %15312 = vpow2.f32 %v9936_v41 }
 0x238   :  { %15314 = vrcp.f32 %v850_v42  ;;  %v862_v51 = vand.u32 2147483648, %v850_v42  ;;  %v860_v53 = vand.u32 2147483647, %v850_v42  ;;  %vm856_vm3 = vweird.f32 %v850_v42 }
 0x23a   :  { %v863_v63 = vor.u32 1.1754944e-38, %v862_v51  ;;  %vm861_vm5 = vcmp.eq.f32.partialorder %v860_v53, 8.507059e+37 }
 0x23d   :  { %v15313_v43 = vpop.eup %15312 }
 0x23e   :  { %v15315_v44 = vpop.eup %15314  ;;  %v870_v45 = vadd.f32 1.0, %v15313_v43 }
 0x23f   :  { %v852_v46 = vmul.f32 %v15315_v44, %v850_v42  ;;  %vm857_vm2 = vweird.f32 %v15315_v44 }
 0x240   :  { %15316 = vrcp.f32 %v870_v45  ;;  %vm858_vm4 = vmor %vm856_vm3, %vm857_vm2  ;;  %v882_v7 = vand.u32 2147483648, %v870_v45  ;;  %v880_v9 = vand.u32 2147483647, %v870_v45  ;;  %vm876_vm7 = vweird.f32 %v870_v45 }
 0x241   :  { %v853_v48 = vsub.f32 1.0, %v852_v46 }
 0x242   :  { %v883_v13 = vor.u32 1.1754944e-38, %v882_v7  ;;  %vm881_vm10 = vcmp.eq.f32.partialorder %v880_v9, 8.507059e+37 }
 0x243   :  { %v854_v52 = vmul.f32 %v15315_v44, %v853_v48 }
 0x245   :  { %v855_v59 = vadd.f32 %v15315_v44, %v854_v52 }
 0x246   :  { %v15317_v61 = vpop.eup %15316 }
 0x247   :  { %v872_v0 = vmul.f32 %v15317_v61, %v870_v45  ;;  %v859_v1 = vsel %vm858_vm4, %v15315_v44, %v855_v59  ;;  %vm877_vm6 = vweird.f32 %v15317_v61 }
 0x248   :  { %v864_v3 = vsel %vm861_vm5, %v863_v63, %v859_v1  ;;  %vm878_vm8 = vmor %vm876_vm7, %vm877_vm6 }
 0x249   :  { %v873_v5 = vsub.f32 1.0, %v872_v0  ;;  %v886_v6 = vmul.f32 %v864_v3, %v844_v58 }
 0x24b   :  { %v874_v8 = vmul.f32 %v15317_v61, %v873_v5  ;;  %v887_v10 = vadd.f32 %v886_v6, %v16111_v4 }
 0x24d   :  { %v875_v11 = vadd.f32 %v15317_v61, %v874_v8  ;;  %15318 = vtanh.f32 %v887_v10 }
 0x24f   :  { %v879_v14 = vsel %vm878_vm8, %v15317_v61, %v875_v11 }
 0x250   :  { %v884_v15 = vsel %vm881_vm10, %v883_v13, %v879_v14 }
 0x251   :  { %v889_v21 = vsub.f32 1.0, %v884_v15  ;;  %v891_v18 = vmul.f32 0.0, %v884_v15 }
 0x253   :  { %v15319_v55 = vpop.eup %15318 }
 0x254   :  { %v890_v17 = vmul.f32 %v15319_v55, %v889_v21 }
 0x256   :  { %v16114_v23 = vadd.f32 %v891_v18, %v890_v17 }
 0x258   :  { %9937 = vmatmul.msk.f32.vlgmr.msra.gmra.mxu2 %vm397_vm9, %v16114_v23  ;;  %9938 = vmatmul.msk.f32.vlgmr.msra.gmra.mxu3 %vm397_vm9, %v16114_v23  ;;  %v1010_v1 = vrot.slane %v16114_v23, 7 }
 0x259   :  { %9939 = vmatmul.msk.f32.vlgmr.msrb.gmra.mxu0 %vm397_vm9, %v16114_v23  ;;  %1192 = vmatpush.msra.mxu2 %v16043_v56 }
 0x25b   :  { %1193 = vmatpush.msra.mxu2 %v16045_v57 }
 0x25d   :  { %1194 = vmatpush.msra.mxu2 %v16050_v60 }
 0x25f   :  { %1195 = vmatpush.msra.mxu2 %v16054_v2 }
 0x2d6   :  { %v953_v33 = vpop.f32.mrf.mxu0 }
 0x2d7   :  { %v954_v41 = vadd.f32 %v953_v33, %v16108_v47 }
 0x2d9   :  { %v1003_v48 = vrot.slane %v954_v41, 7 }
 0x2db   :  { %v913_v49 = vpop.f32.mrf.mxu2  ;;  %v933_v20 = vpop.f32.mrf.mxu3 }
 0x2dc   :  { %v914_v22 = vadd.f32 %v913_v49, %v16096_v26  ;;  %v934_v25 = vadd.f32 %v933_v20, %v16102_v36 }
 0x2de   :  { %v957_v16 = vrot.slane %v914_v22, 7  ;;  %v980_v12 = vrot.slane %v934_v25, 7 }
 0x2e0   :  { %v959_v31 = vadd.f32 %v957_v16, %v16099_v28  ;;  %v982_v19 = vadd.f32 %v980_v12, %v16104_v38 }
 0x2e2   :  { %v9940_v32 = vmul.f32 -1.442695, %v959_v31  ;;  %v9941_v56 = vmul.f32 -1.442695, %v982_v19 }
 0x2e4   :  { %15320 = vpow2.f32 %v9940_v32 }
 0x2e5   :  { %15322 = vpow2.f32 %v9941_v56 }
 0x2ea   :  { %v15321_v57 = vpop.eup %15320 }
 0x2eb   :  { %v15323_v60 = vpop.eup %15322  ;;  %v963_v34 = vadd.f32 1.0, %v15321_v57 }
 0x2ec   :  { %v986_v2 = vadd.f32 1.0, %v15323_v60 }
 0x2ed   :  { %15324 = vrcp.f32 %v963_v34  ;;  %v975_v39 = vand.u32 2147483648, %v963_v34  ;;  %v973_v43 = vand.u32 2147483647, %v963_v34  ;;  %vm969_vm12 = vweird.f32 %v963_v34 }
 0x2ee   :  { %15326 = vrcp.f32 %v986_v2  ;;  %v998_v54 = vand.u32 2147483648, %v986_v2  ;;  %vm992_vm0 = vweird.f32 %v986_v2  ;;  %v996_v58 = vand.u32 2147483647, %v986_v2 }
 0x2ef   :  { %v976_v46 = vor.u32 1.1754944e-38, %v975_v39  ;;  %vm974_vm14 = vcmp.eq.f32.partialorder %v973_v43, 8.507059e+37 }
 0x2f0   :  { %v999_v62 = vor.u32 1.1754944e-38, %v998_v54  ;;  %vm997_vm2 = vcmp.eq.f32.partialorder %v996_v58, 8.507059e+37 }
 0x2f3   :  { %v15325_v24 = vpop.eup %15324 }
 0x2f4   :  { %v15327_v29 = vpop.eup %15326  ;;  %v965_v35 = vmul.f32 %v15325_v24, %v963_v34  ;;  %vm970_vm11 = vweird.f32 %v15325_v24 }
 0x2f5   :  { %v988_v37 = vmul.f32 %v15327_v29, %v986_v2  ;;  %vm971_vm13 = vmor %vm969_vm12, %vm970_vm11  ;;  %vm993_vm15 = vweird.f32 %v15327_v29 }
 0x2f6   :  { %v966_v27 = vsub.f32 1.0, %v965_v35  ;;  %vm994_vm1 = vmor %vm992_vm0, %vm993_vm15 }
 0x2f7   :  { %v989_v40 = vsub.f32 1.0, %v988_v37 }
 0x2f8   :  { %v967_v42 = vmul.f32 %v15325_v24, %v966_v27 }
 0x2f9   :  { %v990_v44 = vmul.f32 %v15327_v29, %v989_v40 }
 0x2fa   :  { %v968_v45 = vadd.f32 %v15325_v24, %v967_v42 }
 0x2fb   :  { %v991_v52 = vadd.f32 %v15327_v29, %v990_v44 }
 0x2fc   :  { %v972_v50 = vsel %vm971_vm13, %v15325_v24, %v968_v45 }
 0x2fd   :  { %v977_v51 = vsel %vm974_vm14, %v976_v46, %v972_v50  ;;  %v995_v61 = vsel %vm994_vm1, %v15327_v29, %v991_v52 }
 0x2fe   :  { %v1005_v53 = vmul.f32 %v1003_v48, %v977_v51  ;;  %v1000_v63 = vsel %vm997_vm2, %v999_v62, %v995_v61 }
 0x2ff   :  { %v1008_v0 = vsub.f32 1.0, %v1000_v63  ;;  %v1012_v6 = vmul.f32 %v1010_v1, %v1000_v63 }
 0x300   :  { %v1006_v59 = vadd.f32 %v1005_v53, %v16111_v4 }
 0x302   :  { %15328 = vtanh.f32 %v1006_v59 }
 0x308   :  { %v15329_v3 = vpop.eup %15328 }
 0x309   :  { %v1009_v5 = vmul.f32 %v15329_v3, %v1008_v0 }
 0x30b   :  { %v1013_v7 = vadd.f32 %v1012_v6, %v1009_v5 }
 0x30d   :  { %v1015_v8 = vrot.slane %v1013_v7, 1  ;;  %v1132_v48 = vrot.slane %v1013_v7, 7 }
 0x30f   :  { %9942 = vmatmul.msk.f32.vlgmr.msrb.gmra.mxu1 %vm397_vm9, %v1015_v8  ;;  %9943 = vmatmul.msk.f32.vlgmr.msrb.gmra.mxu2 %vm397_vm9, %v1015_v8 }
 0x310   :  { %9944 = vmatmul.msk.f32.vlgmr.msrb.gmra.mxu3 %vm397_vm9, %v1015_v8 }
 0x38c   :  { %v1035_v9 = vpop.f32.mrf.mxu1 }
 0x38d   :  { %v1036_v10 = vadd.f32 %v1035_v9, %v16096_v26 }
 0x38f   :  { %v1079_v11 = vrot.slane %v1036_v10, 6 }
 0x391   :  { %v1081_v13 = vadd.f32 %v1079_v11, %v16099_v28 }
 0x392   :  { %v1055_v14 = vpop.f32.mrf.mxu2 }
 0x393   :  { %v9945_v15 = vmul.f32 -1.442695, %v1081_v13  ;;  %v1056_v21 = vadd.f32 %v1055_v14, %v16102_v36  ;;  %v1075_v12 = vpop.f32.mrf.mxu3 }
 0x394   :  { %v1076_v32 = vadd.f32 %v1075_v12, %v16108_v47 }
 0x395   :  { %15330 = vpow2.f32 %v9945_v15  ;;  %v1102_v55 = vrot.slane %v1056_v21, 6 }
 0x396   :  { %v1125_v33 = vrot.slane %v1076_v32, 6 }
 0x397   :  { %v1104_v17 = vadd.f32 %v1102_v55, %v16104_v38 }
 0x399   :  { %v9946_v18 = vmul.f32 -1.442695, %v1104_v17 }
 0x39b   :  { %v15331_v23 = vpop.eup %15330  ;;  %15332 = vpow2.f32 %v9946_v18 }
 0x39c   :  { %v1085_v49 = vadd.f32 1.0, %v15331_v23 }
 0x39e   :  { %15334 = vrcp.f32 %v1085_v49  ;;  %v1097_v19 = vand.u32 2147483648, %v1085_v49  ;;  %v1095_v57 = vand.u32 2147483647, %v1085_v49  ;;  %vm1091_vm4 = vweird.f32 %v1085_v49 }
 0x3a0   :  { %v1098_v24 = vor.u32 1.1754944e-38, %v1097_v19  ;;  %vm1096_vm6 = vcmp.eq.f32.partialorder %v1095_v57, 8.507059e+37 }
 0x3a1   :  { %v15333_v20 = vpop.eup %15332 }
 0x3a2   :  { %v1108_v22 = vadd.f32 1.0, %v15333_v20 }
 0x3a4   :  { %v15335_v25 = vpop.eup %15334  ;;  %15336 = vrcp.f32 %v1108_v22  ;;  %v1120_v39 = vand.u32 2147483648, %v1108_v22  ;;  %v1118_v41 = vand.u32 2147483647, %v1108_v22  ;;  %vm1114_vm8 = vweird.f32 %v1108_v22 }
 0x3a5   :  { %v1087_v16 = vmul.f32 %v15335_v25, %v1085_v49  ;;  %vm1092_vm3 = vweird.f32 %v15335_v25 }
 0x3a6   :  { %vm1093_vm5 = vmor %vm1091_vm4, %vm1092_vm3  ;;  %v1121_v44 = vor.u32 1.1754944e-38, %v1120_v39  ;;  %vm1119_vm11 = vcmp.eq.f32.partialorder %v1118_v41, 8.507059e+37 }
 0x3a7   :  { %v1088_v31 = vsub.f32 1.0, %v1087_v16 }
 0x3a9   :  { %v1089_v56 = vmul.f32 %v15335_v25, %v1088_v31 }
 0x3aa   :  { %v15337_v60 = vpop.eup %15336 }
 0x3ab   :  { %v1110_v34 = vmul.f32 %v15337_v60, %v1108_v22  ;;  %v1090_v2 = vadd.f32 %v15335_v25, %v1089_v56  ;;  %vm1115_vm7 = vweird.f32 %v15337_v60 }
 0x3ac   :  { %vm1116_vm10 = vmor %vm1114_vm8, %vm1115_vm7 }
 0x3ad   :  { %v1111_v29 = vsub.f32 1.0, %v1110_v34  ;;  %v1094_v35 = vsel %vm1093_vm5, %v15335_v25, %v1090_v2 }
 0x3ae   :  { %v1099_v37 = vsel %vm1096_vm6, %v1098_v24, %v1094_v35 }
 0x3af   :  { %v1112_v27 = vmul.f32 %v15337_v60, %v1111_v29  ;;  %v1127_v40 = vmul.f32 %v1125_v33, %v1099_v37 }
 0x3b1   :  { %v1113_v42 = vadd.f32 %v15337_v60, %v1112_v27  ;;  %v1128_v43 = vadd.f32 %v1127_v40, %v16111_v4 }
 0x3b3   :  { %v1117_v45 = vsel %vm1116_vm10, %v15337_v60, %v1113_v42  ;;  %15338 = vtanh.f32 %v1128_v43 }
 0x3b4   :  { %v1122_v46 = vsel %vm1119_vm11, %v1121_v44, %v1117_v45 }
 0x3b5   :  { %v1130_v50 = vsub.f32 1.0, %v1122_v46  ;;  %v1134_v53 = vmul.f32 %v1132_v48, %v1122_v46 }
 0x3b9   :  { %v15339_v51 = vpop.eup %15338 }
 0x3ba   :  { %v1131_v52 = vmul.f32 %v15339_v51, %v1130_v50 }
 0x3bc   :  { %v16142_v54 = vadd.f32 %v1134_v53, %v1131_v52 }
 0x3be   :  { %v1137_v58 = vrot.slane %v16142_v54, 2  ;;  %v1254_v34 = vrot.slane %v16142_v54, 7 }
 0x3c0   :  { %9947 = vmatmul.msk.f32.vlgmr.msra.gmra.mxu0 %vm397_vm9, %v1137_v58  ;;  %9948 = vmatmul.msk.f32.vlgmr.msra.gmra.mxu1 %vm397_vm9, %v1137_v58 }
 0x3c1   :  { %9949 = vmatmul.msk.f32.vlgmr.msra.gmra.mxu2 %vm397_vm9, %v1137_v58 }
 0x43d   :  { %v1157_v59 = vpop.f32.mrf.mxu0  ;;  %v1177_v61 = vpop.f32.mrf.mxu1 }
 0x43e   :  { %v1158_v62 = vadd.f32 %v1157_v59, %v16096_v26  ;;  %v1178_v63 = vadd.f32 %v1177_v61, %v16102_v36 }
 0x440   :  { %v1201_v0 = vrot.slane %v1158_v62, 5  ;;  %v1224_v1 = vrot.slane %v1178_v63, 5 }
 0x442   :  { %v1203_v3 = vadd.f32 %v1201_v0, %v16099_v28  ;;  %v1226_v5 = vadd.f32 %v1224_v1, %v16104_v38 }
 0x444   :  { %v9950_v6 = vmul.f32 -1.442695, %v1203_v3  ;;  %v9951_v7 = vmul.f32 -1.442695, %v1226_v5  ;;  %v1197_v15 = vpop.f32.mrf.mxu2 }
 0x445   :  { %v1198_v38 = vadd.f32 %v1197_v15, %v16108_v47 }
 0x446   :  { %15340 = vpow2.f32 %v9950_v6 }
 0x447   :  { %15342 = vpow2.f32 %v9951_v7  ;;  %v1247_v25 = vrot.slane %v1198_v38, 5 }
 0x44c   :  { %v15341_v8 = vpop.eup %15340 }
 0x44d   :  { %v15343_v9 = vpop.eup %15342  ;;  %v1207_v10 = vadd.f32 1.0, %v15341_v8 }
 0x44e   :  { %v1230_v11 = vadd.f32 1.0, %v15343_v9 }
 0x44f   :  { %15344 = vrcp.f32 %v1207_v10  ;;  %v1219_v28 = vand.u32 2147483648, %v1207_v10  ;;  %v1217_v18 = vand.u32 2147483647, %v1207_v10  ;;  %vm1213_vm13 = vweird.f32 %v1207_v10 }
 0x450   :  { %15346 = vrcp.f32 %v1230_v11  ;;  %v1242_v31 = vand.u32 2147483648, %v1230_v11  ;;  %vm1236_vm1 = vweird.f32 %v1230_v11  ;;  %v1240_v32 = vand.u32 2147483647, %v1230_v11 }
 0x451   :  { %v1220_v20 = vor.u32 1.1754944e-38, %v1219_v28  ;;  %vm1218_vm15 = vcmp.eq.f32.partialorder %v1217_v18, 8.507059e+37 }
 0x452   :  { %v1243_v57 = vor.u32 1.1754944e-38, %v1242_v31  ;;  %vm1241_vm3 = vcmp.eq.f32.partialorder %v1240_v32, 8.507059e+37 }
 0x455   :  { %v15345_v13 = vpop.eup %15344 }
 0x456   :  { %v15347_v26 = vpop.eup %15346  ;;  %v1209_v14 = vmul.f32 %v15345_v13, %v1207_v10  ;;  %vm1214_vm12 = vweird.f32 %v15345_v13 }
 0x457   :  { %v1232_v36 = vmul.f32 %v15347_v26, %v1230_v11  ;;  %vm1215_vm14 = vmor %vm1213_vm13, %vm1214_vm12  ;;  %vm1237_vm0 = vweird.f32 %v15347_v26 }
 0x458   :  { %v1210_v21 = vsub.f32 1.0, %v1209_v14  ;;  %vm1238_vm2 = vmor %vm1236_vm1, %vm1237_vm0 }
 0x459   :  { %v1233_v55 = vsub.f32 1.0, %v1232_v36 }
 0x45a   :  { %v1211_v17 = vmul.f32 %v15345_v13, %v1210_v21 }
 0x45b   :  { %v1234_v23 = vmul.f32 %v15347_v26, %v1233_v55 }
 0x45c   :  { %v1212_v49 = vadd.f32 %v15345_v13, %v1211_v17 }
 0x45d   :  { %v1235_v12 = vadd.f32 %v15347_v26, %v1234_v23 }
 0x45e   :  { %v1216_v22 = vsel %vm1215_vm14, %v15345_v13, %v1212_v49 }
 0x45f   :  { %v1221_v16 = vsel %vm1218_vm15, %v1220_v20, %v1216_v22  ;;  %v1239_v56 = vsel %vm1238_vm2, %v15347_v26, %v1235_v12 }
 0x460   :  { %v1249_v19 = vmul.f32 %v1247_v25, %v1221_v16  ;;  %v1244_v60 = vsel %vm1241_vm3, %v1243_v57, %v1239_v56 }
 0x461   :  { %v1252_v2 = vsub.f32 1.0, %v1244_v60  ;;  %v1256_v35 = vmul.f32 %v1254_v34, %v1244_v60 }
 0x462   :  { %v1250_v47 = vadd.f32 %v1249_v19, %v16111_v4 }
 0x464   :  { %15348 = vtanh.f32 %v1250_v47 }
 0x46a   :  { %v15349_v24 = vpop.eup %15348 }
 0x46b   :  { %v1253_v29 = vmul.f32 %v15349_v24, %v1252_v2 }
 0x46d   :  { %v16167_v33 = vadd.f32 %v1256_v35, %v1253_v29 }
 0x46e   :  { %15781 = dma.done.wait [#allocation6], 2048 }
 0x46f   :  { %15782 = vsyncadd [#allocation6], 4294965248 }
 0x470   :  { %15783 = dma.done.wait [#allocation6 + $0x1], 2048 }
 0x471   :  { %15784 = vsyncadd [#allocation6 + $0x1], 4294965248  ;;  %v9986_v37 = vld [vmem:[#allocation2 + $0x40] sm:$0xf]  ;;  %v14221_v4 = vld [vmem:[#allocation2 + $0x4c] sm:$0xf]  ;;  %v16171_v5 = vpack.c.bf16 %v16066_v30, %v16066_v30 }
 0x472   :  { %v14224_v27 = vld [vmem:[#allocation2 + $0x5c] sm:$0xf0]  ;;  %v9996_v40 = vld [vmem:[#allocation2 + $0x68] sm:$0xf0]  ;;  %v14220_v44 = vld [vmem:[#allocation2 + $0x44] sm:$0xf] }
 0x473   :  { %v9987_v39 = vor.u32 %v14224_v27, %v9986_v37  ;;  %v9954_v41 = vld [vmem:[#allocation2] sm:$0xf]  ;;  %v9999_v43 = vor.u32 %v14221_v4, %v9996_v40  ;;  %v9988_v45 = vld [vmem:[#allocation2 + $0x60] sm:$0xf0]  ;;  %v9994_v46 = vld [vmem:[#allocation2 + $0x48] sm:$0xf] }
 0x474   :  { %v14216_v42 = vld [vmem:[#allocation2 + $0x1c] sm:$0xf0]  ;;  %v9991_v50 = vor.u32 %v14220_v44, %v9988_v45  ;;  %v14225_v51 = vld [vmem:[#allocation2 + $0x64] sm:$0xf0]  ;;  %v14213_v52 = vld [vmem:[#allocation2 + $0xc] sm:$0xf] }
 0x475   :  { %1389 = vmatpush.bf16.msra.mxu3 %v9987_v39  ;;  %v9955_v48 = vor.u32 %v14216_v42, %v9954_v41  ;;  %v9964_v53 = vld [vmem:[#allocation2 + $0x28] sm:$0xf0]  ;;  %1428 = vmatpush.bf16.msrb.mxu2 %v9999_v43  ;;  %v9995_v54 = vor.u32 %v14225_v51, %v9994_v46  ;;  %v14212_v59 = vld [vmem:[#allocation2 + $0x4] sm:$0xf]  ;;  %v9962_v62 = vld [vmem:[#allocation2 + $0x8] sm:$0xf] }
 0x476   :  { %v9967_v58 = vor.u32 %v14213_v52, %v9964_v53  ;;  %v9956_v61 = vld [vmem:[#allocation2 + $0x20] sm:$0xf0]  ;;  %1402 = vmatpush.bf16.msrb.mxu0 %v9991_v50  ;;  %v14217_v0 = vld [vmem:[#allocation2 + $0x24] sm:$0xf0]  ;;  %v10002_v1 = vld [vmem:[#allocation2 + $0x50] sm:$0xf] }
 0x477   :  { %v9959_v63 = vor.u32 %v14212_v59, %v9956_v61  ;;  %v14226_v3 = vld [vmem:[#allocation2 + $0x6c] sm:$0xf0]  ;;  %1415 = vmatpush.bf16.msrb.mxu1 %v9995_v54  ;;  %v9963_v6 = vor.u32 %v14217_v0, %v9962_v62  ;;  %v14223_v8 = vld [vmem:[#allocation2 + $0x5c] sm:$0xf]  ;;  %v14222_v26 = vld [vmem:[#allocation2 + $0x54] sm:$0xf] }
 0x478   :  { %v10003_v7 = vor.u32 %v14226_v3, %v10002_v1  ;;  %v10012_v9 = vld [vmem:[#allocation2 + $0x78] sm:$0xf0]  ;;  %v9970_v10 = vld [vmem:[#allocation2 + $0x10] sm:$0xf]  ;;  %v10004_v14 = vld [vmem:[#allocation2 + $0x70] sm:$0xf0] }
 0x479   :  { %1390 = vmatpush.bf16.msra.mxu3 %v9955_v48  ;;  %v10015_v11 = vor.u32 %v14223_v8, %v10012_v9  ;;  %v14218_v13 = vld [vmem:[#allocation2 + $0x2c] sm:$0xf0]  ;;  %1429 = vmatpush.bf16.msrb.mxu2 %v9967_v58  ;;  %v10007_v15 = vor.u32 %v14222_v26, %v10004_v14  ;;  %v10010_v21 = vld [vmem:[#allocation2 + $0x58] sm:$0xf]  ;;  %v14215_v28 = vld [vmem:[#allocation2 + $0x1c] sm:$0xf]  ;;  %v1265_v9 = vpack.c.bf16 %v16167_v33, %v16167_v33 }
 0x47a   :  { %v9971_v36 = vor.u32 %v14218_v13, %v9970_v10  ;;  %v14227_v55 = vld [vmem:[#allocation2 + $0x74] sm:$0xf0]  ;;  %1403 = vmatpush.bf16.msrb.mxu0 %v9959_v63  ;;  %v9980_v30 = vld [vmem:[#allocation2 + $0x38] sm:$0xf0]  ;;  %v14214_v38 = vld [vmem:[#allocation2 + $0x14] sm:$0xf] }
 0x47b   :  { %v9972_v17 = vld [vmem:[#allocation2 + $0x30] sm:$0xf0]  ;;  %1416 = vmatpush.bf16.msrb.mxu1 %v9963_v6  ;;  %v10011_v18 = vor.u32 %v14227_v55, %v10010_v21  ;;  %v9983_v23 = vor.u32 %v14215_v28, %v9980_v30  ;;  %v9978_v49 = vld [vmem:[#allocation2 + $0x18] sm:$0xf]  ;;  %v10058_v22 = vld [vmem:[#allocation3 + $0x40] sm:$0xf] }
 0x47c   :  { %10016 = vmatmul.msk.bf16.vlgmr.msra.gmra.mxu3 %vm397_vm9, %v16171_v5  ;;  %v14219_v20 = vld [vmem:[#allocation2 + $0x34] sm:$0xf0]  ;;  %10019 = vmatmul.msk.bf16.vlgmr.msrb.gmra.mxu2 %vm397_vm9, %v16171_v5  ;;  %v9975_v25 = vor.u32 %v14214_v38, %v9972_v17  ;;  %v14240_v16 = vld [vmem:[#allocation3 + $0x5c] sm:$0xf0]  ;;  %v14237_v12 = vld [vmem:[#allocation3 + $0x4c] sm:$0xf] }
 0x47d   :  { %1441 = vmatpush.bf16.msrb.mxu3 %v10003_v7  ;;  %1480 = vmatpush.bf16.msra.mxu2 %v10015_v11  ;;  %v10068_v31 = vld [vmem:[#allocation3 + $0x68] sm:$0xf0]  ;;  %v10059_v19 = vor.u32 %v14240_v16, %v10058_v22  ;;  %v10026_v47 = vld [vmem:[#allocation3] sm:$0xf]  ;;  %v14236_v34 = vld [vmem:[#allocation3 + $0x44] sm:$0xf]  ;;  %v9979_v24 = vor.u32 %v14219_v20, %v9978_v49 }
 0x47e   :  { %1454 = vmatpush.bf16.msra.mxu0 %v10007_v15  ;;  %v10071_v32 = vor.u32 %v14237_v12, %v10068_v31  ;;  %v14232_v56 = vld [vmem:[#allocation3 + $0x1c] sm:$0xf0]  ;;  %v14229_v57 = vld [vmem:[#allocation3 + $0xc] sm:$0xf]  ;;  %10018 = vmatmul.msk.bf16.vlgmr.msrb.gmra.mxu1 %vm397_vm9, %v16171_v5  ;;  %v10060_v2 = vld [vmem:[#allocation3 + $0x60] sm:$0xf0] }
 0x47f   :  { %10017 = vmatmul.msk.bf16.vlgmr.msrb.gmra.mxu0 %vm397_vm9, %v16171_v5  ;;  %v10036_v60 = vld [vmem:[#allocation3 + $0x28] sm:$0xf0]  ;;  %1467 = vmatpush.bf16.msra.mxu1 %v10011_v18  ;;  %v10027_v29 = vor.u32 %v14232_v56, %v10026_v47  ;;  %v10063_v35 = vor.u32 %v14236_v34, %v10060_v2  ;;  %v10066_v37 = vld [vmem:[#allocation3 + $0x48] sm:$0xf]  ;;  %v14228_v40 = vld [vmem:[#allocation3 + $0x4] sm:$0xf] }
 0x480   :  { %v14241_v27 = vld [vmem:[#allocation3 + $0x64] sm:$0xf0]  ;;  %v10039_v4 = vor.u32 %v14229_v57, %v10036_v60  ;;  %v10028_v41 = vld [vmem:[#allocation3 + $0x20] sm:$0xf0]  ;;  %v10074_v46 = vld [vmem:[#allocation3 + $0x50] sm:$0xf] }
 0x481   :  { %1442 = vmatpush.bf16.msrb.mxu3 %v9971_v36  ;;  %1481 = vmatpush.bf16.msra.mxu2 %v9983_v23  ;;  %v10067_v39 = vor.u32 %v14241_v27, %v10066_v37  ;;  %v10031_v42 = vor.u32 %v14228_v40, %v10028_v41  ;;  %v10034_v43 = vld [vmem:[#allocation3 + $0x8] sm:$0xf]  ;;  %v14242_v48 = vld [vmem:[#allocation3 + $0x6c] sm:$0xf0]  ;;  %v14239_v50 = vld [vmem:[#allocation3 + $0x5c] sm:$0xf] }
 0x482   :  { %1455 = vmatpush.bf16.msra.mxu0 %v9975_v25  ;;  %v14233_v44 = vld [vmem:[#allocation3 + $0x24] sm:$0xf0]  ;;  %v10084_v51 = vld [vmem:[#allocation3 + $0x78] sm:$0xf0]  ;;  %v14238_v52 = vld [vmem:[#allocation3 + $0x54] sm:$0xf]  ;;  %v10075_v54 = vor.u32 %v14242_v48, %v10074_v46 }
 0x483   :  { %1468 = vmatpush.bf16.msra.mxu1 %v9979_v24  ;;  %v10035_v45 = vor.u32 %v14233_v44, %v10034_v43  ;;  %v10076_v53 = vld [vmem:[#allocation3 + $0x70] sm:$0xf0]  ;;  %v10082_v58 = vld [vmem:[#allocation3 + $0x58] sm:$0xf]  ;;  %v10087_v61 = vor.u32 %v14239_v50, %v10084_v51  ;;  %v10042_v62 = vld [vmem:[#allocation3 + $0x10] sm:$0xf] }
 0x484   :  { %v14243_v59 = vld [vmem:[#allocation3 + $0x74] sm:$0xf0]  ;;  %v14234_v63 = vld [vmem:[#allocation3 + $0x2c] sm:$0xf0]  ;;  %v14231_v0 = vld [vmem:[#allocation3 + $0x1c] sm:$0xf]  ;;  %v10079_v3 = vor.u32 %v14238_v52, %v10076_v53 }
 0x485   :  { %1622 = vmatpush.bf16.msra.mxu3 %v10059_v19  ;;  %1661 = vmatpush.bf16.msrb.mxu2 %v10071_v32  ;;  %v10052_v1 = vld [vmem:[#allocation3 + $0x38] sm:$0xf0]  ;;  %v10083_v6 = vor.u32 %v14243_v59, %v10082_v58  ;;  %v10043_v7 = vor.u32 %v14234_v63, %v10042_v62  ;;  %v1513_v10 = vshrl.u32 %v1265_v9, 16  ;;  %v10044_v13 = vld [vmem:[#allocation3 + $0x30] sm:$0xf0]  ;;  %v1282_v15 = vld [vmem:[#allocation22] sm:$0xff] }
 0x486   :  { %1635 = vmatpush.bf16.msrb.mxu0 %v10063_v35  ;;  %v10055_v8 = vor.u32 %v14231_v0, %v10052_v1  ;;  %v10050_v33 = vld [vmem:[#allocation3 + $0x18] sm:$0xf]  ;;  %v1285_v21 = vperm.slane %v1282_v15, 1  ;;  %v1286_v55 = vperm.slane %v1282_v15, 2  ;;  %v1284_v17 = vperm.slane %v1282_v15, 0 }
 0x487   :  { %1648 = vmatpush.bf16.msrb.mxu1 %v10067_v39  ;;  %v1515_v11 = vrot.slane %v1513_v10, 1  ;;  %v14235_v14 = vld [vmem:[#allocation3 + $0x34] sm:$0xf0]  ;;  %v1287_v23 = vperm.slane %v1282_v15, 3  ;;  %vm1733_vm4 = vcmask 1043456   ;;  %v1289_v34 = vperm.slane %v1282_v15, 5 }
 0x488   :  { %v10051_v36 = vor.u32 %v14235_v14, %v10050_v33  ;;  %v1728_v12 = vld [vmem:[%s16583_s9] sm:$0x3f]  ;;  %v1290_v2 = vperm.slane %v1282_v15, 6  ;;  %v1288_v37 = vperm.slane %v1282_v15, 4  ;;  %v1511_v51 = vld [vmem:[#allocation24] sm:$0xff] }
 0x489   :  { %1623 = vmatpush.bf16.msra.mxu3 %v10027_v29  ;;  %1662 = vmatpush.bf16.msrb.mxu2 %v10039_v4  ;;  %v1291_v4 = vperm.slane %v1282_v15, 7  ;;  %v1599_v58 = vperm.slane %v1511_v51, 2  ;;  %v1600_v1 = vperm.slane %v1511_v51, 3 }
 0x48a   :  { %1636 = vmatpush.bf16.msrb.mxu0 %v10031_v42 }
 0x48b   :  { %1649 = vmatpush.bf16.msrb.mxu1 %v10035_v45 }
 0x48c   :  { %10020 = vmatmul.msk.bf16.vlgmr.msrb.gmra.mxu3 %vm397_vm9, %v16171_v5  ;;  %10023 = vmatmul.msk.bf16.vlgmr.msra.gmra.mxu2 %vm397_vm9, %v16171_v5 }
 0x48d   :  { %1674 = vmatpush.bf16.msrb.mxu3 %v10075_v54  ;;  %1713 = vmatpush.bf16.msra.mxu2 %v10087_v61  ;;  %v1598_v54 = vperm.slane %v1511_v51, 1  ;;  %v1597_v61 = vperm.slane %v1511_v51, 0 }
 0x48e   :  { %10022 = vmatmul.msk.bf16.vlgmr.msra.gmra.mxu1 %vm397_vm9, %v16171_v5 }
 0x48f   :  { %10021 = vmatmul.msk.bf16.vlgmr.msra.gmra.mxu0 %vm397_vm9, %v16171_v5  ;;  %1700 = vmatpush.bf16.msra.mxu1 %v10083_v6  ;;  %v14230_v5 = vld [vmem:[#allocation3 + $0x14] sm:$0xf] }
 0x490   :  { %1687 = vmatpush.bf16.msra.mxu0 %v10079_v3  ;;  %v10047_v26 = vor.u32 %v14230_v5, %v10044_v13 }
 0x491   :  { %1675 = vmatpush.bf16.msrb.mxu3 %v10043_v7  ;;  %1714 = vmatpush.bf16.msra.mxu2 %v10055_v8 }
 0x493   :  { %1701 = vmatpush.bf16.msra.mxu1 %v10051_v36  ;;  %v1601_v36 = vperm.slane %v1511_v51, 4 }
 0x494   :  { %1688 = vmatpush.bf16.msra.mxu0 %v10047_v26 }
 0x49c   :  { %10088 = vmatmul.msk.bf16.vlgmr.msra.gmra.mxu3 %vm397_vm9, %v1515_v11  ;;  %10091 = vmatmul.msk.bf16.vlgmr.msrb.gmra.mxu2 %vm397_vm9, %v1515_v11 }
 0x49e   :  { %10090 = vmatmul.msk.bf16.vlgmr.msrb.gmra.mxu1 %vm397_vm9, %v1515_v11 }
 0x49f   :  { %10089 = vmatmul.msk.bf16.vlgmr.msrb.gmra.mxu0 %vm397_vm9, %v1515_v11 }
 0x4ac   :  { %10092 = vmatmul.msk.bf16.vlgmr.msrb.gmra.mxu3 %vm397_vm9, %v1515_v11  ;;  %10095 = vmatmul.msk.bf16.vlgmr.msra.gmra.mxu2 %vm397_vm9, %v1515_v11 }
 0x4ae   :  { %10094 = vmatmul.msk.bf16.vlgmr.msra.gmra.mxu1 %vm397_vm9, %v1515_v11 }
 0x4af   :  { %10093 = vmatmul.msk.bf16.vlgmr.msra.gmra.mxu0 %vm397_vm9, %v1515_v11  ;;  %vm1729_vm9 = vcmask 31744  }
 0x4fb   :  { %v1418_v38 = vpop.f32.mrf.mxu1 }
 0x4fc   :  { %v1405_v28 = vpop.f32.mrf.mxu0  ;;  %v1419_v18 = vadd.f32 %v1418_v38, %v1286_v55 }
 0x4fd   :  { %v1406_v30 = vadd.f32 %v1405_v28, %v1285_v21 }
 0x4fe   :  { %v1489_v20 = vmax.f32 %v1419_v18, 0.0 }
 0x4ff   :  { %v1488_v49 = vmax.f32 %v1406_v30, 0.0  ;;  %v1392_v22 = vpop.f32.mrf.mxu3  ;;  %v1431_v16 = vpop.f32.mrf.mxu2  ;;  %v1604_v30 = vperm.slane %v1511_v51, 7 }
 0x500   :  { %v1393_v25 = vadd.f32 %v1392_v22, %v1284_v17  ;;  %v1432_v31 = vadd.f32 %v1431_v16, %v1287_v23  ;;  %10100 = vmatpush.msk.msrb.mxu1 %vm1733_vm4, %v1489_v20  ;;  %v1603_v20 = vperm.slane %v1511_v51, 6 }
 0x501   :  { %10098 = vmatpush.msk.msrb.mxu0 %vm1733_vm4, %v1488_v49  ;;  %10101 = vmatmul.msk.f32.vlgmr.msrb.gmra.mxu1 %vm1729_vm9, %v1728_v12  ;;  %v1602_v49 = vperm.slane %v1511_v51, 5 }
 0x502   :  { %10099 = vmatmul.msk.f32.vlgmr.msrb.gmra.mxu0 %vm1729_vm9, %v1728_v12  ;;  %v1487_v19 = vmax.f32 %v1393_v25, 0.0  ;;  %v1490_v32 = vmax.f32 %v1432_v31, 0.0 }
 0x503   :  { %v1420_v56 = vpop.f32.mrf.mxu1 }
 0x504   :  { %v1407_v47 = vpop.f32.mrf.mxu0  ;;  %10096 = vmatpush.msk.msra.mxu3 %vm1733_vm4, %v1487_v19  ;;  %10102 = vmatpush.msk.msrb.mxu2 %vm1733_vm4, %v1490_v32 }
 0x505   :  { %10097 = vmatmul.msk.f32.vlgmr.msra.gmra.mxu3 %vm1729_vm9, %v1728_v12  ;;  %10103 = vmatmul.msk.f32.vlgmr.msrb.gmra.mxu2 %vm1729_vm9, %v1728_v12 }
 0x507   :  { %v1394_v57 = vpop.f32.mrf.mxu3  ;;  %v1433_v60 = vpop.f32.mrf.mxu2 }
 0x50b   :  { %v1470_v35 = vpop.f32.mrf.mxu1 }
 0x50c   :  { %v1457_v24 = vpop.f32.mrf.mxu0  ;;  %v1471_v27 = vadd.f32 %v1470_v35, %v1290_v2 }
 0x50d   :  { %v1458_v29 = vadd.f32 %v1457_v24, %v1289_v34 }
 0x50e   :  { %v1493_v40 = vmax.f32 %v1471_v27, 0.0 }
 0x50f   :  { %v1492_v39 = vmax.f32 %v1458_v29, 0.0  ;;  %v1444_v41 = vpop.f32.mrf.mxu3  ;;  %v1483_v43 = vpop.f32.mrf.mxu2 }
 0x510   :  { %v1445_v42 = vadd.f32 %v1444_v41, %v1288_v37  ;;  %v1484_v44 = vadd.f32 %v1483_v43, %v1291_v4  ;;  %10108 = vmatpush.msk.msra.mxu1 %vm1733_vm4, %v1493_v40 }
 0x511   :  { %10106 = vmatpush.msk.msra.mxu0 %vm1733_vm4, %v1492_v39  ;;  %10109 = vmatmul.msk.f32.vlgmr.msra.gmra.mxu1 %vm1729_vm9, %v1728_v12 }
 0x512   :  { %10107 = vmatmul.msk.f32.vlgmr.msra.gmra.mxu0 %vm1729_vm9, %v1728_v12  ;;  %v1491_v45 = vmax.f32 %v1445_v42, 0.0  ;;  %v1494_v46 = vmax.f32 %v1484_v44, 0.0 }
 0x513   :  { %v1472_v50 = vpop.f32.mrf.mxu1 }
 0x514   :  { %v1459_v48 = vpop.f32.mrf.mxu0  ;;  %10104 = vmatpush.msk.msrb.mxu3 %vm1733_vm4, %v1491_v45  ;;  %10110 = vmatpush.msk.msra.mxu2 %vm1733_vm4, %v1494_v46 }
 0x515   :  { %10105 = vmatmul.msk.f32.vlgmr.msrb.gmra.mxu3 %vm1729_vm9, %v1728_v12  ;;  %10111 = vmatmul.msk.f32.vlgmr.msra.gmra.mxu2 %vm1729_vm9, %v1728_v12 }
 0x517   :  { %v1446_v52 = vpop.f32.mrf.mxu3  ;;  %v1485_v53 = vpop.f32.mrf.mxu2 }
 0x51b   :  { %v1651_v63 = vpop.f32.mrf.mxu1 }
 0x51c   :  { %v1638_v59 = vpop.f32.mrf.mxu0  ;;  %v16220_v0 = vadd.f32 %v1651_v63, %v1599_v58 }
 0x51d   :  { %v16218_v62 = vadd.f32 %v1638_v59, %v1598_v54 }
 0x51e   :  { %v1722_v7 = vmax.f32 %v16220_v0, 0.0 }
 0x51f   :  { %v1721_v3 = vmax.f32 %v16218_v62, 0.0  ;;  %v1625_v6 = vpop.f32.mrf.mxu3  ;;  %v1664_v9 = vpop.f32.mrf.mxu2 }
 0x520   :  { %v16224_v8 = vadd.f32 %v1625_v6, %v1597_v61  ;;  %v16226_v10 = vadd.f32 %v1664_v9, %v1600_v1 }
 0x522   :  { %v1720_v11 = vmax.f32 %v16224_v8, 0.0  ;;  %v1723_v5 = vmax.f32 %v16226_v10, 0.0 }
 0x523   :  { %v1653_v33 = vpop.f32.mrf.mxu1 }
 0x524   :  { %v1640_v13 = vpop.f32.mrf.mxu0 }
 0x527   :  { %v1627_v26 = vpop.f32.mrf.mxu3  ;;  %v1666_v14 = vpop.f32.mrf.mxu2 }
 0x52b   :  { %v1703_v16 = vpop.f32.mrf.mxu1 }
 0x52c   :  { %v1690_v22 = vpop.f32.mrf.mxu0  ;;  %v16238_v12 = vadd.f32 %v1703_v16, %v1603_v20 }
 0x52d   :  { %v16236_v25 = vadd.f32 %v1690_v22, %v1602_v49 }
 0x52e   :  { %v1726_v19 = vmax.f32 %v16238_v12, 0.0 }
 0x52f   :  { %v1677_v15 = vpop.f32.mrf.mxu3  ;;  %v1716_v38 = vpop.f32.mrf.mxu2  ;;  %v1725_v31 = vmax.f32 %v16236_v25, 0.0 }
 0x530   :  { %v16230_v21 = vadd.f32 %v1677_v15, %v1601_v36  ;;  %v16233_v17 = vadd.f32 %v1716_v38, %v1604_v30 }
 0x532   :  { %v1724_v55 = vmax.f32 %v16230_v21, 0.0  ;;  %v1727_v18 = vmax.f32 %v16233_v17, 0.0 }
 0x533   :  { %v1705_v47 = vpop.f32.mrf.mxu1 }
 0x534   :  { %v1692_v32 = vpop.f32.mrf.mxu0 }
 0x537   :  { %v1679_v28 = vpop.f32.mrf.mxu3  ;;  %v1718_v23 = vpop.f32.mrf.mxu2 }
 0x57e   :  { %v16244_v57 = vpop.f32.mrf.mxu1 }
 0x57f   :  { %v16242_v56 = vpop.f32.mrf.mxu0 }
 0x588   :  { %v16246_v60 = vpop.f32.mrf.mxu3  ;;  %v16248_v34 = vpop.f32.mrf.mxu2 }
 0x58e   :  { %v16252_v24 = vpop.f32.mrf.mxu1 }
 0x58f   :  { %v16250_v2 = vpop.f32.mrf.mxu0 }
 0x598   :  { %v16254_v29 = vpop.f32.mrf.mxu3  ;;  %v16256_v35 = vpop.f32.mrf.mxu2 }
 0x599   :  { %15785 = dma.done.wait [#allocation6 + $0x2], 65536 }
 0x59a   :  { %15786 = vsyncadd [#allocation6 + $0x2], 4294901760 }
 0x59b   :  { %15787 = dma.done.wait [#allocation6 + $0x3], 65536 }
 0x59c   :  { %15788 = vsyncadd [#allocation6 + $0x3], 4294901760  ;;  %v10338_v37 = vld [vmem:[#allocation4 + $0x1c0] sm:$0xf]  ;;  %v16276_v10 = vpack.c.bf16 %v1722_v7, %v1722_v7  ;;  %v16295_v21 = vpack.c.bf16 %v1725_v31, %v1725_v31  ;;  %v14348_v17 = vld [vmem:[#allocation4 + $0x344] sm:$0xf]  ;;  %v16301_v25 = vpack.c.bf16 %v1726_v19, %v1726_v19 }
 0x59d   :  { %v14304_v27 = vld [vmem:[#allocation4 + $0x1dc] sm:$0xf0]  ;;  %v14340_v12 = vld [vmem:[#allocation4 + $0x304] sm:$0xf]  ;;  %vm9824_vm5 = vcmask 1045504   ;;  %vm9847_vm6 = vcmask 5120  }
 0x59e   :  { %v10594_v4 = vld [vmem:[#allocation4 + $0x3c0] sm:$0xf]  ;;  %v10339_v39 = vor.u32 %v14304_v27, %v10338_v37  ;;  %v14468_v19 = vld [vmem:[#allocation4 + $0x704] sm:$0xf] }
 0x59f   :  { %v14368_v40 = vld [vmem:[#allocation4 + $0x3dc] sm:$0xf0] }
 0x5a0   :  { %v11106_v41 = vld [vmem:[#allocation4 + $0x7c0] sm:$0xf]  ;;  %v10595_v43 = vor.u32 %v14368_v40, %v10594_v4  ;;  %5004 = vmatpush.bf16.msra.mxu3 %v10339_v39 }
 0x5a1   :  { %v14496_v42 = vld [vmem:[#allocation4 + $0x7dc] sm:$0xf0] }
 0x5a2   :  { %v11107_v44 = vor.u32 %v14496_v42, %v11106_v41  ;;  %v10850_v45 = vld [vmem:[#allocation4 + $0x5c0] sm:$0xf]  ;;  %5017 = vmatpush.bf16.msrb.mxu0 %v10595_v43 }
 0x5a3   :  { %v14432_v46 = vld [vmem:[#allocation4 + $0x5dc] sm:$0xf0] }
 0x5a4   :  { %v10306_v48 = vld [vmem:[#allocation4 + $0x180] sm:$0xf]  ;;  %v10851_v50 = vor.u32 %v14432_v46, %v10850_v45  ;;  %5043 = vmatpush.bf16.msrb.mxu2 %v11107_v44 }
 0x5a5   :  { %v14296_v51 = vld [vmem:[#allocation4 + $0x19c] sm:$0xf0] }
 0x5a6   :  { %v10562_v52 = vld [vmem:[#allocation4 + $0x380] sm:$0xf]  ;;  %v10307_v54 = vor.u32 %v14296_v51, %v10306_v48  ;;  %5030 = vmatpush.bf16.msrb.mxu1 %v10851_v50 }
 0x5a7   :  { %v14360_v53 = vld [vmem:[#allocation4 + $0x39c] sm:$0xf0] }
 0x5a8   :  { %v10563_v58 = vor.u32 %v14360_v53, %v10562_v52  ;;  %v11074_v59 = vld [vmem:[#allocation4 + $0x780] sm:$0xf]  ;;  %5005 = vmatpush.bf16.msra.mxu3 %v10307_v54 }
 0x5a9   :  { %v14488_v61 = vld [vmem:[#allocation4 + $0x79c] sm:$0xf0] }
 0x5aa   :  { %v10818_v63 = vld [vmem:[#allocation4 + $0x580] sm:$0xf]  ;;  %v11075_v1 = vor.u32 %v14488_v61, %v11074_v59  ;;  %5018 = vmatpush.bf16.msrb.mxu0 %v10563_v58 }
 0x5ab   :  { %v14424_v6 = vld [vmem:[#allocation4 + $0x59c] sm:$0xf0] }
 0x5ac   :  { %v10274_v9 = vld [vmem:[#allocation4 + $0x140] sm:$0xf]  ;;  %v10819_v33 = vor.u32 %v14424_v6, %v10818_v63  ;;  %5044 = vmatpush.bf16.msrb.mxu2 %v11075_v1 }
 0x5ad   :  { %v14288_v13 = vld [vmem:[#allocation4 + $0x15c] sm:$0xf0] }
 0x5ae   :  { %v10530_v26 = vld [vmem:[#allocation4 + $0x340] sm:$0xf]  ;;  %v10275_v15 = vor.u32 %v14288_v13, %v10274_v9  ;;  %5031 = vmatpush.bf16.msrb.mxu1 %v10819_v33 }
 0x5af   :  { %v14352_v14 = vld [vmem:[#allocation4 + $0x35c] sm:$0xf0] }
 0x5b0   :  { %v11042_v36 = vld [vmem:[#allocation4 + $0x740] sm:$0xf]  ;;  %v10531_v23 = vor.u32 %v14352_v14, %v10530_v26  ;;  %5006 = vmatpush.bf16.msra.mxu3 %v10275_v15 }
 0x5b1   :  { %v14480_v28 = vld [vmem:[#allocation4 + $0x75c] sm:$0xf0] }
 0x5b2   :  { %v10786_v30 = vld [vmem:[#allocation4 + $0x540] sm:$0xf]  ;;  %v11043_v49 = vor.u32 %v14480_v28, %v11042_v36  ;;  %5019 = vmatpush.bf16.msrb.mxu0 %v10531_v23 }
 0x5b3   :  { %v14416_v38 = vld [vmem:[#allocation4 + $0x55c] sm:$0xf0] }
 0x5b4   :  { %v10242_v20 = vld [vmem:[#allocation4 + $0x100] sm:$0xf]  ;;  %v10787_v32 = vor.u32 %v14416_v38, %v10786_v30  ;;  %5045 = vmatpush.bf16.msrb.mxu2 %v11043_v49 }
 0x5b5   :  { %v14280_v22 = vld [vmem:[#allocation4 + $0x11c] sm:$0xf0] }
 0x5b6   :  { %v10498_v16 = vld [vmem:[#allocation4 + $0x300] sm:$0xf]  ;;  %v10243_v40 = vor.u32 %v14280_v22, %v10242_v20  ;;  %5032 = vmatpush.bf16.msrb.mxu1 %v10787_v32 }
 0x5b7   :  { %v14344_v47 = vld [vmem:[#allocation4 + $0x31c] sm:$0xf0] }
 0x5b8   :  { %v11010_v37 = vld [vmem:[#allocation4 + $0x700] sm:$0xf]  ;;  %v10499_v41 = vor.u32 %v14344_v47, %v10498_v16  ;;  %5007 = vmatpush.bf16.msra.mxu3 %v10243_v40 }
 0x5b9   :  { %v14472_v27 = vld [vmem:[#allocation4 + $0x71c] sm:$0xf0] }
 0x5ba   :  { %v10754_v4 = vld [vmem:[#allocation4 + $0x500] sm:$0xf]  ;;  %v11011_v42 = vor.u32 %v14472_v27, %v11010_v37  ;;  %5020 = vmatpush.bf16.msrb.mxu0 %v10499_v41 }
 0x5bb   :  { %v14408_v39 = vld [vmem:[#allocation4 + $0x51c] sm:$0xf0] }
 0x5bc   :  { %v10210_v43 = vld [vmem:[#allocation4 + $0xc0] sm:$0xf]  ;;  %v10755_v46 = vor.u32 %v14408_v39, %v10754_v4  ;;  %5046 = vmatpush.bf16.msrb.mxu2 %v11011_v42 }
 0x5bd   :  { %v14272_v44 = vld [vmem:[#allocation4 + $0xdc] sm:$0xf0] }
 0x5be   :  { %v10466_v45 = vld [vmem:[#allocation4 + $0x2c0] sm:$0xf]  ;;  %v10211_v54 = vor.u32 %v14272_v44, %v10210_v43  ;;  %5033 = vmatpush.bf16.msrb.mxu1 %v10755_v46 }
 0x5bf   :  { %v14336_v48 = vld [vmem:[#allocation4 + $0x2dc] sm:$0xf0] }
 0x5c0   :  { %v10978_v50 = vld [vmem:[#allocation4 + $0x6c0] sm:$0xf]  ;;  %v10467_v58 = vor.u32 %v14336_v48, %v10466_v45  ;;  %5008 = vmatpush.bf16.msra.mxu3 %v10211_v54 }
 0x5c1   :  { %v14464_v51 = vld [vmem:[#allocation4 + $0x6dc] sm:$0xf0] }
 0x5c2   :  { %v10722_v52 = vld [vmem:[#allocation4 + $0x4c0] sm:$0xf]  ;;  %v10979_v59 = vor.u32 %v14464_v51, %v10978_v50  ;;  %5021 = vmatpush.bf16.msrb.mxu0 %v10467_v58 }
 0x5c3   :  { %v14400_v53 = vld [vmem:[#allocation4 + $0x4dc] sm:$0xf0] }
 0x5c4   :  { %v10178_v61 = vld [vmem:[#allocation4 + $0x80] sm:$0xf]  ;;  %v10723_v6 = vor.u32 %v14400_v53, %v10722_v52  ;;  %5047 = vmatpush.bf16.msrb.mxu2 %v10979_v59 }
 0x5c5   :  { %v14264_v63 = vld [vmem:[#allocation4 + $0x9c] sm:$0xf0] }
 0x5c6   :  { %v10434_v1 = vld [vmem:[#allocation4 + $0x280] sm:$0xf]  ;;  %v10179_v36 = vor.u32 %v14264_v63, %v10178_v61  ;;  %5034 = vmatpush.bf16.msrb.mxu1 %v10723_v6 }
 0x5c7   :  { %v14328_v9 = vld [vmem:[#allocation4 + $0x29c] sm:$0xf0] }
 0x5c8   :  { %v10946_v13 = vld [vmem:[#allocation4 + $0x680] sm:$0xf]  ;;  %v10435_v15 = vor.u32 %v14328_v9, %v10434_v1  ;;  %5009 = vmatpush.bf16.msra.mxu3 %v10179_v36 }
 0x5c9   :  { %v14456_v33 = vld [vmem:[#allocation4 + $0x69c] sm:$0xf0] }
 0x5ca   :  { %v10690_v26 = vld [vmem:[#allocation4 + $0x480] sm:$0xf]  ;;  %v10947_v28 = vor.u32 %v14456_v33, %v10946_v13  ;;  %5022 = vmatpush.bf16.msrb.mxu0 %v10435_v15 }
 0x5cb   :  { %v14392_v14 = vld [vmem:[#allocation4 + $0x49c] sm:$0xf0] }
 0x5cc   :  { %v10146_v30 = vld [vmem:[#allocation4 + $0x40] sm:$0xf]  ;;  %v10691_v49 = vor.u32 %v14392_v14, %v10690_v26  ;;  %5048 = vmatpush.bf16.msrb.mxu2 %v10947_v28 }
 0x5cd   :  { %v14256_v38 = vld [vmem:[#allocation4 + $0x5c] sm:$0xf0] }
 0x5ce   :  { %v10402_v23 = vld [vmem:[#allocation4 + $0x240] sm:$0xf]  ;;  %v10147_v37 = vor.u32 %v14256_v38, %v10146_v30  ;;  %5035 = vmatpush.bf16.msrb.mxu1 %v10691_v49  ;;  %v16261_v49 = vpack.c.bf16 %v1720_v11, %v1720_v11 }
 0x5cf   :  { %v14320_v20 = vld [vmem:[#allocation4 + $0x25c] sm:$0xf0] }
 0x5d0   :  { %v10914_v22 = vld [vmem:[#allocation4 + $0x640] sm:$0xf]  ;;  %v10403_v39 = vor.u32 %v14320_v20, %v10402_v23  ;;  %5010 = vmatpush.bf16.msra.mxu3 %v10147_v37 }
 0x5d1   :  { %v14448_v16 = vld [vmem:[#allocation4 + $0x65c] sm:$0xf0] }
 0x5d2   :  { %v10658_v32 = vld [vmem:[#allocation4 + $0x440] sm:$0xf]  ;;  %v10915_v40 = vor.u32 %v14448_v16, %v10914_v22  ;;  %5023 = vmatpush.bf16.msrb.mxu0 %v10403_v39  ;;  %v16266_v16 = vpack.c.bf16 %v1723_v5, %v1723_v5 }
 0x5d3   :  { %v14384_v47 = vld [vmem:[#allocation4 + $0x45c] sm:$0xf0] }
 0x5d4   :  { %v10114_v27 = vld [vmem:[#allocation4] sm:$0xf]  ;;  %v10659_v44 = vor.u32 %v14384_v47, %v10658_v32  ;;  %5049 = vmatpush.bf16.msrb.mxu2 %v10915_v40  ;;  %v16271_v32 = vpack.c.bf16 %v1721_v3, %v1721_v3 }
 0x5d5   :  { %v14248_v4 = vld [vmem:[#allocation4 + $0x1c] sm:$0xf0] }
 0x5d6   :  { %v10370_v41 = vld [vmem:[#allocation4 + $0x200] sm:$0xf]  ;;  %v10115_v53 = vor.u32 %v14248_v4, %v10114_v27  ;;  %5036 = vmatpush.bf16.msrb.mxu1 %v10659_v44 }
 0x5d7   :  { %v14312_v42 = vld [vmem:[#allocation4 + $0x21c] sm:$0xf0] }
 0x5d8   :  { %v10882_v43 = vld [vmem:[#allocation4 + $0x600] sm:$0xf]  ;;  %v10371_v61 = vor.u32 %v14312_v42, %v10370_v41  ;;  %5011 = vmatpush.bf16.msra.mxu3 %v10115_v53 }
 0x5d9   :  { %v14440_v45 = vld [vmem:[#allocation4 + $0x61c] sm:$0xf0] }
 0x5da   :  { %v11362_v46 = vld [vmem:[#allocation4 + $0x9c0] sm:$0xf]  ;;  %v10883_v63 = vor.u32 %v14440_v45, %v10882_v43  ;;  %5024 = vmatpush.bf16.msrb.mxu0 %v10371_v61 }
 0x5db   :  { %v14560_v48 = vld [vmem:[#allocation4 + $0x9dc] sm:$0xf0]  ;;  %5012 = vmatmul.bf16.vlgmr.msra.gmra.mxu3 %v16261_v49 }
 0x5dc   :  { %v11618_v50 = vld [vmem:[#allocation4 + $0xbc0] sm:$0xf]  ;;  %v11363_v9 = vor.u32 %v14560_v48, %v11362_v46  ;;  %5050 = vmatpush.bf16.msrb.mxu2 %v10883_v63 }
 0x5dd   :  { %v14624_v51 = vld [vmem:[#allocation4 + $0xbdc] sm:$0xf0]  ;;  %5025 = vmatmul.bf16.vlgmr.msrb.gmra.mxu0 %v16271_v32 }
 0x5de   :  { %v12130_v52 = vld [vmem:[#allocation4 + $0xfc0] sm:$0xf]  ;;  %v11619_v13 = vor.u32 %v14624_v51, %v11618_v50  ;;  %5056 = vmatpush.bf16.msrb.mxu3 %v11363_v9 }
 0x5df   :  { %v14752_v54 = vld [vmem:[#allocation4 + $0xfdc] sm:$0xf0]  ;;  %5051 = vmatmul.bf16.vlgmr.msrb.gmra.mxu2 %v16266_v16 }
 0x5e0   :  { %v10626_v58 = vld [vmem:[#allocation4 + $0x400] sm:$0xf]  ;;  %v12131_v26 = vor.u32 %v14752_v54, %v12130_v52  ;;  %5069 = vmatpush.bf16.msra.mxu0 %v11619_v13 }
 0x5e1   :  { %v14376_v59 = vld [vmem:[#allocation4 + $0x41c] sm:$0xf0] }
 0x5e2   :  { %v11874_v1 = vld [vmem:[#allocation4 + $0xdc0] sm:$0xf]  ;;  %v10627_v14 = vor.u32 %v14376_v59, %v10626_v58  ;;  %5095 = vmatpush.bf16.msra.mxu2 %v12131_v26 }
 0x5e3   :  { %v14688_v6 = vld [vmem:[#allocation4 + $0xddc] sm:$0xf0] }
 0x5e4   :  { %v11330_v33 = vld [vmem:[#allocation4 + $0x980] sm:$0xf]  ;;  %v11875_v30 = vor.u32 %v14688_v6, %v11874_v1  ;;  %5037 = vmatpush.bf16.msrb.mxu1 %v10627_v14 }
 0x5e5   :  { %v14552_v36 = vld [vmem:[#allocation4 + $0x99c] sm:$0xf0] }
 0x5e6   :  { %v11586_v15 = vld [vmem:[#allocation4 + $0xb80] sm:$0xf]  ;;  %v11331_v8 = vor.u32 %v14552_v36, %v11330_v33 }
 0x5e7   :  { %v14616_v28 = vld [vmem:[#allocation4 + $0xb9c] sm:$0xf0]  ;;  %5038 = vmatmul.bf16.vlgmr.msrb.gmra.mxu1 %v16276_v10 }
 0x5e8   :  { %v12098_v38 = vld [vmem:[#allocation4 + $0xf80] sm:$0xf]  ;;  %v11587_v47 = vor.u32 %v14616_v28, %v11586_v15  ;;  %5082 = vmatpush.bf16.msra.mxu1 %v11875_v30  ;;  %5057 = vmatpush.bf16.msrb.mxu3 %v11331_v8 }
 0x5e9   :  { %v14744_v23 = vld [vmem:[#allocation4 + $0xf9c] sm:$0xf0] }
 0x5ea   :  { %v11842_v20 = vld [vmem:[#allocation4 + $0xd80] sm:$0xf]  ;;  %v12099_v37 = vor.u32 %v14744_v23, %v12098_v38  ;;  %5070 = vmatpush.bf16.msra.mxu0 %v11587_v47 }
 0x5eb   :  { %v14680_v22 = vld [vmem:[#allocation4 + $0xd9c] sm:$0xf0] }
 0x5ec   :  { %v11298_v11 = vld [vmem:[#allocation4 + $0x940] sm:$0xf]  ;;  %v11843_v62 = vor.u32 %v14680_v22, %v11842_v20  ;;  %5096 = vmatpush.bf16.msra.mxu2 %v12099_v37 }
 0x5ed   :  { %v14544_v27 = vld [vmem:[#allocation4 + $0x95c] sm:$0xf0] }
 0x5ee   :  { %v11554_v4 = vld [vmem:[#allocation4 + $0xb40] sm:$0xf]  ;;  %v11299_v42 = vor.u32 %v14544_v27, %v11298_v11  ;;  %5083 = vmatpush.bf16.msra.mxu1 %v11843_v62 }
 0x5ef   :  { %v14608_v39 = vld [vmem:[#allocation4 + $0xb5c] sm:$0xf0] }
 0x5f0   :  { %v12066_v3 = vld [vmem:[#allocation4 + $0xf40] sm:$0xf]  ;;  %v11555_v43 = vor.u32 %v14608_v39, %v11554_v4  ;;  %5058 = vmatpush.bf16.msrb.mxu3 %v11299_v42 }
 0x5f1   :  { %v14736_v5 = vld [vmem:[#allocation4 + $0xf5c] sm:$0xf0] }
 0x5f2   :  { %v11810_v40 = vld [vmem:[#allocation4 + $0xd40] sm:$0xf]  ;;  %v12067_v7 = vor.u32 %v14736_v5, %v12066_v3  ;;  %5071 = vmatpush.bf16.msra.mxu0 %v11555_v43 }
 0x5f3   :  { %v14672_v41 = vld [vmem:[#allocation4 + $0xd5c] sm:$0xf0] }
 0x5f4   :  { %v11266_v0 = vld [vmem:[#allocation4 + $0x900] sm:$0xf]  ;;  %v11811_v48 = vor.u32 %v14672_v41, %v11810_v40  ;;  %5097 = vmatpush.bf16.msra.mxu2 %v12067_v7 }
 0x5f5   :  { %v14536_v44 = vld [vmem:[#allocation4 + $0x91c] sm:$0xf0] }
 0x5f6   :  { %v11522_v45 = vld [vmem:[#allocation4 + $0xb00] sm:$0xf]  ;;  %v11267_v54 = vor.u32 %v14536_v44, %v11266_v0  ;;  %5084 = vmatpush.bf16.msra.mxu1 %v11811_v48 }
 0x5f7   :  { %v14600_v46 = vld [vmem:[#allocation4 + $0xb1c] sm:$0xf0] }
 0x5f8   :  { %v12034_v50 = vld [vmem:[#allocation4 + $0xf00] sm:$0xf]  ;;  %v11523_v58 = vor.u32 %v14600_v46, %v11522_v45  ;;  %5059 = vmatpush.bf16.msrb.mxu3 %v11267_v54 }
 0x5f9   :  { %v14728_v51 = vld [vmem:[#allocation4 + $0xf1c] sm:$0xf0] }
 0x5fa   :  { %v11778_v52 = vld [vmem:[#allocation4 + $0xd00] sm:$0xf]  ;;  %v12035_v61 = vor.u32 %v14728_v51, %v12034_v50  ;;  %5072 = vmatpush.bf16.msra.mxu0 %v11523_v58 }
 0x5fb   :  { %v14664_v53 = vld [vmem:[#allocation4 + $0xd1c] sm:$0xf0] }
 0x5fc   :  { %v11234_v59 = vld [vmem:[#allocation4 + $0x8c0] sm:$0xf]  ;;  %v11779_v9 = vor.u32 %v14664_v53, %v11778_v52  ;;  %5098 = vmatpush.bf16.msra.mxu2 %v12035_v61  ;;  %v10340_v61 = vld [vmem:[#allocation4 + $0x1e0] sm:$0xf0] }
 0x5fd   :  { %v14528_v63 = vld [vmem:[#allocation4 + $0x8dc] sm:$0xf0] }
 0x5fe   :  { %v11490_v1 = vld [vmem:[#allocation4 + $0xac0] sm:$0xf]  ;;  %v11235_v36 = vor.u32 %v14528_v63, %v11234_v59  ;;  %5085 = vmatpush.bf16.msra.mxu1 %v11779_v9  ;;  %v14300_v59 = vld [vmem:[#allocation4 + $0x1c4] sm:$0xf] }
 0x5ff   :  { %v14592_v6 = vld [vmem:[#allocation4 + $0xadc] sm:$0xf0]  ;;  %v14364_v63 = vld [vmem:[#allocation4 + $0x3c4] sm:$0xf] }
 0x600   :  { %v12002_v13 = vld [vmem:[#allocation4 + $0xec0] sm:$0xf]  ;;  %v11491_v15 = vor.u32 %v14592_v6, %v11490_v1  ;;  %5060 = vmatpush.bf16.msrb.mxu3 %v11235_v36  ;;  %v10596_v1 = vld [vmem:[#allocation4 + $0x3e0] sm:$0xf0] }
 0x601   :  { %v14720_v33 = vld [vmem:[#allocation4 + $0xedc] sm:$0xf0]  ;;  %v14492_v6 = vld [vmem:[#allocation4 + $0x7c4] sm:$0xf] }
 0x602   :  { %v11746_v26 = vld [vmem:[#allocation4 + $0xcc0] sm:$0xf]  ;;  %v12003_v30 = vor.u32 %v14720_v33, %v12002_v13  ;;  %5073 = vmatpush.bf16.msra.mxu0 %v11491_v15  ;;  %v11108_v9 = vld [vmem:[#allocation4 + $0x7e0] sm:$0xf0]  ;;  %v10343_v15 = vor.u32 %v14300_v59, %v10340_v61 }
 0x603   :  { %v14656_v14 = vld [vmem:[#allocation4 + $0xcdc] sm:$0xf0]  ;;  %v14404_v61 = vld [vmem:[#allocation4 + $0x504] sm:$0xf] }
 0x604   :  { %v11202_v28 = vld [vmem:[#allocation4 + $0x880] sm:$0xf]  ;;  %v11747_v22 = vor.u32 %v14656_v14, %v11746_v26  ;;  %5099 = vmatpush.bf16.msra.mxu2 %v12003_v30  ;;  %v10852_v30 = vld [vmem:[#allocation4 + $0x5e0] sm:$0xf0] }
 0x605   :  { %v14520_v38 = vld [vmem:[#allocation4 + $0x89c] sm:$0xf0] }
 0x606   :  { %v11458_v23 = vld [vmem:[#allocation4 + $0xa80] sm:$0xf]  ;;  %v11203_v27 = vor.u32 %v14520_v38, %v11202_v28  ;;  %5086 = vmatpush.bf16.msra.mxu1 %v11747_v22  ;;  %v14428_v28 = vld [vmem:[#allocation4 + $0x5c4] sm:$0xf]  ;;  %v10599_v38 = vor.u32 %v14364_v63, %v10596_v1 }
 0x607   :  { %v14584_v20 = vld [vmem:[#allocation4 + $0xa9c] sm:$0xf0]  ;;  %v10308_v22 = vld [vmem:[#allocation4 + $0x1a0] sm:$0xf0] }
 0x608   :  { %v11970_v8 = vld [vmem:[#allocation4 + $0xe80] sm:$0xf]  ;;  %v11459_v4 = vor.u32 %v14584_v20, %v11458_v23  ;;  %5061 = vmatpush.bf16.msrb.mxu3 %v11203_v27  ;;  %v11111_v23 = vor.u32 %v14492_v6, %v11108_v9  ;;  %v14292_v20 = vld [vmem:[#allocation4 + $0x184] sm:$0xf] }
 0x609   :  { %v14712_v47 = vld [vmem:[#allocation4 + $0xe9c] sm:$0xf0]  ;;  %v11076_v27 = vld [vmem:[#allocation4 + $0x7a0] sm:$0xf0] }
 0x60a   :  { %v11714_v11 = vld [vmem:[#allocation4 + $0xc80] sm:$0xf]  ;;  %v11971_v62 = vor.u32 %v14712_v47, %v11970_v8  ;;  %5074 = vmatpush.bf16.msra.mxu0 %v11459_v4  ;;  %v14356_v8 = vld [vmem:[#allocation4 + $0x384] sm:$0xf]  ;;  %v16285_v4 = vpack.c.bf16 %v1724_v55, %v1724_v55 }
 0x60b   :  { %v14648_v37 = vld [vmem:[#allocation4 + $0xc9c] sm:$0xf0]  ;;  %v10756_v63 = vld [vmem:[#allocation4 + $0x520] sm:$0xf0] }
 0x60c   :  { %v11170_v39 = vld [vmem:[#allocation4 + $0x840] sm:$0xf]  ;;  %v11715_v41 = vor.u32 %v14648_v37, %v11714_v11  ;;  %5100 = vmatpush.bf16.msra.mxu2 %v11971_v62  ;;  %v10564_v11 = vld [vmem:[#allocation4 + $0x3a0] sm:$0xf0]  ;;  %v16290_v62 = vpack.c.bf16 %v1727_v18, %v1727_v18 }
 0x60d   :  { %v14512_v3 = vld [vmem:[#allocation4 + $0x85c] sm:$0xf0]  ;;  %v14484_v37 = vld [vmem:[#allocation4 + $0x784] sm:$0xf]  ;;  %v10567_v55 = vor.u32 %v14356_v8, %v10564_v11 }
 0x60e   :  { %v11426_v5 = vld [vmem:[#allocation4 + $0xa40] sm:$0xf]  ;;  %v11171_v44 = vor.u32 %v14512_v3, %v11170_v39  ;;  %5087 = vmatpush.bf16.msra.mxu1 %v11715_v41  ;;  %v10855_v39 = vor.u32 %v14428_v28, %v10852_v30  ;;  %v10311_v3 = vor.u32 %v14292_v20, %v10308_v22  ;;  %v11079_v41 = vor.u32 %v14484_v37, %v11076_v27  ;;  %v10532_v18 = vld [vmem:[#allocation4 + $0x360] sm:$0xf0] }
 0x60f   :  { %v14576_v40 = vld [vmem:[#allocation4 + $0xa5c] sm:$0xf0]  ;;  %v14268_v9 = vld [vmem:[#allocation4 + $0xc4] sm:$0xf] }
 0x610   :  { %v11938_v42 = vld [vmem:[#allocation4 + $0xe40] sm:$0xf]  ;;  %v11427_v45 = vor.u32 %v14576_v40, %v11426_v5  ;;  %5062 = vmatpush.bf16.msrb.mxu3 %v11171_v44  ;;  %v14420_v5 = vld [vmem:[#allocation4 + $0x584] sm:$0xf] }
 0x611   :  { %v14704_v43 = vld [vmem:[#allocation4 + $0xe5c] sm:$0xf0]  ;;  %v10820_v40 = vld [vmem:[#allocation4 + $0x5a0] sm:$0xf0] }
 0x612   :  { %v11682_v0 = vld [vmem:[#allocation4 + $0xc40] sm:$0xf]  ;;  %v11939_v51 = vor.u32 %v14704_v43, %v11938_v42  ;;  %5075 = vmatpush.bf16.msra.mxu0 %v11427_v45  ;;  %v14284_v42 = vld [vmem:[#allocation4 + $0x144] sm:$0xf]  ;;  %v10823_v31 = vor.u32 %v14420_v5, %v10820_v40 }
 0x613   :  { %v14640_v7 = vld [vmem:[#allocation4 + $0xc5c] sm:$0xf0]  ;;  %v10276_v43 = vld [vmem:[#allocation4 + $0x160] sm:$0xf0] }
 0x614   :  { %v11138_v46 = vld [vmem:[#allocation4 + $0x800] sm:$0xf]  ;;  %v11683_v58 = vor.u32 %v14640_v7, %v11682_v0  ;;  %5101 = vmatpush.bf16.msra.mxu2 %v11939_v51  ;;  %v14476_v0 = vld [vmem:[#allocation4 + $0x744] sm:$0xf]  ;;  %v10279_v44 = vor.u32 %v14284_v42, %v10276_v43 }
 0x615   :  { %v14504_v48 = vld [vmem:[#allocation4 + $0x81c] sm:$0xf0]  ;;  %v11044_v7 = vld [vmem:[#allocation4 + $0x760] sm:$0xf0] }
 0x616   :  { %v11394_v50 = vld [vmem:[#allocation4 + $0xa00] sm:$0xf]  ;;  %v11139_v13 = vor.u32 %v14504_v48, %v11138_v46  ;;  %5088 = vmatpush.bf16.msra.mxu1 %v11683_v58  ;;  %v14412_v45 = vld [vmem:[#allocation4 + $0x544] sm:$0xf]  ;;  %v10535_v48 = vor.u32 %v14348_v17, %v10532_v18 }
 0x617   :  { %v14568_v52 = vld [vmem:[#allocation4 + $0xa1c] sm:$0xf0]  ;;  %v10788_v46 = vld [vmem:[#allocation4 + $0x560] sm:$0xf0] }
 0x618   :  { %v11906_v53 = vld [vmem:[#allocation4 + $0xe00] sm:$0xf]  ;;  %v11395_v33 = vor.u32 %v14568_v52, %v11394_v50  ;;  %5063 = vmatpush.bf16.msrb.mxu3 %v11139_v13  ;;  %v11047_v50 = vor.u32 %v14476_v0, %v11044_v7  ;;  %v14276_v51 = vld [vmem:[#allocation4 + $0x104] sm:$0xf]  ;;  %v10791_v58 = vor.u32 %v14412_v45, %v10788_v46 }
 0x619   :  { %v14696_v54 = vld [vmem:[#allocation4 + $0xe1c] sm:$0xf0]  ;;  %v10244_v52 = vld [vmem:[#allocation4 + $0x120] sm:$0xf0] }
 0x61a   :  { %v11650_v26 = vld [vmem:[#allocation4 + $0xc00] sm:$0xf]  ;;  %v11907_v36 = vor.u32 %v14696_v54, %v11906_v53  ;;  %5076 = vmatpush.bf16.msra.mxu0 %v11395_v33  ;;  %v10500_v53 = vld [vmem:[#allocation4 + $0x320] sm:$0xf0]  ;;  %v10247_v59 = vor.u32 %v14276_v51, %v10244_v52 }
 0x61b   :  { %v14632_v14 = vld [vmem:[#allocation4 + $0xc1c] sm:$0xf0]  ;;  %5064 = vmatmul.bf16.vlgmr.msrb.gmra.mxu3 %v16285_v4  ;;  %v11012_v54 = vld [vmem:[#allocation4 + $0x720] sm:$0xf0]  ;;  %v10503_v1 = vor.u32 %v14340_v12, %v10500_v53 }
 0x61c   :  { %v11651_v47 = vor.u32 %v14632_v14, %v11650_v26  ;;  %5102 = vmatpush.bf16.msra.mxu2 %v11907_v36  ;;  %5108 = vmatpush.bf16.msra.mxu3 %v10343_v15  ;;  %v11015_v6 = vor.u32 %v14468_v19, %v11012_v54  ;;  %v10212_v13 = vld [vmem:[#allocation4 + $0xe0] sm:$0xf0]  ;;  %v10759_v15 = vor.u32 %v14404_v61, %v10756_v63 }
 0x61d   :  { %5077 = vmatmul.bf16.vlgmr.msra.gmra.mxu0 %v16295_v21  ;;  %v14332_v33 = vld [vmem:[#allocation4 + $0x2c4] sm:$0xf]  ;;  %v10215_v28 = vor.u32 %v14268_v9, %v10212_v13 }
 0x61e   :  { %5121 = vmatpush.bf16.msrb.mxu0 %v10599_v38  ;;  %5089 = vmatpush.bf16.msra.mxu1 %v11651_v47  ;;  %v10468_v26 = vld [vmem:[#allocation4 + $0x2e0] sm:$0xf0] }
 0x61f   :  { %5103 = vmatmul.bf16.vlgmr.msra.gmra.mxu2 %v16290_v62  ;;  %v14460_v14 = vld [vmem:[#allocation4 + $0x6c4] sm:$0xf] }
 0x620   :  { %5147 = vmatpush.bf16.msrb.mxu2 %v11111_v23  ;;  %5109 = vmatpush.bf16.msra.mxu3 %v10311_v3  ;;  %v10980_v36 = vld [vmem:[#allocation4 + $0x6e0] sm:$0xf0]  ;;  %v10471_v23 = vor.u32 %v14332_v33, %v10468_v26 }
 0x621   :  { %5090 = vmatmul.bf16.vlgmr.msra.gmra.mxu1 %v16301_v25  ;;  %v14396_v30 = vld [vmem:[#allocation4 + $0x4c4] sm:$0xf]  ;;  %v10983_v20 = vor.u32 %v14460_v14, %v10980_v36 }
 0x622   :  { %5134 = vmatpush.bf16.msrb.mxu1 %v10855_v39  ;;  %5122 = vmatpush.bf16.msrb.mxu0 %v10567_v55  ;;  %v10724_v38 = vld [vmem:[#allocation4 + $0x4e0] sm:$0xf0] }
 0x623   :  { %v14260_v22 = vld [vmem:[#allocation4 + $0x84] sm:$0xf]  ;;  %v10727_v39 = vor.u32 %v14396_v30, %v10724_v38 }
 0x624   :  { %5148 = vmatpush.bf16.msrb.mxu2 %v11079_v41  ;;  %5110 = vmatpush.bf16.msra.mxu3 %v10279_v44  ;;  %v10180_v8 = vld [vmem:[#allocation4 + $0xa0] sm:$0xf0] }
 0x625   :  { %v14324_v47 = vld [vmem:[#allocation4 + $0x284] sm:$0xf]  ;;  %v10183_v3 = vor.u32 %v14260_v22, %v10180_v8 }
 0x626   :  { %5135 = vmatpush.bf16.msrb.mxu1 %v10823_v31  ;;  %5123 = vmatpush.bf16.msrb.mxu0 %v10535_v48  ;;  %v10436_v11 = vld [vmem:[#allocation4 + $0x2a0] sm:$0xf0] }
 0x627   :  { %v14452_v37 = vld [vmem:[#allocation4 + $0x684] sm:$0xf]  ;;  %v10439_v55 = vor.u32 %v14324_v47, %v10436_v11 }
 0x628   :  { %5149 = vmatpush.bf16.msrb.mxu2 %v11047_v50  ;;  %5111 = vmatpush.bf16.msra.mxu3 %v10247_v59  ;;  %v10948_v27 = vld [vmem:[#allocation4 + $0x6a0] sm:$0xf0] }
 0x629   :  { %v14388_v5 = vld [vmem:[#allocation4 + $0x484] sm:$0xf]  ;;  %v10951_v41 = vor.u32 %v14452_v37, %v10948_v27 }
 0x62a   :  { %5136 = vmatpush.bf16.msrb.mxu1 %v10791_v58  ;;  %5124 = vmatpush.bf16.msrb.mxu0 %v10503_v1  ;;  %v10692_v40 = vld [vmem:[#allocation4 + $0x4a0] sm:$0xf0] }
 0x62b   :  { %v14252_v42 = vld [vmem:[#allocation4 + $0x44] sm:$0xf]  ;;  %v10695_v31 = vor.u32 %v14388_v5, %v10692_v40 }
 0x62c   :  { %5150 = vmatpush.bf16.msrb.mxu2 %v11015_v6  ;;  %5112 = vmatpush.bf16.msra.mxu3 %v10215_v28  ;;  %v10148_v43 = vld [vmem:[#allocation4 + $0x60] sm:$0xf0] }
 0x62d   :  { %v14316_v17 = vld [vmem:[#allocation4 + $0x244] sm:$0xf]  ;;  %v10151_v45 = vor.u32 %v14252_v42, %v10148_v43 }
 0x62e   :  { %5137 = vmatpush.bf16.msrb.mxu1 %v10759_v15  ;;  %5125 = vmatpush.bf16.msrb.mxu0 %v10471_v23  ;;  %v10404_v18 = vld [vmem:[#allocation4 + $0x260] sm:$0xf0] }
 0x62f   :  { %v14444_v0 = vld [vmem:[#allocation4 + $0x644] sm:$0xf]  ;;  %v10407_v51 = vor.u32 %v14316_v17, %v10404_v18 }
 0x630   :  { %5151 = vmatpush.bf16.msrb.mxu2 %v10983_v20  ;;  %v10916_v7 = vld [vmem:[#allocation4 + $0x660] sm:$0xf0]  ;;  %5113 = vmatpush.bf16.msra.mxu3 %v10183_v3 }
 0x631   :  { %v14380_v44 = vld [vmem:[#allocation4 + $0x444] sm:$0xf]  ;;  %v10919_v52 = vor.u32 %v14444_v0, %v10916_v7 }
 0x632   :  { %5138 = vmatpush.bf16.msrb.mxu1 %v10727_v39  ;;  %v10660_v46 = vld [vmem:[#allocation4 + $0x460] sm:$0xf0]  ;;  %5126 = vmatpush.bf16.msrb.mxu0 %v10439_v55 }
 0x633   :  { %v14244_v48 = vld [vmem:[#allocation4 + $0x4] sm:$0xf]  ;;  %v10663_v61 = vor.u32 %v14380_v44, %v10660_v46 }
 0x634   :  { %v10116_v50 = vld [vmem:[#allocation4 + $0x20] sm:$0xf0]  ;;  %5152 = vmatpush.bf16.msrb.mxu2 %v10951_v41  ;;  %5114 = vmatpush.bf16.msra.mxu3 %v10151_v45 }
 0x635   :  { %v14308_v12 = vld [vmem:[#allocation4 + $0x204] sm:$0xf]  ;;  %v10119_v9 = vor.u32 %v14244_v48, %v10116_v50 }
 0x636   :  { %v10372_v53 = vld [vmem:[#allocation4 + $0x220] sm:$0xf0]  ;;  %5139 = vmatpush.bf16.msrb.mxu1 %v10695_v31  ;;  %5127 = vmatpush.bf16.msrb.mxu0 %v10407_v51 }
 0x637   :  { %v14436_v19 = vld [vmem:[#allocation4 + $0x604] sm:$0xf]  ;;  %v10375_v14 = vor.u32 %v14308_v12, %v10372_v53 }
 0x638   :  { %v10884_v54 = vld [vmem:[#allocation4 + $0x620] sm:$0xf0]  ;;  %5153 = vmatpush.bf16.msrb.mxu2 %v10919_v52  ;;  %5115 = vmatpush.bf16.msra.mxu3 %v10119_v9 }
 0x639   :  { %v14556_v58 = vld [vmem:[#allocation4 + $0x9c4] sm:$0xf]  ;;  %v10887_v36 = vor.u32 %v14436_v19, %v10884_v54 }
 0x63a   :  { %v11364_v59 = vld [vmem:[#allocation4 + $0x9e0] sm:$0xf0]  ;;  %5140 = vmatpush.bf16.msrb.mxu1 %v10663_v61  ;;  %5128 = vmatpush.bf16.msrb.mxu0 %v10375_v14 }
 0x63b   :  { %v14620_v63 = vld [vmem:[#allocation4 + $0xbc4] sm:$0xf]  ;;  %v11367_v30 = vor.u32 %v14556_v58, %v11364_v59  ;;  %5116 = vmatmul.bf16.vlgmr.msra.gmra.mxu3 %v16261_v49 }
 0x63c   :  { %v11620_v1 = vld [vmem:[#allocation4 + $0xbe0] sm:$0xf0]  ;;  %5154 = vmatpush.bf16.msrb.mxu2 %v10887_v36 }
 0x63d   :  { %v14748_v6 = vld [vmem:[#allocation4 + $0xfc4] sm:$0xf]  ;;  %v11623_v38 = vor.u32 %v14620_v63, %v11620_v1  ;;  %5160 = vmatpush.bf16.msrb.mxu3 %v11367_v30  ;;  %5129 = vmatmul.bf16.vlgmr.msrb.gmra.mxu0 %v16271_v32 }
 0x63e   :  { %v12132_v13 = vld [vmem:[#allocation4 + $0xfe0] sm:$0xf0] }
 0x63f   :  { %v14372_v33 = vld [vmem:[#allocation4 + $0x404] sm:$0xf]  ;;  %v12135_v20 = vor.u32 %v14748_v6, %v12132_v13  ;;  %5173 = vmatpush.bf16.msra.mxu0 %v11623_v38  ;;  %5155 = vmatmul.bf16.vlgmr.msrb.gmra.mxu2 %v16266_v16 }
 0x640   :  { %v10628_v26 = vld [vmem:[#allocation4 + $0x420] sm:$0xf0] }
 0x641   :  { %v14684_v15 = vld [vmem:[#allocation4 + $0xdc4] sm:$0xf]  ;;  %v10631_v22 = vor.u32 %v14372_v33, %v10628_v26  ;;  %5199 = vmatpush.bf16.msra.mxu2 %v12135_v20 }
 0x642   :  { %v11876_v28 = vld [vmem:[#allocation4 + $0xde0] sm:$0xf0] }
 0x643   :  { %v14548_v23 = vld [vmem:[#allocation4 + $0x984] sm:$0xf]  ;;  %v11879_v37 = vor.u32 %v14684_v15, %v11876_v28  ;;  %5141 = vmatpush.bf16.msrb.mxu1 %v10631_v22 }
 0x644   :  { %v11332_v8 = vld [vmem:[#allocation4 + $0x9a0] sm:$0xf0] }
 0x645   :  { %v14612_v47 = vld [vmem:[#allocation4 + $0xb84] sm:$0xf]  ;;  %v11335_v40 = vor.u32 %v14548_v23, %v11332_v8 }
 0x646   :  { %v11588_v11 = vld [vmem:[#allocation4 + $0xba0] sm:$0xf0]  ;;  %5142 = vmatmul.bf16.vlgmr.msrb.gmra.mxu1 %v16276_v10 }
 0x647   :  { %v14740_v27 = vld [vmem:[#allocation4 + $0xf84] sm:$0xf]  ;;  %v11591_v55 = vor.u32 %v14612_v47, %v11588_v11  ;;  %5186 = vmatpush.bf16.msra.mxu1 %v11879_v37  ;;  %5161 = vmatpush.bf16.msrb.mxu3 %v11335_v40 }
 0x648   :  { %v12100_v39 = vld [vmem:[#allocation4 + $0xfa0] sm:$0xf0] }
 0x649   :  { %v14676_v3 = vld [vmem:[#allocation4 + $0xd84] sm:$0xf]  ;;  %v12103_v42 = vor.u32 %v14740_v27, %v12100_v39  ;;  %5174 = vmatpush.bf16.msra.mxu0 %v11591_v55 }
 0x64a   :  { %v11844_v5 = vld [vmem:[#allocation4 + $0xda0] sm:$0xf0] }
 0x64b   :  { %v14540_v41 = vld [vmem:[#allocation4 + $0x944] sm:$0xf]  ;;  %v11847_v0 = vor.u32 %v14676_v3, %v11844_v5  ;;  %5200 = vmatpush.bf16.msra.mxu2 %v12103_v42 }
 0x64c   :  { %v11300_v43 = vld [vmem:[#allocation4 + $0x960] sm:$0xf0] }
 0x64d   :  { %v14604_v17 = vld [vmem:[#allocation4 + $0xb44] sm:$0xf]  ;;  %v11303_v46 = vor.u32 %v14540_v41, %v11300_v43  ;;  %5187 = vmatpush.bf16.msra.mxu1 %v11847_v0 }
 0x64e   :  { %v11556_v18 = vld [vmem:[#allocation4 + $0xb60] sm:$0xf0] }
 0x64f   :  { %v14732_v7 = vld [vmem:[#allocation4 + $0xf44] sm:$0xf]  ;;  %v11559_v48 = vor.u32 %v14604_v17, %v11556_v18  ;;  %5162 = vmatpush.bf16.msrb.mxu3 %v11303_v46 }
 0x650   :  { %v12068_v31 = vld [vmem:[#allocation4 + $0xf60] sm:$0xf0] }
 0x651   :  { %v14668_v44 = vld [vmem:[#allocation4 + $0xd44] sm:$0xf]  ;;  %v12071_v51 = vor.u32 %v14732_v7, %v12068_v31  ;;  %5175 = vmatpush.bf16.msra.mxu0 %v11559_v48 }
 0x652   :  { %v11812_v45 = vld [vmem:[#allocation4 + $0xd60] sm:$0xf0] }
 0x653   :  { %v14532_v50 = vld [vmem:[#allocation4 + $0x904] sm:$0xf]  ;;  %v11815_v19 = vor.u32 %v14668_v44, %v11812_v45  ;;  %5201 = vmatpush.bf16.msra.mxu2 %v12071_v51 }
 0x654   :  { %v11268_v52 = vld [vmem:[#allocation4 + $0x920] sm:$0xf0] }
 0x655   :  { %v14596_v12 = vld [vmem:[#allocation4 + $0xb04] sm:$0xf]  ;;  %v11271_v63 = vor.u32 %v14532_v50, %v11268_v52  ;;  %5188 = vmatpush.bf16.msra.mxu1 %v11815_v19 }
 0x656   :  { %v11524_v53 = vld [vmem:[#allocation4 + $0xb20] sm:$0xf0] }
 0x657   :  { %v14724_v54 = vld [vmem:[#allocation4 + $0xf04] sm:$0xf]  ;;  %v11527_v1 = vor.u32 %v14596_v12, %v11524_v53  ;;  %5163 = vmatpush.bf16.msrb.mxu3 %v11271_v63  ;;  %v10602_v63 = vld [vmem:[#allocation4 + $0x3c8] sm:$0xf] }
 0x658   :  { %v12036_v58 = vld [vmem:[#allocation4 + $0xf20] sm:$0xf0] }
 0x659   :  { %v14660_v59 = vld [vmem:[#allocation4 + $0xd04] sm:$0xf]  ;;  %v12039_v9 = vor.u32 %v14724_v54, %v12036_v58  ;;  %5176 = vmatpush.bf16.msra.mxu0 %v11527_v1  ;;  %v14369_v1 = vld [vmem:[#allocation4 + $0x3e4] sm:$0xf0] }
 0x65a   :  { %v11780_v61 = vld [vmem:[#allocation4 + $0xd20] sm:$0xf0] }
 0x65b   :  { %v14524_v6 = vld [vmem:[#allocation4 + $0x8c4] sm:$0xf]  ;;  %v11783_v14 = vor.u32 %v14660_v59, %v11780_v61  ;;  %5202 = vmatpush.bf16.msra.mxu2 %v12039_v9  ;;  %v10346_v59 = vld [vmem:[#allocation4 + $0x1c8] sm:$0xf] }
 0x65c   :  { %v11236_v13 = vld [vmem:[#allocation4 + $0x8e0] sm:$0xf0]  ;;  %v14305_v61 = vld [vmem:[#allocation4 + $0x1e4] sm:$0xf0] }
 0x65d   :  { %v14588_v33 = vld [vmem:[#allocation4 + $0xac4] sm:$0xf]  ;;  %v11239_v38 = vor.u32 %v14524_v6, %v11236_v13  ;;  %5189 = vmatpush.bf16.msra.mxu1 %v11783_v14  ;;  %v11114_v6 = vld [vmem:[#allocation4 + $0x7c8] sm:$0xf] }
 0x65e   :  { %v11492_v26 = vld [vmem:[#allocation4 + $0xae0] sm:$0xf0]  ;;  %v14497_v9 = vld [vmem:[#allocation4 + $0x7e4] sm:$0xf0] }
 0x65f   :  { %v14716_v36 = vld [vmem:[#allocation4 + $0xec4] sm:$0xf]  ;;  %v11495_v23 = vor.u32 %v14588_v33, %v11492_v26  ;;  %5164 = vmatpush.bf16.msrb.mxu3 %v11239_v38  ;;  %v10603_v38 = vor.u32 %v14369_v1, %v10602_v63  ;;  %v14409_v63 = vld [vmem:[#allocation4 + $0x524] sm:$0xf0] }
 0x660   :  { %v12004_v15 = vld [vmem:[#allocation4 + $0xee0] sm:$0xf0] }
 0x661   :  { %v14652_v28 = vld [vmem:[#allocation4 + $0xcc4] sm:$0xf]  ;;  %v12007_v22 = vor.u32 %v14716_v36, %v12004_v15  ;;  %5177 = vmatpush.bf16.msra.mxu0 %v11495_v23  ;;  %v10347_v15 = vor.u32 %v14305_v61, %v10346_v59  ;;  %v11115_v23 = vor.u32 %v14497_v9, %v11114_v6  ;;  %v10762_v61 = vld [vmem:[#allocation4 + $0x508] sm:$0xf] }
 0x662   :  { %v11748_v30 = vld [vmem:[#allocation4 + $0xce0] sm:$0xf0]  ;;  %v10218_v9 = vld [vmem:[#allocation4 + $0xc8] sm:$0xf] }
 0x663   :  { %v14516_v20 = vld [vmem:[#allocation4 + $0x884] sm:$0xf]  ;;  %v11751_v37 = vor.u32 %v14652_v28, %v11748_v30  ;;  %5203 = vmatpush.bf16.msra.mxu2 %v12007_v22  ;;  %v10858_v28 = vld [vmem:[#allocation4 + $0x5c8] sm:$0xf] }
 0x664   :  { %v11204_v8 = vld [vmem:[#allocation4 + $0x8a0] sm:$0xf0]  ;;  %v14433_v30 = vld [vmem:[#allocation4 + $0x5e4] sm:$0xf0] }
 0x665   :  { %v14580_v47 = vld [vmem:[#allocation4 + $0xa84] sm:$0xf]  ;;  %v11207_v40 = vor.u32 %v14516_v20, %v11204_v8  ;;  %5190 = vmatpush.bf16.msra.mxu1 %v11751_v37  ;;  %v10314_v20 = vld [vmem:[#allocation4 + $0x188] sm:$0xf] }
 0x666   :  { %v11460_v11 = vld [vmem:[#allocation4 + $0xaa0] sm:$0xf0]  ;;  %v14297_v22 = vld [vmem:[#allocation4 + $0x1a4] sm:$0xf0] }
 0x667   :  { %v14708_v27 = vld [vmem:[#allocation4 + $0xe84] sm:$0xf]  ;;  %v11463_v55 = vor.u32 %v14580_v47, %v11460_v11  ;;  %5165 = vmatpush.bf16.msrb.mxu3 %v11207_v40  ;;  %v10570_v8 = vld [vmem:[#allocation4 + $0x388] sm:$0xf] }
 0x668   :  { %v11972_v39 = vld [vmem:[#allocation4 + $0xea0] sm:$0xf0]  ;;  %v14361_v11 = vld [vmem:[#allocation4 + $0x3a4] sm:$0xf0] }
 0x669   :  { %v14644_v3 = vld [vmem:[#allocation4 + $0xc84] sm:$0xf]  ;;  %v11975_v42 = vor.u32 %v14708_v27, %v11972_v39  ;;  %5178 = vmatpush.bf16.msra.mxu0 %v11463_v55  ;;  %v11082_v37 = vld [vmem:[#allocation4 + $0x788] sm:$0xf]  ;;  %v10859_v39 = vor.u32 %v14433_v30, %v10858_v28  ;;  %v10571_v55 = vor.u32 %v14361_v11, %v10570_v8 }
 0x66a   :  { %v11716_v5 = vld [vmem:[#allocation4 + $0xca0] sm:$0xf0]  ;;  %v14489_v27 = vld [vmem:[#allocation4 + $0x7a4] sm:$0xf0] }
 0x66b   :  { %v14508_v41 = vld [vmem:[#allocation4 + $0x844] sm:$0xf]  ;;  %v11719_v0 = vor.u32 %v14644_v3, %v11716_v5  ;;  %5204 = vmatpush.bf16.msra.mxu2 %v11975_v42  ;;  %v10315_v3 = vor.u32 %v14297_v22, %v10314_v20  ;;  %v10826_v5 = vld [vmem:[#allocation4 + $0x588] sm:$0xf] }
 0x66c   :  { %v11172_v43 = vld [vmem:[#allocation4 + $0x860] sm:$0xf0]  ;;  %v14425_v40 = vld [vmem:[#allocation4 + $0x5a4] sm:$0xf0] }
 0x66d   :  { %v14572_v17 = vld [vmem:[#allocation4 + $0xa44] sm:$0xf]  ;;  %v11175_v46 = vor.u32 %v14508_v41, %v11172_v43  ;;  %5191 = vmatpush.bf16.msra.mxu1 %v11719_v0  ;;  %v11083_v41 = vor.u32 %v14489_v27, %v11082_v37  ;;  %v10282_v42 = vld [vmem:[#allocation4 + $0x148] sm:$0xf] }
 0x66e   :  { %v11428_v18 = vld [vmem:[#allocation4 + $0xa60] sm:$0xf0]  ;;  %v14289_v43 = vld [vmem:[#allocation4 + $0x164] sm:$0xf0] }
 0x66f   :  { %v14700_v7 = vld [vmem:[#allocation4 + $0xe44] sm:$0xf]  ;;  %v11431_v48 = vor.u32 %v14572_v17, %v11428_v18  ;;  %5166 = vmatpush.bf16.msrb.mxu3 %v11175_v46  ;;  %v10538_v17 = vld [vmem:[#allocation4 + $0x348] sm:$0xf] }
 0x670   :  { %v11940_v31 = vld [vmem:[#allocation4 + $0xe60] sm:$0xf0]  ;;  %v14353_v18 = vld [vmem:[#allocation4 + $0x364] sm:$0xf0] }
 0x671   :  { %v14636_v44 = vld [vmem:[#allocation4 + $0xc44] sm:$0xf]  ;;  %v11943_v12 = vor.u32 %v14700_v7, %v11940_v31  ;;  %5179 = vmatpush.bf16.msra.mxu0 %v11431_v48  ;;  %v11050_v0 = vld [vmem:[#allocation4 + $0x748] sm:$0xf]  ;;  %v10827_v31 = vor.u32 %v14425_v40, %v10826_v5  ;;  %v10539_v48 = vor.u32 %v14353_v18, %v10538_v17 }
 0x672   :  { %v11684_v45 = vld [vmem:[#allocation4 + $0xc60] sm:$0xf0]  ;;  %v14481_v7 = vld [vmem:[#allocation4 + $0x764] sm:$0xf0] }
 0x673   :  { %v14500_v50 = vld [vmem:[#allocation4 + $0x804] sm:$0xf]  ;;  %v11687_v58 = vor.u32 %v14636_v44, %v11684_v45  ;;  %5205 = vmatpush.bf16.msra.mxu2 %v11943_v12  ;;  %v10283_v44 = vor.u32 %v14289_v43, %v10282_v42  ;;  %v10794_v45 = vld [vmem:[#allocation4 + $0x548] sm:$0xf] }
 0x674   :  { %v11140_v51 = vld [vmem:[#allocation4 + $0x820] sm:$0xf0]  ;;  %v14417_v46 = vld [vmem:[#allocation4 + $0x564] sm:$0xf0] }
 0x675   :  { %v14564_v52 = vld [vmem:[#allocation4 + $0xa04] sm:$0xf]  ;;  %v11143_v13 = vor.u32 %v14500_v50, %v11140_v51  ;;  %5192 = vmatpush.bf16.msra.mxu1 %v11687_v58  ;;  %v11051_v50 = vor.u32 %v14481_v7, %v11050_v0  ;;  %v10250_v51 = vld [vmem:[#allocation4 + $0x108] sm:$0xf]  ;;  %v10795_v58 = vor.u32 %v14417_v46, %v10794_v45 }
 0x676   :  { %v11396_v53 = vld [vmem:[#allocation4 + $0xa20] sm:$0xf0]  ;;  %v10506_v12 = vld [vmem:[#allocation4 + $0x308] sm:$0xf] }
 0x677   :  { %v14692_v19 = vld [vmem:[#allocation4 + $0xe04] sm:$0xf]  ;;  %v11399_v33 = vor.u32 %v14564_v52, %v11396_v53  ;;  %5167 = vmatpush.bf16.msrb.mxu3 %v11143_v13  ;;  %v14281_v52 = vld [vmem:[#allocation4 + $0x124] sm:$0xf0] }
 0x678   :  { %v11908_v54 = vld [vmem:[#allocation4 + $0xe20] sm:$0xf0]  ;;  %v14345_v53 = vld [vmem:[#allocation4 + $0x324] sm:$0xf0]  ;;  %v10251_v59 = vor.u32 %v14281_v52, %v10250_v51 }
 0x679   :  { %v14628_v26 = vld [vmem:[#allocation4 + $0xc04] sm:$0xf]  ;;  %v11911_v36 = vor.u32 %v14692_v19, %v11908_v54  ;;  %5180 = vmatpush.bf16.msra.mxu0 %v11399_v33  ;;  %v11018_v19 = vld [vmem:[#allocation4 + $0x708] sm:$0xf]  ;;  %v10507_v1 = vor.u32 %v14345_v53, %v10506_v12 }
 0x67a   :  { %v11652_v14 = vld [vmem:[#allocation4 + $0xc20] sm:$0xf0]  ;;  %5168 = vmatmul.bf16.vlgmr.msrb.gmra.mxu3 %v16285_v4  ;;  %v14473_v54 = vld [vmem:[#allocation4 + $0x724] sm:$0xf0] }
 0x67b   :  { %v11655_v47 = vor.u32 %v14628_v26, %v11652_v14  ;;  %5206 = vmatpush.bf16.msra.mxu2 %v11911_v36  ;;  %5212 = vmatpush.bf16.msra.mxu3 %v10347_v15  ;;  %v11019_v6 = vor.u32 %v14473_v54, %v11018_v19  ;;  %v14273_v13 = vld [vmem:[#allocation4 + $0xe4] sm:$0xf0]  ;;  %v10763_v15 = vor.u32 %v14409_v63, %v10762_v61 }
 0x67c   :  { %5181 = vmatmul.bf16.vlgmr.msra.gmra.mxu0 %v16295_v21  ;;  %v10474_v33 = vld [vmem:[#allocation4 + $0x2c8] sm:$0xf]  ;;  %v10219_v28 = vor.u32 %v14273_v13, %v10218_v9 }
 0x67d   :  { %5225 = vmatpush.bf16.msrb.mxu0 %v10603_v38  ;;  %5193 = vmatpush.bf16.msra.mxu1 %v11655_v47  ;;  %v14337_v26 = vld [vmem:[#allocation4 + $0x2e4] sm:$0xf0] }
 0x67e   :  { %5207 = vmatmul.bf16.vlgmr.msra.gmra.mxu2 %v16290_v62  ;;  %v10986_v14 = vld [vmem:[#allocation4 + $0x6c8] sm:$0xf] }
 0x67f   :  { %5251 = vmatpush.bf16.msrb.mxu2 %v11115_v23  ;;  %5213 = vmatpush.bf16.msra.mxu3 %v10315_v3  ;;  %v14465_v36 = vld [vmem:[#allocation4 + $0x6e4] sm:$0xf0]  ;;  %v10475_v23 = vor.u32 %v14337_v26, %v10474_v33 }
 0x680   :  { %5194 = vmatmul.bf16.vlgmr.msra.gmra.mxu1 %v16301_v25  ;;  %v10730_v30 = vld [vmem:[#allocation4 + $0x4c8] sm:$0xf]  ;;  %v10987_v20 = vor.u32 %v14465_v36, %v10986_v14 }
 0x681   :  { %5238 = vmatpush.bf16.msrb.mxu1 %v10859_v39  ;;  %5226 = vmatpush.bf16.msrb.mxu0 %v10571_v55  ;;  %v14401_v38 = vld [vmem:[#allocation4 + $0x4e4] sm:$0xf0] }
 0x682   :  { %v10186_v22 = vld [vmem:[#allocation4 + $0x88] sm:$0xf]  ;;  %v10731_v39 = vor.u32 %v14401_v38, %v10730_v30 }
 0x683   :  { %5252 = vmatpush.bf16.msrb.mxu2 %v11083_v41  ;;  %5214 = vmatpush.bf16.msra.mxu3 %v10283_v44  ;;  %v14265_v8 = vld [vmem:[#allocation4 + $0xa4] sm:$0xf0] }
 0x684   :  { %v10442_v47 = vld [vmem:[#allocation4 + $0x288] sm:$0xf]  ;;  %v10187_v3 = vor.u32 %v14265_v8, %v10186_v22 }
 0x685   :  { %5239 = vmatpush.bf16.msrb.mxu1 %v10827_v31  ;;  %5227 = vmatpush.bf16.msrb.mxu0 %v10539_v48  ;;  %v14329_v11 = vld [vmem:[#allocation4 + $0x2a4] sm:$0xf0] }
 0x686   :  { %v10954_v37 = vld [vmem:[#allocation4 + $0x688] sm:$0xf]  ;;  %v10443_v55 = vor.u32 %v14329_v11, %v10442_v47 }
 0x687   :  { %5253 = vmatpush.bf16.msrb.mxu2 %v11051_v50  ;;  %5215 = vmatpush.bf16.msra.mxu3 %v10251_v59  ;;  %v14457_v27 = vld [vmem:[#allocation4 + $0x6a4] sm:$0xf0] }
 0x688   :  { %v10698_v5 = vld [vmem:[#allocation4 + $0x488] sm:$0xf]  ;;  %v10955_v41 = vor.u32 %v14457_v27, %v10954_v37 }
 0x689   :  { %5240 = vmatpush.bf16.msrb.mxu1 %v10795_v58  ;;  %5228 = vmatpush.bf16.msrb.mxu0 %v10507_v1  ;;  %v14393_v40 = vld [vmem:[#allocation4 + $0x4a4] sm:$0xf0] }
 0x68a   :  { %v10154_v42 = vld [vmem:[#allocation4 + $0x48] sm:$0xf]  ;;  %v10699_v31 = vor.u32 %v14393_v40, %v10698_v5 }
 0x68b   :  { %5254 = vmatpush.bf16.msrb.mxu2 %v11019_v6  ;;  %5216 = vmatpush.bf16.msra.mxu3 %v10219_v28  ;;  %v14257_v43 = vld [vmem:[#allocation4 + $0x64] sm:$0xf0] }
 0x68c   :  { %v10410_v17 = vld [vmem:[#allocation4 + $0x248] sm:$0xf]  ;;  %v10155_v45 = vor.u32 %v14257_v43, %v10154_v42 }
 0x68d   :  { %5241 = vmatpush.bf16.msrb.mxu1 %v10763_v15  ;;  %5229 = vmatpush.bf16.msrb.mxu0 %v10475_v23  ;;  %v14321_v18 = vld [vmem:[#allocation4 + $0x264] sm:$0xf0] }
 0x68e   :  { %v10922_v0 = vld [vmem:[#allocation4 + $0x648] sm:$0xf]  ;;  %v10411_v51 = vor.u32 %v14321_v18, %v10410_v17 }
 0x68f   :  { %5255 = vmatpush.bf16.msrb.mxu2 %v10987_v20  ;;  %v14449_v7 = vld [vmem:[#allocation4 + $0x664] sm:$0xf0]  ;;  %5217 = vmatpush.bf16.msra.mxu3 %v10187_v3 }
 0x690   :  { %v10666_v44 = vld [vmem:[#allocation4 + $0x448] sm:$0xf]  ;;  %v10923_v52 = vor.u32 %v14449_v7, %v10922_v0 }
 0x691   :  { %5242 = vmatpush.bf16.msrb.mxu1 %v10731_v39  ;;  %v14385_v46 = vld [vmem:[#allocation4 + $0x464] sm:$0xf0]  ;;  %5230 = vmatpush.bf16.msrb.mxu0 %v10443_v55 }
 0x692   :  { %v10122_v48 = vld [vmem:[#allocation4 + $0x8] sm:$0xf]  ;;  %v10667_v61 = vor.u32 %v14385_v46, %v10666_v44 }
 0x693   :  { %v14249_v50 = vld [vmem:[#allocation4 + $0x24] sm:$0xf0]  ;;  %5256 = vmatpush.bf16.msrb.mxu2 %v10955_v41  ;;  %5218 = vmatpush.bf16.msra.mxu3 %v10155_v45 }
 0x694   :  { %v10378_v12 = vld [vmem:[#allocation4 + $0x208] sm:$0xf]  ;;  %v10123_v9 = vor.u32 %v14249_v50, %v10122_v48 }
 0x695   :  { %v14313_v53 = vld [vmem:[#allocation4 + $0x224] sm:$0xf0]  ;;  %5243 = vmatpush.bf16.msrb.mxu1 %v10699_v31  ;;  %5231 = vmatpush.bf16.msrb.mxu0 %v10411_v51 }
 0x696   :  { %v10890_v19 = vld [vmem:[#allocation4 + $0x608] sm:$0xf]  ;;  %v10379_v14 = vor.u32 %v14313_v53, %v10378_v12 }
 0x697   :  { %v14441_v54 = vld [vmem:[#allocation4 + $0x624] sm:$0xf0]  ;;  %5257 = vmatpush.bf16.msrb.mxu2 %v10923_v52  ;;  %5219 = vmatpush.bf16.msra.mxu3 %v10123_v9 }
 0x698   :  { %v11370_v58 = vld [vmem:[#allocation4 + $0x9c8] sm:$0xf]  ;;  %v10891_v36 = vor.u32 %v14441_v54, %v10890_v19 }
 0x699   :  { %v14561_v59 = vld [vmem:[#allocation4 + $0x9e4] sm:$0xf0]  ;;  %5244 = vmatpush.bf16.msrb.mxu1 %v10667_v61  ;;  %5232 = vmatpush.bf16.msrb.mxu0 %v10379_v14 }
 0x69a   :  { %v11626_v63 = vld [vmem:[#allocation4 + $0xbc8] sm:$0xf]  ;;  %v11371_v30 = vor.u32 %v14561_v59, %v11370_v58  ;;  %5220 = vmatmul.bf16.vlgmr.msra.gmra.mxu3 %v16261_v49 }
 0x69b   :  { %v14625_v1 = vld [vmem:[#allocation4 + $0xbe4] sm:$0xf0]  ;;  %5258 = vmatpush.bf16.msrb.mxu2 %v10891_v36 }
 0x69c   :  { %v12138_v6 = vld [vmem:[#allocation4 + $0xfc8] sm:$0xf]  ;;  %v11627_v38 = vor.u32 %v14625_v1, %v11626_v63  ;;  %5264 = vmatpush.bf16.msrb.mxu3 %v11371_v30  ;;  %5233 = vmatmul.bf16.vlgmr.msrb.gmra.mxu0 %v16271_v32 }
 0x69d   :  { %v14753_v13 = vld [vmem:[#allocation4 + $0xfe4] sm:$0xf0] }
 0x69e   :  { %v10634_v33 = vld [vmem:[#allocation4 + $0x408] sm:$0xf]  ;;  %v12139_v20 = vor.u32 %v14753_v13, %v12138_v6  ;;  %5277 = vmatpush.bf16.msra.mxu0 %v11627_v38  ;;  %5259 = vmatmul.bf16.vlgmr.msrb.gmra.mxu2 %v16266_v16 }
 0x69f   :  { %v14377_v26 = vld [vmem:[#allocation4 + $0x424] sm:$0xf0] }
 0x6a0   :  { %v11882_v15 = vld [vmem:[#allocation4 + $0xdc8] sm:$0xf]  ;;  %v10635_v22 = vor.u32 %v14377_v26, %v10634_v33  ;;  %5303 = vmatpush.bf16.msra.mxu2 %v12139_v20 }
 0x6a1   :  { %v14689_v28 = vld [vmem:[#allocation4 + $0xde4] sm:$0xf0] }
 0x6a2   :  { %v11338_v23 = vld [vmem:[#allocation4 + $0x988] sm:$0xf]  ;;  %v11883_v37 = vor.u32 %v14689_v28, %v11882_v15  ;;  %5245 = vmatpush.bf16.msrb.mxu1 %v10635_v22  ;;  %v5026_v28 = vpop.f32.mrf.mxu0 }
 0x6a3   :  { %v14553_v8 = vld [vmem:[#allocation4 + $0x9a4] sm:$0xf0] }
 0x6a4   :  { %v11594_v47 = vld [vmem:[#allocation4 + $0xb88] sm:$0xf]  ;;  %v11339_v40 = vor.u32 %v14553_v8, %v11338_v23  ;;  %v5039_v8 = vpop.f32.mrf.mxu1 }
 0x6a5   :  { %v14617_v11 = vld [vmem:[#allocation4 + $0xba4] sm:$0xf0]  ;;  %5246 = vmatmul.bf16.vlgmr.msrb.gmra.mxu1 %v16276_v10 }
 0x6a6   :  { %v12106_v27 = vld [vmem:[#allocation4 + $0xf88] sm:$0xf]  ;;  %v11595_v55 = vor.u32 %v14617_v11, %v11594_v47  ;;  %5290 = vmatpush.bf16.msra.mxu1 %v11883_v37  ;;  %5265 = vmatpush.bf16.msrb.mxu3 %v11339_v40 }
 0x6a7   :  { %v14745_v39 = vld [vmem:[#allocation4 + $0xfa4] sm:$0xf0] }
 0x6a8   :  { %v11850_v3 = vld [vmem:[#allocation4 + $0xd88] sm:$0xf]  ;;  %v12107_v42 = vor.u32 %v14745_v39, %v12106_v27  ;;  %5278 = vmatpush.bf16.msra.mxu0 %v11595_v55 }
 0x6a9   :  { %v14681_v5 = vld [vmem:[#allocation4 + $0xda4] sm:$0xf0] }
 0x6aa   :  { %v11306_v41 = vld [vmem:[#allocation4 + $0x948] sm:$0xf]  ;;  %v11851_v0 = vor.u32 %v14681_v5, %v11850_v3  ;;  %5304 = vmatpush.bf16.msra.mxu2 %v12107_v42 }
 0x6ab   :  { %v14545_v43 = vld [vmem:[#allocation4 + $0x964] sm:$0xf0] }
 0x6ac   :  { %v11562_v17 = vld [vmem:[#allocation4 + $0xb48] sm:$0xf]  ;;  %v11307_v46 = vor.u32 %v14545_v43, %v11306_v41  ;;  %5291 = vmatpush.bf16.msra.mxu1 %v11851_v0  ;;  %v5013_v41 = vpop.f32.mrf.mxu3  ;;  %v5052_v0 = vpop.f32.mrf.mxu2 }
 0x6ad   :  { %v14609_v18 = vld [vmem:[#allocation4 + $0xb64] sm:$0xf0] }
 0x6ae   :  { %v12074_v7 = vld [vmem:[#allocation4 + $0xf48] sm:$0xf]  ;;  %v11563_v48 = vor.u32 %v14609_v18, %v11562_v17  ;;  %5266 = vmatpush.bf16.msrb.mxu3 %v11307_v46  ;;  %v5027_v18 = vadd.f32 %v5026_v28, %v5013_v41  ;;  %v10604_v28 = vld [vmem:[#allocation4 + $0x3e8] sm:$0xf0] }
 0x6af   :  { %v14737_v31 = vld [vmem:[#allocation4 + $0xf64] sm:$0xf0]  ;;  %v10316_v41 = vld [vmem:[#allocation4 + $0x1a8] sm:$0xf0] }
 0x6b0   :  { %v11818_v44 = vld [vmem:[#allocation4 + $0xd48] sm:$0xf]  ;;  %v12075_v51 = vor.u32 %v14737_v31, %v12074_v7  ;;  %5279 = vmatpush.bf16.msra.mxu0 %v11563_v48 }
 0x6b1   :  { %v14673_v45 = vld [vmem:[#allocation4 + $0xd64] sm:$0xf0] }
 0x6b2   :  { %v11274_v50 = vld [vmem:[#allocation4 + $0x908] sm:$0xf]  ;;  %v11819_v19 = vor.u32 %v14673_v45, %v11818_v44  ;;  %5305 = vmatpush.bf16.msra.mxu2 %v12075_v51  ;;  %v5040_v51 = vadd.f32 %v5039_v8, %v5027_v18  ;;  %v14485_v18 = vld [vmem:[#allocation4 + $0x78c] sm:$0xf] }
 0x6b3   :  { %v14537_v52 = vld [vmem:[#allocation4 + $0x924] sm:$0xf0] }
 0x6b4   :  { %v11530_v12 = vld [vmem:[#allocation4 + $0xb08] sm:$0xf]  ;;  %v11275_v63 = vor.u32 %v14537_v52, %v11274_v50  ;;  %5292 = vmatpush.bf16.msra.mxu1 %v11819_v19  ;;  %v5028_v52 = vpop.f32.mrf.mxu0 }
 0x6b5   :  { %v14601_v53 = vld [vmem:[#allocation4 + $0xb24] sm:$0xf0]  ;;  %v14349_v52 = vld [vmem:[#allocation4 + $0x34c] sm:$0xf] }
 0x6b6   :  { %v12042_v54 = vld [vmem:[#allocation4 + $0xf08] sm:$0xf]  ;;  %v11531_v1 = vor.u32 %v14601_v53, %v11530_v12  ;;  %5267 = vmatpush.bf16.msrb.mxu3 %v11275_v63  ;;  %v16318_v63 = vadd.f32 %v5052_v0, %v5040_v51  ;;  %v11084_v0 = vld [vmem:[#allocation4 + $0x7a8] sm:$0xf0] }
 0x6b7   :  { %v14729_v58 = vld [vmem:[#allocation4 + $0xf24] sm:$0xf0]  ;;  %v10284_v51 = vld [vmem:[#allocation4 + $0x168] sm:$0xf0] }
 0x6b8   :  { %v11786_v59 = vld [vmem:[#allocation4 + $0xd08] sm:$0xf]  ;;  %v12043_v9 = vor.u32 %v14729_v58, %v12042_v54  ;;  %5280 = vmatpush.bf16.msra.mxu0 %v11531_v1  ;;  %v5041_v1 = vpop.f32.mrf.mxu1 }
 0x6b9   :  { %v14665_v61 = vld [vmem:[#allocation4 + $0xd24] sm:$0xf0] }
 0x6ba   :  { %v11242_v6 = vld [vmem:[#allocation4 + $0x8c8] sm:$0xf]  ;;  %v11787_v14 = vor.u32 %v14665_v61, %v11786_v59  ;;  %5306 = vmatpush.bf16.msra.mxu2 %v12043_v9 }
 0x6bb   :  { %v14529_v13 = vld [vmem:[#allocation4 + $0x8e4] sm:$0xf0] }
 0x6bc   :  { %v11498_v33 = vld [vmem:[#allocation4 + $0xac8] sm:$0xf]  ;;  %v11243_v23 = vor.u32 %v14529_v13, %v11242_v6  ;;  %5293 = vmatpush.bf16.msra.mxu1 %v11787_v14  ;;  %v14301_v14 = vld [vmem:[#allocation4 + $0x1cc] sm:$0xf] }
 0x6bd   :  { %v14593_v26 = vld [vmem:[#allocation4 + $0xae4] sm:$0xf0] }
 0x6be   :  { %v12010_v36 = vld [vmem:[#allocation4 + $0xec8] sm:$0xf]  ;;  %v11499_v20 = vor.u32 %v14593_v26, %v11498_v33  ;;  %5268 = vmatpush.bf16.msrb.mxu3 %v11243_v23  ;;  %v5015_v23 = vpop.f32.mrf.mxu3 }
 0x6bf   :  { %v14721_v15 = vld [vmem:[#allocation4 + $0xee4] sm:$0xf0] }
 0x6c0   :  { %v11754_v30 = vld [vmem:[#allocation4 + $0xcc8] sm:$0xf]  ;;  %v12011_v47 = vor.u32 %v14721_v15, %v12010_v36  ;;  %5281 = vmatpush.bf16.msra.mxu0 %v11499_v20  ;;  %v10348_v36 = vld [vmem:[#allocation4 + $0x1e8] sm:$0xf0] }
 0x6c1   :  { %v14657_v38 = vld [vmem:[#allocation4 + $0xce4] sm:$0xf0]  ;;  %v14365_v15 = vld [vmem:[#allocation4 + $0x3cc] sm:$0xf] }
 0x6c2   :  { %v11210_v22 = vld [vmem:[#allocation4 + $0x888] sm:$0xf]  ;;  %v11755_v39 = vor.u32 %v14657_v38, %v11754_v30  ;;  %5307 = vmatpush.bf16.msra.mxu2 %v12011_v47  ;;  %v14493_v30 = vld [vmem:[#allocation4 + $0x7cc] sm:$0xf] }
 0x6c3   :  { %v14521_v11 = vld [vmem:[#allocation4 + $0x8a4] sm:$0xf0]  ;;  %v11116_v38 = vld [vmem:[#allocation4 + $0x7e8] sm:$0xf0] }
 0x6c4   :  { %v11466_v37 = vld [vmem:[#allocation4 + $0xa88] sm:$0xf]  ;;  %v11211_v42 = vor.u32 %v14521_v11, %v11210_v22  ;;  %5294 = vmatpush.bf16.msra.mxu1 %v11755_v39  ;;  %v5054_v11 = vpop.f32.mrf.mxu2  ;;  %v14429_v39 = vld [vmem:[#allocation4 + $0x5cc] sm:$0xf] }
 0x6c5   :  { %v14585_v27 = vld [vmem:[#allocation4 + $0xaa4] sm:$0xf0]  ;;  %v10476_v11 = vld [vmem:[#allocation4 + $0x2e8] sm:$0xf0] }
 0x6c6   :  { %v11978_v3 = vld [vmem:[#allocation4 + $0xe88] sm:$0xf]  ;;  %v11467_v43 = vor.u32 %v14585_v27, %v11466_v37  ;;  %5269 = vmatpush.bf16.msrb.mxu3 %v11211_v42  ;;  %v10351_v27 = vor.u32 %v14301_v14, %v10348_v36  ;;  %v14357_v42 = vld [vmem:[#allocation4 + $0x38c] sm:$0xf] }
 0x6c7   :  { %v14713_v5 = vld [vmem:[#allocation4 + $0xea4] sm:$0xf0]  ;;  %v14469_v14 = vld [vmem:[#allocation4 + $0x70c] sm:$0xf] }
 0x6c8   :  { %v11722_v40 = vld [vmem:[#allocation4 + $0xc88] sm:$0xf]  ;;  %v11979_v7 = vor.u32 %v14713_v5, %v11978_v3  ;;  %5282 = vmatpush.bf16.msra.mxu0 %v11467_v43  ;;  %v10860_v3 = vld [vmem:[#allocation4 + $0x5e8] sm:$0xf0]  ;;  %v10607_v5 = vor.u32 %v14365_v15, %v10604_v28 }
 0x6c9   :  { %v14649_v55 = vld [vmem:[#allocation4 + $0xca4] sm:$0xf0]  ;;  %v11020_v36 = vld [vmem:[#allocation4 + $0x728] sm:$0xf0] }
 0x6ca   :  { %v11178_v17 = vld [vmem:[#allocation4 + $0x848] sm:$0xf]  ;;  %v11723_v46 = vor.u32 %v14649_v55, %v11722_v40  ;;  %5308 = vmatpush.bf16.msra.mxu2 %v11979_v7  ;;  %v11119_v40 = vor.u32 %v14493_v30, %v11116_v38  ;;  %v14293_v55 = vld [vmem:[#allocation4 + $0x18c] sm:$0xf]  ;;  %v10863_v7 = vor.u32 %v14429_v39, %v10860_v3  ;;  %v5078_v3 = vpop.f32.mrf.mxu0 }
 0x6cb   :  { %v14513_v31 = vld [vmem:[#allocation4 + $0x864] sm:$0xf0]  ;;  %v14405_v30 = vld [vmem:[#allocation4 + $0x50c] sm:$0xf] }
 0x6cc   :  { %v11434_v44 = vld [vmem:[#allocation4 + $0xa48] sm:$0xf]  ;;  %v11179_v19 = vor.u32 %v14513_v31, %v11178_v17  ;;  %5295 = vmatpush.bf16.msra.mxu1 %v11723_v46  ;;  %v10572_v17 = vld [vmem:[#allocation4 + $0x3a8] sm:$0xf0]  ;;  %v10319_v31 = vor.u32 %v14293_v55, %v10316_v41 }
 0x6cd   :  { %v14577_v45 = vld [vmem:[#allocation4 + $0xa64] sm:$0xf0]  ;;  %v10575_v46 = vor.u32 %v14357_v42, %v10572_v17  ;;  %v10764_v38 = vld [vmem:[#allocation4 + $0x528] sm:$0xf0] }
 0x6ce   :  { %v11946_v48 = vld [vmem:[#allocation4 + $0xe48] sm:$0xf]  ;;  %v11435_v54 = vor.u32 %v14577_v45, %v11434_v44  ;;  %5270 = vmatpush.bf16.msrb.mxu3 %v11179_v19  ;;  %v14421_v44 = vld [vmem:[#allocation4 + $0x58c] sm:$0xf]  ;;  %v10767_v39 = vor.u32 %v14405_v30, %v10764_v38 }
 0x6cf   :  { %v14705_v50 = vld [vmem:[#allocation4 + $0xe64] sm:$0xf0]  ;;  %v10828_v45 = vld [vmem:[#allocation4 + $0x5a8] sm:$0xf0] }
 0x6d0   :  { %v11690_v12 = vld [vmem:[#allocation4 + $0xc48] sm:$0xf]  ;;  %v11947_v6 = vor.u32 %v14705_v50, %v11946_v48  ;;  %5283 = vmatpush.bf16.msra.mxu0 %v11435_v54  ;;  %v11087_v48 = vor.u32 %v14485_v18, %v11084_v0  ;;  %v14285_v50 = vld [vmem:[#allocation4 + $0x14c] sm:$0xf]  ;;  %v10831_v54 = vor.u32 %v14421_v44, %v10828_v45  ;;  %v5091_v0 = vpop.f32.mrf.mxu1 }
 0x6d1   :  { %v14641_v53 = vld [vmem:[#allocation4 + $0xc64] sm:$0xf0]  ;;  %v11052_v19 = vld [vmem:[#allocation4 + $0x768] sm:$0xf0] }
 0x6d2   :  { %v11146_v58 = vld [vmem:[#allocation4 + $0x808] sm:$0xf]  ;;  %v11691_v26 = vor.u32 %v14641_v53, %v11690_v12  ;;  %5309 = vmatpush.bf16.msra.mxu2 %v11947_v6  ;;  %v10540_v12 = vld [vmem:[#allocation4 + $0x368] sm:$0xf0] }
 0x6d3   :  { %v14505_v59 = vld [vmem:[#allocation4 + $0x824] sm:$0xf0]  ;;  %v14477_v53 = vld [vmem:[#allocation4 + $0x74c] sm:$0xf]  ;;  %v10543_v1 = vor.u32 %v14349_v52, %v10540_v12  ;;  %v5104_v12 = vpop.f32.mrf.mxu2 }
 0x6d4   :  { %v11402_v61 = vld [vmem:[#allocation4 + $0xa08] sm:$0xf]  ;;  %v11147_v20 = vor.u32 %v14505_v59, %v11146_v58  ;;  %5296 = vmatpush.bf16.msra.mxu1 %v11691_v26  ;;  %v10287_v58 = vor.u32 %v14285_v50, %v10284_v51  ;;  %v14413_v59 = vld [vmem:[#allocation4 + $0x54c] sm:$0xf]  ;;  %v11055_v6 = vor.u32 %v14477_v53, %v11052_v19 }
 0x6d5   :  { %v14569_v9 = vld [vmem:[#allocation4 + $0xa24] sm:$0xf0]  ;;  %v10508_v26 = vld [vmem:[#allocation4 + $0x328] sm:$0xf0] }
 0x6d6   :  { %v11914_v13 = vld [vmem:[#allocation4 + $0xe08] sm:$0xf]  ;;  %v11403_v22 = vor.u32 %v14569_v9, %v11402_v61  ;;  %5271 = vmatpush.bf16.msrb.mxu3 %v11147_v20  ;;  %v10796_v61 = vld [vmem:[#allocation4 + $0x568] sm:$0xf0]  ;;  %v11023_v20 = vor.u32 %v14469_v14, %v11020_v36 }
 0x6d7   :  { %v14697_v33 = vld [vmem:[#allocation4 + $0xe24] sm:$0xf0]  ;;  %v14277_v9 = vld [vmem:[#allocation4 + $0x10c] sm:$0xf]  ;;  %v10799_v15 = vor.u32 %v14413_v59, %v10796_v61 }
 0x6d8   :  { %v11658_v8 = vld [vmem:[#allocation4 + $0xc08] sm:$0xf]  ;;  %v11915_v37 = vor.u32 %v14697_v33, %v11914_v13  ;;  %5284 = vmatpush.bf16.msra.mxu0 %v11403_v22  ;;  %v10252_v13 = vld [vmem:[#allocation4 + $0x128] sm:$0xf0] }
 0x6d9   :  { %v14633_v47 = vld [vmem:[#allocation4 + $0xc24] sm:$0xf0]  ;;  %5272 = vmatmul.bf16.vlgmr.msrb.gmra.mxu3 %v16285_v4  ;;  %v14341_v33 = vld [vmem:[#allocation4 + $0x30c] sm:$0xf]  ;;  %v10255_v28 = vor.u32 %v14277_v9, %v10252_v13 }
 0x6da   :  { %v11659_v43 = vor.u32 %v14633_v47, %v11658_v8  ;;  %5310 = vmatpush.bf16.msra.mxu2 %v11915_v37  ;;  %5316 = vmatpush.bf16.msra.mxu3 %v10351_v27  ;;  %v10511_v23 = vor.u32 %v14341_v33, %v10508_v26  ;;  %v14269_v22 = vld [vmem:[#allocation4 + $0xcc] sm:$0xf]  ;;  %v5080_v26 = vpop.f32.mrf.mxu0 }
 0x6db   :  { %5285 = vmatmul.bf16.vlgmr.msra.gmra.mxu0 %v16295_v21  ;;  %v10220_v8 = vld [vmem:[#allocation4 + $0xe8] sm:$0xf0] }
 0x6dc   :  { %5329 = vmatpush.bf16.msrb.mxu0 %v10607_v5  ;;  %5297 = vmatpush.bf16.msra.mxu1 %v11659_v43  ;;  %v14333_v47 = vld [vmem:[#allocation4 + $0x2cc] sm:$0xf]  ;;  %v10223_v5 = vor.u32 %v14269_v22, %v10220_v8  ;;  %v5093_v8 = vpop.f32.mrf.mxu1 }
 0x6dd   :  { %5311 = vmatmul.bf16.vlgmr.msra.gmra.mxu2 %v16290_v62  ;;  %v14461_v37 = vld [vmem:[#allocation4 + $0x6cc] sm:$0xf]  ;;  %v10479_v41 = vor.u32 %v14333_v47, %v10476_v11 }
 0x6de   :  { %5355 = vmatpush.bf16.msrb.mxu2 %v11119_v40  ;;  %5317 = vmatpush.bf16.msra.mxu3 %v10319_v31  ;;  %v10988_v27 = vld [vmem:[#allocation4 + $0x6e8] sm:$0xf0] }
 0x6df   :  { %5298 = vmatmul.bf16.vlgmr.msra.gmra.mxu1 %v16301_v25  ;;  %v14397_v40 = vld [vmem:[#allocation4 + $0x4cc] sm:$0xf]  ;;  %v10991_v42 = vor.u32 %v14461_v37, %v10988_v27 }
 0x6e0   :  { %5342 = vmatpush.bf16.msrb.mxu1 %v10863_v7  ;;  %5330 = vmatpush.bf16.msrb.mxu0 %v10575_v46  ;;  %v10732_v55 = vld [vmem:[#allocation4 + $0x4e8] sm:$0xf0]  ;;  %v5065_v46 = vpop.f32.mrf.mxu3 }
 0x6e1   :  { %v14261_v43 = vld [vmem:[#allocation4 + $0x8c] sm:$0xf]  ;;  %v10735_v45 = vor.u32 %v14397_v40, %v10732_v55  ;;  %v5066_v50 = vadd.f32 %v5065_v46, %v16318_v63 }
 0x6e2   :  { %5356 = vmatpush.bf16.msrb.mxu2 %v11087_v48  ;;  %5318 = vmatpush.bf16.msra.mxu3 %v10287_v58  ;;  %v10188_v17 = vld [vmem:[#allocation4 + $0xa8] sm:$0xf0] }
 0x6e3   :  { %v14325_v18 = vld [vmem:[#allocation4 + $0x28c] sm:$0xf]  ;;  %v10191_v48 = vor.u32 %v14261_v43, %v10188_v17  ;;  %v5079_v61 = vadd.f32 %v5078_v3, %v5066_v50 }
 0x6e4   :  { %5343 = vmatpush.bf16.msrb.mxu1 %v10831_v54  ;;  %5331 = vmatpush.bf16.msrb.mxu0 %v10543_v1  ;;  %v10444_v7 = vld [vmem:[#allocation4 + $0x2a8] sm:$0xf0] }
 0x6e5   :  { %v14453_v31 = vld [vmem:[#allocation4 + $0x68c] sm:$0xf]  ;;  %v10447_v53 = vor.u32 %v14325_v18, %v10444_v7  ;;  %v5092_v14 = vadd.f32 %v5091_v0, %v5079_v61  ;;  %v5106_v18 = vpop.f32.mrf.mxu2 }
 0x6e6   :  { %5357 = vmatpush.bf16.msrb.mxu2 %v11055_v6  ;;  %5319 = vmatpush.bf16.msra.mxu3 %v10255_v28  ;;  %v10956_v44 = vld [vmem:[#allocation4 + $0x6a8] sm:$0xf0] }
 0x6e7   :  { %v14389_v51 = vld [vmem:[#allocation4 + $0x48c] sm:$0xf]  ;;  %v10959_v19 = vor.u32 %v14453_v31, %v10956_v44  ;;  %v16325_v47 = vadd.f32 %v5104_v12, %v5092_v14 }
 0x6e8   :  { %5344 = vmatpush.bf16.msrb.mxu1 %v10799_v15  ;;  %5332 = vmatpush.bf16.msrb.mxu0 %v10511_v23  ;;  %v10700_v52 = vld [vmem:[#allocation4 + $0x4a8] sm:$0xf0]  ;;  %v5067_v55 = vpop.f32.mrf.mxu3 }
 0x6e9   :  { %v14253_v54 = vld [vmem:[#allocation4 + $0x4c] sm:$0xf]  ;;  %v10703_v13 = vor.u32 %v14389_v51, %v10700_v52 }
 0x6ea   :  { %5358 = vmatpush.bf16.msrb.mxu2 %v11023_v20  ;;  %5320 = vmatpush.bf16.msra.mxu3 %v10223_v5  ;;  %v10156_v58 = vld [vmem:[#allocation4 + $0x68] sm:$0xf0] }
 0x6eb   :  { %v14317_v59 = vld [vmem:[#allocation4 + $0x24c] sm:$0xf]  ;;  %v10159_v63 = vor.u32 %v14253_v54, %v10156_v58 }
 0x6ec   :  { %5345 = vmatpush.bf16.msrb.mxu1 %v10767_v39  ;;  %5333 = vmatpush.bf16.msrb.mxu0 %v10479_v41  ;;  %v10412_v1 = vld [vmem:[#allocation4 + $0x268] sm:$0xf0] }
 0x6ed   :  { %v14445_v6 = vld [vmem:[#allocation4 + $0x64c] sm:$0xf]  ;;  %v10415_v30 = vor.u32 %v14317_v59, %v10412_v1 }
 0x6ee   :  { %5359 = vmatpush.bf16.msrb.mxu2 %v10991_v42  ;;  %v10924_v9 = vld [vmem:[#allocation4 + $0x668] sm:$0xf0]  ;;  %5321 = vmatpush.bf16.msra.mxu3 %v10191_v48 }
 0x6ef   :  { %v14381_v33 = vld [vmem:[#allocation4 + $0x44c] sm:$0xf]  ;;  %v10927_v38 = vor.u32 %v14445_v6, %v10924_v9 }
 0x6f0   :  { %5346 = vmatpush.bf16.msrb.mxu1 %v10735_v45  ;;  %v10668_v36 = vld [vmem:[#allocation4 + $0x468] sm:$0xf0]  ;;  %5334 = vmatpush.bf16.msrb.mxu0 %v10447_v53 }
 0x6f1   :  { %v14245_v15 = vld [vmem:[#allocation4 + $0xc] sm:$0xf]  ;;  %v10671_v39 = vor.u32 %v14381_v33, %v10668_v36 }
 0x6f2   :  { %v10124_v28 = vld [vmem:[#allocation4 + $0x28] sm:$0xf0]  ;;  %5360 = vmatpush.bf16.msrb.mxu2 %v10959_v19  ;;  %5322 = vmatpush.bf16.msra.mxu3 %v10159_v63 }
 0x6f3   :  { %v14309_v23 = vld [vmem:[#allocation4 + $0x20c] sm:$0xf]  ;;  %v10127_v41 = vor.u32 %v14245_v15, %v10124_v28 }
 0x6f4   :  { %v10380_v20 = vld [vmem:[#allocation4 + $0x228] sm:$0xf0]  ;;  %5347 = vmatpush.bf16.msrb.mxu1 %v10703_v13  ;;  %5335 = vmatpush.bf16.msrb.mxu0 %v10415_v30 }
 0x6f5   :  { %v14437_v22 = vld [vmem:[#allocation4 + $0x60c] sm:$0xf]  ;;  %v10383_v0 = vor.u32 %v14309_v23, %v10380_v20 }
 0x6f6   :  { %v10892_v11 = vld [vmem:[#allocation4 + $0x628] sm:$0xf0]  ;;  %5361 = vmatpush.bf16.msrb.mxu2 %v10927_v38  ;;  %5323 = vmatpush.bf16.msra.mxu3 %v10127_v41 }
 0x6f7   :  { %v14557_v37 = vld [vmem:[#allocation4 + $0x9cc] sm:$0xf]  ;;  %v10895_v7 = vor.u32 %v14437_v22, %v10892_v11 }
 0x6f8   :  { %v11372_v27 = vld [vmem:[#allocation4 + $0x9e8] sm:$0xf0]  ;;  %5348 = vmatpush.bf16.msrb.mxu1 %v10671_v39  ;;  %5336 = vmatpush.bf16.msrb.mxu0 %v10383_v0 }
 0x6f9   :  { %v14621_v3 = vld [vmem:[#allocation4 + $0xbcc] sm:$0xf]  ;;  %v11375_v45 = vor.u32 %v14557_v37, %v11372_v27  ;;  %5324 = vmatmul.bf16.vlgmr.msra.gmra.mxu3 %v16261_v49 }
 0x6fa   :  { %v11628_v5 = vld [vmem:[#allocation4 + $0xbe8] sm:$0xf0]  ;;  %5362 = vmatpush.bf16.msrb.mxu2 %v10895_v7 }
 0x6fb   :  { %v14749_v40 = vld [vmem:[#allocation4 + $0xfcc] sm:$0xf]  ;;  %v11631_v46 = vor.u32 %v14621_v3, %v11628_v5  ;;  %5368 = vmatpush.bf16.msrb.mxu3 %v11375_v45  ;;  %5337 = vmatmul.bf16.vlgmr.msrb.gmra.mxu0 %v16271_v32  ;;  %v5130_v45 = vpop.f32.mrf.mxu0 }
 0x6fc   :  { %v12140_v42 = vld [vmem:[#allocation4 + $0xfe8] sm:$0xf0] }
 0x6fd   :  { %v14373_v43 = vld [vmem:[#allocation4 + $0x40c] sm:$0xf]  ;;  %v12143_v50 = vor.u32 %v14749_v40, %v12140_v42  ;;  %5381 = vmatpush.bf16.msra.mxu0 %v11631_v46  ;;  %5363 = vmatmul.bf16.vlgmr.msrb.gmra.mxu2 %v16266_v16 }
 0x6fe   :  { %v10636_v17 = vld [vmem:[#allocation4 + $0x428] sm:$0xf0] }
 0x6ff   :  { %v14685_v31 = vld [vmem:[#allocation4 + $0xdcc] sm:$0xf]  ;;  %v10639_v51 = vor.u32 %v14373_v43, %v10636_v17  ;;  %5407 = vmatpush.bf16.msra.mxu2 %v12143_v50 }
 0x700   :  { %v11884_v44 = vld [vmem:[#allocation4 + $0xde8] sm:$0xf0] }
 0x701   :  { %v14549_v48 = vld [vmem:[#allocation4 + $0x98c] sm:$0xf]  ;;  %v11887_v19 = vor.u32 %v14685_v31, %v11884_v44  ;;  %5349 = vmatpush.bf16.msrb.mxu1 %v10639_v51 }
 0x702   :  { %v11340_v52 = vld [vmem:[#allocation4 + $0x9a8] sm:$0xf0] }
 0x703   :  { %v14613_v12 = vld [vmem:[#allocation4 + $0xb8c] sm:$0xf]  ;;  %v11343_v1 = vor.u32 %v14549_v48, %v11340_v52 }
 0x704   :  { %v11596_v53 = vld [vmem:[#allocation4 + $0xba8] sm:$0xf0]  ;;  %5350 = vmatmul.bf16.vlgmr.msrb.gmra.mxu1 %v16276_v10 }
 0x705   :  { %v14741_v54 = vld [vmem:[#allocation4 + $0xf8c] sm:$0xf]  ;;  %v11599_v6 = vor.u32 %v14613_v12, %v11596_v53  ;;  %5394 = vmatpush.bf16.msra.mxu1 %v11887_v19  ;;  %5369 = vmatpush.bf16.msrb.mxu3 %v11343_v1  ;;  %v5143_v12 = vpop.f32.mrf.mxu1 }
 0x706   :  { %v12108_v58 = vld [vmem:[#allocation4 + $0xfa8] sm:$0xf0] }
 0x707   :  { %v14677_v59 = vld [vmem:[#allocation4 + $0xd8c] sm:$0xf]  ;;  %v12111_v13 = vor.u32 %v14741_v54, %v12108_v58  ;;  %5382 = vmatpush.bf16.msra.mxu0 %v11599_v6 }
 0x708   :  { %v11852_v61 = vld [vmem:[#allocation4 + $0xda8] sm:$0xf0] }
 0x709   :  { %v14541_v9 = vld [vmem:[#allocation4 + $0x94c] sm:$0xf]  ;;  %v11855_v14 = vor.u32 %v14677_v59, %v11852_v61  ;;  %5408 = vmatpush.bf16.msra.mxu2 %v12111_v13  ;;  %v5117_v13 = vpop.f32.mrf.mxu3 }
 0x70a   :  { %v11308_v33 = vld [vmem:[#allocation4 + $0x968] sm:$0xf0] }
 0x70b   :  { %v14605_v26 = vld [vmem:[#allocation4 + $0xb4c] sm:$0xf]  ;;  %v11311_v38 = vor.u32 %v14541_v9, %v11308_v33  ;;  %5395 = vmatpush.bf16.msra.mxu1 %v11855_v14  ;;  %v5131_v14 = vadd.f32 %v5130_v45, %v5117_v13  ;;  %v10610_v45 = vld [vmem:[#allocation4 + $0x3d0] sm:$0xf] }
 0x70c   :  { %v11564_v63 = vld [vmem:[#allocation4 + $0xb68] sm:$0xf0]  ;;  %v10322_v13 = vld [vmem:[#allocation4 + $0x190] sm:$0xf] }
 0x70d   :  { %v14733_v36 = vld [vmem:[#allocation4 + $0xf4c] sm:$0xf]  ;;  %v11567_v23 = vor.u32 %v14605_v26, %v11564_v63  ;;  %5370 = vmatpush.bf16.msrb.mxu3 %v11311_v38 }
 0x70e   :  { %v12076_v15 = vld [vmem:[#allocation4 + $0xf68] sm:$0xf0] }
 0x70f   :  { %v14669_v28 = vld [vmem:[#allocation4 + $0xd4c] sm:$0xf]  ;;  %v12079_v22 = vor.u32 %v14733_v36, %v12076_v15  ;;  %5383 = vmatpush.bf16.msra.mxu0 %v11567_v23  ;;  %v5156_v36 = vpop.f32.mrf.mxu2 }
 0x710   :  { %v11820_v30 = vld [vmem:[#allocation4 + $0xd68] sm:$0xf0] }
 0x711   :  { %v14533_v20 = vld [vmem:[#allocation4 + $0x90c] sm:$0xf]  ;;  %v11823_v27 = vor.u32 %v14669_v28, %v11820_v30  ;;  %5409 = vmatpush.bf16.msra.mxu2 %v12079_v22 }
 0x712   :  { %v11276_v8 = vld [vmem:[#allocation4 + $0x928] sm:$0xf0] }
 0x713   :  { %v14597_v11 = vld [vmem:[#allocation4 + $0xb0c] sm:$0xf]  ;;  %v11279_v55 = vor.u32 %v14533_v20, %v11276_v8  ;;  %5396 = vmatpush.bf16.msra.mxu1 %v11823_v27  ;;  %v5144_v8 = vadd.f32 %v5143_v12, %v5131_v14  ;;  %v14362_v14 = vld [vmem:[#allocation4 + $0x3ac] sm:$0xf0] }
 0x714   :  { %v11532_v37 = vld [vmem:[#allocation4 + $0xb28] sm:$0xf0] }
 0x715   :  { %v14725_v39 = vld [vmem:[#allocation4 + $0xf0c] sm:$0xf]  ;;  %v11535_v41 = vor.u32 %v14597_v11, %v11532_v37  ;;  %5371 = vmatpush.bf16.msrb.mxu3 %v11279_v55  ;;  %v5132_v11 = vpop.f32.mrf.mxu0 }
 0x716   :  { %v12044_v3 = vld [vmem:[#allocation4 + $0xf28] sm:$0xf0]  ;;  %v14290_v11 = vld [vmem:[#allocation4 + $0x16c] sm:$0xf0] }
 0x717   :  { %v14661_v5 = vld [vmem:[#allocation4 + $0xd0c] sm:$0xf]  ;;  %v12047_v43 = vor.u32 %v14725_v39, %v12044_v3  ;;  %5384 = vmatpush.bf16.msra.mxu0 %v11535_v41  ;;  %v16331_v41 = vadd.f32 %v5156_v36, %v5144_v8  ;;  %v11090_v36 = vld [vmem:[#allocation4 + $0x790] sm:$0xf] }
 0x718   :  { %v11788_v40 = vld [vmem:[#allocation4 + $0xd28] sm:$0xf0]  ;;  %v10290_v8 = vld [vmem:[#allocation4 + $0x150] sm:$0xf] }
 0x719   :  { %v14525_v42 = vld [vmem:[#allocation4 + $0x8cc] sm:$0xf]  ;;  %v11791_v7 = vor.u32 %v14661_v5, %v11788_v40  ;;  %5410 = vmatpush.bf16.msra.mxu2 %v12047_v43 }
 0x71a   :  { %v11244_v17 = vld [vmem:[#allocation4 + $0x8e8] sm:$0xf0] }
 0x71b   :  { %v14589_v18 = vld [vmem:[#allocation4 + $0xacc] sm:$0xf]  ;;  %v11247_v50 = vor.u32 %v14525_v42, %v11244_v17  ;;  %5397 = vmatpush.bf16.msra.mxu1 %v11791_v7  ;;  %v5145_v42 = vpop.f32.mrf.mxu1 }
 0x71c   :  { %v11500_v0 = vld [vmem:[#allocation4 + $0xae8] sm:$0xf0]  ;;  %v14418_v42 = vld [vmem:[#allocation4 + $0x56c] sm:$0xf0] }
 0x71d   :  { %v14717_v31 = vld [vmem:[#allocation4 + $0xecc] sm:$0xf]  ;;  %v11503_v51 = vor.u32 %v14589_v18, %v11500_v0  ;;  %5372 = vmatpush.bf16.msrb.mxu3 %v11247_v50  ;;  %v14498_v50 = vld [vmem:[#allocation4 + $0x7ec] sm:$0xf0] }
 0x71e   :  { %v12012_v44 = vld [vmem:[#allocation4 + $0xee8] sm:$0xf0] }
 0x71f   :  { %v14653_v46 = vld [vmem:[#allocation4 + $0xccc] sm:$0xf]  ;;  %v12015_v53 = vor.u32 %v14717_v31, %v12012_v44  ;;  %5385 = vmatpush.bf16.msra.mxu0 %v11503_v51  ;;  %v10354_v31 = vld [vmem:[#allocation4 + $0x1d0] sm:$0xf]  ;;  %v5119_v51 = vpop.f32.mrf.mxu3 }
 0x720   :  { %v11756_v48 = vld [vmem:[#allocation4 + $0xce8] sm:$0xf0]  ;;  %v14306_v44 = vld [vmem:[#allocation4 + $0x1ec] sm:$0xf0] }
 0x721   :  { %v14517_v52 = vld [vmem:[#allocation4 + $0x88c] sm:$0xf]  ;;  %v11759_v59 = vor.u32 %v14653_v46, %v11756_v48  ;;  %5411 = vmatpush.bf16.msra.mxu2 %v12015_v53  ;;  %v14370_v46 = vld [vmem:[#allocation4 + $0x3ec] sm:$0xf0] }
 0x722   :  { %v11212_v19 = vld [vmem:[#allocation4 + $0x8a8] sm:$0xf0]  ;;  %v11122_v48 = vld [vmem:[#allocation4 + $0x7d0] sm:$0xf] }
 0x723   :  { %v14581_v54 = vld [vmem:[#allocation4 + $0xa8c] sm:$0xf]  ;;  %v11215_v33 = vor.u32 %v14517_v52, %v11212_v19  ;;  %5398 = vmatpush.bf16.msra.mxu1 %v11759_v59  ;;  %v10355_v59 = vor.u32 %v14306_v44, %v10354_v31  ;;  %v14346_v31 = vld [vmem:[#allocation4 + $0x32c] sm:$0xf0] }
 0x724   :  { %v11468_v58 = vld [vmem:[#allocation4 + $0xaa8] sm:$0xf0]  ;;  %v11026_v44 = vld [vmem:[#allocation4 + $0x710] sm:$0xf] }
 0x725   :  { %v14709_v61 = vld [vmem:[#allocation4 + $0xe8c] sm:$0xf]  ;;  %v11471_v26 = vor.u32 %v14581_v54, %v11468_v58  ;;  %5373 = vmatpush.bf16.msrb.mxu3 %v11215_v33  ;;  %v5158_v54 = vpop.f32.mrf.mxu2  ;;  %v14298_v33 = vld [vmem:[#allocation4 + $0x1ac] sm:$0xf0] }
 0x726   :  { %v11980_v1 = vld [vmem:[#allocation4 + $0xea8] sm:$0xf0]  ;;  %v14410_v51 = vld [vmem:[#allocation4 + $0x52c] sm:$0xf0] }
 0x727   :  { %v14645_v6 = vld [vmem:[#allocation4 + $0xc8c] sm:$0xf]  ;;  %v11983_v15 = vor.u32 %v14709_v61, %v11980_v1  ;;  %5386 = vmatpush.bf16.msra.mxu0 %v11471_v26  ;;  %v10866_v61 = vld [vmem:[#allocation4 + $0x5d0] sm:$0xf] }
 0x728   :  { %v11724_v9 = vld [vmem:[#allocation4 + $0xca8] sm:$0xf0]  ;;  %v14434_v1 = vld [vmem:[#allocation4 + $0x5ec] sm:$0xf0] }
 0x729   :  { %v14509_v63 = vld [vmem:[#allocation4 + $0x84c] sm:$0xf]  ;;  %v11727_v23 = vor.u32 %v14645_v6, %v11724_v9  ;;  %5412 = vmatpush.bf16.msra.mxu2 %v11983_v15  ;;  %v10611_v6 = vor.u32 %v14370_v46, %v10610_v45  ;;  %v11123_v9 = vor.u32 %v14498_v50, %v11122_v48  ;;  %v10578_v26 = vld [vmem:[#allocation4 + $0x390] sm:$0xf] }
 0x72a   :  { %v11180_v28 = vld [vmem:[#allocation4 + $0x868] sm:$0xf0]  ;;  %v14490_v15 = vld [vmem:[#allocation4 + $0x7ac] sm:$0xf0] }
 0x72b   :  { %v14573_v30 = vld [vmem:[#allocation4 + $0xa4c] sm:$0xf]  ;;  %v11183_v39 = vor.u32 %v14509_v63, %v11180_v28  ;;  %5399 = vmatpush.bf16.msra.mxu1 %v11727_v23  ;;  %v10867_v28 = vor.u32 %v14434_v1, %v10866_v61  ;;  %v14426_v23 = vld [vmem:[#allocation4 + $0x5ac] sm:$0xf0] }
 0x72c   :  { %v11436_v38 = vld [vmem:[#allocation4 + $0xa68] sm:$0xf0]  ;;  %v14474_v45 = vld [vmem:[#allocation4 + $0x72c] sm:$0xf0] }
 0x72d   :  { %v14701_v20 = vld [vmem:[#allocation4 + $0xe4c] sm:$0xf]  ;;  %v11439_v3 = vor.u32 %v14573_v30, %v11436_v38  ;;  %5374 = vmatpush.bf16.msrb.mxu3 %v11183_v39  ;;  %v10323_v30 = vor.u32 %v14298_v33, %v10322_v13  ;;  %v10834_v38 = vld [vmem:[#allocation4 + $0x590] sm:$0xf] }
 0x72e   :  { %v11948_v22 = vld [vmem:[#allocation4 + $0xe68] sm:$0xf0]  ;;  %v11058_v39 = vld [vmem:[#allocation4 + $0x750] sm:$0xf] }
 0x72f   :  { %v14637_v37 = vld [vmem:[#allocation4 + $0xc4c] sm:$0xf]  ;;  %v11951_v43 = vor.u32 %v14701_v20, %v11948_v22  ;;  %5387 = vmatpush.bf16.msra.mxu0 %v11439_v3  ;;  %v10579_v20 = vor.u32 %v14362_v14, %v10578_v26  ;;  %v11091_v22 = vor.u32 %v14490_v15, %v11090_v36  ;;  %v14482_v3 = vld [vmem:[#allocation4 + $0x76c] sm:$0xf0] }
 0x730   :  { %v11692_v27 = vld [vmem:[#allocation4 + $0xc68] sm:$0xf0]  ;;  %v10770_v50 = vld [vmem:[#allocation4 + $0x510] sm:$0xf] }
 0x731   :  { %v14501_v5 = vld [vmem:[#allocation4 + $0x80c] sm:$0xf]  ;;  %v11695_v7 = vor.u32 %v14637_v37, %v11692_v27  ;;  %5413 = vmatpush.bf16.msra.mxu2 %v11951_v43  ;;  %v10546_v37 = vld [vmem:[#allocation4 + $0x350] sm:$0xf]  ;;  %v10771_v1 = vor.u32 %v14410_v51, %v10770_v50 }
 0x732   :  { %v11148_v40 = vld [vmem:[#allocation4 + $0x828] sm:$0xf0]  ;;  %v14354_v27 = vld [vmem:[#allocation4 + $0x36c] sm:$0xf0] }
 0x733   :  { %v14565_v55 = vld [vmem:[#allocation4 + $0xa0c] sm:$0xf]  ;;  %v11151_v52 = vor.u32 %v14501_v5, %v11148_v40  ;;  %5400 = vmatpush.bf16.msra.mxu1 %v11695_v7  ;;  %v10835_v5 = vor.u32 %v14426_v23, %v10834_v38  ;;  %v10291_v40 = vor.u32 %v14290_v11, %v10290_v8  ;;  %v10547_v43 = vor.u32 %v14354_v27, %v10546_v37  ;;  %v10514_v7 = vld [vmem:[#allocation4 + $0x310] sm:$0xf] }
 0x734   :  { %v11404_v17 = vld [vmem:[#allocation4 + $0xa28] sm:$0xf0]  ;;  %v10482_v54 = vld [vmem:[#allocation4 + $0x2d0] sm:$0xf] }
 0x735   :  { %v14693_v18 = vld [vmem:[#allocation4 + $0xe0c] sm:$0xf]  ;;  %v11407_v12 = vor.u32 %v14565_v55, %v11404_v17  ;;  %5375 = vmatpush.bf16.msrb.mxu3 %v11151_v52  ;;  %v10802_v55 = vld [vmem:[#allocation4 + $0x550] sm:$0xf]  ;;  %v11059_v17 = vor.u32 %v14482_v3, %v11058_v39  ;;  %v10515_v52 = vor.u32 %v14346_v31, %v10514_v7  ;;  %v5208_v39 = vpop.f32.mrf.mxu2 }
 0x736   :  { %v11916_v0 = vld [vmem:[#allocation4 + $0xe28] sm:$0xf0]  ;;  %v10803_v46 = vor.u32 %v14418_v42, %v10802_v55  ;;  %v14466_v61 = vld [vmem:[#allocation4 + $0x6ec] sm:$0xf0] }
 0x737   :  { %v14629_v53 = vld [vmem:[#allocation4 + $0xc0c] sm:$0xf]  ;;  %v11919_v58 = vor.u32 %v14693_v18, %v11916_v0  ;;  %5388 = vmatpush.bf16.msra.mxu0 %v11407_v12  ;;  %v10258_v18 = vld [vmem:[#allocation4 + $0x110] sm:$0xf]  ;;  %v11027_v12 = vor.u32 %v14474_v45, %v11026_v44 }
 0x738   :  { %v11660_v19 = vld [vmem:[#allocation4 + $0xc28] sm:$0xf0]  ;;  %5376 = vmatmul.bf16.vlgmr.msrb.gmra.mxu3 %v16285_v4  ;;  %v14282_v0 = vld [vmem:[#allocation4 + $0x12c] sm:$0xf0] }
 0x739   :  { %v11663_v63 = vor.u32 %v14629_v53, %v11660_v19  ;;  %5414 = vmatpush.bf16.msra.mxu2 %v11919_v58  ;;  %5420 = vmatpush.bf16.msra.mxu3 %v10355_v59  ;;  %v10259_v48 = vor.u32 %v14282_v0, %v10258_v18  ;;  %v10226_v53 = vld [vmem:[#allocation4 + $0xd0] sm:$0xf] }
 0x73a   :  { %5389 = vmatmul.bf16.vlgmr.msra.gmra.mxu0 %v16295_v21  ;;  %v14274_v19 = vld [vmem:[#allocation4 + $0xec] sm:$0xf0] }
 0x73b   :  { %5433 = vmatpush.bf16.msrb.mxu0 %v10611_v6  ;;  %5401 = vmatpush.bf16.msra.mxu1 %v11663_v63  ;;  %v14338_v58 = vld [vmem:[#allocation4 + $0x2ec] sm:$0xf0]  ;;  %v5182_v6 = vpop.f32.mrf.mxu0 }
 0x73c   :  { %5415 = vmatmul.bf16.vlgmr.msra.gmra.mxu2 %v16290_v62  ;;  %v10994_v59 = vld [vmem:[#allocation4 + $0x6d0] sm:$0xf]  ;;  %v10483_v26 = vor.u32 %v14338_v58, %v10482_v54 }
 0x73d   :  { %5459 = vmatpush.bf16.msrb.mxu2 %v11123_v9  ;;  %5421 = vmatpush.bf16.msra.mxu3 %v10323_v30  ;;  %v10227_v9 = vor.u32 %v14274_v19, %v10226_v53  ;;  %v10738_v13 = vld [vmem:[#allocation4 + $0x4d0] sm:$0xf]  ;;  %v10995_v63 = vor.u32 %v14466_v61, %v10994_v59 }
 0x73e   :  { %5402 = vmatmul.bf16.vlgmr.msra.gmra.mxu1 %v16301_v25  ;;  %v14402_v33 = vld [vmem:[#allocation4 + $0x4ec] sm:$0xf0] }
 0x73f   :  { %5446 = vmatpush.bf16.msrb.mxu1 %v10867_v28  ;;  %5434 = vmatpush.bf16.msrb.mxu0 %v10579_v20  ;;  %v10194_v14 = vld [vmem:[#allocation4 + $0x90] sm:$0xf]  ;;  %v5195_v28 = vpop.f32.mrf.mxu1  ;;  %v10739_v20 = vor.u32 %v14402_v33, %v10738_v13 }
 0x740   :  { %v14266_v36 = vld [vmem:[#allocation4 + $0xac] sm:$0xf0] }
 0x741   :  { %5460 = vmatpush.bf16.msrb.mxu2 %v11091_v22  ;;  %5422 = vmatpush.bf16.msra.mxu3 %v10291_v40  ;;  %v10450_v15 = vld [vmem:[#allocation4 + $0x290] sm:$0xf]  ;;  %v5169_v22 = vpop.f32.mrf.mxu3  ;;  %v10195_v8 = vor.u32 %v14266_v36, %v10194_v14 }
 0x742   :  { %v14330_v30 = vld [vmem:[#allocation4 + $0x2ac] sm:$0xf0]  ;;  %v5170_v11 = vadd.f32 %v5169_v22, %v16331_v41 }
 0x743   :  { %5447 = vmatpush.bf16.msrb.mxu1 %v10835_v5  ;;  %5435 = vmatpush.bf16.msrb.mxu0 %v10547_v43  ;;  %v10962_v38 = vld [vmem:[#allocation4 + $0x690] sm:$0xf]  ;;  %v10451_v3 = vor.u32 %v14330_v30, %v10450_v15  ;;  %v5184_v44 = vpop.f32.mrf.mxu0 }
 0x744   :  { %v14458_v23 = vld [vmem:[#allocation4 + $0x6ac] sm:$0xf0]  ;;  %v5183_v43 = vadd.f32 %v5182_v6, %v5170_v11 }
 0x745   :  { %5461 = vmatpush.bf16.msrb.mxu2 %v11059_v17  ;;  %5423 = vmatpush.bf16.msra.mxu3 %v10259_v48  ;;  %v10706_v37 = vld [vmem:[#allocation4 + $0x490] sm:$0xf]  ;;  %v10963_v5 = vor.u32 %v14458_v23, %v10962_v38 }
 0x746   :  { %v14394_v27 = vld [vmem:[#allocation4 + $0x4ac] sm:$0xf0]  ;;  %v5196_v45 = vadd.f32 %v5195_v28, %v5183_v43  ;;  %v5210_v28 = vpop.f32.mrf.mxu2 }
 0x747   :  { %5448 = vmatpush.bf16.msrb.mxu1 %v10803_v46  ;;  %5436 = vmatpush.bf16.msrb.mxu0 %v10515_v52  ;;  %v10162_v40 = vld [vmem:[#allocation4 + $0x50] sm:$0xf]  ;;  %v10707_v7 = vor.u32 %v14394_v27, %v10706_v37  ;;  %v5197_v54 = vpop.f32.mrf.mxu1 }
 0x748   :  { %v14258_v55 = vld [vmem:[#allocation4 + $0x6c] sm:$0xf0]  ;;  %v16338_v58 = vadd.f32 %v5208_v39, %v5196_v45 }
 0x749   :  { %5462 = vmatpush.bf16.msrb.mxu2 %v11027_v12  ;;  %5424 = vmatpush.bf16.msra.mxu3 %v10227_v9  ;;  %v10418_v42 = vld [vmem:[#allocation4 + $0x250] sm:$0xf]  ;;  %v10163_v41 = vor.u32 %v14258_v55, %v10162_v40 }
 0x74a   :  { %v14322_v17 = vld [vmem:[#allocation4 + $0x26c] sm:$0xf0] }
 0x74b   :  { %5449 = vmatpush.bf16.msrb.mxu1 %v10771_v1  ;;  %5437 = vmatpush.bf16.msrb.mxu0 %v10483_v26  ;;  %v10930_v18 = vld [vmem:[#allocation4 + $0x650] sm:$0xf]  ;;  %v10419_v51 = vor.u32 %v14322_v17, %v10418_v42  ;;  %v5171_v26 = vpop.f32.mrf.mxu3 }
 0x74c   :  { %v14450_v0 = vld [vmem:[#allocation4 + $0x66c] sm:$0xf0] }
 0x74d   :  { %5463 = vmatpush.bf16.msrb.mxu2 %v10995_v63  ;;  %v10674_v31 = vld [vmem:[#allocation4 + $0x450] sm:$0xf]  ;;  %5425 = vmatpush.bf16.msra.mxu3 %v10195_v8  ;;  %v10931_v52 = vor.u32 %v14450_v0, %v10930_v18 }
 0x74e   :  { %v14386_v46 = vld [vmem:[#allocation4 + $0x46c] sm:$0xf0] }
 0x74f   :  { %5450 = vmatpush.bf16.msrb.mxu1 %v10739_v20  ;;  %v10130_v48 = vld [vmem:[#allocation4 + $0x10] sm:$0xf]  ;;  %5438 = vmatpush.bf16.msrb.mxu0 %v10451_v3  ;;  %v10675_v6 = vor.u32 %v14386_v46, %v10674_v31 }
 0x750   :  { %v14250_v50 = vld [vmem:[#allocation4 + $0x2c] sm:$0xf0] }
 0x751   :  { %5464 = vmatpush.bf16.msrb.mxu2 %v10963_v5  ;;  %v10386_v12 = vld [vmem:[#allocation4 + $0x210] sm:$0xf]  ;;  %5426 = vmatpush.bf16.msra.mxu3 %v10163_v41  ;;  %v10131_v63 = vor.u32 %v14250_v50, %v10130_v48 }
 0x752   :  { %v14314_v53 = vld [vmem:[#allocation4 + $0x22c] sm:$0xf0] }
 0x753   :  { %v10898_v19 = vld [vmem:[#allocation4 + $0x610] sm:$0xf]  ;;  %5451 = vmatpush.bf16.msrb.mxu1 %v10707_v7  ;;  %5439 = vmatpush.bf16.msrb.mxu0 %v10419_v51  ;;  %v10387_v30 = vor.u32 %v14314_v53, %v10386_v12 }
 0x754   :  { %v14442_v59 = vld [vmem:[#allocation4 + $0x62c] sm:$0xf0] }
 0x755   :  { %v11378_v61 = vld [vmem:[#allocation4 + $0x9d0] sm:$0xf]  ;;  %5465 = vmatpush.bf16.msrb.mxu2 %v10931_v52  ;;  %v10899_v38 = vor.u32 %v14442_v59, %v10898_v19  ;;  %5427 = vmatpush.bf16.msra.mxu3 %v10131_v63 }
 0x756   :  { %v14562_v1 = vld [vmem:[#allocation4 + $0x9ec] sm:$0xf0] }
 0x757   :  { %v11634_v9 = vld [vmem:[#allocation4 + $0xbd0] sm:$0xf]  ;;  %v11379_v22 = vor.u32 %v14562_v1, %v11378_v61  ;;  %5452 = vmatpush.bf16.msrb.mxu1 %v10675_v6  ;;  %5440 = vmatpush.bf16.msrb.mxu0 %v10387_v30 }
 0x758   :  { %v14626_v13 = vld [vmem:[#allocation4 + $0xbec] sm:$0xf0]  ;;  %5428 = vmatmul.bf16.vlgmr.msra.gmra.mxu3 %v16261_v49 }
 0x759   :  { %v12146_v33 = vld [vmem:[#allocation4 + $0xfd0] sm:$0xf]  ;;  %v11635_v8 = vor.u32 %v14626_v13, %v11634_v9  ;;  %5466 = vmatpush.bf16.msrb.mxu2 %v10899_v38  ;;  %5472 = vmatpush.bf16.msrb.mxu3 %v11379_v22 }
 0x75a   :  { %v14754_v14 = vld [vmem:[#allocation4 + $0xfec] sm:$0xf0]  ;;  %5441 = vmatmul.bf16.vlgmr.msrb.gmra.mxu0 %v16271_v32 }
 0x75b   :  { %v10642_v36 = vld [vmem:[#allocation4 + $0x410] sm:$0xf]  ;;  %v12147_v37 = vor.u32 %v14754_v14, %v12146_v33  ;;  %5485 = vmatpush.bf16.msra.mxu0 %v11635_v8  ;;  %v5234_v8 = vpop.f32.mrf.mxu0 }
 0x75c   :  { %v14378_v15 = vld [vmem:[#allocation4 + $0x42c] sm:$0xf0]  ;;  %5467 = vmatmul.bf16.vlgmr.msrb.gmra.mxu2 %v16266_v16 }
 0x75d   :  { %v11890_v23 = vld [vmem:[#allocation4 + $0xdd0] sm:$0xf]  ;;  %v10643_v27 = vor.u32 %v14378_v15, %v10642_v36  ;;  %5511 = vmatpush.bf16.msra.mxu2 %v12147_v37 }
 0x75e   :  { %v14690_v20 = vld [vmem:[#allocation4 + $0xdec] sm:$0xf0] }
 0x75f   :  { %v11346_v11 = vld [vmem:[#allocation4 + $0x990] sm:$0xf]  ;;  %v11891_v40 = vor.u32 %v14690_v20, %v11890_v23  ;;  %5453 = vmatpush.bf16.msrb.mxu1 %v10643_v27 }
 0x760   :  { %v14554_v39 = vld [vmem:[#allocation4 + $0x9ac] sm:$0xf0] }
 0x761   :  { %v11602_v3 = vld [vmem:[#allocation4 + $0xb90] sm:$0xf]  ;;  %v11347_v18 = vor.u32 %v14554_v39, %v11346_v11 }
 0x762   :  { %v14618_v5 = vld [vmem:[#allocation4 + $0xbac] sm:$0xf0]  ;;  %5454 = vmatmul.bf16.vlgmr.msrb.gmra.mxu1 %v16276_v10 }
 0x763   :  { %v12114_v55 = vld [vmem:[#allocation4 + $0xf90] sm:$0xf]  ;;  %v11603_v0 = vor.u32 %v14618_v5, %v11602_v3  ;;  %5498 = vmatpush.bf16.msra.mxu1 %v11891_v40  ;;  %5473 = vmatpush.bf16.msrb.mxu3 %v11347_v18  ;;  %v5247_v5 = vpop.f32.mrf.mxu1 }
 0x764   :  { %v14746_v42 = vld [vmem:[#allocation4 + $0xfac] sm:$0xf0] }
 0x765   :  { %v11858_v43 = vld [vmem:[#allocation4 + $0xd90] sm:$0xf]  ;;  %v12115_v31 = vor.u32 %v14746_v42, %v12114_v55  ;;  %5486 = vmatpush.bf16.msra.mxu0 %v11603_v0 }
 0x766   :  { %v14682_v17 = vld [vmem:[#allocation4 + $0xdac] sm:$0xf0] }
 0x767   :  { %v11314_v7 = vld [vmem:[#allocation4 + $0x950] sm:$0xf]  ;;  %v11859_v46 = vor.u32 %v14682_v17, %v11858_v43  ;;  %5512 = vmatpush.bf16.msra.mxu2 %v12115_v31 }
 0x768   :  { %v14546_v44 = vld [vmem:[#allocation4 + $0x96c] sm:$0xf0] }
 0x769   :  { %v11570_v41 = vld [vmem:[#allocation4 + $0xb50] sm:$0xf]  ;;  %v11315_v12 = vor.u32 %v14546_v44, %v11314_v7  ;;  %5499 = vmatpush.bf16.msra.mxu1 %v11859_v46  ;;  %v5221_v44 = vpop.f32.mrf.mxu3 }
 0x76a   :  { %v14610_v45 = vld [vmem:[#allocation4 + $0xb6c] sm:$0xf0] }
 0x76b   :  { %v12082_v48 = vld [vmem:[#allocation4 + $0xf50] sm:$0xf]  ;;  %v11571_v53 = vor.u32 %v14610_v45, %v11570_v41  ;;  %5474 = vmatpush.bf16.msrb.mxu3 %v11315_v12 }
 0x76c   :  { %v14738_v50 = vld [vmem:[#allocation4 + $0xf6c] sm:$0xf0] }
 0x76d   :  { %v11826_v51 = vld [vmem:[#allocation4 + $0xd50] sm:$0xf]  ;;  %v12083_v54 = vor.u32 %v14738_v50, %v12082_v48  ;;  %5487 = vmatpush.bf16.msra.mxu0 %v11571_v53  ;;  %v5235_v48 = vadd.f32 %v5234_v8, %v5221_v44  ;;  %v5260_v50 = vpop.f32.mrf.mxu2  ;;  %v10356_v8 = vld [vmem:[#allocation4 + $0x1f0] sm:$0xf0] }
 0x76e   :  { %v14674_v52 = vld [vmem:[#allocation4 + $0xd6c] sm:$0xf0] }
 0x76f   :  { %v11282_v19 = vld [vmem:[#allocation4 + $0x910] sm:$0xf]  ;;  %v11827_v6 = vor.u32 %v14674_v52, %v11826_v51  ;;  %5513 = vmatpush.bf16.msra.mxu2 %v12083_v54 }
 0x770   :  { %v14538_v59 = vld [vmem:[#allocation4 + $0x92c] sm:$0xf0] }
 0x771   :  { %v11538_v61 = vld [vmem:[#allocation4 + $0xb10] sm:$0xf]  ;;  %v11283_v63 = vor.u32 %v14538_v59, %v11282_v19  ;;  %5500 = vmatpush.bf16.msra.mxu1 %v11827_v6 }
 0x772   :  { %v14602_v1 = vld [vmem:[#allocation4 + $0xb2c] sm:$0xf0] }
 0x773   :  { %v12050_v9 = vld [vmem:[#allocation4 + $0xf10] sm:$0xf]  ;;  %v11539_v14 = vor.u32 %v14602_v1, %v11538_v61  ;;  %5475 = vmatpush.bf16.msrb.mxu3 %v11283_v63  ;;  %v5248_v61 = vadd.f32 %v5247_v5, %v5235_v48  ;;  %v5236_v1 = vpop.f32.mrf.mxu0 }
 0x774   :  { %v14730_v13 = vld [vmem:[#allocation4 + $0xf2c] sm:$0xf0]  ;;  %v14286_v1 = vld [vmem:[#allocation4 + $0x154] sm:$0xf] }
 0x775   :  { %v11794_v33 = vld [vmem:[#allocation4 + $0xd10] sm:$0xf]  ;;  %v12051_v15 = vor.u32 %v14730_v13, %v12050_v9  ;;  %5488 = vmatpush.bf16.msra.mxu0 %v11539_v14 }
 0x776   :  { %v14666_v26 = vld [vmem:[#allocation4 + $0xd2c] sm:$0xf0] }
 0x777   :  { %v11250_v36 = vld [vmem:[#allocation4 + $0x8d0] sm:$0xf]  ;;  %v11795_v23 = vor.u32 %v14666_v26, %v11794_v33  ;;  %5514 = vmatpush.bf16.msra.mxu2 %v12051_v15  ;;  %v5249_v15 = vpop.f32.mrf.mxu1 }
 0x778   :  { %v14530_v28 = vld [vmem:[#allocation4 + $0x8ec] sm:$0xf0]  ;;  %v14414_v15 = vld [vmem:[#allocation4 + $0x554] sm:$0xf] }
 0x779   :  { %v11506_v30 = vld [vmem:[#allocation4 + $0xad0] sm:$0xf]  ;;  %v11251_v27 = vor.u32 %v14530_v28, %v11250_v36  ;;  %5501 = vmatpush.bf16.msra.mxu1 %v11795_v23  ;;  %v16344_v36 = vadd.f32 %v5260_v50, %v5248_v61  ;;  %v10580_v50 = vld [vmem:[#allocation4 + $0x3b0] sm:$0xf0] }
 0x77a   :  { %v14594_v38 = vld [vmem:[#allocation4 + $0xaec] sm:$0xf0] }
 0x77b   :  { %v12018_v20 = vld [vmem:[#allocation4 + $0xed0] sm:$0xf]  ;;  %v11507_v39 = vor.u32 %v14594_v38, %v11506_v30  ;;  %5476 = vmatpush.bf16.msrb.mxu3 %v11251_v27  ;;  %v14494_v27 = vld [vmem:[#allocation4 + $0x7d4] sm:$0xf] }
 0x77c   :  { %v14722_v22 = vld [vmem:[#allocation4 + $0xeec] sm:$0xf0] }
 0x77d   :  { %v11762_v11 = vld [vmem:[#allocation4 + $0xcd0] sm:$0xf]  ;;  %v12019_v40 = vor.u32 %v14722_v22, %v12018_v20  ;;  %5489 = vmatpush.bf16.msra.mxu0 %v11507_v39  ;;  %v14302_v22 = vld [vmem:[#allocation4 + $0x1d4] sm:$0xf] }
 0x77e   :  { %v14658_v37 = vld [vmem:[#allocation4 + $0xcec] sm:$0xf0]  ;;  %v11124_v39 = vld [vmem:[#allocation4 + $0x7f0] sm:$0xf0] }
 0x77f   :  { %v11218_v3 = vld [vmem:[#allocation4 + $0x890] sm:$0xf]  ;;  %v11763_v17 = vor.u32 %v14658_v37, %v11762_v11  ;;  %5515 = vmatpush.bf16.msra.mxu2 %v12019_v40  ;;  %v14366_v11 = vld [vmem:[#allocation4 + $0x3d4] sm:$0xf]  ;;  %v11127_v44 = vor.u32 %v14494_v27, %v11124_v39 }
 0x780   :  { %v14522_v55 = vld [vmem:[#allocation4 + $0x8ac] sm:$0xf0]  ;;  %v10612_v37 = vld [vmem:[#allocation4 + $0x3f0] sm:$0xf0] }
 0x781   :  { %v11474_v42 = vld [vmem:[#allocation4 + $0xa90] sm:$0xf]  ;;  %v11219_v41 = vor.u32 %v14522_v55, %v11218_v3  ;;  %5502 = vmatpush.bf16.msra.mxu1 %v11763_v17  ;;  %v5223_v3 = vpop.f32.mrf.mxu3 }
 0x782   :  { %v14586_v43 = vld [vmem:[#allocation4 + $0xaac] sm:$0xf0]  ;;  %v14406_v3 = vld [vmem:[#allocation4 + $0x514] sm:$0xf] }
 0x783   :  { %v11986_v18 = vld [vmem:[#allocation4 + $0xe90] sm:$0xf]  ;;  %v11475_v45 = vor.u32 %v14586_v43, %v11474_v42  ;;  %5477 = vmatpush.bf16.msrb.mxu3 %v11219_v41  ;;  %v5262_v43 = vpop.f32.mrf.mxu2  ;;  %v14294_v41 = vld [vmem:[#allocation4 + $0x194] sm:$0xf] }
 0x784   :  { %v14714_v0 = vld [vmem:[#allocation4 + $0xeac] sm:$0xf0]  ;;  %v10228_v43 = vld [vmem:[#allocation4 + $0xf0] sm:$0xf0] }
 0x785   :  { %v11730_v7 = vld [vmem:[#allocation4 + $0xc90] sm:$0xf]  ;;  %v11987_v51 = vor.u32 %v14714_v0, %v11986_v18  ;;  %5490 = vmatpush.bf16.msra.mxu0 %v11475_v45  ;;  %v10359_v18 = vor.u32 %v14302_v22, %v10356_v8  ;;  %v14430_v0 = vld [vmem:[#allocation4 + $0x5d4] sm:$0xf] }
 0x786   :  { %v14650_v31 = vld [vmem:[#allocation4 + $0xcac] sm:$0xf0]  ;;  %v10324_v45 = vld [vmem:[#allocation4 + $0x1b0] sm:$0xf0] }
 0x787   :  { %v11186_v46 = vld [vmem:[#allocation4 + $0x850] sm:$0xf]  ;;  %v11731_v19 = vor.u32 %v14650_v31, %v11730_v7  ;;  %5516 = vmatpush.bf16.msra.mxu2 %v11987_v51  ;;  %v10868_v7 = vld [vmem:[#allocation4 + $0x5f0] sm:$0xf0]  ;;  %v10615_v31 = vor.u32 %v14366_v11, %v10612_v37 }
 0x788   :  { %v14514_v52 = vld [vmem:[#allocation4 + $0x86c] sm:$0xf0]  ;;  %v14486_v51 = vld [vmem:[#allocation4 + $0x794] sm:$0xf] }
 0x789   :  { %v11442_v12 = vld [vmem:[#allocation4 + $0xa50] sm:$0xf]  ;;  %v11187_v13 = vor.u32 %v14514_v52, %v11186_v46  ;;  %5503 = vmatpush.bf16.msra.mxu1 %v11731_v19  ;;  %v14358_v46 = vld [vmem:[#allocation4 + $0x394] sm:$0xf] }
 0x78a   :  { %v14578_v53 = vld [vmem:[#allocation4 + $0xa6c] sm:$0xf0]  ;;  %v11092_v52 = vld [vmem:[#allocation4 + $0x7b0] sm:$0xf0] }
 0x78b   :  { %v11954_v54 = vld [vmem:[#allocation4 + $0xe50] sm:$0xf]  ;;  %v11443_v33 = vor.u32 %v14578_v53, %v11442_v12  ;;  %5478 = vmatpush.bf16.msrb.mxu3 %v11187_v13  ;;  %v10871_v12 = vor.u32 %v14430_v0, %v10868_v7  ;;  %v10327_v53 = vor.u32 %v14294_v41, %v10324_v45  ;;  %v14422_v19 = vld [vmem:[#allocation4 + $0x594] sm:$0xf]  ;;  %v11095_v61 = vor.u32 %v14486_v51, %v11092_v52 }
 0x78c   :  { %v14706_v59 = vld [vmem:[#allocation4 + $0xe6c] sm:$0xf0]  ;;  %v10548_v13 = vld [vmem:[#allocation4 + $0x370] sm:$0xf0] }
 0x78d   :  { %v11698_v6 = vld [vmem:[#allocation4 + $0xc50] sm:$0xf]  ;;  %v11955_v28 = vor.u32 %v14706_v59, %v11954_v54  ;;  %5491 = vmatpush.bf16.msra.mxu0 %v11443_v33  ;;  %v10836_v54 = vld [vmem:[#allocation4 + $0x5b0] sm:$0xf0]  ;;  %v10583_v59 = vor.u32 %v14358_v46, %v10580_v50 }
 0x78e   :  { %v14642_v9 = vld [vmem:[#allocation4 + $0xc6c] sm:$0xf0]  ;;  %v14478_v33 = vld [vmem:[#allocation4 + $0x754] sm:$0xf] }
 0x78f   :  { %v11154_v26 = vld [vmem:[#allocation4 + $0x810] sm:$0xf]  ;;  %v11699_v20 = vor.u32 %v14642_v9, %v11698_v6  ;;  %5517 = vmatpush.bf16.msra.mxu2 %v11955_v28  ;;  %v10292_v6 = vld [vmem:[#allocation4 + $0x170] sm:$0xf0] }
 0x790   :  { %v14506_v63 = vld [vmem:[#allocation4 + $0x82c] sm:$0xf0]  ;;  %v14350_v9 = vld [vmem:[#allocation4 + $0x354] sm:$0xf] }
 0x791   :  { %v11410_v14 = vld [vmem:[#allocation4 + $0xa10] sm:$0xf]  ;;  %v11155_v5 = vor.u32 %v14506_v63, %v11154_v26  ;;  %5504 = vmatpush.bf16.msra.mxu1 %v11699_v20  ;;  %v11060_v26 = vld [vmem:[#allocation4 + $0x770] sm:$0xf0]  ;;  %v10839_v63 = vor.u32 %v14422_v19, %v10836_v54 }
 0x792   :  { %v14570_v30 = vld [vmem:[#allocation4 + $0xa2c] sm:$0xf0]  ;;  %v10804_v28 = vld [vmem:[#allocation4 + $0x570] sm:$0xf0] }
 0x793   :  { %v11922_v38 = vld [vmem:[#allocation4 + $0xe10] sm:$0xf]  ;;  %v11411_v40 = vor.u32 %v14570_v30, %v11410_v14  ;;  %5479 = vmatpush.bf16.msrb.mxu3 %v11155_v5  ;;  %v10295_v14 = vor.u32 %v14286_v1, %v10292_v6  ;;  %v10551_v30 = vor.u32 %v14350_v9, %v10548_v13  ;;  %v10260_v20 = vld [vmem:[#allocation4 + $0x130] sm:$0xf0]  ;;  %v10807_v27 = vor.u32 %v14414_v15, %v10804_v28  ;;  %v5273_v1 = vpop.f32.mrf.mxu3 }
 0x794   :  { %v14698_v23 = vld [vmem:[#allocation4 + $0xe2c] sm:$0xf0]  ;;  %v14342_v22 = vld [vmem:[#allocation4 + $0x314] sm:$0xf]  ;;  %v5274_v9 = vadd.f32 %v5273_v1, %v16344_v36 }
 0x795   :  { %v11666_v55 = vld [vmem:[#allocation4 + $0xc10] sm:$0xf]  ;;  %v11923_v17 = vor.u32 %v14698_v23, %v11922_v38  ;;  %5492 = vmatpush.bf16.msra.mxu0 %v11411_v40  ;;  %v11063_v38 = vor.u32 %v14478_v33, %v11060_v26  ;;  %v14278_v23 = vld [vmem:[#allocation4 + $0x114] sm:$0xf]  ;;  %v5312_v26 = vpop.f32.mrf.mxu2 }
 0x796   :  { %v14634_v42 = vld [vmem:[#allocation4 + $0xc2c] sm:$0xf0]  ;;  %5480 = vmatmul.bf16.vlgmr.msrb.gmra.mxu3 %v16285_v4  ;;  %v10516_v8 = vld [vmem:[#allocation4 + $0x330] sm:$0xf0]  ;;  %v10263_v39 = vor.u32 %v14278_v23, %v10260_v20 }
 0x797   :  { %v11667_v48 = vor.u32 %v14634_v42, %v11666_v55  ;;  %5518 = vmatpush.bf16.msra.mxu2 %v11923_v17  ;;  %5524 = vmatpush.bf16.msra.mxu3 %v10359_v18  ;;  %v14470_v11 = vld [vmem:[#allocation4 + $0x714] sm:$0xf]  ;;  %v10519_v40 = vor.u32 %v14342_v22, %v10516_v8 }
 0x798   :  { %5493 = vmatmul.bf16.vlgmr.msra.gmra.mxu0 %v16295_v21  ;;  %v11028_v37 = vld [vmem:[#allocation4 + $0x730] sm:$0xf0] }
 0x799   :  { %5537 = vmatpush.bf16.msrb.mxu0 %v10615_v31  ;;  %5505 = vmatpush.bf16.msra.mxu1 %v11667_v48  ;;  %v10772_v5 = vld [vmem:[#allocation4 + $0x530] sm:$0xf0]  ;;  %v11031_v55 = vor.u32 %v14470_v11, %v11028_v37 }
 0x79a   :  { %5519 = vmatmul.bf16.vlgmr.msra.gmra.mxu2 %v16290_v62  ;;  %v14270_v42 = vld [vmem:[#allocation4 + $0xd4] sm:$0xf]  ;;  %v10775_v31 = vor.u32 %v14406_v3, %v10772_v5 }
 0x79b   :  { %5563 = vmatpush.bf16.msrb.mxu2 %v11127_v44  ;;  %5525 = vmatpush.bf16.msra.mxu3 %v10327_v53  ;;  %v14334_v17 = vld [vmem:[#allocation4 + $0x2d4] sm:$0xf]  ;;  %v5286_v44 = vpop.f32.mrf.mxu0  ;;  %v10231_v41 = vor.u32 %v14270_v42, %v10228_v43  ;;  %v5299_v53 = vpop.f32.mrf.mxu1 }
 0x79c   :  { %5506 = vmatmul.bf16.vlgmr.msra.gmra.mxu1 %v16301_v25  ;;  %v10484_v18 = vld [vmem:[#allocation4 + $0x2f0] sm:$0xf0] }
 0x79d   :  { %5550 = vmatpush.bf16.msrb.mxu1 %v10871_v12  ;;  %5538 = vmatpush.bf16.msrb.mxu0 %v10583_v59  ;;  %v14462_v0 = vld [vmem:[#allocation4 + $0x6d4] sm:$0xf]  ;;  %v10487_v48 = vor.u32 %v14334_v17, %v10484_v18 }
 0x79e   :  { %v10996_v7 = vld [vmem:[#allocation4 + $0x6f0] sm:$0xf0] }
 0x79f   :  { %5564 = vmatpush.bf16.msrb.mxu2 %v11095_v61  ;;  %5526 = vmatpush.bf16.msra.mxu3 %v10295_v14  ;;  %v14398_v45 = vld [vmem:[#allocation4 + $0x4d4] sm:$0xf]  ;;  %v10999_v50 = vor.u32 %v14462_v0, %v10996_v7 }
 0x7a0   :  { %v10740_v46 = vld [vmem:[#allocation4 + $0x4f0] sm:$0xf0] }
 0x7a1   :  { %5551 = vmatpush.bf16.msrb.mxu1 %v10839_v63  ;;  %5539 = vmatpush.bf16.msrb.mxu0 %v10551_v30  ;;  %v14262_v51 = vld [vmem:[#allocation4 + $0x94] sm:$0xf]  ;;  %v10743_v61 = vor.u32 %v14398_v45, %v10740_v46 }
 0x7a2   :  { %v10196_v52 = vld [vmem:[#allocation4 + $0xb0] sm:$0xf0] }
 0x7a3   :  { %5565 = vmatpush.bf16.msrb.mxu2 %v11063_v38  ;;  %5527 = vmatpush.bf16.msra.mxu3 %v10263_v39  ;;  %v14326_v12 = vld [vmem:[#allocation4 + $0x294] sm:$0xf]  ;;  %v10199_v6 = vor.u32 %v14262_v51, %v10196_v52  ;;  %v5287_v38 = vadd.f32 %v5286_v44, %v5274_v9  ;;  %v5288_v37 = vpop.f32.mrf.mxu0  ;;  %v5301_v18 = vpop.f32.mrf.mxu1 }
 0x7a4   :  { %v10452_v19 = vld [vmem:[#allocation4 + $0x2b0] sm:$0xf0] }
 0x7a5   :  { %5552 = vmatpush.bf16.msrb.mxu1 %v10807_v27  ;;  %5540 = vmatpush.bf16.msrb.mxu0 %v10519_v40  ;;  %v14454_v54 = vld [vmem:[#allocation4 + $0x694] sm:$0xf]  ;;  %v10455_v63 = vor.u32 %v14326_v12, %v10452_v19  ;;  %v5300_v27 = vadd.f32 %v5299_v53, %v5287_v38  ;;  %v5314_v19 = vpop.f32.mrf.mxu2 }
 0x7a6   :  { %v10964_v59 = vld [vmem:[#allocation4 + $0x6b0] sm:$0xf0] }
 0x7a7   :  { %5566 = vmatpush.bf16.msrb.mxu2 %v11031_v55  ;;  %5528 = vmatpush.bf16.msra.mxu3 %v10231_v41  ;;  %v14390_v13 = vld [vmem:[#allocation4 + $0x494] sm:$0xf]  ;;  %v10967_v14 = vor.u32 %v14454_v54, %v10964_v59  ;;  %v16351_v0 = vadd.f32 %v5312_v26, %v5300_v27 }
 0x7a8   :  { %v10708_v33 = vld [vmem:[#allocation4 + $0x4b0] sm:$0xf0] }
 0x7a9   :  { %5553 = vmatpush.bf16.msrb.mxu1 %v10775_v31  ;;  %5541 = vmatpush.bf16.msrb.mxu0 %v10487_v48  ;;  %v14254_v15 = vld [vmem:[#allocation4 + $0x54] sm:$0xf]  ;;  %v10711_v8 = vor.u32 %v14390_v13, %v10708_v33 }
 0x7aa   :  { %v10164_v28 = vld [vmem:[#allocation4 + $0x70] sm:$0xf0] }
 0x7ab   :  { %5567 = vmatpush.bf16.msrb.mxu2 %v10999_v50  ;;  %v14318_v30 = vld [vmem:[#allocation4 + $0x254] sm:$0xf]  ;;  %5529 = vmatpush.bf16.msra.mxu3 %v10199_v6  ;;  %v10167_v36 = vor.u32 %v14254_v15, %v10164_v28  ;;  %v5275_v50 = vpop.f32.mrf.mxu3 }
 0x7ac   :  { %v10420_v23 = vld [vmem:[#allocation4 + $0x270] sm:$0xf0] }
 0x7ad   :  { %v14446_v20 = vld [vmem:[#allocation4 + $0x654] sm:$0xf]  ;;  %5554 = vmatpush.bf16.msrb.mxu1 %v10743_v61  ;;  %5542 = vmatpush.bf16.msrb.mxu0 %v10455_v63  ;;  %v10423_v40 = vor.u32 %v14318_v30, %v10420_v23 }
 0x7ae   :  { %v10932_v22 = vld [vmem:[#allocation4 + $0x670] sm:$0xf0] }
 0x7af   :  { %v14382_v11 = vld [vmem:[#allocation4 + $0x454] sm:$0xf]  ;;  %5568 = vmatpush.bf16.msrb.mxu2 %v10967_v14  ;;  %v10935_v55 = vor.u32 %v14446_v20, %v10932_v22  ;;  %5530 = vmatpush.bf16.msra.mxu3 %v10167_v36 }
 0x7b0   :  { %v10676_v39 = vld [vmem:[#allocation4 + $0x470] sm:$0xf0] }
 0x7b1   :  { %v14246_v3 = vld [vmem:[#allocation4 + $0x14] sm:$0xf]  ;;  %5555 = vmatpush.bf16.msrb.mxu1 %v10711_v8  ;;  %v10679_v41 = vor.u32 %v14382_v11, %v10676_v39  ;;  %5543 = vmatpush.bf16.msrb.mxu0 %v10423_v40 }
 0x7b2   :  { %v10132_v5 = vld [vmem:[#allocation4 + $0x30] sm:$0xf0] }
 0x7b3   :  { %v14310_v42 = vld [vmem:[#allocation4 + $0x214] sm:$0xf]  ;;  %v10135_v51 = vor.u32 %v14246_v3, %v10132_v5  ;;  %5569 = vmatpush.bf16.msrb.mxu2 %v10935_v55 }
 0x7b4   :  { %v10388_v43 = vld [vmem:[#allocation4 + $0x230] sm:$0xf0] }
 0x7b5   :  { %v14438_v17 = vld [vmem:[#allocation4 + $0x614] sm:$0xf]  ;;  %v10391_v54 = vor.u32 %v14310_v42, %v10388_v43  ;;  %5556 = vmatpush.bf16.msrb.mxu1 %v10679_v41  ;;  %5531 = vmatpush.bf16.msra.mxu3 %v10135_v51 }
 0x7b6   :  { %v10900_v7 = vld [vmem:[#allocation4 + $0x630] sm:$0xf0] }
 0x7b7   :  { %v14558_v31 = vld [vmem:[#allocation4 + $0x9d4] sm:$0xf]  ;;  %v10903_v59 = vor.u32 %v14438_v17, %v10900_v7  ;;  %5544 = vmatpush.bf16.msrb.mxu0 %v10391_v54 }
 0x7b8   :  { %v11380_v44 = vld [vmem:[#allocation4 + $0x9f0] sm:$0xf0]  ;;  %5532 = vmatmul.bf16.vlgmr.msra.gmra.mxu3 %v16261_v49 }
 0x7b9   :  { %v14622_v45 = vld [vmem:[#allocation4 + $0xbd4] sm:$0xf]  ;;  %v11383_v6 = vor.u32 %v14558_v31, %v11380_v44  ;;  %5570 = vmatpush.bf16.msrb.mxu2 %v10903_v59 }
 0x7ba   :  { %v11636_v46 = vld [vmem:[#allocation4 + $0xbf0] sm:$0xf0]  ;;  %5545 = vmatmul.bf16.vlgmr.msrb.gmra.mxu0 %v16271_v32 }
 0x7bb   :  { %v14750_v48 = vld [vmem:[#allocation4 + $0xfd4] sm:$0xf]  ;;  %v11639_v9 = vor.u32 %v14622_v45, %v11636_v46  ;;  %5576 = vmatpush.bf16.msrb.mxu3 %v11383_v6 }
 0x7bc   :  { %v12148_v52 = vld [vmem:[#allocation4 + $0xff0] sm:$0xf0]  ;;  %5571 = vmatmul.bf16.vlgmr.msrb.gmra.mxu2 %v16266_v16 }
 0x7bd   :  { %v14374_v12 = vld [vmem:[#allocation4 + $0x414] sm:$0xf]  ;;  %v12151_v33 = vor.u32 %v14750_v48, %v12148_v52  ;;  %5589 = vmatpush.bf16.msra.mxu0 %v11639_v9 }
 0x7be   :  { %v10644_v53 = vld [vmem:[#allocation4 + $0x430] sm:$0xf0] }
 0x7bf   :  { %v14686_v61 = vld [vmem:[#allocation4 + $0xdd4] sm:$0xf]  ;;  %v10647_v26 = vor.u32 %v14374_v12, %v10644_v53  ;;  %5615 = vmatpush.bf16.msra.mxu2 %v12151_v33 }
 0x7c0   :  { %v11892_v1 = vld [vmem:[#allocation4 + $0xdf0] sm:$0xf0] }
 0x7c1   :  { %v14550_v13 = vld [vmem:[#allocation4 + $0x994] sm:$0xf]  ;;  %v11895_v28 = vor.u32 %v14686_v61, %v11892_v1  ;;  %5557 = vmatpush.bf16.msrb.mxu1 %v10647_v26 }
 0x7c2   :  { %v11348_v63 = vld [vmem:[#allocation4 + $0x9b0] sm:$0xf0] }
 0x7c3   :  { %v14614_v14 = vld [vmem:[#allocation4 + $0xb94] sm:$0xf]  ;;  %v11351_v22 = vor.u32 %v14550_v13, %v11348_v63  ;;  %v5338_v13 = vpop.f32.mrf.mxu0 }
 0x7c4   :  { %v11604_v15 = vld [vmem:[#allocation4 + $0xbb0] sm:$0xf0]  ;;  %5558 = vmatmul.bf16.vlgmr.msrb.gmra.mxu1 %v16276_v10 }
 0x7c5   :  { %v14742_v30 = vld [vmem:[#allocation4 + $0xf94] sm:$0xf]  ;;  %v11607_v8 = vor.u32 %v14614_v14, %v11604_v15  ;;  %5602 = vmatpush.bf16.msra.mxu1 %v11895_v28  ;;  %5577 = vmatpush.bf16.msrb.mxu3 %v11351_v22  ;;  %v5351_v28 = vpop.f32.mrf.mxu1 }
 0x7c6   :  { %v12116_v38 = vld [vmem:[#allocation4 + $0xfb0] sm:$0xf0] }
 0x7c7   :  { %v14678_v23 = vld [vmem:[#allocation4 + $0xd94] sm:$0xf]  ;;  %v12119_v37 = vor.u32 %v14742_v30, %v12116_v38  ;;  %5590 = vmatpush.bf16.msra.mxu0 %v11607_v8 }
 0x7c8   :  { %v11860_v20 = vld [vmem:[#allocation4 + $0xdb0] sm:$0xf0] }
 0x7c9   :  { %v14542_v11 = vld [vmem:[#allocation4 + $0x954] sm:$0xf]  ;;  %v11863_v3 = vor.u32 %v14678_v23, %v11860_v20  ;;  %5616 = vmatpush.bf16.msra.mxu2 %v12119_v37 }
 0x7ca   :  { %v11316_v36 = vld [vmem:[#allocation4 + $0x970] sm:$0xf0] }
 0x7cb   :  { %v14606_v27 = vld [vmem:[#allocation4 + $0xb54] sm:$0xf]  ;;  %v11319_v43 = vor.u32 %v14542_v11, %v11316_v36  ;;  %5603 = vmatpush.bf16.msra.mxu1 %v11863_v3 }
 0x7cc   :  { %v11572_v39 = vld [vmem:[#allocation4 + $0xb70] sm:$0xf0] }
 0x7cd   :  { %v14734_v5 = vld [vmem:[#allocation4 + $0xf54] sm:$0xf]  ;;  %v11575_v17 = vor.u32 %v14606_v27, %v11572_v39  ;;  %5578 = vmatpush.bf16.msrb.mxu3 %v11319_v43  ;;  %v5325_v27 = vpop.f32.mrf.mxu3 }
 0x7ce   :  { %v12084_v40 = vld [vmem:[#allocation4 + $0xf70] sm:$0xf0] }
 0x7cf   :  { %v14670_v55 = vld [vmem:[#allocation4 + $0xd54] sm:$0xf]  ;;  %v12087_v7 = vor.u32 %v14734_v5, %v12084_v40  ;;  %5591 = vmatpush.bf16.msra.mxu0 %v11575_v17  ;;  %v5339_v40 = vadd.f32 %v5338_v13, %v5325_v27  ;;  %v10362_v13 = vld [vmem:[#allocation4 + $0x1d8] sm:$0xf] }
 0x7d0   :  { %v11828_v42 = vld [vmem:[#allocation4 + $0xd70] sm:$0xf0] }
 0x7d1   :  { %v14534_v18 = vld [vmem:[#allocation4 + $0x914] sm:$0xf]  ;;  %v11831_v45 = vor.u32 %v14670_v55, %v11828_v42  ;;  %5617 = vmatpush.bf16.msra.mxu2 %v12087_v7  ;;  %v5364_v55 = vpop.f32.mrf.mxu2 }
 0x7d2   :  { %v11284_v31 = vld [vmem:[#allocation4 + $0x930] sm:$0xf0] }
 0x7d3   :  { %v14598_v44 = vld [vmem:[#allocation4 + $0xb14] sm:$0xf]  ;;  %v11287_v52 = vor.u32 %v14534_v18, %v11284_v31  ;;  %5604 = vmatpush.bf16.msra.mxu1 %v11831_v45  ;;  %v5340_v45 = vpop.f32.mrf.mxu0 }
 0x7d4   :  { %v11540_v41 = vld [vmem:[#allocation4 + $0xb30] sm:$0xf0] }
 0x7d5   :  { %v14726_v46 = vld [vmem:[#allocation4 + $0xf14] sm:$0xf]  ;;  %v11543_v12 = vor.u32 %v14598_v44, %v11540_v41  ;;  %5579 = vmatpush.bf16.msrb.mxu3 %v11287_v52  ;;  %v5352_v41 = vadd.f32 %v5351_v28, %v5339_v40  ;;  %v5327_v28 = vpop.f32.mrf.mxu3  ;;  %v10586_v40 = vld [vmem:[#allocation4 + $0x398] sm:$0xf] }
 0x7d6   :  { %v12052_v48 = vld [vmem:[#allocation4 + $0xf30] sm:$0xf0] }
 0x7d7   :  { %v14662_v50 = vld [vmem:[#allocation4 + $0xd14] sm:$0xf]  ;;  %v12055_v19 = vor.u32 %v14726_v46, %v12052_v48  ;;  %5592 = vmatpush.bf16.msra.mxu0 %v11543_v12 }
 0x7d8   :  { %v11796_v51 = vld [vmem:[#allocation4 + $0xd30] sm:$0xf0] }
 0x7d9   :  { %v14526_v53 = vld [vmem:[#allocation4 + $0x8d4] sm:$0xf]  ;;  %v11799_v1 = vor.u32 %v14662_v50, %v11796_v51  ;;  %5618 = vmatpush.bf16.msra.mxu2 %v12055_v19  ;;  %v16357_v19 = vadd.f32 %v5364_v55, %v5352_v41 }
 0x7da   :  { %v11252_v54 = vld [vmem:[#allocation4 + $0x8f0] sm:$0xf0] }
 0x7db   :  { %v14590_v59 = vld [vmem:[#allocation4 + $0xad4] sm:$0xf]  ;;  %v11255_v63 = vor.u32 %v14526_v53, %v11252_v54  ;;  %5605 = vmatpush.bf16.msra.mxu1 %v11799_v1  ;;  %v5353_v54 = vpop.f32.mrf.mxu1 }
 0x7dc   :  { %v11508_v61 = vld [vmem:[#allocation4 + $0xaf0] sm:$0xf0] }
 0x7dd   :  { %v14718_v6 = vld [vmem:[#allocation4 + $0xed4] sm:$0xf]  ;;  %v11511_v14 = vor.u32 %v14590_v59, %v11508_v61  ;;  %5580 = vmatpush.bf16.msrb.mxu3 %v11255_v63  ;;  %v14371_v63 = vld [vmem:[#allocation4 + $0x3f4] sm:$0xf0] }
 0x7de   :  { %v12020_v9 = vld [vmem:[#allocation4 + $0xef0] sm:$0xf0] }
 0x7df   :  { %v14654_v33 = vld [vmem:[#allocation4 + $0xcd4] sm:$0xf]  ;;  %v12023_v30 = vor.u32 %v14718_v6, %v12020_v9  ;;  %5593 = vmatpush.bf16.msra.mxu0 %v11511_v14  ;;  %v11130_v14 = vld [vmem:[#allocation4 + $0x7d8] sm:$0xf] }
 0x7e0   :  { %v11764_v26 = vld [vmem:[#allocation4 + $0xcf0] sm:$0xf0] }
 0x7e1   :  { %v14518_v15 = vld [vmem:[#allocation4 + $0x894] sm:$0xf]  ;;  %v11767_v22 = vor.u32 %v14654_v33, %v11764_v26  ;;  %5619 = vmatpush.bf16.msra.mxu2 %v12023_v30  ;;  %v14307_v33 = vld [vmem:[#allocation4 + $0x1f4] sm:$0xf0] }
 0x7e2   :  { %v11220_v38 = vld [vmem:[#allocation4 + $0x8b0] sm:$0xf0]  ;;  %v10618_v26 = vld [vmem:[#allocation4 + $0x3d8] sm:$0xf] }
 0x7e3   :  { %v14582_v23 = vld [vmem:[#allocation4 + $0xa94] sm:$0xf]  ;;  %v11223_v39 = vor.u32 %v14518_v15, %v11220_v38  ;;  %5606 = vmatpush.bf16.msra.mxu1 %v11767_v22  ;;  %v14499_v15 = vld [vmem:[#allocation4 + $0x7f4] sm:$0xf0]  ;;  %v5366_v22 = vpop.f32.mrf.mxu2  ;;  %v10619_v27 = vor.u32 %v14371_v63, %v10618_v26 }
 0x7e4   :  { %v11476_v20 = vld [vmem:[#allocation4 + $0xab0] sm:$0xf0]  ;;  %v14347_v26 = vld [vmem:[#allocation4 + $0x334] sm:$0xf0] }
 0x7e5   :  { %v14710_v8 = vld [vmem:[#allocation4 + $0xe94] sm:$0xf]  ;;  %v11479_v3 = vor.u32 %v14582_v23, %v11476_v20  ;;  %5581 = vmatpush.bf16.msrb.mxu3 %v11223_v39  ;;  %v11131_v39 = vor.u32 %v14499_v15, %v11130_v14  ;;  %v11034_v63 = vld [vmem:[#allocation4 + $0x718] sm:$0xf] }
 0x7e6   :  { %v11988_v11 = vld [vmem:[#allocation4 + $0xeb0] sm:$0xf0]  ;;  %v14475_v14 = vld [vmem:[#allocation4 + $0x734] sm:$0xf0] }
 0x7e7   :  { %v14646_v37 = vld [vmem:[#allocation4 + $0xc94] sm:$0xf]  ;;  %v11991_v42 = vor.u32 %v14710_v8, %v11988_v11  ;;  %5594 = vmatpush.bf16.msra.mxu0 %v11479_v3  ;;  %v10363_v11 = vor.u32 %v14307_v33, %v10362_v13  ;;  %v10330_v3 = vld [vmem:[#allocation4 + $0x198] sm:$0xf] }
 0x7e8   :  { %v11732_v36 = vld [vmem:[#allocation4 + $0xcb0] sm:$0xf0]  ;;  %v14283_v13 = vld [vmem:[#allocation4 + $0x134] sm:$0xf0] }
 0x7e9   :  { %v14510_v5 = vld [vmem:[#allocation4 + $0x854] sm:$0xf]  ;;  %v11735_v7 = vor.u32 %v14646_v37, %v11732_v36  ;;  %5620 = vmatpush.bf16.msra.mxu2 %v11991_v42  ;;  %v10874_v37 = vld [vmem:[#allocation4 + $0x5d8] sm:$0xf] }
 0x7ea   :  { %v11188_v43 = vld [vmem:[#allocation4 + $0x870] sm:$0xf0]  ;;  %v14435_v36 = vld [vmem:[#allocation4 + $0x5f4] sm:$0xf0] }
 0x7eb   :  { %v14574_v17 = vld [vmem:[#allocation4 + $0xa54] sm:$0xf]  ;;  %v11191_v50 = vor.u32 %v14510_v5, %v11188_v43  ;;  %5607 = vmatpush.bf16.msra.mxu1 %v11735_v7  ;;  %v14299_v5 = vld [vmem:[#allocation4 + $0x1b4] sm:$0xf0] }
 0x7ec   :  { %v11444_v18 = vld [vmem:[#allocation4 + $0xa70] sm:$0xf0]  ;;  %v14363_v42 = vld [vmem:[#allocation4 + $0x3b4] sm:$0xf0]  ;;  %v10331_v7 = vor.u32 %v14299_v5, %v10330_v3  ;;  %v5390_v3 = vpop.f32.mrf.mxu0 }
 0x7ed   :  { %v14702_v31 = vld [vmem:[#allocation4 + $0xe54] sm:$0xf]  ;;  %v11447_v51 = vor.u32 %v14574_v17, %v11444_v18  ;;  %5582 = vmatpush.bf16.msrb.mxu3 %v11191_v50  ;;  %v11098_v43 = vld [vmem:[#allocation4 + $0x798] sm:$0xf]  ;;  %v10875_v18 = vor.u32 %v14435_v36, %v10874_v37  ;;  %v10587_v41 = vor.u32 %v14363_v42, %v10586_v40 }
 0x7ee   :  { %v11956_v44 = vld [vmem:[#allocation4 + $0xe70] sm:$0xf0]  ;;  %v14491_v17 = vld [vmem:[#allocation4 + $0x7b4] sm:$0xf0] }
 0x7ef   :  { %v14638_v46 = vld [vmem:[#allocation4 + $0xc54] sm:$0xf]  ;;  %v11959_v59 = vor.u32 %v14702_v31, %v11956_v44  ;;  %5595 = vmatpush.bf16.msra.mxu0 %v11447_v51  ;;  %v10842_v31 = vld [vmem:[#allocation4 + $0x598] sm:$0xf]  ;;  %v11099_v45 = vor.u32 %v14491_v17, %v11098_v43 }
 0x7f0   :  { %v11700_v48 = vld [vmem:[#allocation4 + $0xc70] sm:$0xf0]  ;;  %v14427_v44 = vld [vmem:[#allocation4 + $0x5b4] sm:$0xf0] }
 0x7f1   :  { %v14502_v52 = vld [vmem:[#allocation4 + $0x814] sm:$0xf]  ;;  %v11703_v9 = vor.u32 %v14638_v46, %v11700_v48  ;;  %5621 = vmatpush.bf16.msra.mxu2 %v11959_v59  ;;  %v10298_v46 = vld [vmem:[#allocation4 + $0x158] sm:$0xf] }
 0x7f2   :  { %v11156_v12 = vld [vmem:[#allocation4 + $0x830] sm:$0xf0]  ;;  %v14291_v48 = vld [vmem:[#allocation4 + $0x174] sm:$0xf0] }
 0x7f3   :  { %v14566_v53 = vld [vmem:[#allocation4 + $0xa14] sm:$0xf]  ;;  %v11159_v30 = vor.u32 %v14502_v52, %v11156_v12  ;;  %5608 = vmatpush.bf16.msra.mxu1 %v11703_v9  ;;  %v10554_v50 = vld [vmem:[#allocation4 + $0x358] sm:$0xf]  ;;  %v10299_v54 = vor.u32 %v14291_v48, %v10298_v46  ;;  %v5377_v48 = vpop.f32.mrf.mxu3 }
 0x7f4   :  { %v11412_v61 = vld [vmem:[#allocation4 + $0xa30] sm:$0xf0]  ;;  %v14355_v51 = vld [vmem:[#allocation4 + $0x374] sm:$0xf0] }
 0x7f5   :  { %v14694_v1 = vld [vmem:[#allocation4 + $0xe14] sm:$0xf]  ;;  %v11415_v38 = vor.u32 %v14566_v53, %v11412_v61  ;;  %5583 = vmatpush.bf16.msrb.mxu3 %v11159_v30  ;;  %v11066_v52 = vld [vmem:[#allocation4 + $0x758] sm:$0xf]  ;;  %v10843_v53 = vor.u32 %v14427_v44, %v10842_v31  ;;  %v5403_v31 = vpop.f32.mrf.mxu1 }
 0x7f6   :  { %v11924_v6 = vld [vmem:[#allocation4 + $0xe30] sm:$0xf0]  ;;  %v14483_v12 = vld [vmem:[#allocation4 + $0x774] sm:$0xf0] }
 0x7f7   :  { %v14630_v23 = vld [vmem:[#allocation4 + $0xc14] sm:$0xf]  ;;  %v11927_v8 = vor.u32 %v14694_v1, %v11924_v6  ;;  %5596 = vmatpush.bf16.msra.mxu0 %v11415_v38  ;;  %v10810_v59 = vld [vmem:[#allocation4 + $0x558] sm:$0xf]  ;;  %v10555_v1 = vor.u32 %v14355_v51, %v10554_v50  ;;  %v11067_v6 = vor.u32 %v14483_v12, %v11066_v52  ;;  %v5378_v51 = vadd.f32 %v5377_v48, %v16357_v19 }
 0x7f8   :  { %v11668_v20 = vld [vmem:[#allocation4 + $0xc30] sm:$0xf0]  ;;  %5584 = vmatmul.bf16.vlgmr.msrb.gmra.mxu3 %v16285_v4  ;;  %v14419_v61 = vld [vmem:[#allocation4 + $0x574] sm:$0xf0] }
 0x7f9   :  { %v11671_v55 = vor.u32 %v14630_v23, %v11668_v20  ;;  %5622 = vmatpush.bf16.msra.mxu2 %v11927_v8  ;;  %5628 = vmatpush.bf16.msra.mxu3 %v10363_v11  ;;  %v10266_v9 = vld [vmem:[#allocation4 + $0x118] sm:$0xf]  ;;  %v10811_v15 = vor.u32 %v14419_v61, %v10810_v59  ;;  %v11035_v20 = vor.u32 %v14475_v14, %v11034_v63 }
 0x7fa   :  { %5597 = vmatmul.bf16.vlgmr.msra.gmra.mxu0 %v16295_v21  ;;  %v10522_v33 = vld [vmem:[#allocation4 + $0x318] sm:$0xf]  ;;  %v10267_v28 = vor.u32 %v14283_v13, %v10266_v9  ;;  %v5391_v9 = vadd.f32 %v5390_v3, %v5378_v51 }
 0x7fb   :  { %5641 = vmatpush.bf16.msrb.mxu0 %v10619_v27  ;;  %5609 = vmatpush.bf16.msra.mxu1 %v11671_v55  ;;  %v10778_v30 = vld [vmem:[#allocation4 + $0x518] sm:$0xf]  ;;  %v10523_v23 = vor.u32 %v14347_v26, %v10522_v33 }
 0x7fc   :  { %5623 = vmatmul.bf16.vlgmr.msra.gmra.mxu2 %v16290_v62  ;;  %v14411_v38 = vld [vmem:[#allocation4 + $0x534] sm:$0xf0] }
 0x7fd   :  { %5667 = vmatpush.bf16.msrb.mxu2 %v11131_v39  ;;  %5629 = vmatpush.bf16.msra.mxu3 %v10331_v7  ;;  %v10234_v22 = vld [vmem:[#allocation4 + $0xd8] sm:$0xf]  ;;  %v10779_v39 = vor.u32 %v14411_v38, %v10778_v30 }
 0x7fe   :  { %5610 = vmatmul.bf16.vlgmr.msra.gmra.mxu1 %v16301_v25  ;;  %v14275_v8 = vld [vmem:[#allocation4 + $0xf4] sm:$0xf0] }
 0x7ff   :  { %5654 = vmatpush.bf16.msrb.mxu1 %v10875_v18  ;;  %5642 = vmatpush.bf16.msrb.mxu0 %v10587_v41  ;;  %v10490_v11 = vld [vmem:[#allocation4 + $0x2d8] sm:$0xf]  ;;  %v10235_v5 = vor.u32 %v14275_v8, %v10234_v22 }
 0x800   :  { %v14339_v37 = vld [vmem:[#allocation4 + $0x2f4] sm:$0xf0] }
 0x801   :  { %5668 = vmatpush.bf16.msrb.mxu2 %v11099_v45  ;;  %5630 = vmatpush.bf16.msra.mxu3 %v10299_v54  ;;  %v11002_v36 = vld [vmem:[#allocation4 + $0x6d8] sm:$0xf]  ;;  %v10491_v42 = vor.u32 %v14339_v37, %v10490_v11 }
 0x802   :  { %v14467_v27 = vld [vmem:[#allocation4 + $0x6f4] sm:$0xf0] }
 0x803   :  { %5655 = vmatpush.bf16.msrb.mxu1 %v10843_v53  ;;  %5643 = vmatpush.bf16.msrb.mxu0 %v10555_v1  ;;  %v10746_v40 = vld [vmem:[#allocation4 + $0x4d8] sm:$0xf]  ;;  %v11003_v43 = vor.u32 %v14467_v27, %v11002_v36  ;;  %v5416_v53 = vpop.f32.mrf.mxu2  ;;  %v5405_v36 = vpop.f32.mrf.mxu1 }
 0x804   :  { %v14403_v55 = vld [vmem:[#allocation4 + $0x4f4] sm:$0xf0] }
 0x805   :  { %5669 = vmatpush.bf16.msrb.mxu2 %v11067_v6  ;;  %5631 = vmatpush.bf16.msra.mxu3 %v10267_v28  ;;  %v10202_v17 = vld [vmem:[#allocation4 + $0x98] sm:$0xf]  ;;  %v10747_v46 = vor.u32 %v14403_v55, %v10746_v40  ;;  %v5404_v28 = vadd.f32 %v5403_v31, %v5391_v9 }
 0x806   :  { %v14267_v18 = vld [vmem:[#allocation4 + $0xb4] sm:$0xf0] }
 0x807   :  { %5656 = vmatpush.bf16.msrb.mxu1 %v10811_v15  ;;  %5644 = vmatpush.bf16.msrb.mxu0 %v10523_v23  ;;  %v10458_v7 = vld [vmem:[#allocation4 + $0x298] sm:$0xf]  ;;  %v10203_v50 = vor.u32 %v14267_v18, %v10202_v17  ;;  %v5392_v15 = vpop.f32.mrf.mxu0  ;;  %v16364_v27 = vadd.f32 %v5416_v53, %v5404_v28  ;;  %v5379_v17 = vpop.f32.mrf.mxu3 }
 0x808   :  { %v14331_v44 = vld [vmem:[#allocation4 + $0x2b4] sm:$0xf0] }
 0x809   :  { %5670 = vmatpush.bf16.msrb.mxu2 %v11035_v20  ;;  %v10970_v41 = vld [vmem:[#allocation4 + $0x698] sm:$0xf]  ;;  %5632 = vmatpush.bf16.msra.mxu3 %v10235_v5  ;;  %v10459_v54 = vor.u32 %v14331_v44, %v10458_v7 }
 0x80a   :  { %v14459_v45 = vld [vmem:[#allocation4 + $0x6b4] sm:$0xf0] }
 0x80b   :  { %5657 = vmatpush.bf16.msrb.mxu1 %v10779_v39  ;;  %v10714_v52 = vld [vmem:[#allocation4 + $0x498] sm:$0xf]  ;;  %5645 = vmatpush.bf16.msrb.mxu0 %v10491_v42  ;;  %v10971_v59 = vor.u32 %v14459_v45, %v10970_v41  ;;  %v5418_v41 = vpop.f32.mrf.mxu2 }
 0x80c   :  { %v14395_v12 = vld [vmem:[#allocation4 + $0x4b4] sm:$0xf0] }
 0x80d   :  { %5671 = vmatpush.bf16.msrb.mxu2 %v11003_v43  ;;  %v10170_v61 = vld [vmem:[#allocation4 + $0x58] sm:$0xf]  ;;  %v10715_v63 = vor.u32 %v14395_v12, %v10714_v52  ;;  %5633 = vmatpush.bf16.msra.mxu3 %v10203_v50 }
 0x80e   :  { %v14259_v1 = vld [vmem:[#allocation4 + $0x74] sm:$0xf0] }
 0x80f   :  { %v10426_v6 = vld [vmem:[#allocation4 + $0x258] sm:$0xf]  ;;  %5658 = vmatpush.bf16.msrb.mxu1 %v10747_v46  ;;  %v10171_v19 = vor.u32 %v14259_v1, %v10170_v61  ;;  %5646 = vmatpush.bf16.msrb.mxu0 %v10459_v54 }
 0x810   :  { %v14323_v13 = vld [vmem:[#allocation4 + $0x274] sm:$0xf0] }
 0x811   :  { %v10938_v33 = vld [vmem:[#allocation4 + $0x658] sm:$0xf]  ;;  %5672 = vmatpush.bf16.msrb.mxu2 %v10971_v59  ;;  %v10427_v20 = vor.u32 %v14323_v13, %v10426_v6  ;;  %5634 = vmatpush.bf16.msra.mxu3 %v10171_v19 }
 0x812   :  { %v14451_v26 = vld [vmem:[#allocation4 + $0x674] sm:$0xf0] }
 0x813   :  { %v10682_v14 = vld [vmem:[#allocation4 + $0x458] sm:$0xf]  ;;  %v10939_v22 = vor.u32 %v14451_v26, %v10938_v33  ;;  %5659 = vmatpush.bf16.msrb.mxu1 %v10715_v63  ;;  %5647 = vmatpush.bf16.msrb.mxu0 %v10427_v20 }
 0x814   :  { %v14387_v30 = vld [vmem:[#allocation4 + $0x474] sm:$0xf0] }
 0x815   :  { %v10138_v38 = vld [vmem:[#allocation4 + $0x18] sm:$0xf]  ;;  %v10683_v40 = vor.u32 %v14387_v30, %v10682_v14  ;;  %5673 = vmatpush.bf16.msrb.mxu2 %v10939_v22 }
 0x816   :  { %v14251_v23 = vld [vmem:[#allocation4 + $0x34] sm:$0xf0] }
 0x817   :  { %v10394_v8 = vld [vmem:[#allocation4 + $0x218] sm:$0xf]  ;;  %v10139_v18 = vor.u32 %v14251_v23, %v10138_v38  ;;  %5660 = vmatpush.bf16.msrb.mxu1 %v10683_v40 }
 0x818   :  { %v14315_v11 = vld [vmem:[#allocation4 + $0x234] sm:$0xf0] }
 0x819   :  { %v10906_v37 = vld [vmem:[#allocation4 + $0x618] sm:$0xf]  ;;  %v10395_v45 = vor.u32 %v14315_v11, %v10394_v8  ;;  %5635 = vmatpush.bf16.msra.mxu3 %v10139_v18 }
 0x81a   :  { %v14443_v39 = vld [vmem:[#allocation4 + $0x634] sm:$0xf0] }
 0x81b   :  { %v11386_v3 = vld [vmem:[#allocation4 + $0x9d8] sm:$0xf]  ;;  %v10907_v46 = vor.u32 %v14443_v39, %v10906_v37  ;;  %5648 = vmatpush.bf16.msrb.mxu0 %v10395_v45 }
 0x81c   :  { %v14563_v5 = vld [vmem:[#allocation4 + $0x9f4] sm:$0xf0]  ;;  %5636 = vmatmul.bf16.vlgmr.msra.gmra.mxu3 %v16261_v49 }
 0x81d   :  { %v11642_v55 = vld [vmem:[#allocation4 + $0xbd8] sm:$0xf]  ;;  %v11387_v51 = vor.u32 %v14563_v5, %v11386_v3  ;;  %5674 = vmatpush.bf16.msrb.mxu2 %v10907_v46 }
 0x81e   :  { %v14627_v42 = vld [vmem:[#allocation4 + $0xbf4] sm:$0xf0]  ;;  %5649 = vmatmul.bf16.vlgmr.msrb.gmra.mxu0 %v16271_v32 }
 0x81f   :  { %v12154_v43 = vld [vmem:[#allocation4 + $0xfd8] sm:$0xf]  ;;  %v11643_v52 = vor.u32 %v14627_v42, %v11642_v55  ;;  %5680 = vmatpush.bf16.msrb.mxu3 %v11387_v51 }
 0x820   :  { %v14755_v7 = vld [vmem:[#allocation4 + $0xff4] sm:$0xf0]  ;;  %5675 = vmatmul.bf16.vlgmr.msrb.gmra.mxu2 %v16266_v16 }
 0x821   :  { %v10650_v31 = vld [vmem:[#allocation4 + $0x418] sm:$0xf]  ;;  %v12155_v53 = vor.u32 %v14755_v7, %v12154_v43  ;;  %5693 = vmatpush.bf16.msra.mxu0 %v11643_v52 }
 0x822   :  { %v14379_v44 = vld [vmem:[#allocation4 + $0x434] sm:$0xf0] }
 0x823   :  { %v11898_v48 = vld [vmem:[#allocation4 + $0xdd8] sm:$0xf]  ;;  %v10651_v54 = vor.u32 %v14379_v44, %v10650_v31  ;;  %5719 = vmatpush.bf16.msra.mxu2 %v12155_v53  ;;  %v5442_v53 = vpop.f32.mrf.mxu0 }
 0x824   :  { %v14691_v50 = vld [vmem:[#allocation4 + $0xdf4] sm:$0xf0] }
 0x825   :  { %v11354_v12 = vld [vmem:[#allocation4 + $0x998] sm:$0xf]  ;;  %v11899_v6 = vor.u32 %v14691_v50, %v11898_v48  ;;  %5661 = vmatpush.bf16.msrb.mxu1 %v10651_v54 }
 0x826   :  { %v14555_v59 = vld [vmem:[#allocation4 + $0x9b4] sm:$0xf0] }
 0x827   :  { %v11610_v61 = vld [vmem:[#allocation4 + $0xb98] sm:$0xf]  ;;  %v11355_v63 = vor.u32 %v14555_v59, %v11354_v12 }
 0x828   :  { %v14619_v1 = vld [vmem:[#allocation4 + $0xbb4] sm:$0xf0]  ;;  %5662 = vmatmul.bf16.vlgmr.msrb.gmra.mxu1 %v16276_v10 }
 0x829   :  { %v12122_v9 = vld [vmem:[#allocation4 + $0xf98] sm:$0xf]  ;;  %v11611_v14 = vor.u32 %v14619_v1, %v11610_v61  ;;  %5706 = vmatpush.bf16.msra.mxu1 %v11899_v6  ;;  %5681 = vmatpush.bf16.msrb.mxu3 %v11355_v63 }
 0x82a   :  { %v14747_v13 = vld [vmem:[#allocation4 + $0xfb4] sm:$0xf0] }
 0x82b   :  { %v11866_v33 = vld [vmem:[#allocation4 + $0xd98] sm:$0xf]  ;;  %v12123_v19 = vor.u32 %v14747_v13, %v12122_v9  ;;  %5694 = vmatpush.bf16.msra.mxu0 %v11611_v14  ;;  %v5455_v9 = vpop.f32.mrf.mxu1 }
 0x82c   :  { %v14683_v26 = vld [vmem:[#allocation4 + $0xdb4] sm:$0xf0] }
 0x82d   :  { %v11322_v15 = vld [vmem:[#allocation4 + $0x958] sm:$0xf]  ;;  %v11867_v23 = vor.u32 %v14683_v26, %v11866_v33  ;;  %5720 = vmatpush.bf16.msra.mxu2 %v12123_v19 }
 0x82e   :  { %v14547_v28 = vld [vmem:[#allocation4 + $0x974] sm:$0xf0] }
 0x82f   :  { %v11578_v30 = vld [vmem:[#allocation4 + $0xb58] sm:$0xf]  ;;  %v11323_v37 = vor.u32 %v14547_v28, %v11322_v15  ;;  %5707 = vmatpush.bf16.msra.mxu1 %v11867_v23 }
 0x830   :  { %v14611_v38 = vld [vmem:[#allocation4 + $0xb74] sm:$0xf0] }
 0x831   :  { %v12090_v20 = vld [vmem:[#allocation4 + $0xf58] sm:$0xf]  ;;  %v11579_v36 = vor.u32 %v14611_v38, %v11578_v30  ;;  %5682 = vmatpush.bf16.msrb.mxu3 %v11323_v37  ;;  %v5429_v38 = vpop.f32.mrf.mxu3 }
 0x832   :  { %v14739_v22 = vld [vmem:[#allocation4 + $0xf74] sm:$0xf0] }
 0x833   :  { %v11834_v8 = vld [vmem:[#allocation4 + $0xd58] sm:$0xf]  ;;  %v12091_v3 = vor.u32 %v14739_v22, %v12090_v20  ;;  %5695 = vmatpush.bf16.msra.mxu0 %v11579_v36 }
 0x834   :  { %v14675_v11 = vld [vmem:[#allocation4 + $0xd74] sm:$0xf0] }
 0x835   :  { %v11290_v39 = vld [vmem:[#allocation4 + $0x918] sm:$0xf]  ;;  %v11835_v42 = vor.u32 %v14675_v11, %v11834_v8  ;;  %5721 = vmatpush.bf16.msra.mxu2 %v12091_v3  ;;  %v5443_v8 = vadd.f32 %v5442_v53, %v5429_v38  ;;  %v5468_v11 = vpop.f32.mrf.mxu2  ;;  %v10876_v38 = vld [vmem:[#allocation4 + $0x5f8] sm:$0xf0] }
 0x836   :  { %v14539_v5 = vld [vmem:[#allocation4 + $0x934] sm:$0xf0] }
 0x837   :  { %v11546_v40 = vld [vmem:[#allocation4 + $0xb18] sm:$0xf]  ;;  %v11291_v31 = vor.u32 %v14539_v5, %v11290_v39  ;;  %5708 = vmatpush.bf16.msra.mxu1 %v11835_v42  ;;  %v5456_v42 = vadd.f32 %v5455_v9, %v5443_v8  ;;  %v11132_v9 = vld [vmem:[#allocation4 + $0x7f8] sm:$0xf0] }
 0x838   :  { %v14603_v55 = vld [vmem:[#allocation4 + $0xb34] sm:$0xf0]  ;;  %v10332_v8 = vld [vmem:[#allocation4 + $0x1b8] sm:$0xf0] }
 0x839   :  { %v12058_v43 = vld [vmem:[#allocation4 + $0xf18] sm:$0xf]  ;;  %v11547_v44 = vor.u32 %v14603_v55, %v11546_v40  ;;  %5683 = vmatpush.bf16.msrb.mxu3 %v11291_v31 }
 0x83a   :  { %v14731_v17 = vld [vmem:[#allocation4 + $0xf34] sm:$0xf0] }
 0x83b   :  { %v11802_v18 = vld [vmem:[#allocation4 + $0xd18] sm:$0xf]  ;;  %v12059_v45 = vor.u32 %v14731_v17, %v12058_v43  ;;  %5696 = vmatpush.bf16.msra.mxu0 %v11547_v44  ;;  %v5444_v43 = vpop.f32.mrf.mxu0 }
 0x83c   :  { %v14667_v7 = vld [vmem:[#allocation4 + $0xd34] sm:$0xf0] }
 0x83d   :  { %v11258_v41 = vld [vmem:[#allocation4 + $0x8d8] sm:$0xf]  ;;  %v11803_v51 = vor.u32 %v14667_v7, %v11802_v18  ;;  %5722 = vmatpush.bf16.msra.mxu2 %v12059_v45 }
 0x83e   :  { %v14531_v46 = vld [vmem:[#allocation4 + $0x8f4] sm:$0xf0] }
 0x83f   :  { %v11514_v48 = vld [vmem:[#allocation4 + $0xad8] sm:$0xf]  ;;  %v11259_v61 = vor.u32 %v14531_v46, %v11258_v41  ;;  %5709 = vmatpush.bf16.msra.mxu1 %v11803_v51  ;;  %v16370_v46 = vadd.f32 %v5468_v11, %v5456_v42  ;;  %v14359_v11 = vld [vmem:[#allocation4 + $0x39c] sm:$0xf] }
 0x840   :  { %v14595_v50 = vld [vmem:[#allocation4 + $0xaf4] sm:$0xf0]  ;;  %v10844_v42 = vld [vmem:[#allocation4 + $0x5b8] sm:$0xf0] }
 0x841   :  { %v12026_v52 = vld [vmem:[#allocation4 + $0xed8] sm:$0xf]  ;;  %v11515_v1 = vor.u32 %v14595_v50, %v11514_v48  ;;  %5684 = vmatpush.bf16.msrb.mxu3 %v11259_v61  ;;  %v5457_v48 = vpop.f32.mrf.mxu1  ;;  %v14367_v61 = vld [vmem:[#allocation4 + $0x3dc] sm:$0xf] }
 0x842   :  { %v14723_v12 = vld [vmem:[#allocation4 + $0xef4] sm:$0xf0] }
 0x843   :  { %v11770_v54 = vld [vmem:[#allocation4 + $0xcd8] sm:$0xf]  ;;  %v12027_v13 = vor.u32 %v14723_v12, %v12026_v52  ;;  %5697 = vmatpush.bf16.msra.mxu0 %v11515_v1  ;;  %v10620_v1 = vld [vmem:[#allocation4 + $0x3f8] sm:$0xf0] }
 0x844   :  { %v14659_v59 = vld [vmem:[#allocation4 + $0xcf4] sm:$0xf0] }
 0x845   :  { %v11226_v6 = vld [vmem:[#allocation4 + $0x898] sm:$0xf]  ;;  %v11771_v14 = vor.u32 %v14659_v59, %v11770_v54  ;;  %5723 = vmatpush.bf16.msra.mxu2 %v12027_v13  ;;  %v14303_v54 = vld [vmem:[#allocation4 + $0x1dc] sm:$0xf]  ;;  %v5431_v13 = vpop.f32.mrf.mxu3 }
 0x846   :  { %v14523_v33 = vld [vmem:[#allocation4 + $0x8b4] sm:$0xf0]  ;;  %v10364_v59 = vld [vmem:[#allocation4 + $0x1f8] sm:$0xf0] }
 0x847   :  { %v11482_v26 = vld [vmem:[#allocation4 + $0xa98] sm:$0xf]  ;;  %v11227_v23 = vor.u32 %v14523_v33, %v11226_v6  ;;  %5710 = vmatpush.bf16.msra.mxu1 %v11771_v14  ;;  %v14495_v6 = vld [vmem:[#allocation4 + $0x7dc] sm:$0xf] }
 0x848   :  { %v14587_v63 = vld [vmem:[#allocation4 + $0xab4] sm:$0xf0] }
 0x849   :  { %v11994_v15 = vld [vmem:[#allocation4 + $0xe98] sm:$0xf]  ;;  %v11483_v20 = vor.u32 %v14587_v63, %v11482_v26  ;;  %5685 = vmatpush.bf16.msrb.mxu3 %v11227_v23  ;;  %v10623_v23 = vor.u32 %v14367_v61, %v10620_v1  ;;  %v14343_v61 = vld [vmem:[#allocation4 + $0x31c] sm:$0xf] }
 0x84a   :  { %v14715_v19 = vld [vmem:[#allocation4 + $0xeb4] sm:$0xf0]  ;;  %v10524_v1 = vld [vmem:[#allocation4 + $0x338] sm:$0xf0] }
 0x84b   :  { %v11738_v28 = vld [vmem:[#allocation4 + $0xc98] sm:$0xf]  ;;  %v11995_v37 = vor.u32 %v14715_v19, %v11994_v15  ;;  %5698 = vmatpush.bf16.msra.mxu0 %v11483_v20  ;;  %v5470_v15 = vpop.f32.mrf.mxu2  ;;  %v11135_v20 = vor.u32 %v14495_v6, %v11132_v9  ;;  %v14471_v6 = vld [vmem:[#allocation4 + $0x71c] sm:$0xf] }
 0x84c   :  { %v14651_v30 = vld [vmem:[#allocation4 + $0xcb4] sm:$0xf0]  ;;  %v11036_v9 = vld [vmem:[#allocation4 + $0x738] sm:$0xf0] }
 0x84d   :  { %v11194_v22 = vld [vmem:[#allocation4 + $0x858] sm:$0xf]  ;;  %v11739_v5 = vor.u32 %v14651_v30, %v11738_v28  ;;  %5724 = vmatpush.bf16.msra.mxu2 %v11995_v37  ;;  %v10367_v28 = vor.u32 %v14303_v54, %v10364_v59  ;;  %v14431_v30 = vld [vmem:[#allocation4 + $0x5dc] sm:$0xf]  ;;  %v11039_v15 = vor.u32 %v14471_v6, %v11036_v9 }
 0x84e   :  { %v14515_v36 = vld [vmem:[#allocation4 + $0x874] sm:$0xf0]  ;;  %v14279_v54 = vld [vmem:[#allocation4 + $0x11c] sm:$0xf] }
 0x84f   :  { %v11450_v39 = vld [vmem:[#allocation4 + $0xa58] sm:$0xf]  ;;  %v11195_v7 = vor.u32 %v14515_v36, %v11194_v22  ;;  %5711 = vmatpush.bf16.msra.mxu1 %v11739_v5  ;;  %v14295_v22 = vld [vmem:[#allocation4 + $0x19c] sm:$0xf]  ;;  %v10879_v5 = vor.u32 %v14431_v30, %v10876_v38 }
 0x850   :  { %v14579_v3 = vld [vmem:[#allocation4 + $0xa74] sm:$0xf0]  ;;  %v10588_v36 = vld [vmem:[#allocation4 + $0x3b8] sm:$0xf0] }
 0x851   :  { %v11962_v40 = vld [vmem:[#allocation4 + $0xe58] sm:$0xf]  ;;  %v11451_v31 = vor.u32 %v14579_v3, %v11450_v39  ;;  %5686 = vmatpush.bf16.msrb.mxu3 %v11195_v7  ;;  %v14487_v39 = vld [vmem:[#allocation4 + $0x79c] sm:$0xf]  ;;  %v10591_v43 = vor.u32 %v14359_v11, %v10588_v36 }
 0x852   :  { %v14707_v55 = vld [vmem:[#allocation4 + $0xe74] sm:$0xf0]  ;;  %v11100_v3 = vld [vmem:[#allocation4 + $0x7b8] sm:$0xf0] }
 0x853   :  { %v11706_v17 = vld [vmem:[#allocation4 + $0xc58] sm:$0xf]  ;;  %v11963_v50 = vor.u32 %v14707_v55, %v11962_v40  ;;  %5699 = vmatpush.bf16.msra.mxu0 %v11451_v31  ;;  %v10335_v40 = vor.u32 %v14295_v22, %v10332_v8  ;;  %v14423_v55 = vld [vmem:[#allocation4 + $0x59c] sm:$0xf]  ;;  %v5494_v8 = vpop.f32.mrf.mxu0 }
 0x854   :  { %v14643_v18 = vld [vmem:[#allocation4 + $0xc74] sm:$0xf0]  ;;  %v10300_v7 = vld [vmem:[#allocation4 + $0x178] sm:$0xf0]  ;;  %v10847_v48 = vor.u32 %v14423_v55, %v10844_v42  ;;  %v5507_v42 = vpop.f32.mrf.mxu1 }
 0x855   :  { %v11162_v44 = vld [vmem:[#allocation4 + $0x818] sm:$0xf]  ;;  %v11707_v53 = vor.u32 %v14643_v18, %v11706_v17  ;;  %5725 = vmatpush.bf16.msra.mxu2 %v11963_v50  ;;  %v11103_v17 = vor.u32 %v14487_v39, %v11100_v3  ;;  %v14287_v18 = vld [vmem:[#allocation4 + $0x15c] sm:$0xf] }
 0x856   :  { %v14507_v41 = vld [vmem:[#allocation4 + $0x834] sm:$0xf0]  ;;  %v14351_v31 = vld [vmem:[#allocation4 + $0x35c] sm:$0xf]  ;;  %v10303_v50 = vor.u32 %v14287_v18, %v10300_v7 }
 0x857   :  { %v11418_v45 = vld [vmem:[#allocation4 + $0xa18] sm:$0xf]  ;;  %v11163_v33 = vor.u32 %v14507_v41, %v11162_v44  ;;  %5712 = vmatpush.bf16.msra.mxu1 %v11707_v53  ;;  %v10556_v44 = vld [vmem:[#allocation4 + $0x378] sm:$0xf0] }
 0x858   :  { %v14571_v51 = vld [vmem:[#allocation4 + $0xa34] sm:$0xf0]  ;;  %v14479_v41 = vld [vmem:[#allocation4 + $0x75c] sm:$0xf] }
 0x859   :  { %v11930_v52 = vld [vmem:[#allocation4 + $0xe18] sm:$0xf]  ;;  %v11419_v26 = vor.u32 %v14571_v51, %v11418_v45  ;;  %5687 = vmatpush.bf16.msrb.mxu3 %v11163_v33  ;;  %v11068_v45 = vld [vmem:[#allocation4 + $0x778] sm:$0xf0] }
 0x85a   :  { %v14699_v12 = vld [vmem:[#allocation4 + $0xe34] sm:$0xf0]  ;;  %v14415_v51 = vld [vmem:[#allocation4 + $0x55c] sm:$0xf]  ;;  %v11071_v53 = vor.u32 %v14479_v41, %v11068_v45 }
 0x85b   :  { %v11674_v63 = vld [vmem:[#allocation4 + $0xc18] sm:$0xf]  ;;  %v11931_v19 = vor.u32 %v14699_v12, %v11930_v52  ;;  %5700 = vmatpush.bf16.msra.mxu0 %v11419_v26  ;;  %v10812_v52 = vld [vmem:[#allocation4 + $0x578] sm:$0xf0]  ;;  %v10559_v12 = vor.u32 %v14351_v31, %v10556_v44  ;;  %v5481_v31 = vpop.f32.mrf.mxu3 }
 0x85c   :  { %v14635_v14 = vld [vmem:[#allocation4 + $0xc34] sm:$0xf0]  ;;  %5688 = vmatmul.bf16.vlgmr.msrb.gmra.mxu3 %v16285_v4  ;;  %v10268_v59 = vld [vmem:[#allocation4 + $0x138] sm:$0xf0]  ;;  %v10815_v13 = vor.u32 %v14415_v51, %v10812_v52  ;;  %v5482_v41 = vadd.f32 %v5481_v31, %v16370_v46 }
 0x85d   :  { %v11675_v37 = vor.u32 %v14635_v14, %v11674_v63  ;;  %5726 = vmatpush.bf16.msra.mxu2 %v11931_v19  ;;  %5732 = vmatpush.bf16.msra.mxu3 %v10367_v28  ;;  %v10271_v33 = vor.u32 %v14279_v54, %v10268_v59  ;;  %v14407_v26 = vld [vmem:[#allocation4 + $0x51c] sm:$0xf]  ;;  %v10527_v14 = vor.u32 %v14343_v61, %v10524_v1 }
 0x85e   :  { %5701 = vmatmul.bf16.vlgmr.msra.gmra.mxu0 %v16295_v21  ;;  %v10780_v63 = vld [vmem:[#allocation4 + $0x538] sm:$0xf0]  ;;  %v5495_v59 = vadd.f32 %v5494_v8, %v5482_v41 }
 0x85f   :  { %5745 = vmatpush.bf16.msrb.mxu0 %v10623_v23  ;;  %5713 = vmatpush.bf16.msra.mxu1 %v11675_v37  ;;  %v14271_v19 = vld [vmem:[#allocation4 + $0xdc] sm:$0xf]  ;;  %v10783_v22 = vor.u32 %v14407_v26, %v10780_v63 }
 0x860   :  { %5727 = vmatmul.bf16.vlgmr.msra.gmra.mxu2 %v16290_v62  ;;  %v10236_v28 = vld [vmem:[#allocation4 + $0xf8] sm:$0xf0]  ;;  %v5508_v26 = vadd.f32 %v5507_v42, %v5495_v59 }
 0x861   :  { %5771 = vmatpush.bf16.msrb.mxu2 %v11135_v20  ;;  %5733 = vmatpush.bf16.msra.mxu3 %v10335_v40  ;;  %v14335_v30 = vld [vmem:[#allocation4 + $0x2dc] sm:$0xf]  ;;  %v10239_v11 = vor.u32 %v14271_v19, %v10236_v28 }
 0x862   :  { %5714 = vmatmul.bf16.vlgmr.msra.gmra.mxu1 %v16301_v25  ;;  %v10492_v38 = vld [vmem:[#allocation4 + $0x2f8] sm:$0xf0] }
 0x863   :  { %5758 = vmatpush.bf16.msrb.mxu1 %v10879_v5  ;;  %5746 = vmatpush.bf16.msrb.mxu0 %v10591_v43  ;;  %v14463_v23 = vld [vmem:[#allocation4 + $0x6dc] sm:$0xf]  ;;  %v10495_v39 = vor.u32 %v14335_v30, %v10492_v38 }
 0x864   :  { %v11004_v20 = vld [vmem:[#allocation4 + $0x6f8] sm:$0xf0] }
 0x865   :  { %5772 = vmatpush.bf16.msrb.mxu2 %v11103_v17  ;;  %5734 = vmatpush.bf16.msra.mxu3 %v10303_v50  ;;  %v14399_v37 = vld [vmem:[#allocation4 + $0x4dc] sm:$0xf]  ;;  %v11007_v3 = vor.u32 %v14463_v23, %v11004_v20  ;;  %v5520_v50 = vpop.f32.mrf.mxu2  ;;  %v5509_v20 = vpop.f32.mrf.mxu1 }
 0x866   :  { %v10748_v36 = vld [vmem:[#allocation4 + $0x4f8] sm:$0xf0] }
 0x867   :  { %5759 = vmatpush.bf16.msrb.mxu1 %v10847_v48  ;;  %5747 = vmatpush.bf16.msrb.mxu0 %v10559_v12  ;;  %v14263_v5 = vld [vmem:[#allocation4 + $0x9c] sm:$0xf]  ;;  %v10751_v7 = vor.u32 %v14399_v37, %v10748_v36 }
 0x868   :  { %v10204_v40 = vld [vmem:[#allocation4 + $0xb8] sm:$0xf0] }
 0x869   :  { %5773 = vmatpush.bf16.msrb.mxu2 %v11071_v53  ;;  %5735 = vmatpush.bf16.msra.mxu3 %v10271_v33  ;;  %v14327_v55 = vld [vmem:[#allocation4 + $0x29c] sm:$0xf]  ;;  %v10207_v44 = vor.u32 %v14263_v5, %v10204_v40  ;;  %v5496_v33 = vpop.f32.mrf.mxu0  ;;  %v5483_v40 = vpop.f32.mrf.mxu3 }
 0x86a   :  { %v10460_v43 = vld [vmem:[#allocation4 + $0x2b8] sm:$0xf0] }
 0x86b   :  { %5760 = vmatpush.bf16.msrb.mxu1 %v10815_v13  ;;  %5748 = vmatpush.bf16.msrb.mxu0 %v10527_v14  ;;  %v14455_v17 = vld [vmem:[#allocation4 + $0x69c] sm:$0xf]  ;;  %v10463_v51 = vor.u32 %v14327_v55, %v10460_v43 }
 0x86c   :  { %v10972_v18 = vld [vmem:[#allocation4 + $0x6b8] sm:$0xf0] }
 0x86d   :  { %5774 = vmatpush.bf16.msrb.mxu2 %v11039_v15  ;;  %5736 = vmatpush.bf16.msra.mxu3 %v10239_v11  ;;  %v14391_v45 = vld [vmem:[#allocation4 + $0x49c] sm:$0xf]  ;;  %v10975_v52 = vor.u32 %v14455_v17, %v10972_v18  ;;  %v5522_v18 = vpop.f32.mrf.mxu2 }
 0x86e   :  { %v10716_v48 = vld [vmem:[#allocation4 + $0x4b8] sm:$0xf0] }
 0x86f   :  { %5761 = vmatpush.bf16.msrb.mxu1 %v10783_v22  ;;  %5749 = vmatpush.bf16.msrb.mxu0 %v10495_v39  ;;  %v14255_v12 = vld [vmem:[#allocation4 + $0x5c] sm:$0xf]  ;;  %v10719_v9 = vor.u32 %v14391_v45, %v10716_v48  ;;  %v16377_v22 = vadd.f32 %v5520_v50, %v5508_v26 }
 0x870   :  { %v10172_v53 = vld [vmem:[#allocation4 + $0x78] sm:$0xf0] }
 0x871   :  { %5775 = vmatpush.bf16.msrb.mxu2 %v11007_v3  ;;  %v14319_v54 = vld [vmem:[#allocation4 + $0x25c] sm:$0xf]  ;;  %5737 = vmatpush.bf16.msra.mxu3 %v10207_v44  ;;  %v10175_v46 = vor.u32 %v14255_v12, %v10172_v53 }
 0x872   :  { %v10428_v61 = vld [vmem:[#allocation4 + $0x278] sm:$0xf0] }
 0x873   :  { %v14447_v1 = vld [vmem:[#allocation4 + $0x65c] sm:$0xf]  ;;  %5762 = vmatpush.bf16.msrb.mxu1 %v10751_v7  ;;  %5750 = vmatpush.bf16.msrb.mxu0 %v10463_v51  ;;  %v10431_v19 = vor.u32 %v14319_v54, %v10428_v61 }
 0x874   :  { %v10940_v6 = vld [vmem:[#allocation4 + $0x678] sm:$0xf0] }
 0x875   :  { %v14383_v13 = vld [vmem:[#allocation4 + $0x45c] sm:$0xf]  ;;  %5776 = vmatpush.bf16.msrb.mxu2 %v10975_v52  ;;  %v10943_v28 = vor.u32 %v14447_v1, %v10940_v6  ;;  %5738 = vmatpush.bf16.msra.mxu3 %v10175_v46 }
 0x876   :  { %v10684_v63 = vld [vmem:[#allocation4 + $0x478] sm:$0xf0] }
 0x877   :  { %v14247_v14 = vld [vmem:[#allocation4 + $0x1c] sm:$0xf]  ;;  %5763 = vmatpush.bf16.msrb.mxu1 %v10719_v9  ;;  %v10687_v36 = vor.u32 %v14383_v13, %v10684_v63  ;;  %5751 = vmatpush.bf16.msrb.mxu0 %v10431_v19 }
 0x878   :  { %v10140_v15 = vld [vmem:[#allocation4 + $0x38] sm:$0xf0] }
 0x879   :  { %v14311_v30 = vld [vmem:[#allocation4 + $0x21c] sm:$0xf]  ;;  %v10143_v55 = vor.u32 %v14247_v14, %v10140_v15  ;;  %5777 = vmatpush.bf16.msrb.mxu2 %v10943_v28 }
 0x87a   :  { %v10396_v38 = vld [vmem:[#allocation4 + $0x238] sm:$0xf0] }
 0x87b   :  { %v14439_v23 = vld [vmem:[#allocation4 + $0x61c] sm:$0xf]  ;;  %v10399_v7 = vor.u32 %v14311_v30, %v10396_v38  ;;  %5764 = vmatpush.bf16.msrb.mxu1 %v10687_v36  ;;  %5739 = vmatpush.bf16.msra.mxu3 %v10143_v55 }
 0x87c   :  { %v10908_v8 = vld [vmem:[#allocation4 + $0x638] sm:$0xf0] }
 0x87d   :  { %v14559_v11 = vld [vmem:[#allocation4 + $0x9dc] sm:$0xf]  ;;  %v10911_v31 = vor.u32 %v14439_v23, %v10908_v8  ;;  %5752 = vmatpush.bf16.msrb.mxu0 %v10399_v7 }
 0x87e   :  { %v11388_v37 = vld [vmem:[#allocation4 + $0x9f8] sm:$0xf0]  ;;  %5740 = vmatmul.bf16.vlgmr.msra.gmra.mxu3 %v16261_v49 }
 0x87f   :  { %v14623_v39 = vld [vmem:[#allocation4 + $0xbdc] sm:$0xf]  ;;  %v11391_v45 = vor.u32 %v14559_v11, %v11388_v37  ;;  %5778 = vmatpush.bf16.msrb.mxu2 %v10911_v31 }
 0x880   :  { %v11644_v3 = vld [vmem:[#allocation4 + $0xbf8] sm:$0xf0]  ;;  %5753 = vmatmul.bf16.vlgmr.msrb.gmra.mxu0 %v16271_v32 }
 0x881   :  { %v14751_v5 = vld [vmem:[#allocation4 + $0xfdc] sm:$0xf]  ;;  %v11647_v48 = vor.u32 %v14623_v39, %v11644_v3  ;;  %5784 = vmatpush.bf16.msrb.mxu3 %v11391_v45  ;;  %v5546_v45 = vpop.f32.mrf.mxu0 }
 0x882   :  { %v12156_v42 = vld [vmem:[#allocation4 + $0xff8] sm:$0xf0]  ;;  %5779 = vmatmul.bf16.vlgmr.msrb.gmra.mxu2 %v16266_v16 }
 0x883   :  { %v14375_v43 = vld [vmem:[#allocation4 + $0x41c] sm:$0xf]  ;;  %v12159_v51 = vor.u32 %v14751_v5, %v12156_v42  ;;  %5797 = vmatpush.bf16.msra.mxu0 %v11647_v48 }
 0x884   :  { %v10652_v17 = vld [vmem:[#allocation4 + $0x438] sm:$0xf0] }
 0x885   :  { %v14687_v44 = vld [vmem:[#allocation4 + $0xddc] sm:$0xf]  ;;  %v10655_v52 = vor.u32 %v14375_v43, %v10652_v17  ;;  %5823 = vmatpush.bf16.msra.mxu2 %v12159_v51 }
 0x886   :  { %v11900_v41 = vld [vmem:[#allocation4 + $0xdf8] sm:$0xf0] }
 0x887   :  { %v14551_v50 = vld [vmem:[#allocation4 + $0x99c] sm:$0xf]  ;;  %v11903_v59 = vor.u32 %v14687_v44, %v11900_v41  ;;  %5765 = vmatpush.bf16.msrb.mxu1 %v10655_v52 }
 0x888   :  { %v11356_v12 = vld [vmem:[#allocation4 + $0x9b8] sm:$0xf0] }
 0x889   :  { %v14615_v53 = vld [vmem:[#allocation4 + $0xb9c] sm:$0xf]  ;;  %v11359_v13 = vor.u32 %v14551_v50, %v11356_v12 }
 0x88a   :  { %v11612_v54 = vld [vmem:[#allocation4 + $0xbb8] sm:$0xf0]  ;;  %5766 = vmatmul.bf16.vlgmr.msrb.gmra.mxu1 %v16276_v10 }
 0x88b   :  { %v14743_v61 = vld [vmem:[#allocation4 + $0xf9c] sm:$0xf]  ;;  %v11615_v33 = vor.u32 %v14615_v53, %v11612_v54  ;;  %5810 = vmatpush.bf16.msra.mxu1 %v11903_v59  ;;  %5785 = vmatpush.bf16.msrb.mxu3 %v11359_v13  ;;  %v5559_v53 = vpop.f32.mrf.mxu1 }
 0x88c   :  { %v12124_v1 = vld [vmem:[#allocation4 + $0xfb8] sm:$0xf0] }
 0x88d   :  { %v14679_v6 = vld [vmem:[#allocation4 + $0xd9c] sm:$0xf]  ;;  %v12127_v26 = vor.u32 %v14743_v61, %v12124_v1  ;;  %5798 = vmatpush.bf16.msra.mxu0 %v11615_v33 }
 0x88e   :  { %v11868_v9 = vld [vmem:[#allocation4 + $0xdb8] sm:$0xf0] }
 0x88f   :  { %v14543_v46 = vld [vmem:[#allocation4 + $0x95c] sm:$0xf]  ;;  %v11871_v19 = vor.u32 %v14679_v6, %v11868_v9  ;;  %5824 = vmatpush.bf16.msra.mxu2 %v12127_v26  ;;  %v5533_v26 = vpop.f32.mrf.mxu3 }
 0x890   :  { %v11324_v63 = vld [vmem:[#allocation4 + $0x978] sm:$0xf0] }
 0x891   :  { %v14607_v14 = vld [vmem:[#allocation4 + $0xb5c] sm:$0xf]  ;;  %v11327_v20 = vor.u32 %v14543_v46, %v11324_v63  ;;  %5811 = vmatpush.bf16.msra.mxu1 %v11871_v19  ;;  %v5547_v19 = vadd.f32 %v5546_v45, %v5533_v26  ;;  %v12642_v45 = vld [vmem:[#allocation5 + $0x3c0] sm:$0xf] }
 0x892   :  { %v11580_v15 = vld [vmem:[#allocation4 + $0xb78] sm:$0xf0]  ;;  %v12354_v26 = vld [vmem:[#allocation5 + $0x180] sm:$0xf] }
 0x893   :  { %v14735_v28 = vld [vmem:[#allocation4 + $0xf5c] sm:$0xf]  ;;  %v11583_v8 = vor.u32 %v14607_v14, %v11580_v15  ;;  %5786 = vmatpush.bf16.msrb.mxu3 %v11327_v20 }
 0x894   :  { %v12092_v30 = vld [vmem:[#allocation4 + $0xf78] sm:$0xf0] }
 0x895   :  { %v14671_v38 = vld [vmem:[#allocation4 + $0xd5c] sm:$0xf]  ;;  %v12095_v37 = vor.u32 %v14735_v28, %v12092_v30  ;;  %5799 = vmatpush.bf16.msra.mxu0 %v11583_v8  ;;  %v5572_v28 = vpop.f32.mrf.mxu2 }
 0x896   :  { %v11836_v23 = vld [vmem:[#allocation4 + $0xd78] sm:$0xf0] }
 0x897   :  { %v14535_v11 = vld [vmem:[#allocation4 + $0x91c] sm:$0xf]  ;;  %v11839_v49 = vor.u32 %v14671_v38, %v11836_v23  ;;  %5825 = vmatpush.bf16.msra.mxu2 %v12095_v37 }
 0x898   :  { %v11292_v36 = vld [vmem:[#allocation4 + $0x938] sm:$0xf0] }
 0x899   :  { %v14599_v39 = vld [vmem:[#allocation4 + $0xb1c] sm:$0xf]  ;;  %v11295_v32 = vor.u32 %v14535_v11, %v11292_v36  ;;  %5812 = vmatpush.bf16.msra.mxu1 %v11839_v49  ;;  %v5560_v36 = vadd.f32 %v5559_v53, %v5547_v19  ;;  %v14872_v19 = vld [vmem:[#allocation5 + $0x39c] sm:$0xf0] }
 0x89a   :  { %v11548_v3 = vld [vmem:[#allocation4 + $0xb38] sm:$0xf0] }
 0x89b   :  { %v14727_v5 = vld [vmem:[#allocation4 + $0xf1c] sm:$0xf]  ;;  %v11551_v42 = vor.u32 %v14599_v39, %v11548_v3  ;;  %5787 = vmatpush.bf16.msrb.mxu3 %v11295_v32  ;;  %v5548_v39 = vpop.f32.mrf.mxu0 }
 0x89c   :  { %v12060_v40 = vld [vmem:[#allocation4 + $0xf38] sm:$0xf0]  ;;  %v14800_v39 = vld [vmem:[#allocation5 + $0x15c] sm:$0xf0] }
 0x89d   :  { %v14663_v55 = vld [vmem:[#allocation4 + $0xd1c] sm:$0xf]  ;;  %v12063_v17 = vor.u32 %v14727_v5, %v12060_v40  ;;  %5800 = vmatpush.bf16.msra.mxu0 %v11551_v42  ;;  %v16383_v42 = vadd.f32 %v5572_v28, %v5560_v36  ;;  %v13122_v28 = vld [vmem:[#allocation5 + $0x780] sm:$0xf] }
 0x89e   :  { %v11804_v16 = vld [vmem:[#allocation4 + $0xd38] sm:$0xf0]  ;;  %v12322_v36 = vld [vmem:[#allocation5 + $0x140] sm:$0xf] }
 0x89f   :  { %v14527_v43 = vld [vmem:[#allocation4 + $0x8dc] sm:$0xf]  ;;  %v11807_v44 = vor.u32 %v14663_v55, %v11804_v16  ;;  %5826 = vmatpush.bf16.msra.mxu2 %v12063_v17 }
 0x8a0   :  { %v11260_v18 = vld [vmem:[#allocation4 + $0x8f8] sm:$0xf0] }
 0x8a1   :  { %v14591_v7 = vld [vmem:[#allocation4 + $0xadc] sm:$0xf]  ;;  %v11263_v51 = vor.u32 %v14527_v43, %v11260_v18  ;;  %5813 = vmatpush.bf16.msra.mxu1 %v11807_v44  ;;  %v5561_v43 = vpop.f32.mrf.mxu1 }
 0x8a2   :  { %v11516_v31 = vld [vmem:[#allocation4 + $0xaf8] sm:$0xf0]  ;;  %v14928_v43 = vld [vmem:[#allocation5 + $0x55c] sm:$0xf0] }
 0x8a3   :  { %v14719_v41 = vld [vmem:[#allocation4 + $0xedc] sm:$0xf]  ;;  %v11519_v52 = vor.u32 %v14591_v7, %v11516_v31  ;;  %5788 = vmatpush.bf16.msrb.mxu3 %v11263_v51  ;;  %v15008_v51 = vld [vmem:[#allocation5 + $0x7dc] sm:$0xf0] }
 0x8a4   :  { %v12028_v10 = vld [vmem:[#allocation4 + $0xef8] sm:$0xf0] }
 0x8a5   :  { %v14655_v48 = vld [vmem:[#allocation4 + $0xcdc] sm:$0xf]  ;;  %v12031_v54 = vor.u32 %v14719_v41, %v12028_v10  ;;  %5801 = vmatpush.bf16.msra.mxu0 %v11519_v52  ;;  %v12386_v41 = vld [vmem:[#allocation5 + $0x1c0] sm:$0xf]  ;;  %v5535_v52 = vpop.f32.mrf.mxu3 }
 0x8a6   :  { %v11772_v50 = vld [vmem:[#allocation4 + $0xcf8] sm:$0xf0]  ;;  %v14816_v10 = vld [vmem:[#allocation5 + $0x1dc] sm:$0xf0] }
 0x8a7   :  { %v14519_v12 = vld [vmem:[#allocation4 + $0x89c] sm:$0xf]  ;;  %v11775_v6 = vor.u32 %v14655_v48, %v11772_v50  ;;  %5827 = vmatpush.bf16.msra.mxu2 %v12031_v54  ;;  %v14880_v48 = vld [vmem:[#allocation5 + $0x3dc] sm:$0xf0] }
 0x8a8   :  { %v11228_v59 = vld [vmem:[#allocation4 + $0x8b8] sm:$0xf0]  ;;  %v13154_v50 = vld [vmem:[#allocation5 + $0x7c0] sm:$0xf] }
 0x8a9   :  { %v14583_v61 = vld [vmem:[#allocation4 + $0xa9c] sm:$0xf]  ;;  %v11231_v63 = vor.u32 %v14519_v12, %v11228_v59  ;;  %5814 = vmatpush.bf16.msra.mxu1 %v11775_v6  ;;  %v12387_v6 = vor.u32 %v14816_v10, %v12386_v41  ;;  %v13058_v41 = vld [vmem:[#allocation5 + $0x700] sm:$0xf] }
 0x8aa   :  { %v11484_v1 = vld [vmem:[#allocation4 + $0xab8] sm:$0xf0]  ;;  %v14984_v10 = vld [vmem:[#allocation5 + $0x71c] sm:$0xf0] }
 0x8ab   :  { %v14711_v9 = vld [vmem:[#allocation4 + $0xe9c] sm:$0xf]  ;;  %v11487_v14 = vor.u32 %v14583_v61, %v11484_v1  ;;  %5789 = vmatpush.bf16.msrb.mxu3 %v11231_v63  ;;  %v5574_v61 = vpop.f32.mrf.mxu2  ;;  %v14808_v63 = vld [vmem:[#allocation5 + $0x19c] sm:$0xf0] }
 0x8ac   :  { %v11996_v13 = vld [vmem:[#allocation4 + $0xeb8] sm:$0xf0]  ;;  %v12258_v52 = vld [vmem:[#allocation5 + $0xc0] sm:$0xf] }
 0x8ad   :  { %v14647_v33 = vld [vmem:[#allocation4 + $0xc9c] sm:$0xf]  ;;  %v11999_v30 = vor.u32 %v14711_v9, %v11996_v13  ;;  %5802 = vmatpush.bf16.msra.mxu0 %v11487_v14  ;;  %v12898_v9 = vld [vmem:[#allocation5 + $0x5c0] sm:$0xf] }
 0x8ae   :  { %v11740_v46 = vld [vmem:[#allocation4 + $0xcb8] sm:$0xf0]  ;;  %v14944_v13 = vld [vmem:[#allocation5 + $0x5dc] sm:$0xf0] }
 0x8af   :  { %v14511_v15 = vld [vmem:[#allocation4 + $0x85c] sm:$0xf]  ;;  %v11743_v8 = vor.u32 %v14647_v33, %v11740_v46  ;;  %5828 = vmatpush.bf16.msra.mxu2 %v11999_v30  ;;  %v12643_v33 = vor.u32 %v14880_v48, %v12642_v45  ;;  %v13155_v46 = vor.u32 %v15008_v51, %v13154_v50  ;;  %v12610_v14 = vld [vmem:[#allocation5 + $0x380] sm:$0xf]  ;;  %v13059_v51 = vor.u32 %v14984_v10, %v13058_v41 }
 0x8b0   :  { %v11196_v38 = vld [vmem:[#allocation4 + $0x878] sm:$0xf0]  ;;  %v15000_v30 = vld [vmem:[#allocation5 + $0x79c] sm:$0xf0] }
 0x8b1   :  { %v14575_v23 = vld [vmem:[#allocation4 + $0xa5c] sm:$0xf]  ;;  %v11199_v5 = vor.u32 %v14511_v15, %v11196_v38  ;;  %5815 = vmatpush.bf16.msra.mxu1 %v11743_v8  ;;  %v12899_v38 = vor.u32 %v14944_v13, %v12898_v9  ;;  %v14936_v8 = vld [vmem:[#allocation5 + $0x59c] sm:$0xf0] }
 0x8b2   :  { %v11452_v20 = vld [vmem:[#allocation4 + $0xa78] sm:$0xf0]  ;;  %v12802_v48 = vld [vmem:[#allocation5 + $0x500] sm:$0xf] }
 0x8b3   :  { %v14703_v11 = vld [vmem:[#allocation4 + $0xe5c] sm:$0xf]  ;;  %v11455_v40 = vor.u32 %v14575_v23, %v11452_v20  ;;  %5790 = vmatpush.bf16.msrb.mxu3 %v11199_v5  ;;  %v12355_v23 = vor.u32 %v14808_v63, %v12354_v26  ;;  %v12866_v20 = vld [vmem:[#allocation5 + $0x580] sm:$0xf] }
 0x8b4   :  { %v11964_v37 = vld [vmem:[#allocation4 + $0xe78] sm:$0xf0]  ;;  %v13090_v5 = vld [vmem:[#allocation5 + $0x740] sm:$0xf] }
 0x8b5   :  { %v14639_v3 = vld [vmem:[#allocation4 + $0xc5c] sm:$0xf]  ;;  %v11967_v17 = vor.u32 %v14703_v11, %v11964_v37  ;;  %5803 = vmatpush.bf16.msra.mxu0 %v11455_v40  ;;  %v12611_v11 = vor.u32 %v14872_v19, %v12610_v14  ;;  %v13123_v37 = vor.u32 %v15000_v30, %v13122_v28  ;;  %v14992_v40 = vld [vmem:[#allocation5 + $0x75c] sm:$0xf0] }
 0x8b6   :  { %v11708_v49 = vld [vmem:[#allocation4 + $0xc78] sm:$0xf0]  ;;  %v14920_v50 = vld [vmem:[#allocation5 + $0x51c] sm:$0xf0] }
 0x8b7   :  { %v14503_v55 = vld [vmem:[#allocation4 + $0x81c] sm:$0xf]  ;;  %v11711_v44 = vor.u32 %v14639_v3, %v11708_v49  ;;  %5829 = vmatpush.bf16.msra.mxu2 %v11967_v17  ;;  %v12578_v3 = vld [vmem:[#allocation5 + $0x340] sm:$0xf] }
 0x8b8   :  { %v11164_v16 = vld [vmem:[#allocation4 + $0x838] sm:$0xf0]  ;;  %v14864_v49 = vld [vmem:[#allocation5 + $0x35c] sm:$0xf0] }
 0x8b9   :  { %v14567_v32 = vld [vmem:[#allocation4 + $0xa1c] sm:$0xf]  ;;  %v11167_v12 = vor.u32 %v14503_v55, %v11164_v16  ;;  %5816 = vmatpush.bf16.msra.mxu1 %v11711_v44  ;;  %v12867_v55 = vor.u32 %v14936_v8, %v12866_v20  ;;  %v12323_v16 = vor.u32 %v14800_v39, %v12322_v36  ;;  %v12579_v17 = vor.u32 %v14864_v49, %v12578_v3  ;;  %v14856_v44 = vld [vmem:[#allocation5 + $0x31c] sm:$0xf0]  ;;  %v5624_v36 = vpop.f32.mrf.mxu2 }
 0x8ba   :  { %v11420_v18 = vld [vmem:[#allocation4 + $0xa38] sm:$0xf0]  ;;  %v14976_v61 = vld [vmem:[#allocation5 + $0x6dc] sm:$0xf0] }
 0x8bb   :  { %v14695_v7 = vld [vmem:[#allocation4 + $0xe1c] sm:$0xf]  ;;  %v11423_v53 = vor.u32 %v14567_v32, %v11420_v18  ;;  %5791 = vmatpush.bf16.msrb.mxu3 %v11167_v12  ;;  %v12834_v32 = vld [vmem:[#allocation5 + $0x540] sm:$0xf]  ;;  %v13091_v18 = vor.u32 %v14992_v40, %v13090_v5 }
 0x8bc   :  { %v11932_v31 = vld [vmem:[#allocation4 + $0xe38] sm:$0xf0]  ;;  %v14784_v12 = vld [vmem:[#allocation5 + $0xdc] sm:$0xf0] }
 0x8bd   :  { %v14631_v54 = vld [vmem:[#allocation4 + $0xc1c] sm:$0xf]  ;;  %v11935_v1 = vor.u32 %v14695_v7, %v11932_v31  ;;  %5804 = vmatpush.bf16.msra.mxu0 %v11423_v53  ;;  %v12290_v7 = vld [vmem:[#allocation5 + $0x100] sm:$0xf] }
 0x8be   :  { %v11676_v59 = vld [vmem:[#allocation4 + $0xc38] sm:$0xf0]  ;;  %5792 = vmatmul.bf16.vlgmr.msrb.gmra.mxu3 %v16285_v4  ;;  %v14792_v31 = vld [vmem:[#allocation5 + $0x11c] sm:$0xf0] }
 0x8bf   :  { %v11679_v15 = vor.u32 %v14631_v54, %v11676_v59  ;;  %5830 = vmatpush.bf16.msra.mxu2 %v11935_v1  ;;  %8916 = vmatpush.bf16.msra.mxu3 %v12387_v6  ;;  %v12546_v4 = vld [vmem:[#allocation5 + $0x300] sm:$0xf]  ;;  %v12291_v45 = vor.u32 %v14792_v31, %v12290_v7  ;;  %v12803_v1 = vor.u32 %v14920_v50, %v12802_v48  ;;  %v5598_v6 = vpop.f32.mrf.mxu0 }
 0x8c0   :  { %5805 = vmatmul.bf16.vlgmr.msra.gmra.mxu0 %v16295_v21  ;;  %v12547_v21 = vor.u32 %v14856_v44, %v12546_v4  ;;  %v12514_v53 = vld [vmem:[#allocation5 + $0x2c0] sm:$0xf] }
 0x8c1   :  { %8929 = vmatpush.bf16.msrb.mxu0 %v12643_v33  ;;  %5817 = vmatpush.bf16.msra.mxu1 %v11679_v15  ;;  %v14848_v54 = vld [vmem:[#allocation5 + $0x2dc] sm:$0xf0]  ;;  %v5611_v15 = vpop.f32.mrf.mxu1 }
 0x8c2   :  { %5831 = vmatmul.bf16.vlgmr.msra.gmra.mxu2 %v16290_v62  ;;  %v12835_v62 = vor.u32 %v14928_v43, %v12834_v32  ;;  %v13026_v59 = vld [vmem:[#allocation5 + $0x6c0] sm:$0xf]  ;;  %v12515_v33 = vor.u32 %v14848_v54, %v12514_v53 }
 0x8c3   :  { %8955 = vmatpush.bf16.msrb.mxu2 %v13155_v46  ;;  %8917 = vmatpush.bf16.msra.mxu3 %v12355_v23  ;;  %v12770_v9 = vld [vmem:[#allocation5 + $0x4c0] sm:$0xf]  ;;  %v13027_v46 = vor.u32 %v14976_v61, %v13026_v59  ;;  %v5585_v23 = vpop.f32.mrf.mxu3 }
 0x8c4   :  { %5818 = vmatmul.bf16.vlgmr.msra.gmra.mxu1 %v16301_v25  ;;  %v12259_v25 = vor.u32 %v14784_v12, %v12258_v52  ;;  %v14912_v13 = vld [vmem:[#allocation5 + $0x4dc] sm:$0xf0]  ;;  %v5586_v8 = vadd.f32 %v5585_v23, %v16383_v42 }
 0x8c5   :  { %8942 = vmatpush.bf16.msrb.mxu1 %v12899_v38  ;;  %8930 = vmatpush.bf16.msrb.mxu0 %v12611_v11  ;;  %v12226_v26 = vld [vmem:[#allocation5 + $0x80] sm:$0xf]  ;;  %v12771_v38 = vor.u32 %v14912_v13, %v12770_v9 }
 0x8c6   :  { %v14776_v63 = vld [vmem:[#allocation5 + $0x9c] sm:$0xf0] }
 0x8c7   :  { %8956 = vmatpush.bf16.msrb.mxu2 %v13123_v37  ;;  %8918 = vmatpush.bf16.msra.mxu3 %v12323_v16  ;;  %v12482_v14 = vld [vmem:[#allocation5 + $0x280] sm:$0xf]  ;;  %v12227_v20 = vor.u32 %v14776_v63, %v12226_v26  ;;  %v5600_v7 = vpop.f32.mrf.mxu0 }
 0x8c8   :  { %v14840_v19 = vld [vmem:[#allocation5 + $0x29c] sm:$0xf0] }
 0x8c9   :  { %8943 = vmatpush.bf16.msrb.mxu1 %v12867_v55  ;;  %8931 = vmatpush.bf16.msrb.mxu0 %v12579_v17  ;;  %v12994_v28 = vld [vmem:[#allocation5 + $0x680] sm:$0xf]  ;;  %v12483_v39 = vor.u32 %v14840_v19, %v12482_v14  ;;  %v5599_v55 = vadd.f32 %v5598_v6, %v5586_v8 }
 0x8ca   :  { %v14968_v30 = vld [vmem:[#allocation5 + $0x69c] sm:$0xf0] }
 0x8cb   :  { %8957 = vmatpush.bf16.msrb.mxu2 %v13091_v18  ;;  %8919 = vmatpush.bf16.msra.mxu3 %v12291_v45  ;;  %v12738_v11 = vld [vmem:[#allocation5 + $0x480] sm:$0xf]  ;;  %v12995_v3 = vor.u32 %v14968_v30, %v12994_v28  ;;  %v5612_v31 = vadd.f32 %v5611_v15, %v5599_v55  ;;  %v5587_v6 = vpop.f32.mrf.mxu3  ;;  %v16402_v55 = vpack.c.bf16 %v16242_v56, %v16242_v56 }
 0x8cc   :  { %v14904_v37 = vld [vmem:[#allocation5 + $0x49c] sm:$0xf0] }
 0x8cd   :  { %8944 = vmatpush.bf16.msrb.mxu1 %v12835_v62  ;;  %8932 = vmatpush.bf16.msrb.mxu0 %v12547_v21  ;;  %v12194_v49 = vld [vmem:[#allocation5 + $0x40] sm:$0xf]  ;;  %v12739_v17 = vor.u32 %v14904_v37, %v12738_v11  ;;  %v5613_v21 = vpop.f32.mrf.mxu1 }
 0x8ce   :  { %v14768_v5 = vld [vmem:[#allocation5 + $0x5c] sm:$0xf0] }
 0x8cf   :  { %8958 = vmatpush.bf16.msrb.mxu2 %v13059_v51  ;;  %8920 = vmatpush.bf16.msra.mxu3 %v12259_v25  ;;  %v12450_v40 = vld [vmem:[#allocation5 + $0x240] sm:$0xf]  ;;  %v12195_v42 = vor.u32 %v14768_v5, %v12194_v49  ;;  %v16390_v51 = vadd.f32 %v5624_v36, %v5612_v31 }
 0x8d0   :  { %v14832_v16 = vld [vmem:[#allocation5 + $0x25c] sm:$0xf0] }
 0x8d1   :  { %8945 = vmatpush.bf16.msrb.mxu1 %v12803_v1  ;;  %8933 = vmatpush.bf16.msrb.mxu0 %v12515_v33  ;;  %v12962_v32 = vld [vmem:[#allocation5 + $0x640] sm:$0xf]  ;;  %v12451_v10 = vor.u32 %v14832_v16, %v12450_v40  ;;  %v16398_v40 = vpack.c.bf16 %v16248_v34, %v16248_v34 }
 0x8d2   :  { %v14960_v43 = vld [vmem:[#allocation5 + $0x65c] sm:$0xf0] }
 0x8d3   :  { %8959 = vmatpush.bf16.msrb.mxu2 %v13027_v46  ;;  %v12706_v18 = vld [vmem:[#allocation5 + $0x440] sm:$0xf]  ;;  %8921 = vmatpush.bf16.msra.mxu3 %v12227_v20  ;;  %v12963_v62 = vor.u32 %v14960_v43, %v12962_v32  ;;  %v5626_v46 = vpop.f32.mrf.mxu2 }
 0x8d4   :  { %v14896_v4 = vld [vmem:[#allocation5 + $0x45c] sm:$0xf0] }
 0x8d5   :  { %8946 = vmatpush.bf16.msrb.mxu1 %v12771_v38  ;;  %v12162_v44 = vld [vmem:[#allocation5] sm:$0xf]  ;;  %8934 = vmatpush.bf16.msrb.mxu0 %v12483_v39  ;;  %v12707_v54 = vor.u32 %v14896_v4, %v12706_v18 }
 0x8d6   :  { %v14760_v41 = vld [vmem:[#allocation5 + $0x1c] sm:$0xf0] }
 0x8d7   :  { %8960 = vmatpush.bf16.msrb.mxu2 %v12995_v3  ;;  %v12418_v45 = vld [vmem:[#allocation5 + $0x200] sm:$0xf]  ;;  %8922 = vmatpush.bf16.msra.mxu3 %v12195_v42  ;;  %v12163_v25 = vor.u32 %v14760_v41, %v12162_v44  ;;  %v16394_v3 = vpack.c.bf16 %v16246_v60, %v16246_v60  ;;  %v16406_v42 = vpack.c.bf16 %v16244_v57, %v16244_v57 }
 0x8d8   :  { %v14824_v48 = vld [vmem:[#allocation5 + $0x21c] sm:$0xf0] }
 0x8d9   :  { %v12930_v50 = vld [vmem:[#allocation5 + $0x600] sm:$0xf]  ;;  %8947 = vmatpush.bf16.msrb.mxu1 %v12739_v17  ;;  %8935 = vmatpush.bf16.msrb.mxu0 %v12451_v10  ;;  %v12419_v26 = vor.u32 %v14824_v48, %v12418_v45 }
 0x8da   :  { %v14952_v52 = vld [vmem:[#allocation5 + $0x61c] sm:$0xf0] }
 0x8db   :  { %v13410_v12 = vld [vmem:[#allocation5 + $0x9c0] sm:$0xf]  ;;  %8961 = vmatpush.bf16.msrb.mxu2 %v12963_v62  ;;  %v12931_v63 = vor.u32 %v14952_v52, %v12930_v50  ;;  %8923 = vmatpush.bf16.msra.mxu3 %v12163_v25 }
 0x8dc   :  { %v15072_v53 = vld [vmem:[#allocation5 + $0x9dc] sm:$0xf0] }
 0x8dd   :  { %v13666_v59 = vld [vmem:[#allocation5 + $0xbc0] sm:$0xf]  ;;  %v13411_v19 = vor.u32 %v15072_v53, %v13410_v12  ;;  %8948 = vmatpush.bf16.msrb.mxu1 %v12707_v54  ;;  %8936 = vmatpush.bf16.msrb.mxu0 %v12419_v26 }
 0x8de   :  { %v15136_v61 = vld [vmem:[#allocation5 + $0xbdc] sm:$0xf0]  ;;  %8924 = vmatmul.bf16.vlgmr.msra.gmra.mxu3 %v16394_v3 }
 0x8df   :  { %v14178_v1 = vld [vmem:[#allocation5 + $0xfc0] sm:$0xf]  ;;  %v13667_v28 = vor.u32 %v15136_v61, %v13666_v59  ;;  %8962 = vmatpush.bf16.msrb.mxu2 %v12931_v63  ;;  %8968 = vmatpush.bf16.msrb.mxu3 %v13411_v19  ;;  %v5650_v63 = vpop.f32.mrf.mxu0 }
 0x8e0   :  { %v15264_v9 = vld [vmem:[#allocation5 + $0xfdc] sm:$0xf0]  ;;  %8937 = vmatmul.bf16.vlgmr.msrb.gmra.mxu0 %v16402_v55 }
 0x8e1   :  { %v12674_v13 = vld [vmem:[#allocation5 + $0x400] sm:$0xf]  ;;  %v14179_v38 = vor.u32 %v15264_v9, %v14178_v1  ;;  %8981 = vmatpush.bf16.msra.mxu0 %v13667_v28 }
 0x8e2   :  { %v14888_v33 = vld [vmem:[#allocation5 + $0x41c] sm:$0xf0]  ;;  %8963 = vmatmul.bf16.vlgmr.msrb.gmra.mxu2 %v16398_v40 }
 0x8e3   :  { %v13922_v14 = vld [vmem:[#allocation5 + $0xdc0] sm:$0xf]  ;;  %v12675_v23 = vor.u32 %v14888_v33, %v12674_v13  ;;  %9007 = vmatpush.bf16.msra.mxu2 %v14179_v38  ;;  %v5663_v38 = vpop.f32.mrf.mxu1 }
 0x8e4   :  { %v15200_v15 = vld [vmem:[#allocation5 + $0xddc] sm:$0xf0] }
 0x8e5   :  { %v13378_v30 = vld [vmem:[#allocation5 + $0x980] sm:$0xf]  ;;  %v13923_v37 = vor.u32 %v15200_v15, %v13922_v14  ;;  %8949 = vmatpush.bf16.msrb.mxu1 %v12675_v23 }
 0x8e6   :  { %v15064_v20 = vld [vmem:[#allocation5 + $0x99c] sm:$0xf0] }
 0x8e7   :  { %v13634_v8 = vld [vmem:[#allocation5 + $0xb80] sm:$0xf]  ;;  %v13379_v16 = vor.u32 %v15064_v20, %v13378_v30 }
 0x8e8   :  { %v15128_v11 = vld [vmem:[#allocation5 + $0xb9c] sm:$0xf0]  ;;  %8950 = vmatmul.bf16.vlgmr.msrb.gmra.mxu1 %v16406_v42 }
 0x8e9   :  { %v14146_v36 = vld [vmem:[#allocation5 + $0xf80] sm:$0xf]  ;;  %v13635_v32 = vor.u32 %v15128_v11, %v13634_v8  ;;  %8994 = vmatpush.bf16.msra.mxu1 %v13923_v37  ;;  %8969 = vmatpush.bf16.msrb.mxu3 %v13379_v16  ;;  %v5637_v16 = vpop.f32.mrf.mxu3 }
 0x8ea   :  { %v15256_v39 = vld [vmem:[#allocation5 + $0xf9c] sm:$0xf0] }
 0x8eb   :  { %v13890_v49 = vld [vmem:[#allocation5 + $0xd80] sm:$0xf]  ;;  %v14147_v60 = vor.u32 %v15256_v39, %v14146_v36  ;;  %8982 = vmatpush.bf16.msra.mxu0 %v13635_v32 }
 0x8ec   :  { %v15192_v5 = vld [vmem:[#allocation5 + $0xd9c] sm:$0xf0] }
 0x8ed   :  { %v13346_v43 = vld [vmem:[#allocation5 + $0x940] sm:$0xf]  ;;  %v13891_v34 = vor.u32 %v15192_v5, %v13890_v49  ;;  %9008 = vmatpush.bf16.msra.mxu2 %v14147_v60 }
 0x8ee   :  { %v15056_v17 = vld [vmem:[#allocation5 + $0x95c] sm:$0xf0] }
 0x8ef   :  { %v13602_v18 = vld [vmem:[#allocation5 + $0xb40] sm:$0xf]  ;;  %v13347_v41 = vor.u32 %v15056_v17, %v13346_v43  ;;  %8995 = vmatpush.bf16.msra.mxu1 %v13891_v34  ;;  %v5651_v17 = vadd.f32 %v5650_v63, %v5637_v16  ;;  %v13156_v63 = vld [vmem:[#allocation5 + $0x7e0] sm:$0xf0] }
 0x8f0   :  { %v15120_v7 = vld [vmem:[#allocation5 + $0xb5c] sm:$0xf0] }
 0x8f1   :  { %v14114_v31 = vld [vmem:[#allocation5 + $0xf40] sm:$0xf]  ;;  %v13603_v10 = vor.u32 %v15120_v7, %v13602_v18  ;;  %8970 = vmatpush.bf16.msrb.mxu3 %v13347_v41  ;;  %v5676_v18 = vpop.f32.mrf.mxu2 }
 0x8f2   :  { %v15248_v56 = vld [vmem:[#allocation5 + $0xf5c] sm:$0xf0] }
 0x8f3   :  { %v13858_v4 = vld [vmem:[#allocation5 + $0xd40] sm:$0xf]  ;;  %v14115_v57 = vor.u32 %v15248_v56, %v14114_v31  ;;  %8983 = vmatpush.bf16.msra.mxu0 %v13603_v10  ;;  %v5664_v10 = vadd.f32 %v5663_v38, %v5651_v17  ;;  %v13124_v17 = vld [vmem:[#allocation5 + $0x7a0] sm:$0xf0] }
 0x8f4   :  { %v15184_v44 = vld [vmem:[#allocation5 + $0xd5c] sm:$0xf0] }
 0x8f5   :  { %v13314_v62 = vld [vmem:[#allocation5 + $0x900] sm:$0xf]  ;;  %v13859_v21 = vor.u32 %v15184_v44, %v13858_v4  ;;  %9009 = vmatpush.bf16.msra.mxu2 %v14115_v57 }
 0x8f6   :  { %v15048_v45 = vld [vmem:[#allocation5 + $0x91c] sm:$0xf0] }
 0x8f7   :  { %v13570_v48 = vld [vmem:[#allocation5 + $0xb00] sm:$0xf]  ;;  %v13315_v59 = vor.u32 %v15048_v45, %v13314_v62  ;;  %8996 = vmatpush.bf16.msra.mxu1 %v13859_v21  ;;  %v5652_v62 = vpop.f32.mrf.mxu0 }
 0x8f8   :  { %v15112_v50 = vld [vmem:[#allocation5 + $0xb1c] sm:$0xf0]  ;;  %v14860_v62 = vld [vmem:[#allocation5 + $0x344] sm:$0xf] }
 0x8f9   :  { %v14082_v52 = vld [vmem:[#allocation5 + $0xf00] sm:$0xf]  ;;  %v13571_v61 = vor.u32 %v15112_v50, %v13570_v48  ;;  %8971 = vmatpush.bf16.msrb.mxu3 %v13315_v59  ;;  %v5678_v38 = vpop.f32.mrf.mxu2 }
 0x8fa   :  { %v15240_v12 = vld [vmem:[#allocation5 + $0xf1c] sm:$0xf0]  ;;  %v13028_v38 = vld [vmem:[#allocation5 + $0x6e0] sm:$0xf0] }
 0x8fb   :  { %v13826_v53 = vld [vmem:[#allocation5 + $0xd00] sm:$0xf]  ;;  %v14083_v6 = vor.u32 %v15240_v12, %v14082_v52  ;;  %8984 = vmatpush.bf16.msra.mxu0 %v13571_v61 }
 0x8fc   :  { %v15176_v54 = vld [vmem:[#allocation5 + $0xd1c] sm:$0xf0] }
 0x8fd   :  { %v13282_v1 = vld [vmem:[#allocation5 + $0x8c0] sm:$0xf]  ;;  %v13827_v33 = vor.u32 %v15176_v54, %v13826_v53  ;;  %9010 = vmatpush.bf16.msra.mxu2 %v14083_v6  ;;  %v16412_v53 = vadd.f32 %v5676_v18, %v5664_v10  ;;  %v5665_v54 = vpop.f32.mrf.mxu1  ;;  %v12324_v10 = vld [vmem:[#allocation5 + $0x160] sm:$0xf0] }
 0x8fe   :  { %v15040_v25 = vld [vmem:[#allocation5 + $0x8dc] sm:$0xf0] }
 0x8ff   :  { %v13538_v9 = vld [vmem:[#allocation5 + $0xac0] sm:$0xf]  ;;  %v13283_v19 = vor.u32 %v15040_v25, %v13282_v1  ;;  %8997 = vmatpush.bf16.msra.mxu1 %v13827_v33  ;;  %v14876_v33 = vld [vmem:[#allocation5 + $0x3c4] sm:$0xf] }
 0x900   :  { %v15104_v13 = vld [vmem:[#allocation5 + $0xadc] sm:$0xf0] }
 0x901   :  { %v14050_v46 = vld [vmem:[#allocation5 + $0xec0] sm:$0xf]  ;;  %v13539_v28 = vor.u32 %v15104_v13, %v13538_v9  ;;  %8972 = vmatpush.bf16.msrb.mxu3 %v13283_v19  ;;  %v14812_v9 = vld [vmem:[#allocation5 + $0x1c4] sm:$0xf] }
 0x902   :  { %v15232_v26 = vld [vmem:[#allocation5 + $0xedc] sm:$0xf0]  ;;  %v12388_v13 = vld [vmem:[#allocation5 + $0x1e0] sm:$0xf0] }
 0x903   :  { %v13794_v14 = vld [vmem:[#allocation5 + $0xcc0] sm:$0xf]  ;;  %v14051_v23 = vor.u32 %v15232_v26, %v14050_v46  ;;  %8985 = vmatpush.bf16.msra.mxu0 %v13539_v28  ;;  %v12644_v46 = vld [vmem:[#allocation5 + $0x3e0] sm:$0xf0] }
 0x904   :  { %v15168_v15 = vld [vmem:[#allocation5 + $0xcdc] sm:$0xf0]  ;;  %v15004_v26 = vld [vmem:[#allocation5 + $0x7c4] sm:$0xf] }
 0x905   :  { %v13250_v30 = vld [vmem:[#allocation5 + $0x880] sm:$0xf]  ;;  %v13795_v37 = vor.u32 %v15168_v15, %v13794_v14  ;;  %9011 = vmatpush.bf16.msra.mxu2 %v14051_v23  ;;  %v5639_v14 = vpop.f32.mrf.mxu3 }
 0x906   :  { %v15032_v20 = vld [vmem:[#allocation5 + $0x89c] sm:$0xf0]  ;;  %v14780_v14 = vld [vmem:[#allocation5 + $0xc4] sm:$0xf] }
 0x907   :  { %v13506_v8 = vld [vmem:[#allocation5 + $0xa80] sm:$0xf]  ;;  %v13251_v32 = vor.u32 %v15032_v20, %v13250_v30  ;;  %8998 = vmatpush.bf16.msra.mxu1 %v13795_v37  ;;  %v12391_v20 = vor.u32 %v14812_v9, %v12388_v13  ;;  %v12647_v37 = vor.u32 %v14876_v33, %v12644_v46  ;;  %v14916_v33 = vld [vmem:[#allocation5 + $0x504] sm:$0xf] }
 0x908   :  { %v15096_v11 = vld [vmem:[#allocation5 + $0xa9c] sm:$0xf0]  ;;  %v12804_v46 = vld [vmem:[#allocation5 + $0x520] sm:$0xf0] }
 0x909   :  { %v14018_v36 = vld [vmem:[#allocation5 + $0xe80] sm:$0xf]  ;;  %v13507_v43 = vor.u32 %v15096_v11, %v13506_v8  ;;  %8973 = vmatpush.bf16.msrb.mxu3 %v13251_v32  ;;  %v14940_v8 = vld [vmem:[#allocation5 + $0x5c4] sm:$0xf]  ;;  %v16416_v32 = vpack.c.bf16 %v16254_v29, %v16254_v29 }
 0x90a   :  { %v15224_v39 = vld [vmem:[#allocation5 + $0xe9c] sm:$0xf0]  ;;  %v12900_v11 = vld [vmem:[#allocation5 + $0x5e0] sm:$0xf0] }
 0x90b   :  { %v13762_v49 = vld [vmem:[#allocation5 + $0xc80] sm:$0xf]  ;;  %v14019_v7 = vor.u32 %v15224_v39, %v14018_v36  ;;  %8986 = vmatpush.bf16.msra.mxu0 %v13507_v43  ;;  %v13159_v36 = vor.u32 %v15004_v26, %v13156_v63  ;;  %v14804_v39 = vld [vmem:[#allocation5 + $0x184] sm:$0xf]  ;;  %v12903_v18 = vor.u32 %v14940_v8, %v12900_v11 }
 0x90c   :  { %v15160_v5 = vld [vmem:[#allocation5 + $0xc9c] sm:$0xf0]  ;;  %v12612_v43 = vld [vmem:[#allocation5 + $0x3a0] sm:$0xf0] }
 0x90d   :  { %v13218_v60 = vld [vmem:[#allocation5 + $0x840] sm:$0xf]  ;;  %v13763_v4 = vor.u32 %v15160_v5, %v13762_v49  ;;  %9012 = vmatpush.bf16.msra.mxu2 %v14019_v7  ;;  %v12356_v49 = vld [vmem:[#allocation5 + $0x1a0] sm:$0xf0]  ;;  %v16420_v7 = vpack.c.bf16 %v16256_v35, %v16256_v35 }
 0x90e   :  { %v15024_v34 = vld [vmem:[#allocation5 + $0x85c] sm:$0xf0]  ;;  %v14868_v5 = vld [vmem:[#allocation5 + $0x384] sm:$0xf] }
 0x90f   :  { %v13474_v31 = vld [vmem:[#allocation5 + $0xa40] sm:$0xf]  ;;  %v13219_v48 = vor.u32 %v15024_v34, %v13218_v60  ;;  %8999 = vmatpush.bf16.msra.mxu1 %v13763_v4  ;;  %v14996_v60 = vld [vmem:[#allocation5 + $0x784] sm:$0xf]  ;;  %v12359_v34 = vor.u32 %v14804_v39, %v12356_v49  ;;  %v16424_v4 = vpack.c.bf16 %v16250_v2, %v16250_v2  ;;  %v12615_v29 = vor.u32 %v14868_v5, %v12612_v43  ;;  %v5715_v43 = vpop.f32.mrf.mxu1 }
 0x910   :  { %v15088_v56 = vld [vmem:[#allocation5 + $0xa5c] sm:$0xf0]  ;;  %v12580_v35 = vld [vmem:[#allocation5 + $0x360] sm:$0xf0] }
 0x911   :  { %v13986_v44 = vld [vmem:[#allocation5 + $0xe40] sm:$0xf]  ;;  %v13475_v50 = vor.u32 %v15088_v56, %v13474_v31  ;;  %8974 = vmatpush.bf16.msrb.mxu3 %v13219_v48  ;;  %v14932_v31 = vld [vmem:[#allocation5 + $0x584] sm:$0xf]  ;;  %v16429_v48 = vpack.c.bf16 %v16252_v24, %v16252_v24 }
 0x912   :  { %v15216_v41 = vld [vmem:[#allocation5 + $0xe5c] sm:$0xf0]  ;;  %v12868_v56 = vld [vmem:[#allocation5 + $0x5a0] sm:$0xf0] }
 0x913   :  { %v13730_v57 = vld [vmem:[#allocation5 + $0xc40] sm:$0xf]  ;;  %v13987_v59 = vor.u32 %v15216_v41, %v13986_v44  ;;  %8987 = vmatpush.bf16.msra.mxu0 %v13475_v50  ;;  %v13127_v44 = vor.u32 %v14996_v60, %v13124_v17  ;;  %v14796_v41 = vld [vmem:[#allocation5 + $0x144] sm:$0xf]  ;;  %v12871_v2 = vor.u32 %v14932_v31, %v12868_v56  ;;  %v5689_v31 = vpop.f32.mrf.mxu3 }
 0x914   :  { %v15152_v45 = vld [vmem:[#allocation5 + $0xc5c] sm:$0xf0]  ;;  %v12327_v50 = vor.u32 %v14796_v41, %v12324_v10  ;;  %v12548_v24 = vld [vmem:[#allocation5 + $0x320] sm:$0xf0]  ;;  %v5728_v10 = vpop.f32.mrf.mxu2 }
 0x915   :  { %v13186_v21 = vld [vmem:[#allocation5 + $0x800] sm:$0xf]  ;;  %v13731_v25 = vor.u32 %v15152_v45, %v13730_v57  ;;  %9013 = vmatpush.bf16.msra.mxu2 %v13987_v59  ;;  %v14988_v57 = vld [vmem:[#allocation5 + $0x744] sm:$0xf] }
 0x916   :  { %v15016_v52 = vld [vmem:[#allocation5 + $0x81c] sm:$0xf0]  ;;  %v13092_v45 = vld [vmem:[#allocation5 + $0x760] sm:$0xf0] }
 0x917   :  { %v13442_v12 = vld [vmem:[#allocation5 + $0xa00] sm:$0xf]  ;;  %v13187_v15 = vor.u32 %v15016_v52, %v13186_v21  ;;  %9000 = vmatpush.bf16.msra.mxu1 %v13731_v25  ;;  %v14924_v21 = vld [vmem:[#allocation5 + $0x544] sm:$0xf]  ;;  %v13095_v54 = vor.u32 %v14988_v57, %v13092_v45 }
 0x918   :  { %v15080_v61 = vld [vmem:[#allocation5 + $0xa1c] sm:$0xf0]  ;;  %v12836_v52 = vld [vmem:[#allocation5 + $0x560] sm:$0xf0] }
 0x919   :  { %v13954_v1 = vld [vmem:[#allocation5 + $0xe00] sm:$0xf]  ;;  %v13443_v19 = vor.u32 %v15080_v61, %v13442_v12  ;;  %8975 = vmatpush.bf16.msrb.mxu3 %v13187_v15  ;;  %v12583_v12 = vor.u32 %v14860_v62, %v12580_v35  ;;  %v14788_v59 = vld [vmem:[#allocation5 + $0x104] sm:$0xf]  ;;  %v12839_v9 = vor.u32 %v14924_v21, %v12836_v52 }
 0x91a   :  { %v15208_v6 = vld [vmem:[#allocation5 + $0xe1c] sm:$0xf0]  ;;  %v12292_v61 = vld [vmem:[#allocation5 + $0x120] sm:$0xf0] }
 0x91b   :  { %v13698_v28 = vld [vmem:[#allocation5 + $0xc00] sm:$0xf]  ;;  %v13955_v23 = vor.u32 %v15208_v6, %v13954_v1  ;;  %8988 = vmatpush.bf16.msra.mxu0 %v13443_v19  ;;  %v14852_v1 = vld [vmem:[#allocation5 + $0x304] sm:$0xf]  ;;  %v12295_v13 = vor.u32 %v14788_v59, %v12292_v61 }
 0x91c   :  { %v15144_v30 = vld [vmem:[#allocation5 + $0xc1c] sm:$0xf0]  ;;  %8976 = vmatmul.bf16.vlgmr.msrb.gmra.mxu3 %v16416_v32  ;;  %v14980_v6 = vld [vmem:[#allocation5 + $0x704] sm:$0xf]  ;;  %v12551_v26 = vor.u32 %v14852_v1, %v12548_v24 }
 0x91d   :  { %v13699_v16 = vor.u32 %v15144_v30, %v13698_v28  ;;  %9014 = vmatpush.bf16.msra.mxu2 %v13955_v23  ;;  %9020 = vmatpush.bf16.msra.mxu3 %v12391_v20  ;;  %v13060_v25 = vld [vmem:[#allocation5 + $0x720] sm:$0xf0]  ;;  %v12807_v23 = vor.u32 %v14916_v33, %v12804_v46  ;;  %v5702_v20 = vpop.f32.mrf.mxu0 }
 0x91e   :  { %8989 = vmatmul.bf16.vlgmr.msra.gmra.mxu0 %v16424_v4  ;;  %v13063_v63 = vor.u32 %v14980_v6, %v13060_v25  ;;  %v12260_v15 = vld [vmem:[#allocation5 + $0xe0] sm:$0xf0] }
 0x91f   :  { %9033 = vmatpush.bf16.msrb.mxu0 %v12647_v37  ;;  %9001 = vmatpush.bf16.msra.mxu1 %v13699_v16  ;;  %v14844_v19 = vld [vmem:[#allocation5 + $0x2c4] sm:$0xf]  ;;  %v12263_v8 = vor.u32 %v14780_v14, %v12260_v15 }
 0x920   :  { %9015 = vmatmul.bf16.vlgmr.msra.gmra.mxu2 %v16420_v7  ;;  %v12516_v28 = vld [vmem:[#allocation5 + $0x2e0] sm:$0xf0] }
 0x921   :  { %9059 = vmatpush.bf16.msrb.mxu2 %v13159_v36  ;;  %9021 = vmatpush.bf16.msra.mxu3 %v12359_v34  ;;  %v14972_v30 = vld [vmem:[#allocation5 + $0x6c4] sm:$0xf]  ;;  %v12519_v36 = vor.u32 %v14844_v19, %v12516_v28 }
 0x922   :  { %9002 = vmatmul.bf16.vlgmr.msra.gmra.mxu1 %v16429_v48  ;;  %v14908_v11 = vld [vmem:[#allocation5 + $0x4c4] sm:$0xf]  ;;  %v13031_v39 = vor.u32 %v14972_v30, %v13028_v38 }
 0x923   :  { %9046 = vmatpush.bf16.msrb.mxu1 %v12903_v18  ;;  %9034 = vmatpush.bf16.msrb.mxu0 %v12615_v29  ;;  %v12772_v37 = vld [vmem:[#allocation5 + $0x4e0] sm:$0xf0]  ;;  %v5690_v29 = vadd.f32 %v5689_v31, %v16412_v53 }
 0x924   :  { %v14772_v49 = vld [vmem:[#allocation5 + $0x84] sm:$0xf]  ;;  %v12775_v34 = vor.u32 %v14908_v11, %v12772_v37 }
 0x925   :  { %9060 = vmatpush.bf16.msrb.mxu2 %v13127_v44  ;;  %9022 = vmatpush.bf16.msra.mxu3 %v12327_v50  ;;  %v12228_v5 = vld [vmem:[#allocation5 + $0xa0] sm:$0xf0]  ;;  %v5703_v50 = vadd.f32 %v5702_v20, %v5690_v29  ;;  %v5704_v61 = vpop.f32.mrf.mxu0 }
 0x926   :  { %v14836_v16 = vld [vmem:[#allocation5 + $0x284] sm:$0xf]  ;;  %v12231_v56 = vor.u32 %v14772_v49, %v12228_v5  ;;  %v5730_v49 = vpop.f32.mrf.mxu2 }
 0x927   :  { %9047 = vmatpush.bf16.msrb.mxu1 %v12871_v2  ;;  %9035 = vmatpush.bf16.msrb.mxu0 %v12583_v12  ;;  %v12484_v60 = vld [vmem:[#allocation5 + $0x2a0] sm:$0xf0]  ;;  %v5716_v1 = vadd.f32 %v5715_v43, %v5703_v50 }
 0x928   :  { %v14964_v17 = vld [vmem:[#allocation5 + $0x684] sm:$0xf]  ;;  %v12487_v62 = vor.u32 %v14836_v16, %v12484_v60 }
 0x929   :  { %9061 = vmatpush.bf16.msrb.mxu2 %v13095_v54  ;;  %9023 = vmatpush.bf16.msra.mxu3 %v12295_v13  ;;  %v12996_v18 = vld [vmem:[#allocation5 + $0x6a0] sm:$0xf0]  ;;  %v16435_v14 = vadd.f32 %v5728_v10, %v5716_v1 }
 0x92a   :  { %v14900_v44 = vld [vmem:[#allocation5 + $0x484] sm:$0xf]  ;;  %v12999_v35 = vor.u32 %v14964_v17, %v12996_v18 }
 0x92b   :  { %9048 = vmatpush.bf16.msrb.mxu1 %v12839_v9  ;;  %9036 = vmatpush.bf16.msrb.mxu0 %v12551_v26  ;;  %v12740_v41 = vld [vmem:[#allocation5 + $0x4a0] sm:$0xf0] }
 0x92c   :  { %v14764_v57 = vld [vmem:[#allocation5 + $0x44] sm:$0xf]  ;;  %v12743_v54 = vor.u32 %v14900_v44, %v12740_v41 }
 0x92d   :  { %9062 = vmatpush.bf16.msrb.mxu2 %v13063_v63  ;;  %9024 = vmatpush.bf16.msra.mxu3 %v12263_v8  ;;  %v12196_v45 = vld [vmem:[#allocation5 + $0x60] sm:$0xf0]  ;;  %v5717_v63 = vpop.f32.mrf.mxu1  ;;  %v5691_v8 = vpop.f32.mrf.mxu3 }
 0x92e   :  { %v14828_v2 = vld [vmem:[#allocation5 + $0x244] sm:$0xf]  ;;  %v12199_v53 = vor.u32 %v14764_v57, %v12196_v45 }
 0x92f   :  { %9049 = vmatpush.bf16.msrb.mxu1 %v12807_v23  ;;  %9037 = vmatpush.bf16.msrb.mxu0 %v12519_v36  ;;  %v12452_v21 = vld [vmem:[#allocation5 + $0x260] sm:$0xf0] }
 0x930   :  { %v14956_v52 = vld [vmem:[#allocation5 + $0x644] sm:$0xf]  ;;  %v12455_v9 = vor.u32 %v14828_v2, %v12452_v21 }
 0x931   :  { %9063 = vmatpush.bf16.msrb.mxu2 %v13031_v39  ;;  %v12964_v12 = vld [vmem:[#allocation5 + $0x660] sm:$0xf0]  ;;  %9025 = vmatpush.bf16.msra.mxu3 %v12231_v56 }
 0x932   :  { %v14892_v59 = vld [vmem:[#allocation5 + $0x444] sm:$0xf]  ;;  %v12967_v13 = vor.u32 %v14956_v52, %v12964_v12 }
 0x933   :  { %9050 = vmatpush.bf16.msrb.mxu1 %v12775_v34  ;;  %v12708_v24 = vld [vmem:[#allocation5 + $0x460] sm:$0xf0]  ;;  %9038 = vmatpush.bf16.msrb.mxu0 %v12487_v62 }
 0x934   :  { %v14756_v6 = vld [vmem:[#allocation5 + $0x4] sm:$0xf]  ;;  %v12711_v30 = vor.u32 %v14892_v59, %v12708_v24 }
 0x935   :  { %v12164_v25 = vld [vmem:[#allocation5 + $0x20] sm:$0xf0]  ;;  %9064 = vmatpush.bf16.msrb.mxu2 %v12999_v35  ;;  %9026 = vmatpush.bf16.msra.mxu3 %v12199_v53 }
 0x936   :  { %v14820_v33 = vld [vmem:[#allocation5 + $0x204] sm:$0xf]  ;;  %v12167_v11 = vor.u32 %v14756_v6, %v12164_v25 }
 0x937   :  { %v12420_v46 = vld [vmem:[#allocation5 + $0x220] sm:$0xf0]  ;;  %9051 = vmatpush.bf16.msrb.mxu1 %v12743_v54  ;;  %9039 = vmatpush.bf16.msrb.mxu0 %v12455_v9 }
 0x938   :  { %v14948_v26 = vld [vmem:[#allocation5 + $0x604] sm:$0xf]  ;;  %v12423_v5 = vor.u32 %v14820_v33, %v12420_v46 }
 0x939   :  { %v12932_v15 = vld [vmem:[#allocation5 + $0x620] sm:$0xf0]  ;;  %9065 = vmatpush.bf16.msrb.mxu2 %v12967_v13  ;;  %9027 = vmatpush.bf16.msra.mxu3 %v12167_v11 }
 0x93a   :  { %v15068_v19 = vld [vmem:[#allocation5 + $0x9c4] sm:$0xf]  ;;  %v12935_v16 = vor.u32 %v14948_v26, %v12932_v15 }
 0x93b   :  { %v13412_v28 = vld [vmem:[#allocation5 + $0x9e0] sm:$0xf0]  ;;  %9052 = vmatpush.bf16.msrb.mxu1 %v12711_v30  ;;  %9040 = vmatpush.bf16.msrb.mxu0 %v12423_v5 }
 0x93c   :  { %v15132_v38 = vld [vmem:[#allocation5 + $0xbc4] sm:$0xf]  ;;  %v13415_v17 = vor.u32 %v15068_v19, %v13412_v28  ;;  %9028 = vmatmul.bf16.vlgmr.msra.gmra.mxu3 %v16394_v3 }
 0x93d   :  { %v13668_v23 = vld [vmem:[#allocation5 + $0xbe0] sm:$0xf0]  ;;  %9066 = vmatpush.bf16.msrb.mxu2 %v12935_v16 }
 0x93e   :  { %v15260_v20 = vld [vmem:[#allocation5 + $0xfc4] sm:$0xf]  ;;  %v13671_v18 = vor.u32 %v15132_v38, %v13668_v23  ;;  %9072 = vmatpush.bf16.msrb.mxu3 %v13415_v17  ;;  %9041 = vmatmul.bf16.vlgmr.msrb.gmra.mxu0 %v16402_v55 }
 0x93f   :  { %v14180_v37 = vld [vmem:[#allocation5 + $0xfe0] sm:$0xf0] }
 0x940   :  { %v14884_v36 = vld [vmem:[#allocation5 + $0x404] sm:$0xf]  ;;  %v14183_v31 = vor.u32 %v15260_v20, %v14180_v37  ;;  %9085 = vmatpush.bf16.msra.mxu0 %v13671_v18  ;;  %9067 = vmatmul.bf16.vlgmr.msrb.gmra.mxu2 %v16398_v40 }
 0x941   :  { %v12676_v39 = vld [vmem:[#allocation5 + $0x420] sm:$0xf0] }
 0x942   :  { %v15196_v43 = vld [vmem:[#allocation5 + $0xdc4] sm:$0xf]  ;;  %v12679_v56 = vor.u32 %v14884_v36, %v12676_v39  ;;  %9111 = vmatpush.bf16.msra.mxu2 %v14183_v31 }
 0x943   :  { %v13924_v60 = vld [vmem:[#allocation5 + $0xde0] sm:$0xf0] }
 0x944   :  { %v15060_v34 = vld [vmem:[#allocation5 + $0x984] sm:$0xf]  ;;  %v13927_v10 = vor.u32 %v15196_v43, %v13924_v60  ;;  %9053 = vmatpush.bf16.msrb.mxu1 %v12679_v56  ;;  %v5754_v43 = vpop.f32.mrf.mxu0  ;;  %v5767_v56 = vpop.f32.mrf.mxu1 }
 0x945   :  { %v13380_v29 = vld [vmem:[#allocation5 + $0x9a0] sm:$0xf0] }
 0x946   :  { %v15124_v44 = vld [vmem:[#allocation5 + $0xb84] sm:$0xf]  ;;  %v13383_v2 = vor.u32 %v15060_v34, %v13380_v29 }
 0x947   :  { %v13636_v41 = vld [vmem:[#allocation5 + $0xba0] sm:$0xf0]  ;;  %9054 = vmatmul.bf16.vlgmr.msrb.gmra.mxu1 %v16406_v42 }
 0x948   :  { %v15252_v62 = vld [vmem:[#allocation5 + $0xf84] sm:$0xf]  ;;  %v13639_v50 = vor.u32 %v15124_v44, %v13636_v41  ;;  %9098 = vmatpush.bf16.msra.mxu1 %v13927_v10  ;;  %9073 = vmatpush.bf16.msrb.mxu3 %v13383_v2 }
 0x949   :  { %v14148_v35 = vld [vmem:[#allocation5 + $0xfa0] sm:$0xf0] }
 0x94a   :  { %v15188_v57 = vld [vmem:[#allocation5 + $0xd84] sm:$0xf]  ;;  %v14151_v52 = vor.u32 %v15252_v62, %v14148_v35  ;;  %9086 = vmatpush.bf16.msra.mxu0 %v13639_v50  ;;  %v5741_v50 = vpop.f32.mrf.mxu3 }
 0x94b   :  { %v13892_v45 = vld [vmem:[#allocation5 + $0xda0] sm:$0xf0] }
 0x94c   :  { %v15052_v21 = vld [vmem:[#allocation5 + $0x944] sm:$0xf]  ;;  %v13895_v61 = vor.u32 %v15188_v57, %v13892_v45  ;;  %9112 = vmatpush.bf16.msra.mxu2 %v14151_v52 }
 0x94d   :  { %v13348_v12 = vld [vmem:[#allocation5 + $0x960] sm:$0xf0] }
 0x94e   :  { %v15116_v54 = vld [vmem:[#allocation5 + $0xb44] sm:$0xf]  ;;  %v13351_v25 = vor.u32 %v15052_v21, %v13348_v12  ;;  %9099 = vmatpush.bf16.msra.mxu1 %v13895_v61 }
 0x94f   :  { %v13604_v59 = vld [vmem:[#allocation5 + $0xb60] sm:$0xf0] }
 0x950   :  { %v15244_v53 = vld [vmem:[#allocation5 + $0xf44] sm:$0xf]  ;;  %v13607_v9 = vor.u32 %v15116_v54, %v13604_v59  ;;  %9074 = vmatpush.bf16.msrb.mxu3 %v13351_v25  ;;  %v5755_v54 = vadd.f32 %v5754_v43, %v5741_v50  ;;  %v5780_v59 = vpop.f32.mrf.mxu2  ;;  %v13162_v43 = vld [vmem:[#allocation5 + $0x7c8] sm:$0xf] }
 0x951   :  { %v14116_v1 = vld [vmem:[#allocation5 + $0xf60] sm:$0xf0]  ;;  %v12618_v50 = vld [vmem:[#allocation5 + $0x388] sm:$0xf] }
 0x952   :  { %v15180_v24 = vld [vmem:[#allocation5 + $0xd44] sm:$0xf]  ;;  %v14119_v33 = vor.u32 %v15244_v53, %v14116_v1  ;;  %9087 = vmatpush.bf16.msra.mxu0 %v13607_v9 }
 0x953   :  { %v13860_v6 = vld [vmem:[#allocation5 + $0xd60] sm:$0xf0] }
 0x954   :  { %v15044_v13 = vld [vmem:[#allocation5 + $0x904] sm:$0xf]  ;;  %v13863_v15 = vor.u32 %v15180_v24, %v13860_v6  ;;  %9113 = vmatpush.bf16.msra.mxu2 %v14119_v33  ;;  %v5756_v33 = vpop.f32.mrf.mxu0 }
 0x955   :  { %v13316_v46 = vld [vmem:[#allocation5 + $0x920] sm:$0xf0]  ;;  %v14865_v33 = vld [vmem:[#allocation5 + $0x364] sm:$0xf0] }
 0x956   :  { %v15108_v26 = vld [vmem:[#allocation5 + $0xb04] sm:$0xf]  ;;  %v13319_v23 = vor.u32 %v15044_v13, %v13316_v46  ;;  %9100 = vmatpush.bf16.msra.mxu1 %v13863_v15  ;;  %v5768_v13 = vadd.f32 %v5767_v56, %v5755_v54  ;;  %v15001_v54 = vld [vmem:[#allocation5 + $0x7a4] sm:$0xf0] }
 0x957   :  { %v13572_v63 = vld [vmem:[#allocation5 + $0xb20] sm:$0xf0] }
 0x958   :  { %v15236_v19 = vld [vmem:[#allocation5 + $0xf04] sm:$0xf]  ;;  %v13575_v20 = vor.u32 %v15108_v26, %v13572_v63  ;;  %9075 = vmatpush.bf16.msrb.mxu3 %v13319_v23  ;;  %v5769_v23 = vpop.f32.mrf.mxu1 }
 0x959   :  { %v14084_v28 = vld [vmem:[#allocation5 + $0xf20] sm:$0xf0] }
 0x95a   :  { %v15172_v30 = vld [vmem:[#allocation5 + $0xd04] sm:$0xf]  ;;  %v14087_v11 = vor.u32 %v15236_v19, %v14084_v28  ;;  %9088 = vmatpush.bf16.msra.mxu0 %v13575_v20 }
 0x95b   :  { %v13828_v38 = vld [vmem:[#allocation5 + $0xd20] sm:$0xf0] }
 0x95c   :  { %v15036_v8 = vld [vmem:[#allocation5 + $0x8c4] sm:$0xf]  ;;  %v13831_v49 = vor.u32 %v15172_v30, %v13828_v38  ;;  %9114 = vmatpush.bf16.msra.mxu2 %v14087_v11  ;;  %v16441_v38 = vadd.f32 %v5780_v59, %v5768_v13  ;;  %v12586_v13 = vld [vmem:[#allocation5 + $0x348] sm:$0xf] }
 0x95d   :  { %v13284_v37 = vld [vmem:[#allocation5 + $0x8e0] sm:$0xf0] }
 0x95e   :  { %v15100_v36 = vld [vmem:[#allocation5 + $0xac4] sm:$0xf]  ;;  %v13287_v18 = vor.u32 %v15036_v8, %v13284_v37  ;;  %9101 = vmatpush.bf16.msra.mxu1 %v13831_v49  ;;  %v14817_v49 = vld [vmem:[#allocation5 + $0x1e4] sm:$0xf0] }
 0x95f   :  { %v13540_v39 = vld [vmem:[#allocation5 + $0xae0] sm:$0xf0] }
 0x960   :  { %v15228_v5 = vld [vmem:[#allocation5 + $0xec4] sm:$0xf]  ;;  %v13543_v34 = vor.u32 %v15100_v36, %v13540_v39  ;;  %9076 = vmatpush.bf16.msrb.mxu3 %v13287_v18  ;;  %v12394_v39 = vld [vmem:[#allocation5 + $0x1c8] sm:$0xf] }
 0x961   :  { %v14052_v16 = vld [vmem:[#allocation5 + $0xee0] sm:$0xf0] }
 0x962   :  { %v15164_v60 = vld [vmem:[#allocation5 + $0xcc4] sm:$0xf]  ;;  %v14055_v29 = vor.u32 %v15228_v5, %v14052_v16  ;;  %9089 = vmatpush.bf16.msra.mxu0 %v13543_v34  ;;  %v12650_v5 = vld [vmem:[#allocation5 + $0x3c8] sm:$0xf] }
 0x963   :  { %v13796_v17 = vld [vmem:[#allocation5 + $0xce0] sm:$0xf0]  ;;  %v14881_v16 = vld [vmem:[#allocation5 + $0x3e4] sm:$0xf0] }
 0x964   :  { %v15028_v31 = vld [vmem:[#allocation5 + $0x884] sm:$0xf]  ;;  %v13799_v62 = vor.u32 %v15164_v60, %v13796_v17  ;;  %9115 = vmatpush.bf16.msra.mxu2 %v14055_v29  ;;  %v15009_v60 = vld [vmem:[#allocation5 + $0x7e4] sm:$0xf0]  ;;  %v5743_v17 = vpop.f32.mrf.mxu3  ;;  %v5782_v29 = vpop.f32.mrf.mxu2 }
 0x965   :  { %v13252_v44 = vld [vmem:[#allocation5 + $0x8a0] sm:$0xf0]  ;;  %v13034_v29 = vld [vmem:[#allocation5 + $0x6c8] sm:$0xf] }
 0x966   :  { %v15092_v41 = vld [vmem:[#allocation5 + $0xa84] sm:$0xf]  ;;  %v13255_v21 = vor.u32 %v15028_v31, %v13252_v44  ;;  %9102 = vmatpush.bf16.msra.mxu1 %v13799_v62  ;;  %v14945_v62 = vld [vmem:[#allocation5 + $0x5e4] sm:$0xf0] }
 0x967   :  { %v13508_v10 = vld [vmem:[#allocation5 + $0xaa0] sm:$0xf0] }
 0x968   :  { %v15220_v35 = vld [vmem:[#allocation5 + $0xe84] sm:$0xf]  ;;  %v13511_v52 = vor.u32 %v15092_v41, %v13508_v10  ;;  %9077 = vmatpush.bf16.msrb.mxu3 %v13255_v21  ;;  %v12395_v41 = vor.u32 %v14817_v49, %v12394_v39  ;;  %v12906_v10 = vld [vmem:[#allocation5 + $0x5c8] sm:$0xf] }
 0x969   :  { %v14020_v57 = vld [vmem:[#allocation5 + $0xea0] sm:$0xf0]  ;;  %v12907_v59 = vor.u32 %v14945_v62, %v12906_v10  ;;  %v14985_v39 = vld [vmem:[#allocation5 + $0x724] sm:$0xf0]  ;;  %v5806_v10 = vpop.f32.mrf.mxu0 }
 0x96a   :  { %v15156_v45 = vld [vmem:[#allocation5 + $0xc84] sm:$0xf]  ;;  %v14023_v61 = vor.u32 %v15220_v35, %v14020_v57  ;;  %9090 = vmatpush.bf16.msra.mxu0 %v13511_v52  ;;  %v12651_v35 = vor.u32 %v14881_v16, %v12650_v5  ;;  %v13163_v57 = vor.u32 %v15009_v60, %v13162_v43  ;;  %v14873_v52 = vld [vmem:[#allocation5 + $0x3a4] sm:$0xf0] }
 0x96b   :  { %v13764_v2 = vld [vmem:[#allocation5 + $0xca0] sm:$0xf0]  ;;  %v12810_v16 = vld [vmem:[#allocation5 + $0x508] sm:$0xf] }
 0x96c   :  { %v15020_v12 = vld [vmem:[#allocation5 + $0x844] sm:$0xf]  ;;  %v13767_v6 = vor.u32 %v15156_v45, %v13764_v2  ;;  %9116 = vmatpush.bf16.msra.mxu2 %v14023_v61  ;;  %v12362_v45 = vld [vmem:[#allocation5 + $0x188] sm:$0xf] }
 0x96d   :  { %v13220_v53 = vld [vmem:[#allocation5 + $0x860] sm:$0xf0]  ;;  %v14809_v2 = vld [vmem:[#allocation5 + $0x1a4] sm:$0xf0] }
 0x96e   :  { %v15084_v1 = vld [vmem:[#allocation5 + $0xa44] sm:$0xf]  ;;  %v13223_v63 = vor.u32 %v15020_v12, %v13220_v53  ;;  %9103 = vmatpush.bf16.msra.mxu1 %v13767_v6  ;;  %v13130_v12 = vld [vmem:[#allocation5 + $0x788] sm:$0xf]  ;;  %v12363_v61 = vor.u32 %v14809_v2, %v12362_v45 }
 0x96f   :  { %v13476_v24 = vld [vmem:[#allocation5 + $0xa60] sm:$0xf0]  ;;  %v12874_v53 = vld [vmem:[#allocation5 + $0x588] sm:$0xf]  ;;  %v13131_v6 = vor.u32 %v15001_v54, %v13130_v12  ;;  %v5819_v12 = vpop.f32.mrf.mxu1 }
 0x970   :  { %v15212_v25 = vld [vmem:[#allocation5 + $0xe44] sm:$0xf]  ;;  %v13479_v15 = vor.u32 %v15084_v1, %v13476_v24  ;;  %9078 = vmatpush.bf16.msrb.mxu3 %v13223_v63  ;;  %v14937_v1 = vld [vmem:[#allocation5 + $0x5a4] sm:$0xf0]  ;;  %v12619_v24 = vor.u32 %v14873_v52, %v12618_v50 }
 0x971   :  { %v13988_v9 = vld [vmem:[#allocation5 + $0xe60] sm:$0xf0]  ;;  %v12875_v63 = vor.u32 %v14937_v1, %v12874_v53  ;;  %v14921_v43 = vld [vmem:[#allocation5 + $0x524] sm:$0xf0]  ;;  %v5793_v1 = vpop.f32.mrf.mxu3 }
 0x972   :  { %v15148_v46 = vld [vmem:[#allocation5 + $0xc44] sm:$0xf]  ;;  %v13991_v20 = vor.u32 %v15212_v25, %v13988_v9  ;;  %9091 = vmatpush.bf16.msra.mxu0 %v13479_v15  ;;  %v12330_v25 = vld [vmem:[#allocation5 + $0x148] sm:$0xf] }
 0x973   :  { %v13732_v26 = vld [vmem:[#allocation5 + $0xc60] sm:$0xf0]  ;;  %v14801_v9 = vld [vmem:[#allocation5 + $0x164] sm:$0xf0] }
 0x974   :  { %v15012_v19 = vld [vmem:[#allocation5 + $0x804] sm:$0xf]  ;;  %v13735_v36 = vor.u32 %v15148_v46, %v13732_v26  ;;  %9117 = vmatpush.bf16.msra.mxu2 %v13991_v20  ;;  %v13098_v46 = vld [vmem:[#allocation5 + $0x748] sm:$0xf]  ;;  %v12331_v15 = vor.u32 %v14801_v9, %v12330_v25 }
 0x975   :  { %v13188_v28 = vld [vmem:[#allocation5 + $0x820] sm:$0xf0]  ;;  %v14993_v26 = vld [vmem:[#allocation5 + $0x764] sm:$0xf0] }
 0x976   :  { %v15076_v30 = vld [vmem:[#allocation5 + $0xa04] sm:$0xf]  ;;  %v13191_v18 = vor.u32 %v15012_v19, %v13188_v28  ;;  %9104 = vmatpush.bf16.msra.mxu1 %v13735_v36  ;;  %v12842_v19 = vld [vmem:[#allocation5 + $0x548] sm:$0xf]  ;;  %v13099_v23 = vor.u32 %v14993_v26, %v13098_v46 }
 0x977   :  { %v13444_v8 = vld [vmem:[#allocation5 + $0xa20] sm:$0xf0]  ;;  %v14929_v28 = vld [vmem:[#allocation5 + $0x564] sm:$0xf0] }
 0x978   :  { %v15204_v11 = vld [vmem:[#allocation5 + $0xe04] sm:$0xf]  ;;  %v13447_v34 = vor.u32 %v15076_v30, %v13444_v8  ;;  %9079 = vmatpush.bf16.msrb.mxu3 %v13191_v18  ;;  %v12587_v30 = vor.u32 %v14865_v33, %v12586_v13  ;;  %v12298_v20 = vld [vmem:[#allocation5 + $0x108] sm:$0xf]  ;;  %v12843_v49 = vor.u32 %v14929_v28, %v12842_v19  ;;  %v5832_v13 = vpop.f32.mrf.mxu2 }
 0x979   :  { %v13956_v37 = vld [vmem:[#allocation5 + $0xe20] sm:$0xf0]  ;;  %v14793_v8 = vld [vmem:[#allocation5 + $0x124] sm:$0xf0] }
 0x97a   :  { %v15140_v31 = vld [vmem:[#allocation5 + $0xc04] sm:$0xf]  ;;  %v13959_v44 = vor.u32 %v15204_v11, %v13956_v37  ;;  %9092 = vmatpush.bf16.msra.mxu0 %v13447_v34  ;;  %v12554_v11 = vld [vmem:[#allocation5 + $0x308] sm:$0xf]  ;;  %v12299_v5 = vor.u32 %v14793_v8, %v12298_v20 }
 0x97b   :  { %v13700_v56 = vld [vmem:[#allocation5 + $0xc20] sm:$0xf0]  ;;  %9080 = vmatmul.bf16.vlgmr.msrb.gmra.mxu3 %v16416_v32  ;;  %v14857_v37 = vld [vmem:[#allocation5 + $0x324] sm:$0xf0] }
 0x97c   :  { %v13703_v21 = vor.u32 %v15140_v31, %v13700_v56  ;;  %9118 = vmatpush.bf16.msra.mxu2 %v13959_v44  ;;  %9124 = vmatpush.bf16.msra.mxu3 %v12395_v41  ;;  %v13066_v36 = vld [vmem:[#allocation5 + $0x708] sm:$0xf]  ;;  %v12555_v60 = vor.u32 %v14857_v37, %v12554_v11  ;;  %v12811_v41 = vor.u32 %v14921_v43, %v12810_v16  ;;  %v5808_v11 = vpop.f32.mrf.mxu0 }
 0x97d   :  { %9093 = vmatmul.bf16.vlgmr.msra.gmra.mxu0 %v16424_v4  ;;  %v13067_v17 = vor.u32 %v14985_v39, %v13066_v36  ;;  %v12266_v18 = vld [vmem:[#allocation5 + $0xc8] sm:$0xf] }
 0x97e   :  { %9137 = vmatpush.bf16.msrb.mxu0 %v12651_v35  ;;  %9105 = vmatpush.bf16.msra.mxu1 %v13703_v21  ;;  %v14785_v34 = vld [vmem:[#allocation5 + $0xe4] sm:$0xf0] }
 0x97f   :  { %9119 = vmatmul.bf16.vlgmr.msra.gmra.mxu2 %v16420_v7  ;;  %v12522_v31 = vld [vmem:[#allocation5 + $0x2c8] sm:$0xf]  ;;  %v12267_v62 = vor.u32 %v14785_v34, %v12266_v18  ;;  %v5821_v18 = vpop.f32.mrf.mxu1 }
 0x980   :  { %9163 = vmatpush.bf16.msrb.mxu2 %v13163_v57  ;;  %9125 = vmatpush.bf16.msra.mxu3 %v12363_v61  ;;  %v14849_v56 = vld [vmem:[#allocation5 + $0x2e4] sm:$0xf0] }
 0x981   :  { %9106 = vmatmul.bf16.vlgmr.msra.gmra.mxu1 %v16429_v48  ;;  %v14977_v44 = vld [vmem:[#allocation5 + $0x6e4] sm:$0xf0]  ;;  %v12523_v45 = vor.u32 %v14849_v56, %v12522_v31 }
 0x982   :  { %9150 = vmatpush.bf16.msrb.mxu1 %v12907_v59  ;;  %9138 = vmatpush.bf16.msrb.mxu0 %v12619_v24  ;;  %v12778_v35 = vld [vmem:[#allocation5 + $0x4c8] sm:$0xf]  ;;  %v13035_v2 = vor.u32 %v14977_v44, %v13034_v29 }
 0x983   :  { %v14913_v57 = vld [vmem:[#allocation5 + $0x4e4] sm:$0xf0] }
 0x984   :  { %9164 = vmatpush.bf16.msrb.mxu2 %v13131_v6  ;;  %9126 = vmatpush.bf16.msra.mxu3 %v12331_v15  ;;  %v12234_v50 = vld [vmem:[#allocation5 + $0x88] sm:$0xf]  ;;  %v12779_v53 = vor.u32 %v14913_v57, %v12778_v35  ;;  %v5794_v6 = vadd.f32 %v5793_v1, %v16441_v38  ;;  %v5795_v35 = vpop.f32.mrf.mxu3 }
 0x985   :  { %v14777_v21 = vld [vmem:[#allocation5 + $0xa4] sm:$0xf0] }
 0x986   :  { %9151 = vmatpush.bf16.msrb.mxu1 %v12875_v63  ;;  %9139 = vmatpush.bf16.msrb.mxu0 %v12587_v30  ;;  %v12490_v52 = vld [vmem:[#allocation5 + $0x288] sm:$0xf]  ;;  %v12235_v24 = vor.u32 %v14777_v21, %v12234_v50  ;;  %v5807_v19 = vadd.f32 %v5806_v10, %v5794_v6  ;;  %v5834_v21 = vpop.f32.mrf.mxu2 }
 0x987   :  { %v14841_v54 = vld [vmem:[#allocation5 + $0x2a4] sm:$0xf0] }
 0x988   :  { %9165 = vmatpush.bf16.msrb.mxu2 %v13099_v23  ;;  %9127 = vmatpush.bf16.msra.mxu3 %v12299_v5  ;;  %v13002_v59 = vld [vmem:[#allocation5 + $0x688] sm:$0xf]  ;;  %v12491_v33 = vor.u32 %v14841_v54, %v12490_v52  ;;  %v5820_v37 = vadd.f32 %v5819_v12, %v5807_v19 }
 0x989   :  { %v14969_v61 = vld [vmem:[#allocation5 + $0x6a4] sm:$0xf0] }
 0x98a   :  { %9152 = vmatpush.bf16.msrb.mxu1 %v12843_v49  ;;  %9140 = vmatpush.bf16.msrb.mxu0 %v12555_v60  ;;  %v12746_v25 = vld [vmem:[#allocation5 + $0x488] sm:$0xf]  ;;  %v13003_v46 = vor.u32 %v14969_v61, %v13002_v59  ;;  %v16448_v34 = vadd.f32 %v5832_v13, %v5820_v37 }
 0x98b   :  { %v14905_v9 = vld [vmem:[#allocation5 + $0x4a4] sm:$0xf0] }
 0x98c   :  { %9166 = vmatpush.bf16.msrb.mxu2 %v13067_v17  ;;  %9128 = vmatpush.bf16.msra.mxu3 %v12267_v62  ;;  %v12202_v26 = vld [vmem:[#allocation5 + $0x48] sm:$0xf]  ;;  %v12747_v20 = vor.u32 %v14905_v9, %v12746_v25 }
 0x98d   :  { %v14769_v63 = vld [vmem:[#allocation5 + $0x64] sm:$0xf0] }
 0x98e   :  { %9153 = vmatpush.bf16.msrb.mxu1 %v12811_v41  ;;  %9141 = vmatpush.bf16.msrb.mxu0 %v12523_v45  ;;  %v12458_v15 = vld [vmem:[#allocation5 + $0x248] sm:$0xf]  ;;  %v12203_v38 = vor.u32 %v14769_v63, %v12202_v26 }
 0x98f   :  { %v14833_v28 = vld [vmem:[#allocation5 + $0x264] sm:$0xf0] }
 0x990   :  { %9167 = vmatpush.bf16.msrb.mxu2 %v13035_v2  ;;  %v12970_v30 = vld [vmem:[#allocation5 + $0x648] sm:$0xf]  ;;  %9129 = vmatpush.bf16.msra.mxu3 %v12235_v24  ;;  %v12459_v5 = vor.u32 %v14833_v28, %v12458_v15 }
 0x991   :  { %v14961_v23 = vld [vmem:[#allocation5 + $0x664] sm:$0xf0] }
 0x992   :  { %9154 = vmatpush.bf16.msrb.mxu1 %v12779_v53  ;;  %v12714_v8 = vld [vmem:[#allocation5 + $0x448] sm:$0xf]  ;;  %9142 = vmatpush.bf16.msrb.mxu0 %v12491_v33  ;;  %v12971_v16 = vor.u32 %v14961_v23, %v12970_v30 }
 0x993   :  { %v14897_v36 = vld [vmem:[#allocation5 + $0x464] sm:$0xf0] }
 0x994   :  { %v12170_v39 = vld [vmem:[#allocation5 + $0x8] sm:$0xf]  ;;  %9168 = vmatpush.bf16.msrb.mxu2 %v13003_v46  ;;  %v12715_v44 = vor.u32 %v14897_v36, %v12714_v8  ;;  %9130 = vmatpush.bf16.msra.mxu3 %v12203_v38 }
 0x995   :  { %v14761_v49 = vld [vmem:[#allocation5 + $0x24] sm:$0xf0] }
 0x996   :  { %v12426_v43 = vld [vmem:[#allocation5 + $0x208] sm:$0xf]  ;;  %9155 = vmatpush.bf16.msrb.mxu1 %v12747_v20  ;;  %v12171_v57 = vor.u32 %v14761_v49, %v12170_v39  ;;  %9143 = vmatpush.bf16.msrb.mxu0 %v12459_v5 }
 0x997   :  { %v14825_v60 = vld [vmem:[#allocation5 + $0x224] sm:$0xf0] }
 0x998   :  { %v12938_v17 = vld [vmem:[#allocation5 + $0x608] sm:$0xf]  ;;  %9169 = vmatpush.bf16.msrb.mxu2 %v12971_v16  ;;  %v12427_v52 = vor.u32 %v14825_v60, %v12426_v43  ;;  %9131 = vmatpush.bf16.msra.mxu3 %v12171_v57 }
 0x999   :  { %v14953_v31 = vld [vmem:[#allocation5 + $0x624] sm:$0xf0] }
 0x99a   :  { %v13418_v56 = vld [vmem:[#allocation5 + $0x9c8] sm:$0xf]  ;;  %v12939_v12 = vor.u32 %v14953_v31, %v12938_v17  ;;  %9156 = vmatpush.bf16.msrb.mxu1 %v12715_v44  ;;  %9144 = vmatpush.bf16.msrb.mxu0 %v12427_v52 }
 0x99b   :  { %v15073_v29 = vld [vmem:[#allocation5 + $0x9e4] sm:$0xf0]  ;;  %9132 = vmatmul.bf16.vlgmr.msra.gmra.mxu3 %v16394_v3 }
 0x99c   :  { %v13674_v41 = vld [vmem:[#allocation5 + $0xbc8] sm:$0xf]  ;;  %v13419_v61 = vor.u32 %v15073_v29, %v13418_v56  ;;  %9170 = vmatpush.bf16.msrb.mxu2 %v12939_v12 }
 0x99d   :  { %v15137_v10 = vld [vmem:[#allocation5 + $0xbe4] sm:$0xf0]  ;;  %9145 = vmatmul.bf16.vlgmr.msrb.gmra.mxu0 %v16402_v55 }
 0x99e   :  { %v14186_v62 = vld [vmem:[#allocation5 + $0xfc8] sm:$0xf]  ;;  %v13675_v53 = vor.u32 %v15137_v10, %v13674_v41  ;;  %9176 = vmatpush.bf16.msrb.mxu3 %v13419_v61 }
 0x99f   :  { %v15265_v45 = vld [vmem:[#allocation5 + $0xfe4] sm:$0xf0]  ;;  %9171 = vmatmul.bf16.vlgmr.msrb.gmra.mxu2 %v16398_v40 }
 0x9a0   :  { %v12682_v2 = vld [vmem:[#allocation5 + $0x408] sm:$0xf]  ;;  %v14187_v24 = vor.u32 %v15265_v45, %v14186_v62  ;;  %9189 = vmatpush.bf16.msra.mxu0 %v13675_v53 }
 0x9a1   :  { %v14889_v50 = vld [vmem:[#allocation5 + $0x424] sm:$0xf0] }
 0x9a2   :  { %v13930_v54 = vld [vmem:[#allocation5 + $0xdc8] sm:$0xf]  ;;  %v12683_v6 = vor.u32 %v14889_v50, %v12682_v2  ;;  %9215 = vmatpush.bf16.msra.mxu2 %v14187_v24 }
 0x9a3   :  { %v15201_v59 = vld [vmem:[#allocation5 + $0xde4] sm:$0xf0] }
 0x9a4   :  { %v13386_v1 = vld [vmem:[#allocation5 + $0x988] sm:$0xf]  ;;  %v13931_v33 = vor.u32 %v15201_v59, %v13930_v54  ;;  %9157 = vmatpush.bf16.msrb.mxu1 %v12683_v6  ;;  %v8938_v59 = vpop.f32.mrf.mxu0 }
 0x9a5   :  { %v15065_v25 = vld [vmem:[#allocation5 + $0x9a4] sm:$0xf0] }
 0x9a6   :  { %v13642_v9 = vld [vmem:[#allocation5 + $0xb88] sm:$0xf]  ;;  %v13387_v19 = vor.u32 %v15065_v25, %v13386_v1  ;;  %v8951_v25 = vpop.f32.mrf.mxu1 }
 0x9a7   :  { %v15129_v13 = vld [vmem:[#allocation5 + $0xba4] sm:$0xf0]  ;;  %9158 = vmatmul.bf16.vlgmr.msrb.gmra.mxu1 %v16406_v42 }
 0x9a8   :  { %v14154_v46 = vld [vmem:[#allocation5 + $0xf88] sm:$0xf]  ;;  %v13643_v28 = vor.u32 %v15129_v13, %v13642_v9  ;;  %9202 = vmatpush.bf16.msra.mxu1 %v13931_v33  ;;  %9177 = vmatpush.bf16.msrb.mxu3 %v13387_v19 }
 0x9a9   :  { %v15257_v26 = vld [vmem:[#allocation5 + $0xfa4] sm:$0xf0] }
 0x9aa   :  { %v13898_v63 = vld [vmem:[#allocation5 + $0xd88] sm:$0xf]  ;;  %v14155_v23 = vor.u32 %v15257_v26, %v14154_v46  ;;  %9190 = vmatpush.bf16.msra.mxu0 %v13643_v28 }
 0x9ab   :  { %v15193_v15 = vld [vmem:[#allocation5 + $0xda4] sm:$0xf0] }
 0x9ac   :  { %v13354_v30 = vld [vmem:[#allocation5 + $0x948] sm:$0xf]  ;;  %v13899_v38 = vor.u32 %v15193_v15, %v13898_v63  ;;  %9216 = vmatpush.bf16.msra.mxu2 %v14155_v23 }
 0x9ad   :  { %v15057_v20 = vld [vmem:[#allocation5 + $0x964] sm:$0xf0] }
 0x9ae   :  { %v13610_v8 = vld [vmem:[#allocation5 + $0xb48] sm:$0xf]  ;;  %v13355_v5 = vor.u32 %v15057_v20, %v13354_v30  ;;  %9203 = vmatpush.bf16.msra.mxu1 %v13899_v38  ;;  %v8925_v30 = vpop.f32.mrf.mxu3  ;;  %v8964_v38 = vpop.f32.mrf.mxu2 }
 0x9af   :  { %v15121_v11 = vld [vmem:[#allocation5 + $0xb64] sm:$0xf0] }
 0x9b0   :  { %v14122_v37 = vld [vmem:[#allocation5 + $0xf48] sm:$0xf]  ;;  %v13611_v16 = vor.u32 %v15121_v11, %v13610_v8  ;;  %9178 = vmatpush.bf16.msrb.mxu3 %v13355_v5  ;;  %v8939_v11 = vadd.f32 %v8938_v59, %v8925_v30  ;;  %v12652_v59 = vld [vmem:[#allocation5 + $0x3e8] sm:$0xf0] }
 0x9b1   :  { %v15249_v36 = vld [vmem:[#allocation5 + $0xf64] sm:$0xf0]  ;;  %v12364_v30 = vld [vmem:[#allocation5 + $0x1a8] sm:$0xf0] }
 0x9b2   :  { %v13866_v39 = vld [vmem:[#allocation5 + $0xd48] sm:$0xf]  ;;  %v14123_v60 = vor.u32 %v15249_v36, %v14122_v37  ;;  %9191 = vmatpush.bf16.msra.mxu0 %v13611_v16 }
 0x9b3   :  { %v15185_v49 = vld [vmem:[#allocation5 + $0xd64] sm:$0xf0] }
 0x9b4   :  { %v13322_v43 = vld [vmem:[#allocation5 + $0x908] sm:$0xf]  ;;  %v13867_v56 = vor.u32 %v15185_v49, %v13866_v39  ;;  %9217 = vmatpush.bf16.msra.mxu2 %v14123_v60  ;;  %v8952_v60 = vadd.f32 %v8951_v25, %v8939_v11  ;;  %v14997_v11 = vld [vmem:[#allocation5 + $0x78c] sm:$0xf] }
 0x9b5   :  { %v15049_v17 = vld [vmem:[#allocation5 + $0x924] sm:$0xf0] }
 0x9b6   :  { %v13578_v18 = vld [vmem:[#allocation5 + $0xb08] sm:$0xf]  ;;  %v13323_v62 = vor.u32 %v15049_v17, %v13322_v43  ;;  %9204 = vmatpush.bf16.msra.mxu1 %v13867_v56  ;;  %v8940_v17 = vpop.f32.mrf.mxu0 }
 0x9b7   :  { %v15113_v31 = vld [vmem:[#allocation5 + $0xb24] sm:$0xf0]  ;;  %v14861_v17 = vld [vmem:[#allocation5 + $0x34c] sm:$0xf] }
 0x9b8   :  { %v14090_v29 = vld [vmem:[#allocation5 + $0xf08] sm:$0xf]  ;;  %v13579_v35 = vor.u32 %v15113_v31, %v13578_v18  ;;  %9179 = vmatpush.bf16.msrb.mxu3 %v13323_v62  ;;  %v16454_v62 = vadd.f32 %v8964_v38, %v8952_v60  ;;  %v13132_v38 = vld [vmem:[#allocation5 + $0x7a8] sm:$0xf0] }
 0x9b9   :  { %v15241_v44 = vld [vmem:[#allocation5 + $0xf24] sm:$0xf0]  ;;  %v12332_v60 = vld [vmem:[#allocation5 + $0x168] sm:$0xf0] }
 0x9ba   :  { %v13834_v41 = vld [vmem:[#allocation5 + $0xd08] sm:$0xf]  ;;  %v14091_v45 = vor.u32 %v15241_v44, %v14090_v29  ;;  %9192 = vmatpush.bf16.msra.mxu0 %v13579_v35  ;;  %v8953_v35 = vpop.f32.mrf.mxu1 }
 0x9bb   :  { %v15177_v10 = vld [vmem:[#allocation5 + $0xd24] sm:$0xf0] }
 0x9bc   :  { %v13290_v57 = vld [vmem:[#allocation5 + $0x8c8] sm:$0xf]  ;;  %v13835_v52 = vor.u32 %v15177_v10, %v13834_v41  ;;  %9218 = vmatpush.bf16.msra.mxu2 %v14091_v45 }
 0x9bd   :  { %v15041_v2 = vld [vmem:[#allocation5 + $0x8e4] sm:$0xf0] }
 0x9be   :  { %v13546_v50 = vld [vmem:[#allocation5 + $0xac8] sm:$0xf]  ;;  %v13291_v1 = vor.u32 %v15041_v2, %v13290_v57  ;;  %9205 = vmatpush.bf16.msra.mxu1 %v13835_v52  ;;  %v14813_v52 = vld [vmem:[#allocation5 + $0x1cc] sm:$0xf] }
 0x9bf   :  { %v15105_v21 = vld [vmem:[#allocation5 + $0xae4] sm:$0xf0] }
 0x9c0   :  { %v14058_v12 = vld [vmem:[#allocation5 + $0xec8] sm:$0xf]  ;;  %v13547_v24 = vor.u32 %v15105_v21, %v13546_v50  ;;  %9180 = vmatpush.bf16.msrb.mxu3 %v13291_v1  ;;  %v8927_v1 = vpop.f32.mrf.mxu3 }
 0x9c1   :  { %v15233_v54 = vld [vmem:[#allocation5 + $0xee4] sm:$0xf0] }
 0x9c2   :  { %v13802_v61 = vld [vmem:[#allocation5 + $0xcc8] sm:$0xf]  ;;  %v14059_v9 = vor.u32 %v15233_v54, %v14058_v12  ;;  %9193 = vmatpush.bf16.msra.mxu0 %v13547_v24  ;;  %v12396_v12 = vld [vmem:[#allocation5 + $0x1e8] sm:$0xf0] }
 0x9c3   :  { %v15169_v53 = vld [vmem:[#allocation5 + $0xce4] sm:$0xf0]  ;;  %v14877_v54 = vld [vmem:[#allocation5 + $0x3cc] sm:$0xf] }
 0x9c4   :  { %v13258_v6 = vld [vmem:[#allocation5 + $0x888] sm:$0xf]  ;;  %v13803_v26 = vor.u32 %v15169_v53, %v13802_v61  ;;  %9219 = vmatpush.bf16.msra.mxu2 %v14059_v9  ;;  %v15005_v61 = vld [vmem:[#allocation5 + $0x7cc] sm:$0xf] }
 0x9c5   :  { %v15033_v13 = vld [vmem:[#allocation5 + $0x8a4] sm:$0xf0]  ;;  %v13164_v53 = vld [vmem:[#allocation5 + $0x7e8] sm:$0xf0] }
 0x9c6   :  { %v13514_v33 = vld [vmem:[#allocation5 + $0xa88] sm:$0xf]  ;;  %v13259_v23 = vor.u32 %v15033_v13, %v13258_v6  ;;  %9206 = vmatpush.bf16.msra.mxu1 %v13803_v26  ;;  %v8966_v13 = vpop.f32.mrf.mxu2  ;;  %v14941_v26 = vld [vmem:[#allocation5 + $0x5cc] sm:$0xf] }
 0x9c7   :  { %v15097_v46 = vld [vmem:[#allocation5 + $0xaa4] sm:$0xf0]  ;;  %v12524_v13 = vld [vmem:[#allocation5 + $0x2e8] sm:$0xf0] }
 0x9c8   :  { %v14026_v63 = vld [vmem:[#allocation5 + $0xe88] sm:$0xf]  ;;  %v13515_v20 = vor.u32 %v15097_v46, %v13514_v33  ;;  %9181 = vmatpush.bf16.msrb.mxu3 %v13259_v23  ;;  %v12399_v46 = vor.u32 %v14813_v52, %v12396_v12  ;;  %v14869_v23 = vld [vmem:[#allocation5 + $0x38c] sm:$0xf] }
 0x9c9   :  { %v15225_v15 = vld [vmem:[#allocation5 + $0xea4] sm:$0xf0]  ;;  %v14981_v52 = vld [vmem:[#allocation5 + $0x70c] sm:$0xf] }
 0x9ca   :  { %v13770_v19 = vld [vmem:[#allocation5 + $0xc88] sm:$0xf]  ;;  %v14027_v37 = vor.u32 %v15225_v15, %v14026_v63  ;;  %9194 = vmatpush.bf16.msra.mxu0 %v13515_v20  ;;  %v12908_v63 = vld [vmem:[#allocation5 + $0x5e8] sm:$0xf0]  ;;  %v12655_v15 = vor.u32 %v14877_v54, %v12652_v59 }
 0x9cb   :  { %v15161_v28 = vld [vmem:[#allocation5 + $0xca4] sm:$0xf0]  ;;  %v13068_v12 = vld [vmem:[#allocation5 + $0x728] sm:$0xf0] }
 0x9cc   :  { %v13226_v8 = vld [vmem:[#allocation5 + $0x848] sm:$0xf]  ;;  %v13771_v5 = vor.u32 %v15161_v28, %v13770_v19  ;;  %9220 = vmatpush.bf16.msra.mxu2 %v14027_v37  ;;  %v13167_v19 = vor.u32 %v15005_v61, %v13164_v53  ;;  %v14805_v28 = vld [vmem:[#allocation5 + $0x18c] sm:$0xf]  ;;  %v12911_v37 = vor.u32 %v14941_v26, %v12908_v63  ;;  %v8990_v63 = vpop.f32.mrf.mxu0 }
 0x9cd   :  { %v15025_v36 = vld [vmem:[#allocation5 + $0x864] sm:$0xf0]  ;;  %v14917_v61 = vld [vmem:[#allocation5 + $0x50c] sm:$0xf] }
 0x9ce   :  { %v13482_v39 = vld [vmem:[#allocation5 + $0xa48] sm:$0xf]  ;;  %v13227_v56 = vor.u32 %v15025_v36, %v13226_v8  ;;  %9207 = vmatpush.bf16.msra.mxu1 %v13771_v5  ;;  %v12620_v8 = vld [vmem:[#allocation5 + $0x3a8] sm:$0xf0]  ;;  %v12367_v36 = vor.u32 %v14805_v28, %v12364_v30 }
 0x9cf   :  { %v15089_v49 = vld [vmem:[#allocation5 + $0xa64] sm:$0xf0]  ;;  %v12623_v5 = vor.u32 %v14869_v23, %v12620_v8  ;;  %v12812_v53 = vld [vmem:[#allocation5 + $0x528] sm:$0xf0] }
 0x9d0   :  { %v13994_v16 = vld [vmem:[#allocation5 + $0xe48] sm:$0xf]  ;;  %v13483_v29 = vor.u32 %v15089_v49, %v13482_v39  ;;  %9182 = vmatpush.bf16.msrb.mxu3 %v13227_v56  ;;  %v14933_v39 = vld [vmem:[#allocation5 + $0x58c] sm:$0xf]  ;;  %v12815_v26 = vor.u32 %v14917_v61, %v12812_v53 }
 0x9d1   :  { %v15217_v43 = vld [vmem:[#allocation5 + $0xe64] sm:$0xf0]  ;;  %v12876_v49 = vld [vmem:[#allocation5 + $0x5a8] sm:$0xf0] }
 0x9d2   :  { %v13738_v18 = vld [vmem:[#allocation5 + $0xc48] sm:$0xf]  ;;  %v13995_v57 = vor.u32 %v15217_v43, %v13994_v16  ;;  %9195 = vmatpush.bf16.msra.mxu0 %v13483_v29  ;;  %v13135_v16 = vor.u32 %v14997_v11, %v13132_v38  ;;  %v14797_v43 = vld [vmem:[#allocation5 + $0x14c] sm:$0xf]  ;;  %v12879_v29 = vor.u32 %v14933_v39, %v12876_v49  ;;  %v9003_v38 = vpop.f32.mrf.mxu1  ;;  %v8977_v49 = vpop.f32.mrf.mxu3 }
 0x9d3   :  { %v15153_v31 = vld [vmem:[#allocation5 + $0xc64] sm:$0xf0]  ;;  %v13100_v56 = vld [vmem:[#allocation5 + $0x768] sm:$0xf0] }
 0x9d4   :  { %v13194_v44 = vld [vmem:[#allocation5 + $0x808] sm:$0xf]  ;;  %v13739_v21 = vor.u32 %v15153_v31, %v13738_v18  ;;  %9221 = vmatpush.bf16.msra.mxu2 %v13995_v57  ;;  %v12588_v18 = vld [vmem:[#allocation5 + $0x368] sm:$0xf0] }
 0x9d5   :  { %v15017_v41 = vld [vmem:[#allocation5 + $0x824] sm:$0xf0]  ;;  %v14989_v31 = vld [vmem:[#allocation5 + $0x74c] sm:$0xf]  ;;  %v12591_v35 = vor.u32 %v14861_v17, %v12588_v18  ;;  %v9016_v18 = vpop.f32.mrf.mxu2 }
 0x9d6   :  { %v13450_v10 = vld [vmem:[#allocation5 + $0xa08] sm:$0xf]  ;;  %v13195_v24 = vor.u32 %v15017_v41, %v13194_v44  ;;  %9208 = vmatpush.bf16.msra.mxu1 %v13739_v21  ;;  %v12335_v44 = vor.u32 %v14797_v43, %v12332_v60  ;;  %v14925_v41 = vld [vmem:[#allocation5 + $0x54c] sm:$0xf]  ;;  %v13103_v57 = vor.u32 %v14989_v31, %v13100_v56 }
 0x9d7   :  { %v15081_v45 = vld [vmem:[#allocation5 + $0xa24] sm:$0xf0]  ;;  %v12556_v21 = vld [vmem:[#allocation5 + $0x328] sm:$0xf0] }
 0x9d8   :  { %v13962_v2 = vld [vmem:[#allocation5 + $0xe08] sm:$0xf]  ;;  %v13451_v6 = vor.u32 %v15081_v45, %v13450_v10  ;;  %9183 = vmatpush.bf16.msrb.mxu3 %v13195_v24  ;;  %v12844_v10 = vld [vmem:[#allocation5 + $0x568] sm:$0xf0]  ;;  %v13071_v24 = vor.u32 %v14981_v52, %v13068_v12 }
 0x9d9   :  { %v15209_v50 = vld [vmem:[#allocation5 + $0xe24] sm:$0xf0]  ;;  %v14789_v45 = vld [vmem:[#allocation5 + $0x10c] sm:$0xf]  ;;  %v12847_v54 = vor.u32 %v14925_v41, %v12844_v10 }
 0x9da   :  { %v13706_v25 = vld [vmem:[#allocation5 + $0xc08] sm:$0xf]  ;;  %v13963_v33 = vor.u32 %v15209_v50, %v13962_v2  ;;  %9196 = vmatpush.bf16.msra.mxu0 %v13451_v6  ;;  %v12300_v2 = vld [vmem:[#allocation5 + $0x128] sm:$0xf0] }
 0x9db   :  { %v15145_v9 = vld [vmem:[#allocation5 + $0xc24] sm:$0xf0]  ;;  %9184 = vmatmul.bf16.vlgmr.msrb.gmra.mxu3 %v16416_v32  ;;  %v14853_v50 = vld [vmem:[#allocation5 + $0x30c] sm:$0xf]  ;;  %v12303_v59 = vor.u32 %v14789_v45, %v12300_v2  ;;  %v9748_v2 = vperm.slane %v16325_v47, 0 }
 0x9dc   :  { %v13707_v20 = vor.u32 %v15145_v9, %v13706_v25  ;;  %9222 = vmatpush.bf16.msra.mxu2 %v13963_v33  ;;  %9228 = vmatpush.bf16.msra.mxu3 %v12399_v46  ;;  %v12559_v1 = vor.u32 %v14853_v50, %v12556_v21  ;;  %v14781_v6 = vld [vmem:[#allocation5 + $0xcc] sm:$0xf]  ;;  %v8992_v21 = vpop.f32.mrf.mxu0 }
 0x9dd   :  { %9197 = vmatmul.bf16.vlgmr.msra.gmra.mxu0 %v16424_v4  ;;  %v12268_v25 = vld [vmem:[#allocation5 + $0xe8] sm:$0xf0] }
 0x9de   :  { %9241 = vmatpush.bf16.msrb.mxu0 %v12655_v15  ;;  %9209 = vmatpush.bf16.msra.mxu1 %v13707_v20  ;;  %v14845_v9 = vld [vmem:[#allocation5 + $0x2cc] sm:$0xf]  ;;  %v12271_v15 = vor.u32 %v14781_v6, %v12268_v25 }
 0x9df   :  { %9223 = vmatmul.bf16.vlgmr.msra.gmra.mxu2 %v16420_v7  ;;  %v14973_v33 = vld [vmem:[#allocation5 + $0x6cc] sm:$0xf]  ;;  %v12527_v30 = vor.u32 %v14845_v9, %v12524_v13  ;;  %v9005_v9 = vpop.f32.mrf.mxu1 }
 0x9e0   :  { %9267 = vmatpush.bf16.msrb.mxu2 %v13167_v19  ;;  %9229 = vmatpush.bf16.msra.mxu3 %v12367_v36  ;;  %v13036_v46 = vld [vmem:[#allocation5 + $0x6e8] sm:$0xf0] }
 0x9e1   :  { %9210 = vmatmul.bf16.vlgmr.msra.gmra.mxu1 %v16429_v48  ;;  %v14909_v19 = vld [vmem:[#allocation5 + $0x4cc] sm:$0xf]  ;;  %v13039_v23 = vor.u32 %v14973_v33, %v13036_v46 }
 0x9e2   :  { %9254 = vmatpush.bf16.msrb.mxu1 %v12911_v37  ;;  %9242 = vmatpush.bf16.msrb.mxu0 %v12623_v5  ;;  %v12780_v28 = vld [vmem:[#allocation5 + $0x4e8] sm:$0xf0] }
 0x9e3   :  { %v14773_v20 = vld [vmem:[#allocation5 + $0x8c] sm:$0xf]  ;;  %v12783_v5 = vor.u32 %v14909_v19, %v12780_v28  ;;  %v8979_v28 = vpop.f32.mrf.mxu3 }
 0x9e4   :  { %9268 = vmatpush.bf16.msrb.mxu2 %v13135_v16  ;;  %9230 = vmatpush.bf16.msra.mxu3 %v12335_v44  ;;  %v12236_v8 = vld [vmem:[#allocation5 + $0xa8] sm:$0xf0]  ;;  %v8978_v16 = vadd.f32 %v8977_v49, %v16454_v62 }
 0x9e5   :  { %v14837_v11 = vld [vmem:[#allocation5 + $0x28c] sm:$0xf]  ;;  %v12239_v43 = vor.u32 %v14773_v20, %v12236_v8 }
 0x9e6   :  { %9255 = vmatpush.bf16.msrb.mxu1 %v12879_v29  ;;  %9243 = vmatpush.bf16.msrb.mxu0 %v12591_v35  ;;  %v12492_v37 = vld [vmem:[#allocation5 + $0x2a8] sm:$0xf0]  ;;  %v8991_v10 = vadd.f32 %v8990_v63, %v8978_v16 }
 0x9e7   :  { %v14965_v36 = vld [vmem:[#allocation5 + $0x68c] sm:$0xf]  ;;  %v12495_v31 = vor.u32 %v14837_v11, %v12492_v37 }
 0x9e8   :  { %9269 = vmatpush.bf16.msrb.mxu2 %v13103_v57  ;;  %9231 = vmatpush.bf16.msra.mxu3 %v12303_v59  ;;  %v13004_v39 = vld [vmem:[#allocation5 + $0x6a8] sm:$0xf0]  ;;  %v9004_v52 = vadd.f32 %v9003_v38, %v8991_v10  ;;  %v9018_v38 = vpop.f32.mrf.mxu2 }
 0x9e9   :  { %v14901_v60 = vld [vmem:[#allocation5 + $0x48c] sm:$0xf]  ;;  %v13007_v56 = vor.u32 %v14965_v36, %v13004_v39 }
 0x9ea   :  { %9256 = vmatpush.bf16.msrb.mxu1 %v12847_v54  ;;  %9244 = vmatpush.bf16.msrb.mxu0 %v12559_v1  ;;  %v12748_v17 = vld [vmem:[#allocation5 + $0x4a8] sm:$0xf0]  ;;  %v9017_v13 = vadd.f32 %v9016_v18, %v9004_v52 }
 0x9eb   :  { %v14765_v29 = vld [vmem:[#allocation5 + $0x4c] sm:$0xf]  ;;  %v12751_v50 = vor.u32 %v14901_v60, %v12748_v17 }
 0x9ec   :  { %9270 = vmatpush.bf16.msrb.mxu2 %v13071_v24  ;;  %9232 = vmatpush.bf16.msra.mxu3 %v12271_v15  ;;  %v12204_v44 = vld [vmem:[#allocation5 + $0x68] sm:$0xf0] }
 0x9ed   :  { %v14829_v41 = vld [vmem:[#allocation5 + $0x24c] sm:$0xf]  ;;  %v12207_v12 = vor.u32 %v14765_v29, %v12204_v44 }
 0x9ee   :  { %9257 = vmatpush.bf16.msrb.mxu1 %v12815_v26  ;;  %9245 = vmatpush.bf16.msrb.mxu0 %v12527_v30  ;;  %v12460_v35 = vld [vmem:[#allocation5 + $0x268] sm:$0xf0]  ;;  %v16462_v30 = vadd.f32 %v9748_v2, %v9017_v13 }
 0x9ef   :  { %v14957_v57 = vld [vmem:[#allocation5 + $0x64c] sm:$0xf]  ;;  %v12463_v53 = vor.u32 %v14829_v41, %v12460_v35 }
 0x9f0   :  { %9271 = vmatpush.bf16.msrb.mxu2 %v13039_v23  ;;  %v12972_v45 = vld [vmem:[#allocation5 + $0x668] sm:$0xf0]  ;;  %9233 = vmatpush.bf16.msra.mxu3 %v12239_v43 }
 0x9f1   :  { %v14893_v62 = vld [vmem:[#allocation5 + $0x44c] sm:$0xf]  ;;  %v12975_v1 = vor.u32 %v14957_v57, %v12972_v45 }
 0x9f2   :  { %9258 = vmatpush.bf16.msrb.mxu1 %v12783_v5  ;;  %v12716_v54 = vld [vmem:[#allocation5 + $0x468] sm:$0xf0]  ;;  %9246 = vmatpush.bf16.msrb.mxu0 %v12495_v31 }
 0x9f3   :  { %v14757_v59 = vld [vmem:[#allocation5 + $0xc] sm:$0xf]  ;;  %v12719_v26 = vor.u32 %v14893_v62, %v12716_v54 }
 0x9f4   :  { %v12172_v61 = vld [vmem:[#allocation5 + $0x28] sm:$0xf0]  ;;  %9272 = vmatpush.bf16.msrb.mxu2 %v13007_v56  ;;  %9234 = vmatpush.bf16.msra.mxu3 %v12207_v12 }
 0x9f5   :  { %v14821_v24 = vld [vmem:[#allocation5 + $0x20c] sm:$0xf]  ;;  %v12175_v23 = vor.u32 %v14757_v59, %v12172_v61 }
 0x9f6   :  { %v12428_v6 = vld [vmem:[#allocation5 + $0x228] sm:$0xf0]  ;;  %9259 = vmatpush.bf16.msrb.mxu1 %v12751_v50  ;;  %9247 = vmatpush.bf16.msrb.mxu0 %v12463_v53 }
 0x9f7   :  { %v14949_v25 = vld [vmem:[#allocation5 + $0x60c] sm:$0xf]  ;;  %v12431_v37 = vor.u32 %v14821_v24, %v12428_v6 }
 0x9f8   :  { %v12940_v47 = vld [vmem:[#allocation5 + $0x628] sm:$0xf0]  ;;  %9273 = vmatpush.bf16.msrb.mxu2 %v12975_v1  ;;  %9235 = vmatpush.bf16.msra.mxu3 %v12175_v23 }
 0x9f9   :  { %v15069_v33 = vld [vmem:[#allocation5 + $0x9cc] sm:$0xf]  ;;  %v12943_v36 = vor.u32 %v14949_v25, %v12940_v47 }
 0x9fa   :  { %v13420_v46 = vld [vmem:[#allocation5 + $0x9e8] sm:$0xf0]  ;;  %9260 = vmatpush.bf16.msrb.mxu1 %v12719_v26  ;;  %9248 = vmatpush.bf16.msrb.mxu0 %v12431_v37 }
 0x9fb   :  { %v15133_v63 = vld [vmem:[#allocation5 + $0xbcc] sm:$0xf]  ;;  %v13423_v5 = vor.u32 %v15069_v33, %v13420_v46  ;;  %9236 = vmatmul.bf16.vlgmr.msra.gmra.mxu3 %v16394_v3 }
 0x9fc   :  { %v13676_v15 = vld [vmem:[#allocation5 + $0xbe8] sm:$0xf0]  ;;  %9274 = vmatpush.bf16.msrb.mxu2 %v12943_v36 }
 0x9fd   :  { %v15261_v19 = vld [vmem:[#allocation5 + $0xfcc] sm:$0xf]  ;;  %v13679_v16 = vor.u32 %v15133_v63, %v13676_v15  ;;  %9280 = vmatpush.bf16.msrb.mxu3 %v13423_v5  ;;  %9249 = vmatmul.bf16.vlgmr.msrb.gmra.mxu0 %v16402_v55 }
 0x9fe   :  { %v14188_v20 = vld [vmem:[#allocation5 + $0xfe8] sm:$0xf0] }
 0x9ff   :  { %v14885_v8 = vld [vmem:[#allocation5 + $0x40c] sm:$0xf]  ;;  %v14191_v60 = vor.u32 %v15261_v19, %v14188_v20  ;;  %9293 = vmatpush.bf16.msra.mxu0 %v13679_v16  ;;  %9275 = vmatmul.bf16.vlgmr.msrb.gmra.mxu2 %v16398_v40 }
 0xa00   :  { %v12684_v11 = vld [vmem:[#allocation5 + $0x428] sm:$0xf0] }
 0xa01   :  { %v15197_v39 = vld [vmem:[#allocation5 + $0xdcc] sm:$0xf]  ;;  %v12687_v17 = vor.u32 %v14885_v8, %v12684_v11  ;;  %9319 = vmatpush.bf16.msra.mxu2 %v14191_v60 }
 0xa02   :  { %v13932_v49 = vld [vmem:[#allocation5 + $0xde8] sm:$0xf0] }
 0xa03   :  { %v15061_v43 = vld [vmem:[#allocation5 + $0x98c] sm:$0xf]  ;;  %v13935_v29 = vor.u32 %v15197_v39, %v13932_v49  ;;  %9261 = vmatpush.bf16.msrb.mxu1 %v12687_v17  ;;  %v9042_v49 = vpop.f32.mrf.mxu0 }
 0xa04   :  { %v13388_v18 = vld [vmem:[#allocation5 + $0x9a8] sm:$0xf0] }
 0xa05   :  { %v15125_v31 = vld [vmem:[#allocation5 + $0xb8c] sm:$0xf]  ;;  %v13391_v57 = vor.u32 %v15061_v43, %v13388_v18  ;;  %v9055_v18 = vpop.f32.mrf.mxu1 }
 0xa06   :  { %v13644_v56 = vld [vmem:[#allocation5 + $0xba8] sm:$0xf0]  ;;  %9262 = vmatmul.bf16.vlgmr.msrb.gmra.mxu1 %v16406_v42 }
 0xa07   :  { %v15253_v44 = vld [vmem:[#allocation5 + $0xf8c] sm:$0xf]  ;;  %v13647_v45 = vor.u32 %v15125_v31, %v13644_v56  ;;  %9306 = vmatpush.bf16.msra.mxu1 %v13935_v29  ;;  %9281 = vmatpush.bf16.msrb.mxu3 %v13391_v57 }
 0xa08   :  { %v14156_v41 = vld [vmem:[#allocation5 + $0xfa8] sm:$0xf0] }
 0xa09   :  { %v15189_v10 = vld [vmem:[#allocation5 + $0xd8c] sm:$0xf]  ;;  %v14159_v50 = vor.u32 %v15253_v44, %v14156_v41  ;;  %9294 = vmatpush.bf16.msra.mxu0 %v13647_v45 }
 0xa0a   :  { %v13900_v35 = vld [vmem:[#allocation5 + $0xda8] sm:$0xf0] }
 0xa0b   :  { %v15053_v2 = vld [vmem:[#allocation5 + $0x94c] sm:$0xf]  ;;  %v13903_v12 = vor.u32 %v15189_v10, %v13900_v35  ;;  %9320 = vmatpush.bf16.msra.mxu2 %v14159_v50 }
 0xa0c   :  { %v13356_v62 = vld [vmem:[#allocation5 + $0x968] sm:$0xf0] }
 0xa0d   :  { %v15117_v21 = vld [vmem:[#allocation5 + $0xb4c] sm:$0xf]  ;;  %v13359_v1 = vor.u32 %v15053_v2, %v13356_v62  ;;  %9307 = vmatpush.bf16.msra.mxu1 %v13903_v12  ;;  %v9029_v2 = vpop.f32.mrf.mxu3  ;;  %v9068_v12 = vpop.f32.mrf.mxu2 }
 0xa0e   :  { %v13612_v52 = vld [vmem:[#allocation5 + $0xb68] sm:$0xf0] }
 0xa0f   :  { %v15245_v54 = vld [vmem:[#allocation5 + $0xf4c] sm:$0xf]  ;;  %v13615_v24 = vor.u32 %v15117_v21, %v13612_v52  ;;  %9282 = vmatpush.bf16.msrb.mxu3 %v13359_v1  ;;  %v9043_v52 = vadd.f32 %v9042_v49, %v9029_v2  ;;  %v14882_v49 = vld [vmem:[#allocation5 + $0x3ec] sm:$0xf0] }
 0xa10   :  { %v14124_v59 = vld [vmem:[#allocation5 + $0xf68] sm:$0xf0]  ;;  %v14810_v2 = vld [vmem:[#allocation5 + $0x1ac] sm:$0xf0] }
 0xa11   :  { %v15181_v61 = vld [vmem:[#allocation5 + $0xd4c] sm:$0xf]  ;;  %v14127_v25 = vor.u32 %v15245_v54, %v14124_v59  ;;  %9295 = vmatpush.bf16.msra.mxu0 %v13615_v24 }
 0xa12   :  { %v13868_v53 = vld [vmem:[#allocation5 + $0xd68] sm:$0xf0] }
 0xa13   :  { %v15045_v6 = vld [vmem:[#allocation5 + $0x90c] sm:$0xf]  ;;  %v13871_v33 = vor.u32 %v15181_v61, %v13868_v53  ;;  %9321 = vmatpush.bf16.msra.mxu2 %v14127_v25  ;;  %v9056_v25 = vadd.f32 %v9055_v18, %v9043_v52  ;;  %v13138_v52 = vld [vmem:[#allocation5 + $0x790] sm:$0xf] }
 0xa14   :  { %v13324_v9 = vld [vmem:[#allocation5 + $0x928] sm:$0xf0] }
 0xa15   :  { %v15109_v13 = vld [vmem:[#allocation5 + $0xb0c] sm:$0xf]  ;;  %v13327_v19 = vor.u32 %v15045_v6, %v13324_v9  ;;  %9308 = vmatpush.bf16.msra.mxu1 %v13871_v33  ;;  %v9044_v9 = vpop.f32.mrf.mxu0 }
 0xa16   :  { %v13580_v47 = vld [vmem:[#allocation5 + $0xb28] sm:$0xf0]  ;;  %v12594_v9 = vld [vmem:[#allocation5 + $0x350] sm:$0xf] }
 0xa17   :  { %v15237_v46 = vld [vmem:[#allocation5 + $0xf0c] sm:$0xf]  ;;  %v13583_v28 = vor.u32 %v15109_v13, %v13580_v47  ;;  %9283 = vmatpush.bf16.msrb.mxu3 %v13327_v19  ;;  %v16468_v19 = vadd.f32 %v9068_v12, %v9056_v25  ;;  %v15002_v12 = vld [vmem:[#allocation5 + $0x7ac] sm:$0xf0] }
 0xa18   :  { %v14092_v26 = vld [vmem:[#allocation5 + $0xf28] sm:$0xf0]  ;;  %v14802_v25 = vld [vmem:[#allocation5 + $0x16c] sm:$0xf0] }
 0xa19   :  { %v15173_v63 = vld [vmem:[#allocation5 + $0xd0c] sm:$0xf]  ;;  %v14095_v20 = vor.u32 %v15237_v46, %v14092_v26  ;;  %9296 = vmatpush.bf16.msra.mxu0 %v13583_v28  ;;  %v9057_v28 = vpop.f32.mrf.mxu1 }
 0xa1a   :  { %v13836_v15 = vld [vmem:[#allocation5 + $0xd28] sm:$0xf0] }
 0xa1b   :  { %v15037_v23 = vld [vmem:[#allocation5 + $0x8cc] sm:$0xf]  ;;  %v13839_v37 = vor.u32 %v15173_v63, %v13836_v15  ;;  %9322 = vmatpush.bf16.msra.mxu2 %v14095_v20 }
 0xa1c   :  { %v13292_v8 = vld [vmem:[#allocation5 + $0x8e8] sm:$0xf0] }
 0xa1d   :  { %v15101_v11 = vld [vmem:[#allocation5 + $0xacc] sm:$0xf]  ;;  %v13295_v43 = vor.u32 %v15037_v23, %v13292_v8  ;;  %9309 = vmatpush.bf16.msra.mxu1 %v13839_v37  ;;  %v12402_v37 = vld [vmem:[#allocation5 + $0x1d0] sm:$0xf] }
 0xa1e   :  { %v13548_v38 = vld [vmem:[#allocation5 + $0xae8] sm:$0xf0] }
 0xa1f   :  { %v15229_v36 = vld [vmem:[#allocation5 + $0xecc] sm:$0xf]  ;;  %v13551_v60 = vor.u32 %v15101_v11, %v13548_v38  ;;  %9284 = vmatpush.bf16.msrb.mxu3 %v13295_v43  ;;  %v9031_v43 = vpop.f32.mrf.mxu3 }
 0xa20   :  { %v14060_v39 = vld [vmem:[#allocation5 + $0xee8] sm:$0xf0]  ;;  %v14922_v43 = vld [vmem:[#allocation5 + $0x52c] sm:$0xf0] }
 0xa21   :  { %v15165_v5 = vld [vmem:[#allocation5 + $0xccc] sm:$0xf]  ;;  %v14063_v31 = vor.u32 %v15229_v36, %v14060_v39  ;;  %9297 = vmatpush.bf16.msra.mxu0 %v13551_v60  ;;  %v14818_v36 = vld [vmem:[#allocation5 + $0x1ec] sm:$0xf0] }
 0xa22   :  { %v13804_v16 = vld [vmem:[#allocation5 + $0xce8] sm:$0xf0]  ;;  %v12658_v39 = vld [vmem:[#allocation5 + $0x3d0] sm:$0xf] }
 0xa23   :  { %v15029_v17 = vld [vmem:[#allocation5 + $0x88c] sm:$0xf]  ;;  %v13807_v41 = vor.u32 %v15165_v5, %v13804_v16  ;;  %9323 = vmatpush.bf16.msra.mxu2 %v14063_v31  ;;  %v13170_v5 = vld [vmem:[#allocation5 + $0x7d0] sm:$0xf] }
 0xa24   :  { %v13260_v56 = vld [vmem:[#allocation5 + $0x8a8] sm:$0xf0]  ;;  %v15010_v16 = vld [vmem:[#allocation5 + $0x7ec] sm:$0xf0] }
 0xa25   :  { %v15093_v29 = vld [vmem:[#allocation5 + $0xa8c] sm:$0xf]  ;;  %v13263_v50 = vor.u32 %v15029_v17, %v13260_v56  ;;  %9310 = vmatpush.bf16.msra.mxu1 %v13807_v41  ;;  %v9070_v56 = vpop.f32.mrf.mxu2  ;;  %v12914_v41 = vld [vmem:[#allocation5 + $0x5d0] sm:$0xf] }
 0xa26   :  { %v13516_v44 = vld [vmem:[#allocation5 + $0xaa8] sm:$0xf0]  ;;  %v12530_v56 = vld [vmem:[#allocation5 + $0x2d0] sm:$0xf] }
 0xa27   :  { %v15221_v10 = vld [vmem:[#allocation5 + $0xe8c] sm:$0xf]  ;;  %v13519_v62 = vor.u32 %v15093_v29, %v13516_v44  ;;  %9285 = vmatpush.bf16.msrb.mxu3 %v13263_v50  ;;  %v12403_v44 = vor.u32 %v14818_v36, %v12402_v37  ;;  %v12626_v50 = vld [vmem:[#allocation5 + $0x390] sm:$0xf] }
 0xa28   :  { %v14028_v35 = vld [vmem:[#allocation5 + $0xea8] sm:$0xf0]  ;;  %v13074_v37 = vld [vmem:[#allocation5 + $0x710] sm:$0xf] }
 0xa29   :  { %v15157_v57 = vld [vmem:[#allocation5 + $0xc8c] sm:$0xf]  ;;  %v14031_v54 = vor.u32 %v15221_v10, %v14028_v35  ;;  %9298 = vmatpush.bf16.msra.mxu0 %v13519_v62  ;;  %v14946_v10 = vld [vmem:[#allocation5 + $0x5ec] sm:$0xf0]  ;;  %v12659_v35 = vor.u32 %v14882_v49, %v12658_v39  ;;  %v16474_v49 = vld [vmem:[#allocation25] sm:$0xff] }
 0xa2a   :  { %v13772_v45 = vld [vmem:[#allocation5 + $0xca8] sm:$0xf0]  ;;  %v14986_v36 = vld [vmem:[#allocation5 + $0x72c] sm:$0xf0] }
 0xa2b   :  { %v15021_v21 = vld [vmem:[#allocation5 + $0x84c] sm:$0xf]  ;;  %v13775_v1 = vor.u32 %v15157_v57, %v13772_v45  ;;  %9324 = vmatpush.bf16.msra.mxu2 %v14031_v54  ;;  %v13171_v57 = vor.u32 %v15010_v16, %v13170_v5  ;;  %v12370_v45 = vld [vmem:[#allocation5 + $0x190] sm:$0xf]  ;;  %v12915_v54 = vor.u32 %v14946_v10, %v12914_v41  ;;  %v9766_v10 = vperm.slane %v16474_v49, 0 }
 0xa2c   :  { %v13228_v59 = vld [vmem:[#allocation5 + $0x868] sm:$0xf0]  ;;  %v12818_v16 = vld [vmem:[#allocation5 + $0x510] sm:$0xf] }
 0xa2d   :  { %v15085_v61 = vld [vmem:[#allocation5 + $0xa4c] sm:$0xf]  ;;  %v13231_v33 = vor.u32 %v15021_v21, %v13228_v59  ;;  %9311 = vmatpush.bf16.msra.mxu1 %v13775_v1  ;;  %v14874_v21 = vld [vmem:[#allocation5 + $0x3ac] sm:$0xf0]  ;;  %v12371_v59 = vor.u32 %v14810_v2, %v12370_v45 }
 0xa2e   :  { %v13484_v53 = vld [vmem:[#allocation5 + $0xa68] sm:$0xf0]  ;;  %v12627_v1 = vor.u32 %v14874_v21, %v12626_v50  ;;  %v14978_v41 = vld [vmem:[#allocation5 + $0x6ec] sm:$0xf0] }
 0xa2f   :  { %v15213_v24 = vld [vmem:[#allocation5 + $0xe4c] sm:$0xf]  ;;  %v13487_v46 = vor.u32 %v15085_v61, %v13484_v53  ;;  %9286 = vmatpush.bf16.msrb.mxu3 %v13231_v33  ;;  %v12882_v61 = vld [vmem:[#allocation5 + $0x590] sm:$0xf] }
 0xa30   :  { %v13996_v6 = vld [vmem:[#allocation5 + $0xe68] sm:$0xf0]  ;;  %v14938_v53 = vld [vmem:[#allocation5 + $0x5ac] sm:$0xf0] }
 0xa31   :  { %v15149_v13 = vld [vmem:[#allocation5 + $0xc4c] sm:$0xf]  ;;  %v13999_v23 = vor.u32 %v15213_v24, %v13996_v6  ;;  %9299 = vmatpush.bf16.msra.mxu0 %v13487_v46  ;;  %v13139_v24 = vor.u32 %v15002_v12, %v13138_v52  ;;  %v12338_v6 = vld [vmem:[#allocation5 + $0x150] sm:$0xf]  ;;  %v12883_v46 = vor.u32 %v14938_v53, %v12882_v61 }
 0xa32   :  { %v13740_v47 = vld [vmem:[#allocation5 + $0xc68] sm:$0xf0]  ;;  %v14994_v33 = vld [vmem:[#allocation5 + $0x76c] sm:$0xf0] }
 0xa33   :  { %v15013_v26 = vld [vmem:[#allocation5 + $0x80c] sm:$0xf]  ;;  %v13743_v38 = vor.u32 %v15149_v13, %v13740_v47  ;;  %9325 = vmatpush.bf16.msra.mxu2 %v13999_v23  ;;  %v14866_v13 = vld [vmem:[#allocation5 + $0x36c] sm:$0xf0] }
 0xa34   :  { %v13196_v63 = vld [vmem:[#allocation5 + $0x828] sm:$0xf0]  ;;  %v13106_v47 = vld [vmem:[#allocation5 + $0x750] sm:$0xf]  ;;  %v12595_v28 = vor.u32 %v14866_v13, %v12594_v9  ;;  %v9749_v9 = vperm.slane %v16338_v58, 0  ;;  %v16481_v13 = vld [vmem:[#allocation27] sm:$0xff] }
 0xa35   :  { %v15077_v15 = vld [vmem:[#allocation5 + $0xa0c] sm:$0xf]  ;;  %v13199_v60 = vor.u32 %v15013_v26, %v13196_v63  ;;  %9312 = vmatpush.bf16.msra.mxu1 %v13743_v38  ;;  %v12339_v26 = vor.u32 %v14802_v25, %v12338_v6  ;;  %v12850_v63 = vld [vmem:[#allocation5 + $0x550] sm:$0xf]  ;;  %v13107_v23 = vor.u32 %v14994_v33, %v13106_v47  ;;  %v9081_v6 = vpop.f32.mrf.mxu3 }
 0xa36   :  { %v13452_v20 = vld [vmem:[#allocation5 + $0xa28] sm:$0xf0]  ;;  %v14858_v38 = vld [vmem:[#allocation5 + $0x32c] sm:$0xf0]  ;;  %v9082_v47 = vadd.f32 %v9081_v6, %v16468_v19 }
 0xa37   :  { %v15205_v8 = vld [vmem:[#allocation5 + $0xe0c] sm:$0xf]  ;;  %v13455_v17 = vor.u32 %v15077_v15, %v13452_v20  ;;  %9287 = vmatpush.bf16.msrb.mxu3 %v13199_v60  ;;  %v14930_v15 = vld [vmem:[#allocation5 + $0x56c] sm:$0xf0] }
 0xa38   :  { %v13964_v11 = vld [vmem:[#allocation5 + $0xe28] sm:$0xf0]  ;;  %v12306_v20 = vld [vmem:[#allocation5 + $0x110] sm:$0xf]  ;;  %v12851_v39 = vor.u32 %v14930_v15, %v12850_v63  ;;  %v9120_v63 = vpop.f32.mrf.mxu2 }
 0xa39   :  { %v15141_v18 = vld [vmem:[#allocation5 + $0xc0c] sm:$0xf]  ;;  %v13967_v29 = vor.u32 %v15205_v8, %v13964_v11  ;;  %9300 = vmatpush.bf16.msra.mxu0 %v13455_v17  ;;  %v14794_v8 = vld [vmem:[#allocation5 + $0x12c] sm:$0xf0]  ;;  %v13075_v17 = vor.u32 %v14986_v36, %v13074_v37  ;;  %v9800_v36 = vperm.slane %v16481_v13, 0 }
 0xa3a   :  { %v13708_v31 = vld [vmem:[#allocation5 + $0xc28] sm:$0xf0]  ;;  %9288 = vmatmul.bf16.vlgmr.msrb.gmra.mxu3 %v16416_v32  ;;  %v12562_v11 = vld [vmem:[#allocation5 + $0x310] sm:$0xf]  ;;  %v12307_v5 = vor.u32 %v14794_v8, %v12306_v20 }
 0xa3b   :  { %v13711_v62 = vor.u32 %v15141_v18, %v13708_v31  ;;  %9326 = vmatpush.bf16.msra.mxu2 %v13967_v29  ;;  %9332 = vmatpush.bf16.msra.mxu3 %v12403_v44  ;;  %v12563_v60 = vor.u32 %v14858_v38, %v12562_v11  ;;  %v12274_v18 = vld [vmem:[#allocation5 + $0xd0] sm:$0xf] }
 0xa3c   :  { %9301 = vmatmul.bf16.vlgmr.msra.gmra.mxu0 %v16424_v4  ;;  %v14786_v31 = vld [vmem:[#allocation5 + $0xec] sm:$0xf0] }
 0xa3d   :  { %9345 = vmatpush.bf16.msrb.mxu0 %v12659_v35  ;;  %9313 = vmatpush.bf16.msra.mxu1 %v13711_v62  ;;  %v14850_v29 = vld [vmem:[#allocation5 + $0x2ec] sm:$0xf0]  ;;  %v12819_v35 = vor.u32 %v14922_v43, %v12818_v16  ;;  %v12275_v45 = vor.u32 %v14786_v31, %v12274_v18 }
 0xa3e   :  { %9327 = vmatmul.bf16.vlgmr.msra.gmra.mxu2 %v16420_v7  ;;  %v13042_v44 = vld [vmem:[#allocation5 + $0x6d0] sm:$0xf]  ;;  %v12531_v62 = vor.u32 %v14850_v29, %v12530_v56 }
 0xa3f   :  { %9371 = vmatpush.bf16.msrb.mxu2 %v13171_v57  ;;  %9333 = vmatpush.bf16.msra.mxu3 %v12371_v59  ;;  %v9094_v57 = vpop.f32.mrf.mxu0  ;;  %v12786_v2 = vld [vmem:[#allocation5 + $0x4d0] sm:$0xf]  ;;  %v13043_v21 = vor.u32 %v14978_v41, %v13042_v44  ;;  %v9107_v59 = vpop.f32.mrf.mxu1 }
 0xa40   :  { %9314 = vmatmul.bf16.vlgmr.msra.gmra.mxu1 %v16429_v48  ;;  %v14914_v50 = vld [vmem:[#allocation5 + $0x4ec] sm:$0xf0]  ;;  %v9095_v8 = vadd.f32 %v9094_v57, %v9082_v47  ;;  %v9122_v6 = vpop.f32.mrf.mxu2 }
 0xa41   :  { %9358 = vmatpush.bf16.msrb.mxu1 %v12915_v54  ;;  %9346 = vmatpush.bf16.msrb.mxu0 %v12627_v1  ;;  %v12242_v52 = vld [vmem:[#allocation5 + $0x90] sm:$0xf]  ;;  %v12787_v25 = vor.u32 %v14914_v50, %v12786_v2 }
 0xa42   :  { %v14778_v12 = vld [vmem:[#allocation5 + $0xac] sm:$0xf0]  ;;  %v9108_v43 = vadd.f32 %v9107_v59, %v9095_v8 }
 0xa43   :  { %9372 = vmatpush.bf16.msrb.mxu2 %v13139_v24  ;;  %9334 = vmatpush.bf16.msra.mxu3 %v12339_v26  ;;  %v12498_v54 = vld [vmem:[#allocation5 + $0x290] sm:$0xf]  ;;  %v16478_v24 = vadd.f32 %v9766_v10, %v16462_v30  ;;  %v12243_v33 = vor.u32 %v14778_v12, %v12242_v52 }
 0xa44   :  { %v14842_v61 = vld [vmem:[#allocation5 + $0x2ac] sm:$0xf0]  ;;  %v9121_v57 = vadd.f32 %v9120_v63, %v9108_v43  ;;  %v9801_v63 = vperm.slane %v16481_v13, 1 }
 0xa45   :  { %9359 = vmatpush.bf16.msrb.mxu1 %v12883_v46  ;;  %9347 = vmatpush.bf16.msrb.mxu0 %v12595_v28  ;;  %v13010_v53 = vld [vmem:[#allocation5 + $0x690] sm:$0xf]  ;;  %v12499_v15 = vor.u32 %v14842_v61, %v12498_v54  ;;  %v9790_v37 = vmax.f32 %v16478_v24, 0.0  ;;  %v9083_v54 = vpop.f32.mrf.mxu3 }
 0xa46   :  { %v14970_v1 = vld [vmem:[#allocation5 + $0x6ac] sm:$0xf0]  ;;  %v9757_v59 = vadd.f32 %v9749_v9, %v9121_v57 }
 0xa47   :  { %9373 = vmatpush.bf16.msrb.mxu2 %v13107_v23  ;;  %9335 = vmatpush.bf16.msra.mxu3 %v12307_v5  ;;  %v12754_v46 = vld [vmem:[#allocation5 + $0x490] sm:$0xf]  ;;  %v13011_v28 = vor.u32 %v14970_v1, %v13010_v53  ;;  %v9096_v16 = vpop.f32.mrf.mxu0 }
 0xa48   :  { %v14906_v26 = vld [vmem:[#allocation5 + $0x4ac] sm:$0xf0] }
 0xa49   :  { %9360 = vmatpush.bf16.msrb.mxu1 %v12851_v39  ;;  %9348 = vmatpush.bf16.msrb.mxu0 %v12563_v60  ;;  %v12210_v30 = vld [vmem:[#allocation5 + $0x50] sm:$0xf]  ;;  %v12755_v19 = vor.u32 %v14906_v26, %v12754_v46  ;;  %v9767_v39 = vperm.slane %v16474_v49, 1 }
 0xa4a   :  { %v14770_v23 = vld [vmem:[#allocation5 + $0x6c] sm:$0xf0] }
 0xa4b   :  { %9374 = vmatpush.bf16.msrb.mxu2 %v13075_v17  ;;  %9336 = vmatpush.bf16.msra.mxu3 %v12275_v45  ;;  %v12466_v20 = vld [vmem:[#allocation5 + $0x250] sm:$0xf]  ;;  %v12211_v60 = vor.u32 %v14770_v23, %v12210_v30  ;;  %v9783_v26 = vadd.f32 %v9767_v39, %v9757_v59 }
 0xa4c   :  { %v14834_v11 = vld [vmem:[#allocation5 + $0x26c] sm:$0xf0] }
 0xa4d   :  { %9361 = vmatpush.bf16.msrb.mxu1 %v12819_v35  ;;  %9349 = vmatpush.bf16.msrb.mxu0 %v12531_v62  ;;  %v12978_v38 = vld [vmem:[#allocation5 + $0x650] sm:$0xf]  ;;  %v12467_v56 = vor.u32 %v14834_v11, %v12466_v20  ;;  %v9109_v35 = vpop.f32.mrf.mxu1 }
 0xa4e   :  { %v14962_v58 = vld [vmem:[#allocation5 + $0x66c] sm:$0xf0] }
 0xa4f   :  { %9375 = vmatpush.bf16.msrb.mxu2 %v13043_v21  ;;  %v12722_v5 = vld [vmem:[#allocation5 + $0x450] sm:$0xf]  ;;  %9337 = vmatpush.bf16.msra.mxu3 %v12243_v33  ;;  %v12979_v29 = vor.u32 %v14962_v58, %v12978_v38  ;;  %v9816_v38 = vmul.f32 %v9800_v36, %v9790_v37  ;;  %v9791_v58 = vmax.f32 %v9783_v26, 0.0 }
 0xa50   :  { %v14898_v17 = vld [vmem:[#allocation5 + $0x46c] sm:$0xf0] }
 0xa51   :  { %9362 = vmatpush.bf16.msrb.mxu1 %v12787_v25  ;;  %v12178_v18 = vld [vmem:[#allocation5 + $0x10] sm:$0xf]  ;;  %9350 = vmatpush.bf16.msrb.mxu0 %v12499_v15  ;;  %v12723_v62 = vor.u32 %v14898_v17, %v12722_v5 }
 0xa52   :  { %v14762_v31 = vld [vmem:[#allocation5 + $0x2c] sm:$0xf0] }
 0xa53   :  { %9376 = vmatpush.bf16.msrb.mxu2 %v13011_v28  ;;  %v12434_v44 = vld [vmem:[#allocation5 + $0x210] sm:$0xf]  ;;  %9338 = vmatpush.bf16.msra.mxu3 %v12211_v60  ;;  %v12179_v61 = vor.u32 %v14762_v31, %v12178_v18  ;;  %v9817_v60 = vmul.f32 %v9801_v63, %v9791_v58 }
 0xa54   :  { %v14826_v41 = vld [vmem:[#allocation5 + $0x22c] sm:$0xf0] }
 0xa55   :  { %v12946_v10 = vld [vmem:[#allocation5 + $0x610] sm:$0xf]  ;;  %9363 = vmatpush.bf16.msrb.mxu1 %v12755_v19  ;;  %9351 = vmatpush.bf16.msrb.mxu0 %v12467_v56  ;;  %v12435_v25 = vor.u32 %v14826_v41, %v12434_v44  ;;  %v9825_v44 = vsel %vm9824_vm5, %v9816_v38, 0.0  ;;  %v9826_v41 = vsel %vm9824_vm5, %v9817_v60, 0.0 }
 0xa56   :  { %v14954_v45 = vld [vmem:[#allocation5 + $0x62c] sm:$0xf0] }
 0xa57   :  { %v13426_v2 = vld [vmem:[#allocation5 + $0x9d0] sm:$0xf]  ;;  %9377 = vmatpush.bf16.msrb.mxu2 %v12979_v29  ;;  %v12947_v47 = vor.u32 %v14954_v45, %v12946_v10  ;;  %9339 = vmatpush.bf16.msra.mxu3 %v12179_v61  ;;  %v16491_v45 = vadd.f32 %v9826_v41, %v9825_v44 }
 0xa58   :  { %v15074_v50 = vld [vmem:[#allocation5 + $0x9ec] sm:$0xf0] }
 0xa59   :  { %v13682_v21 = vld [vmem:[#allocation5 + $0xbd0] sm:$0xf]  ;;  %v13427_v15 = vor.u32 %v15074_v50, %v13426_v2  ;;  %9364 = vmatpush.bf16.msrb.mxu1 %v12723_v62  ;;  %9352 = vmatpush.bf16.msrb.mxu0 %v12435_v25 }
 0xa5a   :  { %v15138_v52 = vld [vmem:[#allocation5 + $0xbec] sm:$0xf0]  ;;  %9340 = vmatmul.bf16.vlgmr.msra.gmra.mxu3 %v16394_v3 }
 0xa5b   :  { %v14194_v12 = vld [vmem:[#allocation5 + $0xfd0] sm:$0xf]  ;;  %v13683_v28 = vor.u32 %v15138_v52, %v13682_v21  ;;  %9378 = vmatpush.bf16.msrb.mxu2 %v12947_v47  ;;  %9384 = vmatpush.bf16.msrb.mxu3 %v13427_v15 }
 0xa5c   :  { %v15266_v53 = vld [vmem:[#allocation5 + $0xfec] sm:$0xf0]  ;;  %9353 = vmatmul.bf16.vlgmr.msrb.gmra.mxu0 %v16402_v55 }
 0xa5d   :  { %v12690_v1 = vld [vmem:[#allocation5 + $0x410] sm:$0xf]  ;;  %v14195_v9 = vor.u32 %v15266_v53, %v14194_v12  ;;  %9397 = vmatpush.bf16.msra.mxu0 %v13683_v28 }
 0xa5e   :  { %v14890_v24 = vld [vmem:[#allocation5 + $0x42c] sm:$0xf0]  ;;  %9379 = vmatmul.bf16.vlgmr.msrb.gmra.mxu2 %v16398_v40 }
 0xa5f   :  { %v13938_v33 = vld [vmem:[#allocation5 + $0xdd0] sm:$0xf]  ;;  %v12691_v23 = vor.u32 %v14890_v24, %v12690_v1  ;;  %9423 = vmatpush.bf16.msra.mxu2 %v14195_v9 }
 0xa60   :  { %v15202_v46 = vld [vmem:[#allocation5 + $0xdec] sm:$0xf0] }
 0xa61   :  { %v13394_v30 = vld [vmem:[#allocation5 + $0x990] sm:$0xf]  ;;  %v13939_v19 = vor.u32 %v15202_v46, %v13938_v33  ;;  %9365 = vmatpush.bf16.msrb.mxu1 %v12691_v23 }
 0xa62   :  { %v15066_v20 = vld [vmem:[#allocation5 + $0x9ac] sm:$0xf0] }
 0xa63   :  { %v13650_v8 = vld [vmem:[#allocation5 + $0xb90] sm:$0xf]  ;;  %v13395_v17 = vor.u32 %v15066_v20, %v13394_v30  ;;  %v9146_v20 = vpop.f32.mrf.mxu0 }
 0xa64   :  { %v15130_v11 = vld [vmem:[#allocation5 + $0xbac] sm:$0xf0]  ;;  %9366 = vmatmul.bf16.vlgmr.msrb.gmra.mxu1 %v16406_v42 }
 0xa65   :  { %v14162_v5 = vld [vmem:[#allocation5 + $0xf90] sm:$0xf]  ;;  %v13651_v18 = vor.u32 %v15130_v11, %v13650_v8  ;;  %9410 = vmatpush.bf16.msra.mxu1 %v13939_v19  ;;  %9385 = vmatpush.bf16.msrb.mxu3 %v13395_v17 }
 0xa66   :  { %v15258_v16 = vld [vmem:[#allocation5 + $0xfac] sm:$0xf0] }
 0xa67   :  { %v13906_v39 = vld [vmem:[#allocation5 + $0xd90] sm:$0xf]  ;;  %v14163_v56 = vor.u32 %v15258_v16, %v14162_v5  ;;  %9398 = vmatpush.bf16.msra.mxu0 %v13651_v18  ;;  %v9159_v5 = vpop.f32.mrf.mxu1 }
 0xa68   :  { %v15194_v43 = vld [vmem:[#allocation5 + $0xdac] sm:$0xf0] }
 0xa69   :  { %v13362_v31 = vld [vmem:[#allocation5 + $0x950] sm:$0xf]  ;;  %v13907_v10 = vor.u32 %v15194_v43, %v13906_v39  ;;  %9424 = vmatpush.bf16.msra.mxu2 %v14163_v56 }
 0xa6a   :  { %v15058_v37 = vld [vmem:[#allocation5 + $0x96c] sm:$0xf0] }
 0xa6b   :  { %v13618_v36 = vld [vmem:[#allocation5 + $0xb50] sm:$0xf]  ;;  %v13363_v62 = vor.u32 %v15058_v37, %v13362_v31  ;;  %9411 = vmatpush.bf16.msra.mxu1 %v13907_v10 }
 0xa6c   :  { %v15122_v29 = vld [vmem:[#allocation5 + $0xb6c] sm:$0xf0] }
 0xa6d   :  { %v14130_v35 = vld [vmem:[#allocation5 + $0xf50] sm:$0xf]  ;;  %v13619_v21 = vor.u32 %v15122_v29, %v13618_v36  ;;  %9386 = vmatpush.bf16.msrb.mxu3 %v13363_v62  ;;  %v9133_v36 = vpop.f32.mrf.mxu3 }
 0xa6e   :  { %v15250_v57 = vld [vmem:[#allocation5 + $0xf6c] sm:$0xf0]  ;;  %v9147_v10 = vadd.f32 %v9146_v20, %v9133_v36  ;;  %v14878_v20 = vld [vmem:[#allocation5 + $0x3d4] sm:$0xf] }
 0xa6f   :  { %v13874_v2 = vld [vmem:[#allocation5 + $0xd50] sm:$0xf]  ;;  %v14131_v12 = vor.u32 %v15250_v57, %v14130_v35  ;;  %9399 = vmatpush.bf16.msra.mxu0 %v13619_v21  ;;  %v9172_v35 = vpop.f32.mrf.mxu2  ;;  %v14806_v36 = vld [vmem:[#allocation5 + $0x194] sm:$0xf] }
 0xa70   :  { %v15186_v50 = vld [vmem:[#allocation5 + $0xd6c] sm:$0xf0] }
 0xa71   :  { %v13330_v52 = vld [vmem:[#allocation5 + $0x910] sm:$0xf]  ;;  %v13875_v53 = vor.u32 %v15186_v50, %v13874_v2  ;;  %9425 = vmatpush.bf16.msra.mxu2 %v14131_v12 }
 0xa72   :  { %v15050_v54 = vld [vmem:[#allocation5 + $0x92c] sm:$0xf0] }
 0xa73   :  { %v13586_v59 = vld [vmem:[#allocation5 + $0xb10] sm:$0xf]  ;;  %v13331_v47 = vor.u32 %v15050_v54, %v13330_v52  ;;  %9412 = vmatpush.bf16.msra.mxu1 %v13875_v53  ;;  %v9160_v54 = vadd.f32 %v9159_v5, %v9147_v10  ;;  %v12628_v10 = vld [vmem:[#allocation5 + $0x3b0] sm:$0xf0] }
 0xa74   :  { %v15114_v61 = vld [vmem:[#allocation5 + $0xb2c] sm:$0xf0] }
 0xa75   :  { %v14098_v1 = vld [vmem:[#allocation5 + $0xf10] sm:$0xf]  ;;  %v13587_v33 = vor.u32 %v15114_v61, %v13586_v59  ;;  %9387 = vmatpush.bf16.msrb.mxu3 %v13331_v47  ;;  %v9148_v59 = vpop.f32.mrf.mxu0 }
 0xa76   :  { %v15242_v24 = vld [vmem:[#allocation5 + $0xf2c] sm:$0xf0]  ;;  %v12340_v59 = vld [vmem:[#allocation5 + $0x170] sm:$0xf0] }
 0xa77   :  { %v13842_v6 = vld [vmem:[#allocation5 + $0xd10] sm:$0xf]  ;;  %v14099_v26 = vor.u32 %v15242_v24, %v14098_v1  ;;  %9400 = vmatpush.bf16.msra.mxu0 %v13587_v33  ;;  %v16496_v33 = vadd.f32 %v9172_v35, %v9160_v54  ;;  %v14998_v35 = vld [vmem:[#allocation5 + $0x794] sm:$0xf] }
 0xa78   :  { %v15178_v25 = vld [vmem:[#allocation5 + $0xd2c] sm:$0xf0]  ;;  %v14798_v54 = vld [vmem:[#allocation5 + $0x154] sm:$0xf] }
 0xa79   :  { %v13298_v46 = vld [vmem:[#allocation5 + $0x8d0] sm:$0xf]  ;;  %v13843_v30 = vor.u32 %v15178_v25, %v13842_v6  ;;  %9426 = vmatpush.bf16.msra.mxu2 %v14099_v26 }
 0xa7a   :  { %v15042_v63 = vld [vmem:[#allocation5 + $0x8ec] sm:$0xf0] }
 0xa7b   :  { %v13554_v15 = vld [vmem:[#allocation5 + $0xad0] sm:$0xf]  ;;  %v13299_v38 = vor.u32 %v15042_v63, %v13298_v46  ;;  %9413 = vmatpush.bf16.msra.mxu1 %v13843_v30  ;;  %v9161_v46 = vpop.f32.mrf.mxu1 }
 0xa7c   :  { %v15106_v28 = vld [vmem:[#allocation5 + $0xaec] sm:$0xf0]  ;;  %v12852_v46 = vld [vmem:[#allocation5 + $0x570] sm:$0xf0] }
 0xa7d   :  { %v14066_v9 = vld [vmem:[#allocation5 + $0xed0] sm:$0xf]  ;;  %v13555_v58 = vor.u32 %v15106_v28, %v13554_v15  ;;  %9388 = vmatpush.bf16.msrb.mxu3 %v13299_v38  ;;  %v13172_v38 = vld [vmem:[#allocation5 + $0x7f0] sm:$0xf0] }
 0xa7e   :  { %v15234_v23 = vld [vmem:[#allocation5 + $0xeec] sm:$0xf0] }
 0xa7f   :  { %v13810_v8 = vld [vmem:[#allocation5 + $0xcd0] sm:$0xf]  ;;  %v14067_v16 = vor.u32 %v15234_v23, %v14066_v9  ;;  %9401 = vmatpush.bf16.msra.mxu0 %v13555_v58  ;;  %v14814_v9 = vld [vmem:[#allocation5 + $0x1d4] sm:$0xf]  ;;  %v9135_v58 = vpop.f32.mrf.mxu3 }
 0xa80   :  { %v15170_v11 = vld [vmem:[#allocation5 + $0xcec] sm:$0xf0]  ;;  %v12404_v23 = vld [vmem:[#allocation5 + $0x1f0] sm:$0xf0] }
 0xa81   :  { %v13266_v19 = vld [vmem:[#allocation5 + $0x890] sm:$0xf]  ;;  %v13811_v17 = vor.u32 %v15170_v11, %v13810_v8  ;;  %9427 = vmatpush.bf16.msra.mxu2 %v14067_v16  ;;  %v12660_v8 = vld [vmem:[#allocation5 + $0x3f0] sm:$0xf0] }
 0xa82   :  { %v15034_v39 = vld [vmem:[#allocation5 + $0x8ac] sm:$0xf0]  ;;  %v15006_v11 = vld [vmem:[#allocation5 + $0x7d4] sm:$0xf] }
 0xa83   :  { %v13522_v43 = vld [vmem:[#allocation5 + $0xa90] sm:$0xf]  ;;  %v13267_v29 = vor.u32 %v15034_v39, %v13266_v19  ;;  %9414 = vmatpush.bf16.msra.mxu1 %v13811_v17  ;;  %v12407_v17 = vor.u32 %v14814_v9, %v12404_v23  ;;  %v12564_v9 = vld [vmem:[#allocation5 + $0x330] sm:$0xf0] }
 0xa84   :  { %v15098_v60 = vld [vmem:[#allocation5 + $0xaac] sm:$0xf0]  ;;  %v14982_v23 = vld [vmem:[#allocation5 + $0x714] sm:$0xf] }
 0xa85   :  { %v14034_v18 = vld [vmem:[#allocation5 + $0xe90] sm:$0xf]  ;;  %v13523_v44 = vor.u32 %v15098_v60, %v13522_v43  ;;  %9389 = vmatpush.bf16.msrb.mxu3 %v13267_v29  ;;  %v9174_v43 = vpop.f32.mrf.mxu2  ;;  %v12372_v29 = vld [vmem:[#allocation5 + $0x1b0] sm:$0xf0] }
 0xa86   :  { %v15226_v31 = vld [vmem:[#allocation5 + $0xeac] sm:$0xf0]  ;;  %v12820_v58 = vld [vmem:[#allocation5 + $0x530] sm:$0xf0] }
 0xa87   :  { %v13778_v56 = vld [vmem:[#allocation5 + $0xc90] sm:$0xf]  ;;  %v14035_v57 = vor.u32 %v15226_v31, %v14034_v18  ;;  %9402 = vmatpush.bf16.msra.mxu0 %v13523_v44  ;;  %v14942_v18 = vld [vmem:[#allocation5 + $0x5d4] sm:$0xf] }
 0xa88   :  { %v15162_v37 = vld [vmem:[#allocation5 + $0xcac] sm:$0xf0]  ;;  %v12916_v31 = vld [vmem:[#allocation5 + $0x5f0] sm:$0xf0] }
 0xa89   :  { %v13234_v41 = vld [vmem:[#allocation5 + $0x850] sm:$0xf]  ;;  %v13779_v21 = vor.u32 %v15162_v37, %v13778_v56  ;;  %9428 = vmatpush.bf16.msra.mxu2 %v14035_v57  ;;  %v12663_v56 = vor.u32 %v14878_v20, %v12660_v8  ;;  %v13175_v37 = vor.u32 %v15006_v11, %v13172_v38  ;;  %v14870_v44 = vld [vmem:[#allocation5 + $0x394] sm:$0xf] }
 0xa8a   :  { %v15026_v2 = vld [vmem:[#allocation5 + $0x86c] sm:$0xf0]  ;;  %v13140_v57 = vld [vmem:[#allocation5 + $0x7b0] sm:$0xf0] }
 0xa8b   :  { %v13490_v50 = vld [vmem:[#allocation5 + $0xa50] sm:$0xf]  ;;  %v13235_v1 = vor.u32 %v15026_v2, %v13234_v41  ;;  %9415 = vmatpush.bf16.msra.mxu1 %v13779_v21  ;;  %v12919_v2 = vor.u32 %v14942_v18, %v12916_v31  ;;  %v12884_v21 = vld [vmem:[#allocation5 + $0x5b0] sm:$0xf0] }
 0xa8c   :  { %v15090_v62 = vld [vmem:[#allocation5 + $0xa6c] sm:$0xf0]  ;;  %v13076_v20 = vld [vmem:[#allocation5 + $0x730] sm:$0xf0] }
 0xa8d   :  { %v14002_v52 = vld [vmem:[#allocation5 + $0xe50] sm:$0xf]  ;;  %v13491_v24 = vor.u32 %v15090_v62, %v13490_v50  ;;  %9390 = vmatpush.bf16.msrb.mxu3 %v13235_v1  ;;  %v12375_v50 = vor.u32 %v14806_v36, %v12372_v29  ;;  %v14934_v62 = vld [vmem:[#allocation5 + $0x594] sm:$0xf] }
 0xa8e   :  { %v15218_v12 = vld [vmem:[#allocation5 + $0xe6c] sm:$0xf0]  ;;  %v14990_v1 = vld [vmem:[#allocation5 + $0x754] sm:$0xf] }
 0xa8f   :  { %v13746_v61 = vld [vmem:[#allocation5 + $0xc50] sm:$0xf]  ;;  %v14003_v26 = vor.u32 %v15218_v12, %v14002_v52  ;;  %9403 = vmatpush.bf16.msra.mxu0 %v13491_v24  ;;  %v12631_v52 = vor.u32 %v14870_v44, %v12628_v10  ;;  %v13143_v12 = vor.u32 %v14998_v35, %v13140_v57  ;;  %v13108_v24 = vld [vmem:[#allocation5 + $0x770] sm:$0xf0] }
 0xa90   :  { %v15154_v53 = vld [vmem:[#allocation5 + $0xc6c] sm:$0xf0]  ;;  %v14918_v38 = vld [vmem:[#allocation5 + $0x514] sm:$0xf] }
 0xa91   :  { %v13202_v6 = vld [vmem:[#allocation5 + $0x810] sm:$0xf]  ;;  %v13747_v30 = vor.u32 %v15154_v53, %v13746_v61  ;;  %9429 = vmatpush.bf16.msra.mxu2 %v14003_v26  ;;  %v14862_v61 = vld [vmem:[#allocation5 + $0x354] sm:$0xf]  ;;  %v12823_v31 = vor.u32 %v14918_v38, %v12820_v58 }
 0xa92   :  { %v15018_v25 = vld [vmem:[#allocation5 + $0x82c] sm:$0xf0]  ;;  %v12596_v53 = vld [vmem:[#allocation5 + $0x370] sm:$0xf0] }
 0xa93   :  { %v13458_v47 = vld [vmem:[#allocation5 + $0xa10] sm:$0xf]  ;;  %v13203_v19 = vor.u32 %v15018_v25, %v13202_v6  ;;  %9416 = vmatpush.bf16.msra.mxu1 %v13747_v30  ;;  %v12887_v6 = vor.u32 %v14934_v62, %v12884_v21  ;;  %v12343_v25 = vor.u32 %v14798_v54, %v12340_v59  ;;  %v12599_v26 = vor.u32 %v14862_v61, %v12596_v53  ;;  %v14854_v30 = vld [vmem:[#allocation5 + $0x314] sm:$0xf] }
 0xa94   :  { %v15082_v63 = vld [vmem:[#allocation5 + $0xa2c] sm:$0xf0]  ;;  %v14846_v43 = vld [vmem:[#allocation5 + $0x2d4] sm:$0xf] }
 0xa95   :  { %v13970_v15 = vld [vmem:[#allocation5 + $0xe10] sm:$0xf]  ;;  %v13459_v5 = vor.u32 %v15082_v63, %v13458_v47  ;;  %9391 = vmatpush.bf16.msrb.mxu3 %v13203_v19  ;;  %v14926_v47 = vld [vmem:[#allocation5 + $0x554] sm:$0xf]  ;;  %v13111_v63 = vor.u32 %v14990_v1, %v13108_v24  ;;  %v12567_v19 = vor.u32 %v14854_v30, %v12564_v9  ;;  %v9224_v1 = vpop.f32.mrf.mxu2  ;;  %v9750_v30 = vperm.slane %v16351_v0, 0 }
 0xa96   :  { %v15210_v28 = vld [vmem:[#allocation5 + $0xe2c] sm:$0xf0]  ;;  %v12855_v8 = vor.u32 %v14926_v47, %v12852_v46  ;;  %v13044_v18 = vld [vmem:[#allocation5 + $0x6f0] sm:$0xf0] }
 0xa97   :  { %v13714_v16 = vld [vmem:[#allocation5 + $0xc10] sm:$0xf]  ;;  %v13971_v60 = vor.u32 %v15210_v28, %v13970_v15  ;;  %9404 = vmatpush.bf16.msra.mxu0 %v13459_v5  ;;  %v14790_v15 = vld [vmem:[#allocation5 + $0x114] sm:$0xf]  ;;  %v13079_v5 = vor.u32 %v14982_v23, %v13076_v20 }
 0xa98   :  { %v15146_v39 = vld [vmem:[#allocation5 + $0xc2c] sm:$0xf0]  ;;  %9392 = vmatmul.bf16.vlgmr.msrb.gmra.mxu3 %v16416_v32  ;;  %v12308_v28 = vld [vmem:[#allocation5 + $0x130] sm:$0xf0] }
 0xa99   :  { %v13715_v41 = vor.u32 %v15146_v39, %v13714_v16  ;;  %9430 = vmatpush.bf16.msra.mxu2 %v13971_v60  ;;  %9436 = vmatpush.bf16.msra.mxu3 %v12407_v17  ;;  %v12311_v11 = vor.u32 %v14790_v15, %v12308_v28  ;;  %v14782_v16 = vld [vmem:[#allocation5 + $0xd4] sm:$0xf] }
 0xa9a   :  { %9405 = vmatmul.bf16.vlgmr.msra.gmra.mxu0 %v16424_v4  ;;  %v12276_v39 = vld [vmem:[#allocation5 + $0xf0] sm:$0xf0] }
 0xa9b   :  { %9449 = vmatpush.bf16.msrb.mxu0 %v12663_v56  ;;  %9417 = vmatpush.bf16.msra.mxu1 %v13715_v41  ;;  %v12532_v60 = vld [vmem:[#allocation5 + $0x2f0] sm:$0xf0]  ;;  %v9198_v56 = vpop.f32.mrf.mxu0 }
 0xa9c   :  { %9431 = vmatmul.bf16.vlgmr.msra.gmra.mxu2 %v16420_v7  ;;  %v14974_v17 = vld [vmem:[#allocation5 + $0x6d4] sm:$0xf]  ;;  %v12535_v44 = vor.u32 %v14846_v43, %v12532_v60 }
 0xa9d   :  { %9475 = vmatpush.bf16.msrb.mxu2 %v13175_v37  ;;  %9437 = vmatpush.bf16.msra.mxu3 %v12375_v50  ;;  %v12279_v37 = vor.u32 %v14782_v16, %v12276_v39  ;;  %v14910_v36 = vld [vmem:[#allocation5 + $0x4d4] sm:$0xf]  ;;  %v13047_v41 = vor.u32 %v14974_v17, %v13044_v18 }
 0xa9e   :  { %9418 = vmatmul.bf16.vlgmr.msra.gmra.mxu1 %v16429_v48  ;;  %v12788_v29 = vld [vmem:[#allocation5 + $0x4f0] sm:$0xf0] }
 0xa9f   :  { %9462 = vmatpush.bf16.msrb.mxu1 %v12919_v2  ;;  %9450 = vmatpush.bf16.msrb.mxu0 %v12631_v52  ;;  %v14774_v10 = vld [vmem:[#allocation5 + $0x94] sm:$0xf]  ;;  %v9211_v2 = vpop.f32.mrf.mxu1  ;;  %v9185_v52 = vpop.f32.mrf.mxu3 }
 0xaa0   :  { %v12244_v35 = vld [vmem:[#allocation5 + $0xb0] sm:$0xf0]  ;;  %v9186_v54 = vadd.f32 %v9185_v52, %v16496_v33  ;;  %v9768_v33 = vperm.slane %v16474_v49, 2 }
 0xaa1   :  { %9476 = vmatpush.bf16.msrb.mxu2 %v13143_v12  ;;  %9438 = vmatpush.bf16.msra.mxu3 %v12343_v25  ;;  %v14838_v57 = vld [vmem:[#allocation5 + $0x294] sm:$0xf]  ;;  %v12791_v12 = vor.u32 %v14910_v36, %v12788_v29  ;;  %v12247_v59 = vor.u32 %v14774_v10, %v12244_v35 }
 0xaa2   :  { %v12500_v50 = vld [vmem:[#allocation5 + $0x2b0] sm:$0xf0] }
 0xaa3   :  { %9463 = vmatpush.bf16.msrb.mxu1 %v12887_v6  ;;  %9451 = vmatpush.bf16.msrb.mxu0 %v12599_v26  ;;  %v14966_v62 = vld [vmem:[#allocation5 + $0x694] sm:$0xf]  ;;  %v12503_v24 = vor.u32 %v14838_v57, %v12500_v50  ;;  %v9199_v26 = vadd.f32 %v9198_v56, %v9186_v54  ;;  %v9200_v20 = vpop.f32.mrf.mxu0  ;;  %v9226_v50 = vpop.f32.mrf.mxu2 }
 0xaa4   :  { %v13012_v21 = vld [vmem:[#allocation5 + $0x6b0] sm:$0xf0] }
 0xaa5   :  { %9477 = vmatpush.bf16.msrb.mxu2 %v13111_v63  ;;  %9439 = vmatpush.bf16.msra.mxu3 %v12311_v11  ;;  %v14902_v61 = vld [vmem:[#allocation5 + $0x494] sm:$0xf]  ;;  %v13015_v6 = vor.u32 %v14966_v62, %v13012_v21 }
 0xaa6   :  { %v12756_v53 = vld [vmem:[#allocation5 + $0x4b0] sm:$0xf0] }
 0xaa7   :  { %9464 = vmatpush.bf16.msrb.mxu1 %v12855_v8  ;;  %9452 = vmatpush.bf16.msrb.mxu0 %v12567_v19  ;;  %v14766_v25 = vld [vmem:[#allocation5 + $0x54] sm:$0xf]  ;;  %v12759_v9 = vor.u32 %v14902_v61, %v12756_v53  ;;  %v9212_v8 = vadd.f32 %v9211_v2, %v9199_v26  ;;  %v9213_v0 = vpop.f32.mrf.mxu1 }
 0xaa8   :  { %v12212_v47 = vld [vmem:[#allocation5 + $0x70] sm:$0xf0] }
 0xaa9   :  { %9478 = vmatpush.bf16.msrb.mxu2 %v13079_v5  ;;  %9440 = vmatpush.bf16.msra.mxu3 %v12279_v37  ;;  %v14830_v46 = vld [vmem:[#allocation5 + $0x254] sm:$0xf]  ;;  %v12215_v11 = vor.u32 %v14766_v25, %v12212_v47  ;;  %v9225_v17 = vadd.f32 %v9224_v1, %v9212_v8 }
 0xaaa   :  { %v12468_v63 = vld [vmem:[#allocation5 + $0x270] sm:$0xf0] }
 0xaab   :  { %9465 = vmatpush.bf16.msrb.mxu1 %v12823_v31  ;;  %9453 = vmatpush.bf16.msrb.mxu0 %v12535_v44  ;;  %v14958_v15 = vld [vmem:[#allocation5 + $0x654] sm:$0xf]  ;;  %v12471_v5 = vor.u32 %v14830_v46, %v12468_v63  ;;  %v9187_v44 = vpop.f32.mrf.mxu3 }
 0xaac   :  { %v12980_v28 = vld [vmem:[#allocation5 + $0x670] sm:$0xf0] }
 0xaad   :  { %9479 = vmatpush.bf16.msrb.mxu2 %v13047_v41  ;;  %v14894_v23 = vld [vmem:[#allocation5 + $0x454] sm:$0xf]  ;;  %9441 = vmatpush.bf16.msra.mxu3 %v12247_v59  ;;  %v12983_v16 = vor.u32 %v14958_v15, %v12980_v28  ;;  %v9758_v41 = vadd.f32 %v9750_v30, %v9225_v17  ;;  %v9802_v59 = vperm.slane %v16481_v13, 2 }
 0xaae   :  { %v12724_v38 = vld [vmem:[#allocation5 + $0x470] sm:$0xf0] }
 0xaaf   :  { %9466 = vmatpush.bf16.msrb.mxu1 %v12791_v12  ;;  %v14758_v58 = vld [vmem:[#allocation5 + $0x14] sm:$0xf]  ;;  %9454 = vmatpush.bf16.msrb.mxu0 %v12503_v24  ;;  %v12727_v56 = vor.u32 %v14894_v23, %v12724_v38  ;;  %v9784_v54 = vadd.f32 %v9768_v33, %v9758_v41 }
 0xab0   :  { %v12180_v19 = vld [vmem:[#allocation5 + $0x30] sm:$0xf0] }
 0xab1   :  { %9480 = vmatpush.bf16.msrb.mxu2 %v13015_v6  ;;  %v14822_v39 = vld [vmem:[#allocation5 + $0x214] sm:$0xf]  ;;  %9442 = vmatpush.bf16.msra.mxu3 %v12215_v11  ;;  %v12183_v10 = vor.u32 %v14758_v58, %v12180_v19  ;;  %v9792_v26 = vmax.f32 %v9784_v54, 0.0 }
 0xab2   :  { %v12436_v43 = vld [vmem:[#allocation5 + $0x230] sm:$0xf0] }
 0xab3   :  { %v14950_v60 = vld [vmem:[#allocation5 + $0x614] sm:$0xf]  ;;  %9467 = vmatpush.bf16.msrb.mxu1 %v12759_v9  ;;  %9455 = vmatpush.bf16.msrb.mxu0 %v12471_v5  ;;  %v12439_v62 = vor.u32 %v14822_v39, %v12436_v43  ;;  %v9818_v33 = vmul.f32 %v9802_v59, %v9792_v26 }
 0xab4   :  { %v12948_v18 = vld [vmem:[#allocation5 + $0x630] sm:$0xf0] }
 0xab5   :  { %v15070_v31 = vld [vmem:[#allocation5 + $0x9d4] sm:$0xf]  ;;  %9481 = vmatpush.bf16.msrb.mxu2 %v12983_v16  ;;  %v12951_v21 = vor.u32 %v14950_v60, %v12948_v18  ;;  %9443 = vmatpush.bf16.msra.mxu3 %v12183_v10  ;;  %v9828_v19 = vsel %vm9824_vm5, %v9818_v33, 0.0 }
 0xab6   :  { %v13428_v49 = vld [vmem:[#allocation5 + $0x9f0] sm:$0xf0]  ;;  %v16511_v0 = vadd.f32 %v9828_v19, %v16491_v45 }
 0xab7   :  { %v15134_v37 = vld [vmem:[#allocation5 + $0xbd4] sm:$0xf]  ;;  %v13431_v61 = vor.u32 %v15070_v31, %v13428_v49  ;;  %9468 = vmatpush.bf16.msrb.mxu1 %v12727_v56  ;;  %9456 = vmatpush.bf16.msrb.mxu0 %v12439_v62 }
 0xab8   :  { %v13684_v36 = vld [vmem:[#allocation5 + $0xbf0] sm:$0xf0]  ;;  %9444 = vmatmul.bf16.vlgmr.msra.gmra.mxu3 %v16394_v3 }
 0xab9   :  { %v15262_v29 = vld [vmem:[#allocation5 + $0xfd4] sm:$0xf]  ;;  %v13687_v53 = vor.u32 %v15134_v37, %v13684_v36  ;;  %9482 = vmatpush.bf16.msrb.mxu2 %v12951_v21  ;;  %9488 = vmatpush.bf16.msrb.mxu3 %v13431_v61  ;;  %v9250_v61 = vpop.f32.mrf.mxu0 }
 0xaba   :  { %v14196_v35 = vld [vmem:[#allocation5 + $0xff0] sm:$0xf0]  ;;  %9457 = vmatmul.bf16.vlgmr.msrb.gmra.mxu0 %v16402_v55 }
 0xabb   :  { %v14886_v57 = vld [vmem:[#allocation5 + $0x414] sm:$0xf]  ;;  %v14199_v24 = vor.u32 %v15262_v29, %v14196_v35  ;;  %9501 = vmatpush.bf16.msra.mxu0 %v13687_v53 }
 0xabc   :  { %v12692_v2 = vld [vmem:[#allocation5 + $0x430] sm:$0xf0]  ;;  %9483 = vmatmul.bf16.vlgmr.msrb.gmra.mxu2 %v16398_v40 }
 0xabd   :  { %v15198_v52 = vld [vmem:[#allocation5 + $0xdd4] sm:$0xf]  ;;  %v12695_v6 = vor.u32 %v14886_v57, %v12692_v2  ;;  %9527 = vmatpush.bf16.msra.mxu2 %v14199_v24 }
 0xabe   :  { %v13940_v12 = vld [vmem:[#allocation5 + $0xdf0] sm:$0xf0] }
 0xabf   :  { %v15062_v1 = vld [vmem:[#allocation5 + $0x994] sm:$0xf]  ;;  %v13943_v63 = vor.u32 %v15198_v52, %v13940_v12  ;;  %9469 = vmatpush.bf16.msrb.mxu1 %v12695_v6 }
 0xac0   :  { %v13396_v25 = vld [vmem:[#allocation5 + $0x9b0] sm:$0xf0] }
 0xac1   :  { %v15126_v47 = vld [vmem:[#allocation5 + $0xb94] sm:$0xf]  ;;  %v13399_v13 = vor.u32 %v15062_v1, %v13396_v25 }
 0xac2   :  { %v13652_v46 = vld [vmem:[#allocation5 + $0xbb0] sm:$0xf0]  ;;  %9470 = vmatmul.bf16.vlgmr.msrb.gmra.mxu1 %v16406_v42 }
 0xac3   :  { %v15254_v15 = vld [vmem:[#allocation5 + $0xf94] sm:$0xf]  ;;  %v13655_v23 = vor.u32 %v15126_v47, %v13652_v46  ;;  %9514 = vmatpush.bf16.msra.mxu1 %v13943_v63  ;;  %9489 = vmatpush.bf16.msrb.mxu3 %v13399_v13  ;;  %v9263_v47 = vpop.f32.mrf.mxu1 }
 0xac4   :  { %v14164_v28 = vld [vmem:[#allocation5 + $0xfb0] sm:$0xf0] }
 0xac5   :  { %v15190_v30 = vld [vmem:[#allocation5 + $0xd94] sm:$0xf]  ;;  %v14167_v8 = vor.u32 %v15254_v15, %v14164_v28  ;;  %9502 = vmatpush.bf16.msra.mxu0 %v13655_v23  ;;  %v9237_v23 = vpop.f32.mrf.mxu3 }
 0xac6   :  { %v13908_v9 = vld [vmem:[#allocation5 + $0xdb0] sm:$0xf0] }
 0xac7   :  { %v15054_v20 = vld [vmem:[#allocation5 + $0x954] sm:$0xf]  ;;  %v13911_v5 = vor.u32 %v15190_v30, %v13908_v9  ;;  %9528 = vmatpush.bf16.msra.mxu2 %v14167_v8 }
 0xac8   :  { %v13364_v11 = vld [vmem:[#allocation5 + $0x970] sm:$0xf0] }
 0xac9   :  { %v15118_v38 = vld [vmem:[#allocation5 + $0xb54] sm:$0xf]  ;;  %v13367_v17 = vor.u32 %v15054_v20, %v13364_v11  ;;  %9515 = vmatpush.bf16.msra.mxu1 %v13911_v5 }
 0xaca   :  { %v13620_v58 = vld [vmem:[#allocation5 + $0xb70] sm:$0xf0] }
 0xacb   :  { %v15246_v16 = vld [vmem:[#allocation5 + $0xf54] sm:$0xf]  ;;  %v13623_v18 = vor.u32 %v15118_v38, %v13620_v58  ;;  %9490 = vmatpush.bf16.msrb.mxu3 %v13367_v17  ;;  %v9251_v38 = vadd.f32 %v9250_v61, %v9237_v23  ;;  %v9276_v58 = vpop.f32.mrf.mxu2  ;;  %v15011_v61 = vld [vmem:[#allocation5 + $0x7f4] sm:$0xf0] }
 0xacc   :  { %v14132_v39 = vld [vmem:[#allocation5 + $0xf70] sm:$0xf0] }
 0xacd   :  { %v15182_v43 = vld [vmem:[#allocation5 + $0xd54] sm:$0xf]  ;;  %v14135_v49 = vor.u32 %v15246_v16, %v14132_v39  ;;  %9503 = vmatpush.bf16.msra.mxu0 %v13623_v18  ;;  %v9264_v18 = vadd.f32 %v9263_v47, %v9251_v38 }
 0xace   :  { %v13876_v60 = vld [vmem:[#allocation5 + $0xd70] sm:$0xf0] }
 0xacf   :  { %v15046_v31 = vld [vmem:[#allocation5 + $0x914] sm:$0xf]  ;;  %v13879_v29 = vor.u32 %v15182_v43, %v13876_v60  ;;  %9529 = vmatpush.bf16.msra.mxu2 %v14135_v49 }
 0xad0   :  { %v13332_v56 = vld [vmem:[#allocation5 + $0x930] sm:$0xf0] }
 0xad1   :  { %v15110_v37 = vld [vmem:[#allocation5 + $0xb14] sm:$0xf]  ;;  %v13335_v45 = vor.u32 %v15046_v31, %v13332_v56  ;;  %9516 = vmatpush.bf16.msra.mxu1 %v13879_v29  ;;  %v9252_v31 = vpop.f32.mrf.mxu0 }
 0xad2   :  { %v13588_v36 = vld [vmem:[#allocation5 + $0xb30] sm:$0xf0]  ;;  %v13114_v31 = vld [vmem:[#allocation5 + $0x758] sm:$0xf] }
 0xad3   :  { %v15238_v44 = vld [vmem:[#allocation5 + $0xf14] sm:$0xf]  ;;  %v13591_v57 = vor.u32 %v15110_v37, %v13588_v36  ;;  %9491 = vmatpush.bf16.msrb.mxu3 %v13335_v45  ;;  %v9278_v47 = vpop.f32.mrf.mxu2 }
 0xad4   :  { %v14100_v41 = vld [vmem:[#allocation5 + $0xf30] sm:$0xf0]  ;;  %v14979_v47 = vld [vmem:[#allocation5 + $0x6f4] sm:$0xf0] }
 0xad5   :  { %v15174_v10 = vld [vmem:[#allocation5 + $0xd14] sm:$0xf]  ;;  %v14103_v50 = vor.u32 %v15238_v44, %v14100_v41  ;;  %9504 = vmatpush.bf16.msra.mxu0 %v13591_v57 }
 0xad6   :  { %v13844_v35 = vld [vmem:[#allocation5 + $0xd30] sm:$0xf0] }
 0xad7   :  { %v15038_v2 = vld [vmem:[#allocation5 + $0x8d4] sm:$0xf]  ;;  %v13847_v12 = vor.u32 %v15174_v10, %v13844_v35  ;;  %9530 = vmatpush.bf16.msra.mxu2 %v14103_v50  ;;  %v16514_v10 = vadd.f32 %v9276_v58, %v9264_v18  ;;  %v9265_v35 = vpop.f32.mrf.mxu1  ;;  %v14867_v18 = vld [vmem:[#allocation5 + $0x374] sm:$0xf0] }
 0xad8   :  { %v13300_v62 = vld [vmem:[#allocation5 + $0x8f0] sm:$0xf0]  ;;  %v12314_v35 = vld [vmem:[#allocation5 + $0x118] sm:$0xf] }
 0xad9   :  { %v15102_v21 = vld [vmem:[#allocation5 + $0xad4] sm:$0xf]  ;;  %v13303_v24 = vor.u32 %v15038_v2, %v13300_v62  ;;  %9517 = vmatpush.bf16.msra.mxu1 %v13847_v12  ;;  %v12666_v12 = vld [vmem:[#allocation5 + $0x3d8] sm:$0xf] }
 0xada   :  { %v13556_v52 = vld [vmem:[#allocation5 + $0xaf0] sm:$0xf0] }
 0xadb   :  { %v15230_v54 = vld [vmem:[#allocation5 + $0xed4] sm:$0xf]  ;;  %v13559_v6 = vor.u32 %v15102_v21, %v13556_v52  ;;  %9492 = vmatpush.bf16.msrb.mxu3 %v13303_v24  ;;  %v12410_v21 = vld [vmem:[#allocation5 + $0x1d8] sm:$0xf] }
 0xadc   :  { %v14068_v59 = vld [vmem:[#allocation5 + $0xef0] sm:$0xf0]  ;;  %v14819_v52 = vld [vmem:[#allocation5 + $0x1f4] sm:$0xf0] }
 0xadd   :  { %v15166_v53 = vld [vmem:[#allocation5 + $0xcd4] sm:$0xf]  ;;  %v14071_v46 = vor.u32 %v15230_v54, %v14068_v59  ;;  %9505 = vmatpush.bf16.msra.mxu0 %v13559_v6  ;;  %v14883_v54 = vld [vmem:[#allocation5 + $0x3f4] sm:$0xf0] }
 0xade   :  { %v13812_v1 = vld [vmem:[#allocation5 + $0xcf0] sm:$0xf0]  ;;  %v13178_v59 = vld [vmem:[#allocation5 + $0x7d8] sm:$0xf] }
 0xadf   :  { %v15030_v25 = vld [vmem:[#allocation5 + $0x894] sm:$0xf]  ;;  %v13815_v28 = vor.u32 %v15166_v53, %v13812_v1  ;;  %9531 = vmatpush.bf16.msra.mxu2 %v14071_v46  ;;  %v9239_v53 = vpop.f32.mrf.mxu3 }
 0xae0   :  { %v13268_v26 = vld [vmem:[#allocation5 + $0x8b0] sm:$0xf0]  ;;  %v12282_v53 = vld [vmem:[#allocation5 + $0xd8] sm:$0xf] }
 0xae1   :  { %v15094_v63 = vld [vmem:[#allocation5 + $0xa94] sm:$0xf]  ;;  %v13271_v20 = vor.u32 %v15030_v25, %v13268_v26  ;;  %9518 = vmatpush.bf16.msra.mxu1 %v13815_v28  ;;  %v12411_v26 = vor.u32 %v14819_v52, %v12410_v21  ;;  %v12667_v28 = vor.u32 %v14883_v54, %v12666_v12  ;;  %v12826_v12 = vld [vmem:[#allocation5 + $0x518] sm:$0xf] }
 0xae2   :  { %v13524_v15 = vld [vmem:[#allocation5 + $0xab0] sm:$0xf0]  ;;  %v14923_v54 = vld [vmem:[#allocation5 + $0x534] sm:$0xf0] }
 0xae3   :  { %v15222_v30 = vld [vmem:[#allocation5 + $0xe94] sm:$0xf]  ;;  %v13527_v8 = vor.u32 %v15094_v63, %v13524_v15  ;;  %9493 = vmatpush.bf16.msrb.mxu3 %v13271_v20  ;;  %v12922_v63 = vld [vmem:[#allocation5 + $0x5d8] sm:$0xf] }
 0xae4   :  { %v14036_v9 = vld [vmem:[#allocation5 + $0xeb0] sm:$0xf0]  ;;  %v14947_v15 = vld [vmem:[#allocation5 + $0x5f4] sm:$0xf0] }
 0xae5   :  { %v15158_v33 = vld [vmem:[#allocation5 + $0xc94] sm:$0xf]  ;;  %v14039_v19 = vor.u32 %v15222_v30, %v14036_v9  ;;  %9506 = vmatpush.bf16.msra.mxu0 %v13527_v8  ;;  %v13179_v30 = vor.u32 %v15011_v61, %v13178_v59  ;;  %v12378_v9 = vld [vmem:[#allocation5 + $0x198] sm:$0xf]  ;;  %v12923_v38 = vor.u32 %v14947_v15, %v12922_v63 }
 0xae6   :  { %v13780_v13 = vld [vmem:[#allocation5 + $0xcb0] sm:$0xf0]  ;;  %v14875_v20 = vld [vmem:[#allocation5 + $0x3b4] sm:$0xf0] }
 0xae7   :  { %v15022_v11 = vld [vmem:[#allocation5 + $0x854] sm:$0xf]  ;;  %v13783_v43 = vor.u32 %v15158_v33, %v13780_v13  ;;  %9532 = vmatpush.bf16.msra.mxu2 %v14039_v19  ;;  %v14811_v33 = vld [vmem:[#allocation5 + $0x1b4] sm:$0xf0] }
 0xae8   :  { %v13236_v5 = vld [vmem:[#allocation5 + $0x870] sm:$0xf0]  ;;  %v12634_v13 = vld [vmem:[#allocation5 + $0x398] sm:$0xf]  ;;  %v12379_v58 = vor.u32 %v14811_v33, %v12378_v9 }
 0xae9   :  { %v15086_v16 = vld [vmem:[#allocation5 + $0xa54] sm:$0xf]  ;;  %v13239_v37 = vor.u32 %v15022_v11, %v13236_v5  ;;  %9519 = vmatpush.bf16.msra.mxu1 %v13783_v43  ;;  %v13146_v8 = vld [vmem:[#allocation5 + $0x798] sm:$0xf] }
 0xaea   :  { %v13492_v39 = vld [vmem:[#allocation5 + $0xa70] sm:$0xf0]  ;;  %v15003_v11 = vld [vmem:[#allocation5 + $0x7b4] sm:$0xf0] }
 0xaeb   :  { %v15214_v60 = vld [vmem:[#allocation5 + $0xe54] sm:$0xf]  ;;  %v13495_v36 = vor.u32 %v15086_v16, %v13492_v39  ;;  %9494 = vmatpush.bf16.msrb.mxu3 %v13239_v37  ;;  %v12890_v19 = vld [vmem:[#allocation5 + $0x598] sm:$0xf]  ;;  %v12635_v16 = vor.u32 %v14875_v20, %v12634_v13  ;;  %v13147_v39 = vor.u32 %v15003_v11, %v13146_v8  ;;  %v9315_v20 = vpop.f32.mrf.mxu1 }
 0xaec   :  { %v14004_v17 = vld [vmem:[#allocation5 + $0xe70] sm:$0xf0]  ;;  %v14939_v5 = vld [vmem:[#allocation5 + $0x5b4] sm:$0xf0] }
 0xaed   :  { %v15150_v49 = vld [vmem:[#allocation5 + $0xc54] sm:$0xf]  ;;  %v14007_v45 = vor.u32 %v15214_v60, %v14004_v17  ;;  %9507 = vmatpush.bf16.msra.mxu0 %v13495_v36  ;;  %v12346_v43 = vld [vmem:[#allocation5 + $0x158] sm:$0xf] }
 0xaee   :  { %v13748_v56 = vld [vmem:[#allocation5 + $0xc70] sm:$0xf0]  ;;  %v14803_v60 = vld [vmem:[#allocation5 + $0x174] sm:$0xf0] }
 0xaef   :  { %v15014_v29 = vld [vmem:[#allocation5 + $0x814] sm:$0xf]  ;;  %v13751_v62 = vor.u32 %v15150_v49, %v13748_v56  ;;  %9533 = vmatpush.bf16.msra.mxu2 %v14007_v45  ;;  %v12602_v17 = vld [vmem:[#allocation5 + $0x358] sm:$0xf]  ;;  %v12891_v56 = vor.u32 %v14939_v5, %v12890_v19  ;;  %v12347_v37 = vor.u32 %v14803_v60, %v12346_v43  ;;  %v9328_v60 = vpop.f32.mrf.mxu2 }
 0xaf0   :  { %v13204_v44 = vld [vmem:[#allocation5 + $0x830] sm:$0xf0]  ;;  %v14995_v49 = vld [vmem:[#allocation5 + $0x774] sm:$0xf0] }
 0xaf1   :  { %v15078_v41 = vld [vmem:[#allocation5 + $0xa14] sm:$0xf]  ;;  %v13207_v1 = vor.u32 %v15014_v29, %v13204_v44  ;;  %9520 = vmatpush.bf16.msra.mxu1 %v13751_v62  ;;  %v12858_v36 = vld [vmem:[#allocation5 + $0x558] sm:$0xf]  ;;  %v12603_v44 = vor.u32 %v14867_v18, %v12602_v17 }
 0xaf2   :  { %v13460_v57 = vld [vmem:[#allocation5 + $0xa30] sm:$0xf0]  ;;  %v14931_v29 = vld [vmem:[#allocation5 + $0x574] sm:$0xf0] }
 0xaf3   :  { %v15206_v2 = vld [vmem:[#allocation5 + $0xe14] sm:$0xf]  ;;  %v13463_v24 = vor.u32 %v15078_v41, %v13460_v57  ;;  %9495 = vmatpush.bf16.msrb.mxu3 %v13207_v1  ;;  %v13115_v41 = vor.u32 %v14995_v49, %v13114_v31  ;;  %v14795_v45 = vld [vmem:[#allocation5 + $0x134] sm:$0xf0]  ;;  %v12859_v21 = vor.u32 %v14931_v29, %v12858_v36 }
 0xaf4   :  { %v13972_v50 = vld [vmem:[#allocation5 + $0xe30] sm:$0xf0]  ;;  %v12570_v57 = vld [vmem:[#allocation5 + $0x318] sm:$0xf]  ;;  %v12315_v52 = vor.u32 %v14795_v45, %v12314_v35 }
 0xaf5   :  { %v15142_v6 = vld [vmem:[#allocation5 + $0xc14] sm:$0xf]  ;;  %v13975_v46 = vor.u32 %v15206_v2, %v13972_v50  ;;  %9508 = vmatpush.bf16.msra.mxu0 %v13463_v24  ;;  %v14859_v2 = vld [vmem:[#allocation5 + $0x334] sm:$0xf0] }
 0xaf6   :  { %v13716_v25 = vld [vmem:[#allocation5 + $0xc30] sm:$0xf0]  ;;  %9496 = vmatmul.bf16.vlgmr.msrb.gmra.mxu3 %v16416_v32  ;;  %v13082_v50 = vld [vmem:[#allocation5 + $0x718] sm:$0xf]  ;;  %v12571_v59 = vor.u32 %v14859_v2, %v12570_v57 }
 0xaf7   :  { %v13719_v23 = vor.u32 %v15142_v6, %v13716_v25  ;;  %9534 = vmatpush.bf16.msra.mxu2 %v13975_v46  ;;  %9540 = vmatpush.bf16.msra.mxu3 %v12411_v26  ;;  %v14987_v62 = vld [vmem:[#allocation5 + $0x734] sm:$0xf0]  ;;  %v12827_v46 = vor.u32 %v14923_v54, %v12826_v12  ;;  %v9302_v26 = vpop.f32.mrf.mxu0 }
 0xaf8   :  { %9509 = vmatmul.bf16.vlgmr.msra.gmra.mxu0 %v16424_v4  ;;  %v13083_v61 = vor.u32 %v14987_v62, %v13082_v50  ;;  %v14787_v1 = vld [vmem:[#allocation5 + $0xf4] sm:$0xf0] }
 0xaf9   :  { %9553 = vmatpush.bf16.msrb.mxu0 %v12667_v28  ;;  %9521 = vmatpush.bf16.msra.mxu1 %v13719_v23  ;;  %v12538_v24 = vld [vmem:[#allocation5 + $0x2d8] sm:$0xf]  ;;  %v12283_v63 = vor.u32 %v14787_v1, %v12282_v53  ;;  %v9317_v1 = vpop.f32.mrf.mxu1 }
 0xafa   :  { %9535 = vmatmul.bf16.vlgmr.msra.gmra.mxu2 %v16420_v7  ;;  %v14851_v6 = vld [vmem:[#allocation5 + $0x2f4] sm:$0xf0] }
 0xafb   :  { %9579 = vmatpush.bf16.msrb.mxu2 %v13179_v30  ;;  %9541 = vmatpush.bf16.msra.mxu3 %v12379_v58  ;;  %v13050_v25 = vld [vmem:[#allocation5 + $0x6d8] sm:$0xf]  ;;  %v12539_v30 = vor.u32 %v14851_v6, %v12538_v24  ;;  %v9289_v58 = vpop.f32.mrf.mxu3 }
 0xafc   :  { %9522 = vmatmul.bf16.vlgmr.msra.gmra.mxu1 %v16429_v48  ;;  %v12794_v15 = vld [vmem:[#allocation5 + $0x4d8] sm:$0xf]  ;;  %v13051_v9 = vor.u32 %v14979_v47, %v13050_v25  ;;  %v9290_v5 = vadd.f32 %v9289_v58, %v16514_v10 }
 0xafd   :  { %9566 = vmatpush.bf16.msrb.mxu1 %v12923_v38  ;;  %9554 = vmatpush.bf16.msrb.mxu0 %v12635_v16  ;;  %v14915_v28 = vld [vmem:[#allocation5 + $0x4f4] sm:$0xf0] }
 0xafe   :  { %v12250_v33 = vld [vmem:[#allocation5 + $0x98] sm:$0xf]  ;;  %v12795_v19 = vor.u32 %v14915_v28, %v12794_v15 }
 0xaff   :  { %9580 = vmatpush.bf16.msrb.mxu2 %v13147_v39  ;;  %9542 = vmatpush.bf16.msra.mxu3 %v12347_v37  ;;  %v14779_v13 = vld [vmem:[#allocation5 + $0xb4] sm:$0xf0]  ;;  %v9303_v37 = vadd.f32 %v9302_v26, %v9290_v5  ;;  %v9304_v2 = vpop.f32.mrf.mxu0  ;;  %v16525_v5 = vld [vmem:[#allocation27] sm:$0xff] }
 0xb00   :  { %v12506_v23 = vld [vmem:[#allocation5 + $0x298] sm:$0xf]  ;;  %v12251_v16 = vor.u32 %v14779_v13, %v12250_v33 }
 0xb01   :  { %9567 = vmatpush.bf16.msrb.mxu1 %v12891_v56  ;;  %9555 = vmatpush.bf16.msrb.mxu0 %v12603_v44  ;;  %v14843_v8 = vld [vmem:[#allocation5 + $0x2b4] sm:$0xf0]  ;;  %v9316_v50 = vadd.f32 %v9315_v20, %v9303_v37  ;;  %v9330_v20 = vpop.f32.mrf.mxu2 }
 0xb02   :  { %v13018_v11 = vld [vmem:[#allocation5 + $0x698] sm:$0xf]  ;;  %v12507_v17 = vor.u32 %v14843_v8, %v12506_v23 }
 0xb03   :  { %9581 = vmatpush.bf16.msrb.mxu2 %v13115_v41  ;;  %9543 = vmatpush.bf16.msra.mxu3 %v12315_v52  ;;  %v14971_v38 = vld [vmem:[#allocation5 + $0x6b4] sm:$0xf0]  ;;  %v9751_v41 = vperm.slane %v16364_v27, 0  ;;  %v9329_v24 = vadd.f32 %v9328_v60, %v9316_v50  ;;  %v9291_v28 = vpop.f32.mrf.mxu3 }
 0xb04   :  { %v12762_v39 = vld [vmem:[#allocation5 + $0x498] sm:$0xf]  ;;  %v13019_v18 = vor.u32 %v14971_v38, %v13018_v11 }
 0xb05   :  { %9568 = vmatpush.bf16.msrb.mxu1 %v12859_v21  ;;  %9556 = vmatpush.bf16.msrb.mxu0 %v12571_v59  ;;  %v14907_v43 = vld [vmem:[#allocation5 + $0x4b4] sm:$0xf0] }
 0xb06   :  { %v12218_v31 = vld [vmem:[#allocation5 + $0x58] sm:$0xf]  ;;  %v12763_v35 = vor.u32 %v14907_v43, %v12762_v39 }
 0xb07   :  { %9582 = vmatpush.bf16.msrb.mxu2 %v13083_v61  ;;  %9544 = vmatpush.bf16.msra.mxu3 %v12283_v63  ;;  %v14771_v49 = vld [vmem:[#allocation5 + $0x74] sm:$0xf0] }
 0xb08   :  { %v12474_v56 = vld [vmem:[#allocation5 + $0x258] sm:$0xf]  ;;  %v12219_v62 = vor.u32 %v14771_v49, %v12218_v31 }
 0xb09   :  { %9569 = vmatpush.bf16.msrb.mxu1 %v12827_v46  ;;  %9557 = vmatpush.bf16.msrb.mxu0 %v12539_v30  ;;  %v14835_v36 = vld [vmem:[#allocation5 + $0x274] sm:$0xf0]  ;;  %v9759_v30 = vadd.f32 %v9751_v41, %v9329_v24 }
 0xb0a   :  { %v12986_v29 = vld [vmem:[#allocation5 + $0x658] sm:$0xf]  ;;  %v12475_v54 = vor.u32 %v14835_v36, %v12474_v56 }
 0xb0b   :  { %9583 = vmatpush.bf16.msrb.mxu2 %v13051_v9  ;;  %v14963_v44 = vld [vmem:[#allocation5 + $0x674] sm:$0xf0]  ;;  %9545 = vmatpush.bf16.msra.mxu3 %v12251_v16  ;;  %v9803_v16 = vperm.slane %v16525_v5, 3 }
 0xb0c   :  { %v16522_v10 = vld [vmem:[#allocation25] sm:$0xff]  ;;  %v12987_v59 = vor.u32 %v14963_v44, %v12986_v29 }
 0xb0d   :  { %9570 = vmatpush.bf16.msrb.mxu1 %v12795_v19  ;;  %v9769_v45 = vperm.slane %v16522_v10, 3  ;;  %v12730_v57 = vld [vmem:[#allocation5 + $0x458] sm:$0xf]  ;;  %9558 = vmatpush.bf16.msrb.mxu0 %v12507_v17 }
 0xb0e   :  { %v14899_v21 = vld [vmem:[#allocation5 + $0x474] sm:$0xf0] }
 0xb0f   :  { %v12186_v52 = vld [vmem:[#allocation5 + $0x18] sm:$0xf]  ;;  %9584 = vmatpush.bf16.msrb.mxu2 %v13019_v18  ;;  %v12731_v46 = vor.u32 %v14899_v21, %v12730_v57  ;;  %9546 = vmatpush.bf16.msra.mxu3 %v12219_v62  ;;  %v9785_v19 = vadd.f32 %v9769_v45, %v9759_v30 }
 0xb10   :  { %v14763_v12 = vld [vmem:[#allocation5 + $0x34] sm:$0xf0] }
 0xb11   :  { %v12442_v61 = vld [vmem:[#allocation5 + $0x218] sm:$0xf]  ;;  %9571 = vmatpush.bf16.msrb.mxu1 %v12763_v35  ;;  %v12187_v9 = vor.u32 %v14763_v12, %v12186_v52  ;;  %9559 = vmatpush.bf16.msrb.mxu0 %v12475_v54  ;;  %v9793_v37 = vmax.f32 %v9785_v19, 0.0 }
 0xb12   :  { %v14827_v27 = vld [vmem:[#allocation5 + $0x234] sm:$0xf0] }
 0xb13   :  { %v12954_v53 = vld [vmem:[#allocation5 + $0x618] sm:$0xf]  ;;  %9585 = vmatpush.bf16.msrb.mxu2 %v12987_v59  ;;  %v12443_v8 = vor.u32 %v14827_v27, %v12442_v61  ;;  %9547 = vmatpush.bf16.msra.mxu3 %v12187_v9  ;;  %v9819_v45 = vmul.f32 %v9803_v16, %v9793_v37 }
 0xb14   :  { %v14955_v6 = vld [vmem:[#allocation5 + $0x634] sm:$0xf0] }
 0xb15   :  { %v13434_v25 = vld [vmem:[#allocation5 + $0x9d8] sm:$0xf]  ;;  %v12955_v11 = vor.u32 %v14955_v6, %v12954_v53  ;;  %9572 = vmatpush.bf16.msrb.mxu1 %v12731_v46  ;;  %9560 = vmatpush.bf16.msrb.mxu0 %v12443_v8  ;;  %v9830_v27 = vsel %vm9824_vm5, %v9819_v45, 0.0 }
 0xb16   :  { %v15075_v47 = vld [vmem:[#allocation5 + $0x9f4] sm:$0xf0]  ;;  %9548 = vmatmul.bf16.vlgmr.msra.gmra.mxu3 %v16394_v3  ;;  %v16533_v24 = vadd.f32 %v9830_v27, %v16511_v0 }
 0xb17   :  { %v13690_v26 = vld [vmem:[#allocation5 + $0xbd8] sm:$0xf]  ;;  %v13435_v39 = vor.u32 %v15075_v47, %v13434_v25  ;;  %9586 = vmatpush.bf16.msrb.mxu2 %v12955_v11 }
 0xb18   :  { %v15139_v63 = vld [vmem:[#allocation5 + $0xbf4] sm:$0xf0]  ;;  %9561 = vmatmul.bf16.vlgmr.msrb.gmra.mxu0 %v16402_v55 }
 0xb19   :  { %v14202_v15 = vld [vmem:[#allocation5 + $0xfd8] sm:$0xf]  ;;  %v13691_v43 = vor.u32 %v15139_v63, %v13690_v26  ;;  %9592 = vmatpush.bf16.msrb.mxu3 %v13435_v39 }
 0xb1a   :  { %v15267_v33 = vld [vmem:[#allocation5 + $0xff4] sm:$0xf0]  ;;  %9587 = vmatmul.bf16.vlgmr.msrb.gmra.mxu2 %v16398_v40 }
 0xb1b   :  { %v12698_v13 = vld [vmem:[#allocation5 + $0x418] sm:$0xf]  ;;  %v14203_v17 = vor.u32 %v15267_v33, %v14202_v15  ;;  %9605 = vmatpush.bf16.msra.mxu0 %v13691_v43  ;;  %v9354_v43 = vpop.f32.mrf.mxu0 }
 0xb1c   :  { %v14891_v23 = vld [vmem:[#allocation5 + $0x434] sm:$0xf0] }
 0xb1d   :  { %v13946_v38 = vld [vmem:[#allocation5 + $0xdd8] sm:$0xf]  ;;  %v12699_v18 = vor.u32 %v14891_v23, %v12698_v13  ;;  %9631 = vmatpush.bf16.msra.mxu2 %v14203_v17 }
 0xb1e   :  { %v15203_v58 = vld [vmem:[#allocation5 + $0xdf4] sm:$0xf0] }
 0xb1f   :  { %v13402_v60 = vld [vmem:[#allocation5 + $0x998] sm:$0xf]  ;;  %v13947_v36 = vor.u32 %v15203_v58, %v13946_v38  ;;  %9573 = vmatpush.bf16.msrb.mxu1 %v12699_v18 }
 0xb20   :  { %v15067_v31 = vld [vmem:[#allocation5 + $0x9b4] sm:$0xf0] }
 0xb21   :  { %v13658_v49 = vld [vmem:[#allocation5 + $0xb98] sm:$0xf]  ;;  %v13403_v57 = vor.u32 %v15067_v31, %v13402_v60 }
 0xb22   :  { %v15131_v56 = vld [vmem:[#allocation5 + $0xbb4] sm:$0xf0]  ;;  %9574 = vmatmul.bf16.vlgmr.msrb.gmra.mxu1 %v16406_v42 }
 0xb23   :  { %v14170_v29 = vld [vmem:[#allocation5 + $0xf98] sm:$0xf]  ;;  %v13659_v2 = vor.u32 %v15131_v56, %v13658_v49  ;;  %9618 = vmatpush.bf16.msra.mxu1 %v13947_v36  ;;  %9593 = vmatpush.bf16.msrb.mxu3 %v13403_v57  ;;  %v9367_v56 = vpop.f32.mrf.mxu1 }
 0xb24   :  { %v15259_v44 = vld [vmem:[#allocation5 + $0xfb4] sm:$0xf0] }
 0xb25   :  { %v13914_v41 = vld [vmem:[#allocation5 + $0xd98] sm:$0xf]  ;;  %v14171_v62 = vor.u32 %v15259_v44, %v14170_v29  ;;  %9606 = vmatpush.bf16.msra.mxu0 %v13659_v2 }
 0xb26   :  { %v15195_v35 = vld [vmem:[#allocation5 + $0xdb4] sm:$0xf0] }
 0xb27   :  { %v13370_v50 = vld [vmem:[#allocation5 + $0x958] sm:$0xf]  ;;  %v13915_v54 = vor.u32 %v15195_v35, %v13914_v41  ;;  %9632 = vmatpush.bf16.msra.mxu2 %v14171_v62 }
 0xb28   :  { %v15059_v21 = vld [vmem:[#allocation5 + $0x974] sm:$0xf0] }
 0xb29   :  { %v13626_v52 = vld [vmem:[#allocation5 + $0xb58] sm:$0xf]  ;;  %v13371_v6 = vor.u32 %v15059_v21, %v13370_v50  ;;  %9619 = vmatpush.bf16.msra.mxu1 %v13915_v54  ;;  %v9341_v50 = vpop.f32.mrf.mxu3  ;;  %v9380_v54 = vpop.f32.mrf.mxu2 }
 0xb2a   :  { %v15123_v12 = vld [vmem:[#allocation5 + $0xb74] sm:$0xf0] }
 0xb2b   :  { %v14138_v59 = vld [vmem:[#allocation5 + $0xf58] sm:$0xf]  ;;  %v13627_v25 = vor.u32 %v15123_v12, %v13626_v52  ;;  %9594 = vmatpush.bf16.msrb.mxu3 %v13371_v6  ;;  %v9355_v12 = vadd.f32 %v9354_v43, %v9341_v50  ;;  %v15007_v43 = vld [vmem:[#allocation5 + $0x7dc] sm:$0xf] }
 0xb2c   :  { %v15251_v61 = vld [vmem:[#allocation5 + $0xf74] sm:$0xf0]  ;;  %v14871_v50 = vld [vmem:[#allocation5 + $0x39c] sm:$0xf] }
 0xb2d   :  { %v13882_v53 = vld [vmem:[#allocation5 + $0xd58] sm:$0xf]  ;;  %v14139_v46 = vor.u32 %v15251_v61, %v14138_v59  ;;  %9607 = vmatpush.bf16.msra.mxu0 %v13627_v25 }
 0xb2e   :  { %v15187_v1 = vld [vmem:[#allocation5 + $0xd74] sm:$0xf0] }
 0xb2f   :  { %v13338_v47 = vld [vmem:[#allocation5 + $0x918] sm:$0xf]  ;;  %v13883_v28 = vor.u32 %v15187_v1, %v13882_v53  ;;  %9633 = vmatpush.bf16.msra.mxu2 %v14139_v46  ;;  %v9356_v46 = vpop.f32.mrf.mxu0 }
 0xb30   :  { %v15051_v26 = vld [vmem:[#allocation5 + $0x934] sm:$0xf0]  ;;  %v12604_v46 = vld [vmem:[#allocation5 + $0x378] sm:$0xf0] }
 0xb31   :  { %v13594_v63 = vld [vmem:[#allocation5 + $0xb18] sm:$0xf]  ;;  %v13339_v0 = vor.u32 %v15051_v26, %v13338_v47  ;;  %9620 = vmatpush.bf16.msra.mxu1 %v13883_v28  ;;  %v9368_v47 = vadd.f32 %v9367_v56, %v9355_v12  ;;  %v13148_v12 = vld [vmem:[#allocation5 + $0x7b8] sm:$0xf0] }
 0xb32   :  { %v15115_v15 = vld [vmem:[#allocation5 + $0xb34] sm:$0xf0] }
 0xb33   :  { %v14106_v30 = vld [vmem:[#allocation5 + $0xf18] sm:$0xf]  ;;  %v13595_v23 = vor.u32 %v15115_v15, %v13594_v63  ;;  %9595 = vmatpush.bf16.msrb.mxu3 %v13339_v0  ;;  %v9369_v0 = vpop.f32.mrf.mxu1 }
 0xb34   :  { %v15243_v9 = vld [vmem:[#allocation5 + $0xf34] sm:$0xf0] }
 0xb35   :  { %v13850_v33 = vld [vmem:[#allocation5 + $0xd18] sm:$0xf]  ;;  %v14107_v8 = vor.u32 %v15243_v9, %v14106_v30  ;;  %9608 = vmatpush.bf16.msra.mxu0 %v13595_v23 }
 0xb36   :  { %v15179_v13 = vld [vmem:[#allocation5 + $0xd34] sm:$0xf0] }
 0xb37   :  { %v13306_v20 = vld [vmem:[#allocation5 + $0x8d8] sm:$0xf]  ;;  %v13851_v19 = vor.u32 %v15179_v13, %v13850_v33  ;;  %9634 = vmatpush.bf16.msra.mxu2 %v14107_v8  ;;  %v16536_v13 = vadd.f32 %v9380_v54, %v9368_v47  ;;  %v14863_v47 = vld [vmem:[#allocation5 + $0x35c] sm:$0xf] }
 0xb38   :  { %v15043_v11 = vld [vmem:[#allocation5 + $0x8f4] sm:$0xf0] }
 0xb39   :  { %v13562_v38 = vld [vmem:[#allocation5 + $0xad8] sm:$0xf]  ;;  %v13307_v18 = vor.u32 %v15043_v11, %v13306_v20  ;;  %9621 = vmatpush.bf16.msra.mxu1 %v13851_v19  ;;  %v12412_v19 = vld [vmem:[#allocation5 + $0x1f8] sm:$0xf0] }
 0xb3a   :  { %v15107_v58 = vld [vmem:[#allocation5 + $0xaf4] sm:$0xf0] }
 0xb3b   :  { %v14074_v16 = vld [vmem:[#allocation5 + $0xed8] sm:$0xf]  ;;  %v13563_v31 = vor.u32 %v15107_v58, %v13562_v38  ;;  %9596 = vmatpush.bf16.msrb.mxu3 %v13307_v18  ;;  %v14815_v58 = vld [vmem:[#allocation5 + $0x1dc] sm:$0xf] }
 0xb3c   :  { %v15235_v39 = vld [vmem:[#allocation5 + $0xef4] sm:$0xf0] }
 0xb3d   :  { %v13818_v60 = vld [vmem:[#allocation5 + $0xcd8] sm:$0xf]  ;;  %v14075_v37 = vor.u32 %v15235_v39, %v14074_v16  ;;  %9609 = vmatpush.bf16.msra.mxu0 %v13563_v31  ;;  %v14879_v16 = vld [vmem:[#allocation5 + $0x3dc] sm:$0xf] }
 0xb3e   :  { %v15171_v17 = vld [vmem:[#allocation5 + $0xcf4] sm:$0xf0]  ;;  %v12668_v39 = vld [vmem:[#allocation5 + $0x3f8] sm:$0xf0] }
 0xb3f   :  { %v13274_v49 = vld [vmem:[#allocation5 + $0x898] sm:$0xf]  ;;  %v13819_v41 = vor.u32 %v15171_v17, %v13818_v60  ;;  %9635 = vmatpush.bf16.msra.mxu2 %v14075_v37  ;;  %v13180_v60 = vld [vmem:[#allocation5 + $0x7f8] sm:$0xf0]  ;;  %v9343_v17 = vpop.f32.mrf.mxu3  ;;  %v9382_v37 = vpop.f32.mrf.mxu2 }
 0xb40   :  { %v15035_v36 = vld [vmem:[#allocation5 + $0x8b4] sm:$0xf0]  ;;  %v14975_v37 = vld [vmem:[#allocation5 + $0x6dc] sm:$0xf] }
 0xb41   :  { %v13530_v29 = vld [vmem:[#allocation5 + $0xa98] sm:$0xf]  ;;  %v13275_v62 = vor.u32 %v15035_v36, %v13274_v49  ;;  %9622 = vmatpush.bf16.msra.mxu1 %v13819_v41  ;;  %v12924_v41 = vld [vmem:[#allocation5 + $0x5f8] sm:$0xf0] }
 0xb42   :  { %v15099_v44 = vld [vmem:[#allocation5 + $0xab4] sm:$0xf0] }
 0xb43   :  { %v14042_v35 = vld [vmem:[#allocation5 + $0xe98] sm:$0xf]  ;;  %v13531_v21 = vor.u32 %v15099_v44, %v13530_v29  ;;  %9597 = vmatpush.bf16.msrb.mxu3 %v13275_v62  ;;  %v12415_v29 = vor.u32 %v14815_v58, %v12412_v19  ;;  %v14943_v44 = vld [vmem:[#allocation5 + $0x5dc] sm:$0xf] }
 0xb44   :  { %v15227_v45 = vld [vmem:[#allocation5 + $0xeb4] sm:$0xf0]  ;;  %v12927_v54 = vor.u32 %v14943_v44, %v12924_v41  ;;  %v13084_v58 = vld [vmem:[#allocation5 + $0x738] sm:$0xf0]  ;;  %v9406_v44 = vpop.f32.mrf.mxu0 }
 0xb45   :  { %v13786_v57 = vld [vmem:[#allocation5 + $0xc98] sm:$0xf]  ;;  %v14043_v59 = vor.u32 %v15227_v45, %v14042_v35  ;;  %9610 = vmatpush.bf16.msra.mxu0 %v13531_v21  ;;  %v12671_v35 = vor.u32 %v14879_v16, %v12668_v39  ;;  %v13183_v45 = vor.u32 %v15007_v43, %v13180_v60  ;;  %v12636_v21 = vld [vmem:[#allocation5 + $0x3b8] sm:$0xf0] }
 0xb46   :  { %v15163_v2 = vld [vmem:[#allocation5 + $0xcb4] sm:$0xf0]  ;;  %v14919_v39 = vld [vmem:[#allocation5 + $0x51c] sm:$0xf] }
 0xb47   :  { %v13242_v52 = vld [vmem:[#allocation5 + $0x858] sm:$0xf]  ;;  %v13787_v1 = vor.u32 %v15163_v2, %v13786_v57  ;;  %9636 = vmatpush.bf16.msra.mxu2 %v14043_v59  ;;  %v14807_v57 = vld [vmem:[#allocation5 + $0x19c] sm:$0xf] }
 0xb48   :  { %v15027_v61 = vld [vmem:[#allocation5 + $0x874] sm:$0xf0]  ;;  %v12380_v2 = vld [vmem:[#allocation5 + $0x1b8] sm:$0xf0] }
 0xb49   :  { %v13498_v27 = vld [vmem:[#allocation5 + $0xa58] sm:$0xf]  ;;  %v13243_v15 = vor.u32 %v15027_v61, %v13242_v52  ;;  %9623 = vmatpush.bf16.msra.mxu1 %v13787_v1  ;;  %v14999_v52 = vld [vmem:[#allocation5 + $0x79c] sm:$0xf]  ;;  %v12383_v59 = vor.u32 %v14807_v57, %v12380_v2 }
 0xb4a   :  { %v15091_v53 = vld [vmem:[#allocation5 + $0xa74] sm:$0xf0]  ;;  %v14935_v61 = vld [vmem:[#allocation5 + $0x59c] sm:$0xf]  ;;  %v13151_v1 = vor.u32 %v14999_v52, %v13148_v12  ;;  %v9419_v52 = vpop.f32.mrf.mxu1 }
 0xb4b   :  { %v14010_v6 = vld [vmem:[#allocation5 + $0xe58] sm:$0xf]  ;;  %v13499_v28 = vor.u32 %v15091_v53, %v13498_v27  ;;  %9598 = vmatpush.bf16.msrb.mxu3 %v13243_v15  ;;  %v12892_v27 = vld [vmem:[#allocation5 + $0x5b8] sm:$0xf0]  ;;  %v12639_v53 = vor.u32 %v14871_v50, %v12636_v21 }
 0xb4c   :  { %v15219_v25 = vld [vmem:[#allocation5 + $0xe74] sm:$0xf0]  ;;  %v12895_v15 = vor.u32 %v14935_v61, %v12892_v27  ;;  %v12828_v43 = vld [vmem:[#allocation5 + $0x538] sm:$0xf0]  ;;  %v9393_v61 = vpop.f32.mrf.mxu3 }
 0xb4d   :  { %v13754_v26 = vld [vmem:[#allocation5 + $0xc58] sm:$0xf]  ;;  %v14011_v23 = vor.u32 %v15219_v25, %v14010_v6  ;;  %9611 = vmatpush.bf16.msra.mxu0 %v13499_v28  ;;  %v14799_v6 = vld [vmem:[#allocation5 + $0x15c] sm:$0xf] }
 0xb4e   :  { %v15155_v63 = vld [vmem:[#allocation5 + $0xc74] sm:$0xf0]  ;;  %v12348_v25 = vld [vmem:[#allocation5 + $0x178] sm:$0xf0] }
 0xb4f   :  { %v13210_v30 = vld [vmem:[#allocation5 + $0x818] sm:$0xf]  ;;  %v13755_v38 = vor.u32 %v15155_v63, %v13754_v26  ;;  %9637 = vmatpush.bf16.msra.mxu2 %v14011_v23  ;;  %v14991_v26 = vld [vmem:[#allocation5 + $0x75c] sm:$0xf]  ;;  %v12351_v28 = vor.u32 %v14799_v6, %v12348_v25 }
 0xb50   :  { %v15019_v9 = vld [vmem:[#allocation5 + $0x834] sm:$0xf0]  ;;  %v13116_v63 = vld [vmem:[#allocation5 + $0x778] sm:$0xf0] }
 0xb51   :  { %v13466_v33 = vld [vmem:[#allocation5 + $0xa18] sm:$0xf]  ;;  %v13211_v18 = vor.u32 %v15019_v9, %v13210_v30  ;;  %9624 = vmatpush.bf16.msra.mxu1 %v13755_v38  ;;  %v14927_v30 = vld [vmem:[#allocation5 + $0x55c] sm:$0xf]  ;;  %v13119_v0 = vor.u32 %v14991_v26, %v13116_v63 }
 0xb52   :  { %v15083_v20 = vld [vmem:[#allocation5 + $0xa34] sm:$0xf0]  ;;  %v12860_v9 = vld [vmem:[#allocation5 + $0x578] sm:$0xf0] }
 0xb53   :  { %v13978_v8 = vld [vmem:[#allocation5 + $0xe18] sm:$0xf]  ;;  %v13467_v31 = vor.u32 %v15083_v20, %v13466_v33  ;;  %9599 = vmatpush.bf16.msrb.mxu3 %v13211_v18  ;;  %v12607_v33 = vor.u32 %v14863_v47, %v12604_v46  ;;  %v14791_v23 = vld [vmem:[#allocation5 + $0x11c] sm:$0xf]  ;;  %v12863_v19 = vor.u32 %v14927_v30, %v12860_v9  ;;  %v9432_v47 = vpop.f32.mrf.mxu2 }
 0xb54   :  { %v15211_v11 = vld [vmem:[#allocation5 + $0xe34] sm:$0xf0]  ;;  %v12316_v20 = vld [vmem:[#allocation5 + $0x138] sm:$0xf0] }
 0xb55   :  { %v13722_v49 = vld [vmem:[#allocation5 + $0xc18] sm:$0xf]  ;;  %v13979_v36 = vor.u32 %v15211_v11, %v13978_v8  ;;  %9612 = vmatpush.bf16.msra.mxu0 %v13467_v31  ;;  %v14855_v8 = vld [vmem:[#allocation5 + $0x31c] sm:$0xf]  ;;  %v12319_v16 = vor.u32 %v14791_v23, %v12316_v20  ;;  %v9752_v23 = vperm.slane %v16377_v22, 0  ;;  %v9421_v22 = vpop.f32.mrf.mxu1 }
 0xb56   :  { %v15147_v56 = vld [vmem:[#allocation5 + $0xc34] sm:$0xf0]  ;;  %9600 = vmatmul.bf16.vlgmr.msrb.gmra.mxu3 %v16416_v32  ;;  %v12572_v11 = vld [vmem:[#allocation5 + $0x338] sm:$0xf0] }
 0xb57   :  { %v13723_v62 = vor.u32 %v15147_v56, %v13722_v49  ;;  %9638 = vmatpush.bf16.msra.mxu2 %v13979_v36  ;;  %9644 = vmatpush.bf16.msra.mxu3 %v12415_v29  ;;  %v14983_v38 = vld [vmem:[#allocation5 + $0x71c] sm:$0xf]  ;;  %v12575_v60 = vor.u32 %v14855_v8, %v12572_v11  ;;  %v12831_v29 = vor.u32 %v14919_v39, %v12828_v43  ;;  %v9408_v11 = vpop.f32.mrf.mxu0 }
 0xb58   :  { %9613 = vmatmul.bf16.vlgmr.msra.gmra.mxu0 %v16424_v4  ;;  %v13087_v17 = vor.u32 %v14983_v38, %v13084_v58  ;;  %v14783_v18 = vld [vmem:[#allocation5 + $0xdc] sm:$0xf] }
 0xb59   :  { %9657 = vmatpush.bf16.msrb.mxu0 %v12671_v35  ;;  %9625 = vmatpush.bf16.msra.mxu1 %v13723_v62  ;;  %v12284_v31 = vld [vmem:[#allocation5 + $0xf8] sm:$0xf0] }
 0xb5a   :  { %9639 = vmatmul.bf16.vlgmr.msra.gmra.mxu2 %v16420_v7  ;;  %v14847_v49 = vld [vmem:[#allocation5 + $0x2dc] sm:$0xf]  ;;  %v12287_v41 = vor.u32 %v14783_v18, %v12284_v31 }
 0xb5b   :  { %9683 = vmatpush.bf16.msrb.mxu2 %v13183_v45  ;;  %9645 = vmatpush.bf16.msra.mxu3 %v12383_v59  ;;  %v12540_v56 = vld [vmem:[#allocation5 + $0x2f8] sm:$0xf0] }
 0xb5c   :  { %9626 = vmatmul.bf16.vlgmr.msra.gmra.mxu1 %v16429_v48  ;;  %v13052_v36 = vld [vmem:[#allocation5 + $0x6f8] sm:$0xf0]  ;;  %v12543_v57 = vor.u32 %v14847_v49, %v12540_v56 }
 0xb5d   :  { %9670 = vmatpush.bf16.msrb.mxu1 %v12927_v54  ;;  %9658 = vmatpush.bf16.msrb.mxu0 %v12639_v53  ;;  %v14911_v35 = vld [vmem:[#allocation5 + $0x4dc] sm:$0xf]  ;;  %v13055_v2 = vor.u32 %v14975_v37, %v13052_v36  ;;  %v9394_v53 = vadd.f32 %v9393_v61, %v16536_v13  ;;  %v9770_v13 = vperm.slane %v16522_v10, 4 }
 0xb5e   :  { %v12796_v45 = vld [vmem:[#allocation5 + $0x4f8] sm:$0xf0] }
 0xb5f   :  { %9684 = vmatpush.bf16.msrb.mxu2 %v13151_v1  ;;  %9646 = vmatpush.bf16.msra.mxu3 %v12351_v28  ;;  %v14775_v50 = vld [vmem:[#allocation5 + $0x9c] sm:$0xf]  ;;  %v12799_v27 = vor.u32 %v14911_v35, %v12796_v45  ;;  %v9407_v30 = vadd.f32 %v9406_v44, %v9394_v53  ;;  %v9395_v45 = vpop.f32.mrf.mxu3  ;;  %v9804_v53 = vperm.slane %v16525_v5, 4 }
 0xb60   :  { %v12252_v62 = vld [vmem:[#allocation5 + $0xb8] sm:$0xf0] }
 0xb61   :  { %9671 = vmatpush.bf16.msrb.mxu1 %v12895_v15  ;;  %9659 = vmatpush.bf16.msrb.mxu0 %v12607_v33  ;;  %v14839_v21 = vld [vmem:[#allocation5 + $0x29c] sm:$0xf]  ;;  %v12255_v1 = vor.u32 %v14775_v50, %v12252_v62  ;;  %v9420_v38 = vadd.f32 %v9419_v52, %v9407_v30  ;;  %v9434_v52 = vpop.f32.mrf.mxu2 }
 0xb62   :  { %v12508_v12 = vld [vmem:[#allocation5 + $0x2b8] sm:$0xf0] }
 0xb63   :  { %9685 = vmatpush.bf16.msrb.mxu2 %v13119_v0  ;;  %9647 = vmatpush.bf16.msra.mxu3 %v12319_v16  ;;  %v14967_v54 = vld [vmem:[#allocation5 + $0x69c] sm:$0xf]  ;;  %v12511_v46 = vor.u32 %v14839_v21, %v12508_v12  ;;  %v9433_v49 = vadd.f32 %v9432_v47, %v9420_v38 }
 0xb64   :  { %v13020_v59 = vld [vmem:[#allocation5 + $0x6b8] sm:$0xf0] }
 0xb65   :  { %9672 = vmatpush.bf16.msrb.mxu1 %v12863_v19  ;;  %9660 = vmatpush.bf16.msrb.mxu0 %v12575_v60  ;;  %v14903_v6 = vld [vmem:[#allocation5 + $0x49c] sm:$0xf]  ;;  %v13023_v26 = vor.u32 %v14967_v54, %v13020_v59 }
 0xb66   :  { %v12764_v25 = vld [vmem:[#allocation5 + $0x4b8] sm:$0xf0] }
 0xb67   :  { %9686 = vmatpush.bf16.msrb.mxu2 %v13087_v17  ;;  %9648 = vmatpush.bf16.msra.mxu3 %v12287_v41  ;;  %v14767_v63 = vld [vmem:[#allocation5 + $0x5c] sm:$0xf]  ;;  %v12767_v20 = vor.u32 %v14903_v6, %v12764_v25 }
 0xb68   :  { %v12220_v15 = vld [vmem:[#allocation5 + $0x78] sm:$0xf0] }
 0xb69   :  { %9673 = vmatpush.bf16.msrb.mxu1 %v12831_v29  ;;  %9661 = vmatpush.bf16.msrb.mxu0 %v12543_v57  ;;  %v14831_v28 = vld [vmem:[#allocation5 + $0x25c] sm:$0xf]  ;;  %v12223_v58 = vor.u32 %v14767_v63, %v12220_v15  ;;  %v9760_v57 = vadd.f32 %v9752_v23, %v9433_v49 }
 0xb6a   :  { %v12476_v9 = vld [vmem:[#allocation5 + $0x278] sm:$0xf0] }
 0xb6b   :  { %9687 = vmatpush.bf16.msrb.mxu2 %v13055_v2  ;;  %v14959_v33 = vld [vmem:[#allocation5 + $0x65c] sm:$0xf]  ;;  %9649 = vmatpush.bf16.msra.mxu3 %v12255_v1  ;;  %v12479_v43 = vor.u32 %v14831_v28, %v12476_v9 }
 0xb6c   :  { %v12988_v0 = vld [vmem:[#allocation5 + $0x678] sm:$0xf0] }
 0xb6d   :  { %9674 = vmatpush.bf16.msrb.mxu1 %v12799_v27  ;;  %v14895_v8 = vld [vmem:[#allocation5 + $0x45c] sm:$0xf]  ;;  %9662 = vmatpush.bf16.msrb.mxu0 %v12511_v46  ;;  %v12991_v60 = vor.u32 %v14959_v33, %v12988_v0  ;;  %v9786_v27 = vadd.f32 %v9770_v13, %v9760_v57 }
 0xb6e   :  { %v12732_v19 = vld [vmem:[#allocation5 + $0x478] sm:$0xf0] }
 0xb6f   :  { %v14759_v16 = vld [vmem:[#allocation5 + $0x1c] sm:$0xf]  ;;  %9688 = vmatpush.bf16.msrb.mxu2 %v13023_v26  ;;  %v12735_v29 = vor.u32 %v14895_v8, %v12732_v19  ;;  %9650 = vmatpush.bf16.msra.mxu3 %v12223_v58  ;;  %v9794_v28 = vmax.f32 %v9786_v27, 0.0 }
 0xb70   :  { %v12188_v39 = vld [vmem:[#allocation5 + $0x38] sm:$0xf0] }
 0xb71   :  { %v14823_v17 = vld [vmem:[#allocation5 + $0x21c] sm:$0xf]  ;;  %9675 = vmatpush.bf16.msrb.mxu1 %v12767_v20  ;;  %v12191_v2 = vor.u32 %v14759_v16, %v12188_v39  ;;  %9663 = vmatpush.bf16.msrb.mxu0 %v12479_v43  ;;  %v9820_v20 = vmul.f32 %v9804_v53, %v9794_v28 }
 0xb72   :  { %v12444_v18 = vld [vmem:[#allocation5 + $0x238] sm:$0xf0] }
 0xb73   :  { %v14951_v31 = vld [vmem:[#allocation5 + $0x61c] sm:$0xf]  ;;  %9689 = vmatpush.bf16.msrb.mxu2 %v12991_v60  ;;  %v12447_v12 = vor.u32 %v14823_v17, %v12444_v18  ;;  %9651 = vmatpush.bf16.msra.mxu3 %v12191_v2  ;;  %v9832_v17 = vsel %vm9824_vm5, %v9820_v20, 0.0 }
 0xb74   :  { %v12956_v56 = vld [vmem:[#allocation5 + $0x638] sm:$0xf0]  ;;  %v16551_v22 = vadd.f32 %v9832_v17, %v16533_v24 }
 0xb75   :  { %v15071_v37 = vld [vmem:[#allocation5 + $0x9dc] sm:$0xf]  ;;  %v12959_v54 = vor.u32 %v14951_v31, %v12956_v56  ;;  %9676 = vmatpush.bf16.msrb.mxu1 %v12735_v29  ;;  %9664 = vmatpush.bf16.msrb.mxu0 %v12447_v12 }
 0xb76   :  { %v13436_v36 = vld [vmem:[#allocation5 + $0x9f8] sm:$0xf0]  ;;  %9652 = vmatmul.bf16.vlgmr.msra.gmra.mxu3 %v16394_v3 }
 0xb77   :  { %v15135_v44 = vld [vmem:[#allocation5 + $0xbdc] sm:$0xf]  ;;  %v13439_v1 = vor.u32 %v15071_v37, %v13436_v36  ;;  %9690 = vmatpush.bf16.msrb.mxu2 %v12959_v54 }
 0xb78   :  { %v13692_v41 = vld [vmem:[#allocation5 + $0xbf8] sm:$0xf0]  ;;  %9665 = vmatmul.bf16.vlgmr.msrb.gmra.mxu0 %v16402_v55 }
 0xb79   :  { %v15263_v35 = vld [vmem:[#allocation5 + $0xfdc] sm:$0xf]  ;;  %v13695_v6 = vor.u32 %v15135_v44, %v13692_v41  ;;  %9696 = vmatpush.bf16.msrb.mxu3 %v13439_v1 }
 0xb7a   :  { %v14204_v50 = vld [vmem:[#allocation5 + $0xff8] sm:$0xf0]  ;;  %9691 = vmatmul.bf16.vlgmr.msrb.gmra.mxu2 %v16398_v40 }
 0xb7b   :  { %v14887_v62 = vld [vmem:[#allocation5 + $0x41c] sm:$0xf]  ;;  %v14207_v47 = vor.u32 %v15263_v35, %v14204_v50  ;;  %9709 = vmatpush.bf16.msra.mxu0 %v13695_v6 }
 0xb7c   :  { %v12700_v21 = vld [vmem:[#allocation5 + $0x438] sm:$0xf0] }
 0xb7d   :  { %v15199_v59 = vld [vmem:[#allocation5 + $0xddc] sm:$0xf]  ;;  %v12703_v46 = vor.u32 %v14887_v62, %v12700_v21  ;;  %9735 = vmatpush.bf16.msra.mxu2 %v14207_v47 }
 0xb7e   :  { %v13948_v61 = vld [vmem:[#allocation5 + $0xdf8] sm:$0xf0] }
 0xb7f   :  { %v15063_v25 = vld [vmem:[#allocation5 + $0x99c] sm:$0xf]  ;;  %v13951_v30 = vor.u32 %v15199_v59, %v13948_v61  ;;  %9677 = vmatpush.bf16.msrb.mxu1 %v12703_v46  ;;  %v9458_v59 = vpop.f32.mrf.mxu0 }
 0xb80   :  { %v13404_v26 = vld [vmem:[#allocation5 + $0x9b8] sm:$0xf0] }
 0xb81   :  { %v15127_v63 = vld [vmem:[#allocation5 + $0xb9c] sm:$0xf]  ;;  %v13407_v13 = vor.u32 %v15063_v25, %v13404_v26  ;;  %v9471_v25 = vpop.f32.mrf.mxu1 }
 0xb82   :  { %v13660_v15 = vld [vmem:[#allocation5 + $0xbb8] sm:$0xf0]  ;;  %9678 = vmatmul.bf16.vlgmr.msrb.gmra.mxu1 %v16406_v42 }
 0xb83   :  { %v15255_v9 = vld [vmem:[#allocation5 + $0xf9c] sm:$0xf]  ;;  %v13663_v8 = vor.u32 %v15127_v63, %v13660_v15  ;;  %9722 = vmatpush.bf16.msra.mxu1 %v13951_v30  ;;  %9697 = vmatpush.bf16.msrb.mxu3 %v13407_v13 }
 0xb84   :  { %v14172_v33 = vld [vmem:[#allocation5 + $0xfb8] sm:$0xf0] }
 0xb85   :  { %v15191_v0 = vld [vmem:[#allocation5 + $0xd9c] sm:$0xf]  ;;  %v14175_v38 = vor.u32 %v15255_v9, %v14172_v33  ;;  %9710 = vmatpush.bf16.msra.mxu0 %v13663_v8 }
 0xb86   :  { %v13916_v23 = vld [vmem:[#allocation5 + $0xdb8] sm:$0xf0] }
 0xb87   :  { %v15055_v11 = vld [vmem:[#allocation5 + $0x95c] sm:$0xf]  ;;  %v13919_v39 = vor.u32 %v15191_v0, %v13916_v23  ;;  %9736 = vmatpush.bf16.msra.mxu2 %v14175_v38  ;;  %v9445_v0 = vpop.f32.mrf.mxu3 }
 0xb88   :  { %v13372_v58 = vld [vmem:[#allocation5 + $0x978] sm:$0xf0]  ;;  %v9459_v8 = vadd.f32 %v9458_v59, %v9445_v0 }
 0xb89   :  { %v15119_v19 = vld [vmem:[#allocation5 + $0xb5c] sm:$0xf]  ;;  %v13375_v49 = vor.u32 %v15055_v11, %v13372_v58  ;;  %9723 = vmatpush.bf16.msra.mxu1 %v13919_v39  ;;  %v9484_v11 = vpop.f32.mrf.mxu2 }
 0xb8a   :  { %v13628_v16 = vld [vmem:[#allocation5 + $0xb78] sm:$0xf0]  ;;  %v9472_v17 = vadd.f32 %v9471_v25, %v9459_v8 }
 0xb8b   :  { %v15247_v43 = vld [vmem:[#allocation5 + $0xf5c] sm:$0xf]  ;;  %v13631_v56 = vor.u32 %v15119_v19, %v13628_v16  ;;  %9698 = vmatpush.bf16.msrb.mxu3 %v13375_v49 }
 0xb8c   :  { %v14140_v60 = vld [vmem:[#allocation5 + $0xf78] sm:$0xf0] }
 0xb8d   :  { %v15183_v18 = vld [vmem:[#allocation5 + $0xd5c] sm:$0xf]  ;;  %v14143_v3 = vor.u32 %v15247_v43, %v14140_v60  ;;  %9711 = vmatpush.bf16.msra.mxu0 %v13631_v56 }
 0xb8e   :  { %v13884_v31 = vld [vmem:[#allocation5 + $0xd78] sm:$0xf0] }
 0xb8f   :  { %v15047_v37 = vld [vmem:[#allocation5 + $0x91c] sm:$0xf]  ;;  %v13887_v41 = vor.u32 %v15183_v18, %v13884_v31  ;;  %9737 = vmatpush.bf16.msra.mxu2 %v14143_v3  ;;  %v9460_v18 = vpop.f32.mrf.mxu0 }
 0xb90   :  { %v13340_v36 = vld [vmem:[#allocation5 + $0x938] sm:$0xf0] }
 0xb91   :  { %v15111_v29 = vld [vmem:[#allocation5 + $0xb1c] sm:$0xf]  ;;  %v13343_v24 = vor.u32 %v15047_v37, %v13340_v36  ;;  %9724 = vmatpush.bf16.msra.mxu1 %v13887_v41  ;;  %v9485_v36 = vadd.f32 %v9484_v11, %v9472_v17 }
 0xb92   :  { %v13596_v44 = vld [vmem:[#allocation5 + $0xb38] sm:$0xf0] }
 0xb93   :  { %v15239_v40 = vld [vmem:[#allocation5 + $0xf1c] sm:$0xf]  ;;  %v13599_v57 = vor.u32 %v15111_v29, %v13596_v44  ;;  %9699 = vmatpush.bf16.msrb.mxu3 %v13343_v24  ;;  %v9473_v29 = vpop.f32.mrf.mxu1 }
 0xb94   :  { %v14108_v35 = vld [vmem:[#allocation5 + $0xf38] sm:$0xf0] }
 0xb95   :  { %v15175_v55 = vld [vmem:[#allocation5 + $0xd1c] sm:$0xf]  ;;  %v14111_v50 = vor.u32 %v15239_v40, %v14108_v35  ;;  %9712 = vmatpush.bf16.msra.mxu0 %v13599_v57 }
 0xb96   :  { %v13852_v45 = vld [vmem:[#allocation5 + $0xd38] sm:$0xf0] }
 0xb97   :  { %v15039_v2 = vld [vmem:[#allocation5 + $0x8dc] sm:$0xf]  ;;  %v13855_v12 = vor.u32 %v15175_v55, %v13852_v45  ;;  %9738 = vmatpush.bf16.msra.mxu2 %v14111_v50  ;;  %v9447_v50 = vpop.f32.mrf.mxu3 }
 0xb98   :  { %v13308_v62 = vld [vmem:[#allocation5 + $0x8f8] sm:$0xf0] }
 0xb99   :  { %v15103_v21 = vld [vmem:[#allocation5 + $0xadc] sm:$0xf]  ;;  %v13311_v53 = vor.u32 %v15039_v2, %v13308_v62  ;;  %9725 = vmatpush.bf16.msra.mxu1 %v13855_v12 }
 0xb9a   :  { %v13564_v52 = vld [vmem:[#allocation5 + $0xaf8] sm:$0xf0] }
 0xb9b   :  { %v15231_v54 = vld [vmem:[#allocation5 + $0xedc] sm:$0xf]  ;;  %v13567_v1 = vor.u32 %v15103_v21, %v13564_v52  ;;  %9700 = vmatpush.bf16.msrb.mxu3 %v13311_v53  ;;  %v9486_v52 = vpop.f32.mrf.mxu2  ;;  %v9523_v59 = vpop.f32.mrf.mxu1 }
 0xb9c   :  { %v14076_v42 = vld [vmem:[#allocation5 + $0xef8] sm:$0xf0] }
 0xb9d   :  { %v15167_v61 = vld [vmem:[#allocation5 + $0xcdc] sm:$0xf]  ;;  %v14079_v47 = vor.u32 %v15231_v54, %v14076_v42  ;;  %9713 = vmatpush.bf16.msra.mxu0 %v13567_v1  ;;  %v9510_v42 = vpop.f32.mrf.mxu0 }
 0xb9e   :  { %v13820_v27 = vld [vmem:[#allocation5 + $0xcf8] sm:$0xf0] }
 0xb9f   :  { %v15031_v6 = vld [vmem:[#allocation5 + $0x89c] sm:$0xf]  ;;  %v13823_v15 = vor.u32 %v15167_v61, %v13820_v27  ;;  %9739 = vmatpush.bf16.msra.mxu2 %v14079_v47  ;;  %v9497_v61 = vpop.f32.mrf.mxu3 }
 0xba0   :  { %v13276_v46 = vld [vmem:[#allocation5 + $0x8b8] sm:$0xf0]  ;;  %v9498_v27 = vadd.f32 %v9497_v61, %v9485_v36 }
 0xba1   :  { %v15095_v26 = vld [vmem:[#allocation5 + $0xa9c] sm:$0xf]  ;;  %v13279_v23 = vor.u32 %v15031_v6, %v13276_v46  ;;  %9726 = vmatpush.bf16.msra.mxu1 %v13823_v15  ;;  %v9753_v46 = vperm.slane %v16390_v51, 0 }
 0xba2   :  { %v13532_v63 = vld [vmem:[#allocation5 + $0xab8] sm:$0xf0]  ;;  %v9511_v1 = vadd.f32 %v9510_v42, %v9498_v27 }
 0xba3   :  { %v15223_v28 = vld [vmem:[#allocation5 + $0xe9c] sm:$0xf]  ;;  %v13535_v20 = vor.u32 %v15095_v26, %v13532_v63  ;;  %9701 = vmatpush.bf16.msrb.mxu3 %v13279_v23  ;;  %v9536_v53 = vpop.f32.mrf.mxu2  ;;  %v9525_v47 = vpop.f32.mrf.mxu1 }
 0xba4   :  { %v14044_v30 = vld [vmem:[#allocation5 + $0xeb8] sm:$0xf0]  ;;  %v9524_v25 = vadd.f32 %v9523_v59, %v9511_v1 }
 0xba5   :  { %v15159_v9 = vld [vmem:[#allocation5 + $0xc9c] sm:$0xf]  ;;  %v14047_v38 = vor.u32 %v15223_v28, %v14044_v30  ;;  %9714 = vmatpush.bf16.msra.mxu0 %v13535_v20  ;;  %v9512_v6 = vpop.f32.mrf.mxu0 }
 0xba6   :  { %v13788_v33 = vld [vmem:[#allocation5 + $0xcb8] sm:$0xf0]  ;;  %v9537_v26 = vadd.f32 %v9536_v53, %v9524_v25 }
 0xba7   :  { %v15023_v13 = vld [vmem:[#allocation5 + $0x85c] sm:$0xf]  ;;  %v13791_v39 = vor.u32 %v15159_v9, %v13788_v33  ;;  %9740 = vmatpush.bf16.msra.mxu2 %v14047_v38  ;;  %v9499_v63 = vpop.f32.mrf.mxu3 }
 0xba8   :  { %v13244_v58 = vld [vmem:[#allocation5 + $0x878] sm:$0xf0] }
 0xba9   :  { %v15087_v19 = vld [vmem:[#allocation5 + $0xa5c] sm:$0xf]  ;;  %v13247_v56 = vor.u32 %v15023_v13, %v13244_v58  ;;  %9727 = vmatpush.bf16.msra.mxu1 %v13791_v39 }
 0xbaa   :  { %v13500_v16 = vld [vmem:[#allocation5 + $0xa78] sm:$0xf0] }
 0xbab   :  { %v15215_v43 = vld [vmem:[#allocation5 + $0xe5c] sm:$0xf]  ;;  %v13503_v37 = vor.u32 %v15087_v19, %v13500_v16  ;;  %9702 = vmatpush.bf16.msrb.mxu3 %v13247_v56  ;;  %v9538_v15 = vpop.f32.mrf.mxu2  ;;  %v9575_v23 = vpop.f32.mrf.mxu1  ;;  %v9754_v56 = vperm.slane %v16435_v14, 0 }
 0xbac   :  { %v14012_v60 = vld [vmem:[#allocation5 + $0xe78] sm:$0xf0] }
 0xbad   :  { %v15151_v31 = vld [vmem:[#allocation5 + $0xc5c] sm:$0xf]  ;;  %v14015_v44 = vor.u32 %v15215_v43, %v14012_v60  ;;  %9715 = vmatpush.bf16.msra.mxu0 %v13503_v37  ;;  %v9562_v0 = vpop.f32.mrf.mxu0 }
 0xbae   :  { %v13756_v49 = vld [vmem:[#allocation5 + $0xc78] sm:$0xf0] }
 0xbaf   :  { %v15015_v3 = vld [vmem:[#allocation5 + $0x81c] sm:$0xf]  ;;  %v13759_v55 = vor.u32 %v15151_v31, %v13756_v49  ;;  %9741 = vmatpush.bf16.msra.mxu2 %v14015_v44  ;;  %v9549_v20 = vpop.f32.mrf.mxu3 }
 0xbb0   :  { %v13212_v41 = vld [vmem:[#allocation5 + $0x838] sm:$0xf0]  ;;  %v9563_v13 = vadd.f32 %v9562_v0, %v9549_v20 }
 0xbb1   :  { %v15079_v40 = vld [vmem:[#allocation5 + $0xa1c] sm:$0xf]  ;;  %v13215_v62 = vor.u32 %v15015_v3, %v13212_v41  ;;  %9728 = vmatpush.bf16.msra.mxu1 %v13759_v55 }
 0xbb2   :  { %v13468_v35 = vld [vmem:[#allocation5 + $0xa38] sm:$0xf0]  ;;  %v9576_v8 = vadd.f32 %v9575_v23, %v9563_v13  ;;  %v15350_v13 = vld [vmem:[#allocation7] ss:$0 sm:$0xff] }
 0xbb3   :  { %v15207_v45 = vld [vmem:[#allocation5 + $0xe1c] sm:$0xf]  ;;  %v13471_v21 = vor.u32 %v15079_v40, %v13468_v35  ;;  %9703 = vmatpush.bf16.msrb.mxu3 %v13215_v62  ;;  %v9588_v51 = vpop.f32.mrf.mxu2  ;;  %v9577_v38 = vpop.f32.mrf.mxu1  ;;  %v9806_v35 = vperm.slane %v16525_v5, 6 }
 0xbb4   :  { %v13980_v24 = vld [vmem:[#allocation5 + $0xe38] sm:$0xf0] }
 0xbb5   :  { %v15143_v57 = vld [vmem:[#allocation5 + $0xc1c] sm:$0xf]  ;;  %v13983_v12 = vor.u32 %v15207_v45, %v13980_v24  ;;  %9716 = vmatpush.bf16.msra.mxu0 %v13471_v21  ;;  %v9564_v11 = vpop.f32.mrf.mxu0 }
 0xbb6   :  { %v13724_v2 = vld [vmem:[#allocation5 + $0xc38] sm:$0xf0]  ;;  %9704 = vmatmul.bf16.vlgmr.msrb.gmra.mxu3 %v16416_v32  ;;  %v9771_v32 = vperm.slane %v16522_v10, 5  ;;  %v9589_v10 = vadd.f32 %v9588_v51, %v9576_v8 }
 0xbb7   :  { %v13727_v54 = vor.u32 %v15143_v57, %v13724_v2  ;;  %9742 = vmatpush.bf16.msra.mxu2 %v13983_v12  ;;  %v9551_v58 = vpop.f32.mrf.mxu3  ;;  %v15357_v3 = vld [vmem:[#allocation25] sm:$0xff] }
 0xbb8   :  { %9717 = vmatmul.bf16.vlgmr.msra.gmra.mxu0 %v16424_v4  ;;  %v9761_v4 = vadd.f32 %v9753_v46, %v9537_v26  ;;  %v9772_v36 = vperm.slane %v15357_v3, 6 }
 0xbb9   :  { %9729 = vmatpush.bf16.msra.mxu1 %v13727_v54 }
 0xbba   :  { %9743 = vmatmul.bf16.vlgmr.msra.gmra.mxu2 %v16420_v7  ;;  %v9787_v7 = vadd.f32 %v9771_v32, %v9761_v4  ;;  %v9755_v32 = vperm.slane %v16448_v34, 0  ;;  %v9773_v4 = vperm.slane %v15357_v3, 7 }
 0xbbb   :  { %v9590_v19 = vpop.f32.mrf.mxu2 }
 0xbbc   :  { %9730 = vmatmul.bf16.vlgmr.msra.gmra.mxu1 %v16429_v48  ;;  %v9805_v48 = vperm.slane %v16525_v5, 5  ;;  %v9795_v28 = vmax.f32 %v9787_v7, 0.0 }
 0xbbe   :  { %v9821_v30 = vmul.f32 %v9805_v48, %v9795_v28 }
 0xbc0   :  { %v9834_v9 = vsel %vm9824_vm5, %v9821_v30, 0.0  ;;  %v15358_v30 = vld [vmem:[#allocation27] sm:$0xff] }
 0xbc1   :  { %v9835_v33 = vadd.f32 %v9834_v9, %v16551_v22  ;;  %v9807_v9 = vperm.slane %v15358_v30, 7 }
 0xbd5   :  { %v9614_v16 = vpop.f32.mrf.mxu0 }
 0xbd9   :  { %v9627_v39 = vpop.f32.mrf.mxu1  ;;  %v9601_v43 = vpop.f32.mrf.mxu3 }
 0xbda   :  { %v9602_v60 = vadd.f32 %v9601_v43, %v9589_v10 }
 0xbdc   :  { %v9615_v18 = vadd.f32 %v9614_v16, %v9602_v60 }
 0xbdd   :  { %v9640_v17 = vpop.f32.mrf.mxu2  ;;  %v9616_v31 = vpop.f32.mrf.mxu0 }
 0xbde   :  { %v9628_v49 = vadd.f32 %v9627_v39, %v9615_v18 }
 0xbe0   :  { %v9641_v37 = vadd.f32 %v9640_v17, %v9628_v49 }
 0xbe1   :  { %v9629_v22 = vpop.f32.mrf.mxu1  ;;  %v9603_v29 = vpop.f32.mrf.mxu3 }
 0xbe2   :  { %v9762_v44 = vadd.f32 %v9754_v56, %v9641_v37 }
 0xbe4   :  { %v9788_v40 = vadd.f32 %v9772_v36, %v9762_v44 }
 0xbe5   :  { %v9642_v41 = vpop.f32.mrf.mxu2 }
 0xbe6   :  { %v9796_v55 = vmax.f32 %v9788_v40, 0.0 }
 0xbe8   :  { %v9822_v45 = vmul.f32 %v9806_v35, %v9796_v55 }
 0xbea   :  { %v9836_v24 = vsel %vm9824_vm5, %v9822_v45, 0.0 }
 0xbeb   :  { %v9837_v57 = vadd.f32 %v9836_v24, %v9835_v33 }
 0xbf5   :  { %v9666_v2 = vpop.f32.mrf.mxu0 }
 0xbf9   :  { %v9653_v62 = vpop.f32.mrf.mxu3 }
 0xbfa   :  { %v9667_v42 = vadd.f32 %v9666_v2, %v9653_v62 }
 0xbfd   :  { %v9692_v21 = vpop.f32.mrf.mxu2  ;;  %v9668_v52 = vpop.f32.mrf.mxu0 }
 0xbff   :  { %v9679_v50 = vpop.f32.mrf.mxu1 }
 0xc00   :  { %v9680_v61 = vadd.f32 %v9679_v50, %v9667_v42 }
 0xc01   :  { %v9655_v12 = vpop.f32.mrf.mxu3 }
 0xc02   :  { %v9693_v53 = vadd.f32 %v9692_v21, %v9680_v61 }
 0xc05   :  { %v9694_v54 = vpop.f32.mrf.mxu2 }
 0xc07   :  { %v9681_v14 = vpop.f32.mrf.mxu1 }
 0xc35   :  { %v9718_v59 = vpop.f32.mrf.mxu0 }
 0xc39   :  { %v9731_v27 = vpop.f32.mrf.mxu1  ;;  %v9705_v1 = vpop.f32.mrf.mxu3 }
 0xc3a   :  { %v9706_v5 = vadd.f32 %v9705_v1, %v9693_v53 }
 0xc3c   :  { %v9719_v47 = vadd.f32 %v9718_v59, %v9706_v5 }
 0xc3d   :  { %v9744_v6 = vpop.f32.mrf.mxu2  ;;  %v9720_v25 = vpop.f32.mrf.mxu0 }
 0xc3e   :  { %v9732_v26 = vadd.f32 %v9731_v27, %v9719_v47 }
 0xc40   :  { %v9745_v63 = vadd.f32 %v9744_v6, %v9732_v26 }
 0xc41   :  { %v9733_v46 = vpop.f32.mrf.mxu1  ;;  %v9707_v15 = vpop.f32.mrf.mxu3 }
 0xc42   :  { %v9763_v7 = vadd.f32 %v9755_v32, %v9745_v63 }
 0xc44   :  { %v9789_v28 = vadd.f32 %v9773_v4, %v9763_v7 }
 0xc45   :  { %v9746_v48 = vpop.f32.mrf.mxu2 }
 0xc46   :  { %v9797_v33 = vmax.f32 %v9789_v28, 0.0 }
 0xc48   :  { %v9823_v0 = vmul.f32 %v9807_v9, %v9797_v33 }
 0xc4a   :  { %v9838_v23 = vsel %vm9824_vm5, %v9823_v0, 0.0 }
 0xc4b   :  { %v9839_v20 = vadd.f32 %v9838_v23, %v9837_v57 }
 0xc4d   :  { %9840 = vadd.xlane.f32.xlu0 %v9839_v20 }
 0xcc0   :  { %v9841_v51 = vpop.xlane.xlu0 %9840 }
 0xcc1   :  { %v9846_v8 = vadd.f32 %v15350_v13, %v9841_v51 }
 0xcc3   :  { %v9848_v34 = vsel %vm9847_vm6, %v9846_v8, -inf }
 0xcc4   :  { %v9849_v11 = vrot.slane %v9848_v34, 4 }
 0xcc6   :  { %v9850_v10 = vmax.f32 %v9848_v34, %v9849_v11 }
 0xcc8   :  { %v9851_v38 = vrot.slane %v9850_v10, 2 }
 0xcca   :  { %v9852_v58 = vmax.f32 %v9850_v10, %v9851_v38 }
 0xccc   :  { %v9853_v19 = vrot.slane %v9852_v58, 1 }
 0xcce   :  { %v9854_v16 = vmax.f32 %v9852_v58, %v9853_v19 }
 0xcd0   :  { %v9855_v39 = vsub.f32 %v9846_v8, %v9854_v16 }
 0xcd2   :  { %v9856_v43 = vmul.f32 1.442695, %v9855_v39 }
 0xcd4   :  { %15351 = vpow2.f32 %v9856_v43 }
 0xcda   :  { %v15352_v60 = vpop.eup %15351 }
 0xcdb   :  { %v9858_v17 = vsel %vm9847_vm6, %v15352_v60, 0.0 }
 0xcdc   :  { %v9859_v18 = vrot.slane %v9858_v17, 4 }
 0xcde   :  { %v9860_v31 = vadd.f32 %v9859_v18, %v9858_v17 }
 0xce0   :  { %v9861_v49 = vrot.slane %v9860_v31, 2 }
 0xce2   :  { %v9862_v22 = vadd.f32 %v9861_v49, %v9860_v31 }
 0xce4   :  { %v9863_v56 = vrot.slane %v9862_v22, 1 }
 0xce6   :  { %v9864_v37 = vadd.f32 %v9863_v56, %v9862_v22 }
 0xce8   :  { %15353 = vrcp.f32 %v9864_v37  ;;  %v9876_v44 = vand.u32 2147483648, %v9864_v37  ;;  %v9874_v40 = vand.u32 2147483647, %v9864_v37  ;;  %vm9870_vm8 = vweird.f32 %v9864_v37 }
 0xcea   :  { %v9877_v55 = vor.u32 1.1754944e-38, %v9876_v44  ;;  %vm9875_vm11 = vcmp.eq.f32.partialorder %v9874_v40, 8.507059e+37 }
 0xcee   :  { %v15354_v3 = vpop.eup %15353 }
 0xcef   :  { %v9866_v36 = vmul.f32 %v15354_v3, %v9864_v37  ;;  %vm9871_vm7 = vweird.f32 %v15354_v3 }
 0xcf0   :  { %vm9872_vm10 = vmor %vm9870_vm8, %vm9871_vm7 }
 0xcf1   :  { %v9867_v29 = vsub.f32 1.0, %v9866_v36 }
 0xcf3   :  { %v9868_v41 = vmul.f32 %v15354_v3, %v9867_v29 }
 0xcf5   :  { %v9869_v35 = vadd.f32 %v15354_v3, %v9868_v41 }
 0xcf7   :  { %v9873_v45 = vsel %vm9872_vm10, %v15354_v3, %v9869_v35 }
 0xcf8   :  { %v9878_v24 = vsel %vm9875_vm11, %v9877_v55, %v9873_v45 }
 0xcf9   :  { %v9879_v57 = vmul.f32 %v15352_v60, %v9878_v24 }
 0xcfb   :  { %9880 = vst.msk [vmem:[%s16593_s19] sm:$0x3f] %vm9847_vm6, %v9879_v57 }
 0xcfc   :  { %9885 = vsyncpa [#allocation9], 1 }
 0xcfd   :  { %9886 = vsyncpa [#allocation11], 1 }
 0xcfe   :  { %9887 = vsyncpa [#allocation14], 1 }
 0xcff   :  { %9888 = vsyncpa [#allocation17], 1 }
 0xd00   :  { %9889 = vsyncpa [#allocation20], 1 }
 0xd01   :  { %9890 = vsyncpa [#allocation23], 1 }
 0xd02   :  { %9891 = vsyncpa [#allocation26], 1 }
 0xd03   :  { %9892 = vsyncmov [#allocation6] }
 0xd06   :  { %s9893_s0 = vpop.sfrf %9892 }
 0xd07   :  { %p14208_p0 = scmp.ne.s32.totalorder %s9893_s0, 0 }
 0xd09   :  { %9897 = shalt.err (%p14208_p0)  }
 0xd0a   :  { %9899 = vsyncmov [#allocation6 + $0x1] }
 0xd0d   :  { %s9900_s30 = vpop.sfrf %9899 }
 0xd0e   :  { %p14209_p1 = scmp.ne.s32.totalorder %s9900_s30, 0 }
 0xd10   :  { %9904 = shalt.err (%p14209_p1)  }
 0xd11   :  { %9906 = vsyncmov [#allocation6 + $0x2] }
 0xd14   :  { %s9907_s21 = vpop.sfrf %9906 }
 0xd15   :  { %p14210_p2 = scmp.ne.s32.totalorder %s9907_s21, 0 }
 0xd17   :  { %9911 = shalt.err (%p14210_p2)  }
 0xd18   :  { %9913 = vsyncmov [#allocation6 + $0x3] }
 0xd1b   :  { %s9914_s19 = vpop.sfrf %9913 }
 0xd1c   :  { %p14211_p3 = scmp.ne.s32.totalorder %s9914_s19, 0 }
 0xd1e   :  { %9918 = shalt.err (%p14211_p3)  }

</bundles_post_ra>
